<compile_context>
chip_gen: v7x
topology: tpu7x:2x2x1
jax: 0.10.0
libtpu: 0.0.40
codegen_flags: <defaults>
</compile_context>

<pallas_src>
from functools import partial

import jax
import jax.numpy as jnp
from jax.experimental import pallas as pl
from jax.experimental.pallas import tpu as pltpu

EPS = 1e-5          # nn.BatchNorm2d default eps
LANE = 128          # lane width; conv Cout is zero-padded to this
VMEM_LIMIT = 32 * 1024 * 1024


def _round_up(n, m):
    return ((n + m - 1) // m) * m


# ---------------------------------------------------------------- kernels ---

def conv_stats_kernel(cols_ref, w_ref, y_ref, stats_ref):
    """Pass 1: conv matmul (bf16 -> f32) + per-channel sum / sumsq accumulation.

    stats_ref (2, 128) is a resident accumulator block across the M-tile grid
    (constant index_map, "arbitrary" axis): row 0 = sum, row 1 = sum of squares.
    """
    t = pl.program_id(0)

    @pl.when(t == 0)
    def _():
        stats_ref[...] = jnp.zeros_like(stats_ref)

    y = jnp.dot(cols_ref[...], w_ref[...], preferred_element_type=jnp.float32)
    y_ref[...] = y
    stats_ref[0:1, :] = stats_ref[0:1, :] + jnp.sum(y, axis=0, keepdims=True)
    stats_ref[1:2, :] = stats_ref[1:2, :] + jnp.sum(y * y, axis=0, keepdims=True)


def bn_relu_kernel(y_ref, stats_ref, gamma_ref, beta_ref, out_ref, *, m_true):
    """Pass 2: training-mode BatchNorm (batch stats, biased var) + ReLU, bf16 out."""
    inv_m = 1.0 / m_true
    mean = stats_ref[0:1, :] * inv_m
    var = jnp.maximum(stats_ref[1:2, :] * inv_m - mean * mean, 0.0)
    scale = gamma_ref[...] * jax.lax.rsqrt(var + EPS)
    shift = beta_ref[...] - mean * scale
    out_ref[...] = jnp.maximum(y_ref[...] * scale + shift, 0.0).astype(out_ref.dtype)


def mlp_kernel(x_ref, w1_ref, b1_ref, w2_ref, b2_ref, out_ref):
    """Fused head: relu(x @ W1 + b1) @ W2 + b2 (bf16 matmuls, f32 accumulate)."""
    h = jnp.dot(x_ref[...], w1_ref[...], preferred_element_type=jnp.float32)
    h = jnp.maximum(h + b1_ref[...], 0.0).astype(jnp.bfloat16)
    out_ref[...] = (jnp.dot(h, w2_ref[...], preferred_element_type=jnp.float32)
                    + b2_ref[...])


# ------------------------------------------------------------------- glue ---

def im2col_nhwc(x, kh, kw, stride):
    """x: (B, H, W, C) -> (B*OH*OW, kh*kw*C); column order (kh, kw, C)."""
    # TODO(synk): the conv1 gather could be moved in-kernel (shift-and-accumulate)
    # to cut the ~3.6x HBM inflation further; kept in XLA here (simple strided
    # slices + lane-axis concat, no 6-D transpose).
    B, H, W, C = x.shape
    OH = (H - kh) // stride + 1
    OW = (W - kw) // stride + 1
    patches = []
    for i in range(kh):
        for j in range(kw):
            patches.append(x[:, i:i + stride * OH:stride,
                              j:j + stride * OW:stride, :])  # (B, OH, OW, C)
    cols = jnp.concatenate(patches, axis=-1)                  # (B, OH, OW, kh*kw*C)
    return cols.reshape(B * OH * OW, kh * kw * C), OH, OW


def conv_bn_relu_layer(x_nhwc, w_mat, gamma, beta, kh, kw, stride, cout):
    """One Conv2d(no-bias-needed) + BatchNorm2d(train) + ReLU layer, NHWC in/out."""
    B = x_nhwc.shape[0]
    cols, oh, ow = im2col_nhwc(x_nhwc, kh, kw, stride)
    M, K = cols.shape
    TM = min(512, _round_up(M, 8))
    M_pad = _round_up(M, TM)
    n_tiles = M_pad // TM
    cols = jnp.pad(cols, ((0, M_pad - M), (0, 0)))   # zero rows -> contribute 0 to stats

    y, stats = pl.pallas_call(
        conv_stats_kernel,
        out_shape=(jax.ShapeDtypeStruct((M_pad, LANE), jnp.float32),
                   jax.ShapeDtypeStruct((2, LANE), jnp.float32)),
        grid=(n_tiles,),
        in_specs=[pl.BlockSpec((TM, K), lambda t: (t, 0)),
                  pl.BlockSpec((K, LANE), lambda t: (0, 0))],
        out_specs=(pl.BlockSpec((TM, LANE), lambda t: (t, 0)),
                   pl.BlockSpec((2, LANE), lambda t: (0, 0))),
        compiler_params=pltpu.CompilerParams(
            dimension_semantics=("arbitrary",),
            vmem_limit_bytes=VMEM_LIMIT),
    )(cols, w_mat)

    act = pl.pallas_call(
        partial(bn_relu_kernel, m_true=float(M)),
        out_shape=jax.ShapeDtypeStruct((M_pad, LANE), jnp.bfloat16),
        grid=(n_tiles,),
        in_specs=[pl.BlockSpec((TM, LANE), lambda t: (t, 0)),
                  pl.BlockSpec((2, LANE), lambda t: (0, 0)),
                  pl.BlockSpec((1, LANE), lambda t: (0, 0)),
                  pl.BlockSpec((1, LANE), lambda t: (0, 0))],
        out_specs=pl.BlockSpec((TM, LANE), lambda t: (t, 0)),
        compiler_params=pltpu.CompilerParams(
            dimension_semantics=("parallel",),
            vmem_limit_bytes=VMEM_LIMIT),
    )(y, stats, gamma, beta)

    # Drop row padding and the zero-padded lanes, back to NHWC for the next layer.
    return act[:M, :cout].reshape(B, oh, ow, cout)


def fused_head(flat, w1, b1, w2, b2):
    B = flat.shape[0]
    return pl.pallas_call(
        mlp_kernel,
        out_shape=jax.ShapeDtypeStruct((B, LANE), jnp.float32),
        in_specs=[pl.BlockSpec(memory_space=pltpu.MemorySpace.VMEM)] * 5,
        out_specs=pl.BlockSpec(memory_space=pltpu.MemorySpace.VMEM),
        compiler_params=pltpu.CompilerParams(vmem_limit_bytes=VMEM_LIMIT),
    )(flat, w1, b1, w2, b2)


def conv_feature_extract(prep, x):
    """Forward pass. x: (B, 4, 84, 84) float32 (PyTorch NCHW convention)."""
    x = jnp.transpose(x, (0, 2, 3, 1)).astype(jnp.bfloat16)   # single NCHW->NHWC
    x = conv_bn_relu_layer(x, prep["w1"], prep["g1"], prep["be1"], 8, 8, 4, 32)
    x = conv_bn_relu_layer(x, prep["w2"], prep["g2"], prep["be2"], 4, 4, 2, 64)
    x = conv_bn_relu_layer(x, prep["w3"], prep["g3"], prep["be3"], 3, 3, 1, 64)
    B = x.shape[0]
    flat = x.reshape(B, -1)            # (B, 7*7*64) in (H, W, C) order
    out = fused_head(flat, prep["head_w"], prep["head_b"],
                     prep["final_w"], prep["final_b"])
    return out[:, :32]                 # drop the lane padding of the final layer


# ------------------------------------------------------------------ params ---

def init_params(key, num_input_channel=4):
    """PyTorch-layout params (uniform +/- 1/sqrt(fan_in); BN gamma=1, beta=0)."""
    ks = jax.random.split(key, 10)

    def u(k, shape, fan_in):
        bound = 1.0 / (fan_in ** 0.5)
        return jax.random.uniform(k, shape, jnp.float32, -bound, bound)

    c = num_input_channel
    return {
        "conv1_w": u(ks[0], (32, c, 8, 8), c * 8 * 8),
        "conv1_b": u(ks[1], (32,), c * 8 * 8),      # unused: cancelled by BN
        "bn1_g": jnp.ones((32,), jnp.float32),
        "bn1_b": jnp.zeros((32,), jnp.float32),
        "conv2_w": u(ks[2], (64, 32, 4, 4), 32 * 4 * 4),
        "conv2_b": u(ks[3], (64,), 32 * 4 * 4),     # unused: cancelled by BN
        "bn2_g": jnp.ones((64,), jnp.float32),
        "bn2_b": jnp.zeros((64,), jnp.float32),
        "conv3_w": u(ks[4], (64, 64, 3, 3), 64 * 3 * 3),
        "conv3_b": u(ks[5], (64,), 64 * 3 * 3),     # unused: cancelled by BN
        "bn3_g": jnp.ones((64,), jnp.float32),
        "bn3_b": jnp.zeros((64,), jnp.float32),
        "head_w": u(ks[6], (512, 3136), 3136),
        "head_b": u(ks[7], (512,), 3136),
        "final_w": u(ks[8], (32, 512), 512),
        "final_b": u(ks[9], (32,), 512),
    }


def prepare_params(p):
    """One-time weight prep (outside the per-call forward): reshape/transpose,
    zero-pad Cout to 128 lanes, permute the head to the NHWC flatten order,
    cast matmul weights to bf16."""
    def conv_w(w):                       # (Cout, Cin, KH, KW) -> (KH*KW*Cin, 128) bf16
        cout = w.shape[0]
        wm = jnp.transpose(w, (2, 3, 1, 0)).reshape(-1, cout)    # (kh*kw*Cin, Cout)
        wm = jnp.pad(wm, ((0, 0), (0, LANE - cout)))
        return wm.astype(jnp.bfloat16)

    def pad_row(v):                      # (C,) -> (1, 128) f32, zero padded
        return jnp.pad(v.astype(jnp.float32), (0, LANE - v.shape[0])).reshape(1, LANE)

    # head: permute columns from PyTorch (C, H, W) flatten order to NHWC (H, W, C)
    hw = p["head_w"].reshape(512, 64, 7, 7)
    hw = jnp.transpose(hw, (0, 2, 3, 1)).reshape(512, 3136).T     # (3136, 512)

    fw = p["final_w"].T                                            # (512, 32)
    fw = jnp.pad(fw, ((0, 0), (0, LANE - 32)))                     # (512, 128)

    return {
        "w1": conv_w(p["conv1_w"]), "g1": pad_row(p["bn1_g"]), "be1": pad_row(p["bn1_b"]),
        "w2": conv_w(p["conv2_w"]), "g2": pad_row(p["bn2_g"]), "be2": pad_row(p["bn2_b"]),
        "w3": conv_w(p["conv3_w"]), "g3": pad_row(p["bn3_g"]), "be3": pad_row(p["bn3_b"]),
        "head_w": hw.astype(jnp.bfloat16),
        "head_b": p["head_b"].astype(jnp.float32).reshape(1, 512),
        "final_w": fw.astype(jnp.bfloat16),
        "final_b": jnp.pad(p["final_b"].astype(jnp.float32), (0, LANE - 32)).reshape(1, LANE),
    }


# -------------------------------------------------------------------- main ---

if __name__ == "__main__":
    key = jax.random.PRNGKey(0)
    pkey, xkey = jax.random.split(key)
    params = init_params(pkey, num_input_channel=4)
    prep = prepare_params(params)          # one-time prep, outside the jitted forward

    # Batch=2, 4 stacked frames, 84x84 (forced by the Linear(3136, 512) head).
    x = jax.random.normal(xkey, (2, 4, 84, 84), jnp.float32)

    fwd = jax.jit(conv_feature_extract)
    out = jax.block_until_ready(fwd(prep, x))
    assert out.shape == (2, 32), out.shape
    assert bool(jnp.all(jnp.isfinite(out)))
    print("KERNEL_OK")
</pallas_src>

<mosaic_0001>
module attributes {stable_mosaic.version = 11 : i64} {
  func.func @conv_stats_kernel(%arg0: i32, %arg1: memref<512x256xbf16, #tpu.memory_space<vmem>>, %arg2: memref<256x128xbf16, #tpu.memory_space<vmem>>, %arg3: memref<512x128xf32, #tpu.memory_space<vmem>>, %arg4: memref<2x128xf32, #tpu.memory_space<vmem>>) attributes {dimension_semantics = [#tpu.dimension_semantics<arbitrary>], iteration_bounds = array<i64: 2>, scalar_prefetch = 0 : i64, scratch_operands = 0 : i64, tpu.core_type = #tpu.core_type<tc>, window_params = [{transform_indices = @transform_0, window_bounds = array<i64: 512, 256>}, {pipeline_mode = #tpu.pipeline_mode<synchronous>, transform_indices = @transform_1, window_bounds = array<i64: 256, 128>}, {transform_indices = @transform_2, window_bounds = array<i64: 512, 128>}, {pipeline_mode = #tpu.pipeline_mode<synchronous>, transform_indices = @transform_3, window_bounds = array<i64: 2, 128>}]} {
    %c0_i32 = arith.constant 0 : i32
    %0 = arith.cmpi eq, %arg0, %c0_i32 : i32
    %1 = arith.extui %0 : i1 to i32
    %c0_i32_0 = arith.constant 0 : i32
    %2 = arith.cmpi ne, %1, %c0_i32_0 : i32
    scf.if %2 {
      %cst_15 = arith.constant 0.000000e+00 : f32
      %18 = vector.broadcast %cst_15 : f32 to vector<2x128xf32>
      %c0_16 = arith.constant 0 : index
      %c0_17 = arith.constant 0 : index
      %19 = vector.load %arg4[%c0_16, %c0_17] : memref<2x128xf32, #tpu.memory_space<vmem>>, vector<2x128xf32>
      tpu.vector_store %arg4[%c0_16, %c0_17], %18 {strides = array<i32>} : memref<2x128xf32, #tpu.memory_space<vmem>>, vector<2x128xf32>,
    } else {
    }
    %c0 = arith.constant 0 : index
    %c0_1 = arith.constant 0 : index
    %3 = vector.load %arg1[%c0, %c0_1] : memref<512x256xbf16, #tpu.memory_space<vmem>>, vector<512x256xbf16>
    %c0_2 = arith.constant 0 : index
    %c0_3 = arith.constant 0 : index
    %4 = vector.load %arg2[%c0_2, %c0_3] : memref<256x128xbf16, #tpu.memory_space<vmem>>, vector<256x128xbf16>
    %cst = arith.constant dense<0.000000e+00> : vector<512x128xf32>
    %5 = tpu.matmul %3, %4, %cst {dimension_numbers = #tpu.dot_dimension_numbers<[1], [0], [0], [1], [0, 0, 1, 1], [], []>} : vector<512x256xbf16>, vector<256x128xbf16>, vector<512x128xf32> -> vector<512x128xf32>
    %c0_4 = arith.constant 0 : index
    %c0_5 = arith.constant 0 : index
    %6 = vector.load %arg3[%c0_4, %c0_5] : memref<512x128xf32, #tpu.memory_space<vmem>>, vector<512x128xf32>
    tpu.vector_store %arg3[%c0_4, %c0_5], %5 {strides = array<i32>} : memref<512x128xf32, #tpu.memory_space<vmem>>, vector<512x128xf32>,
    %c0_6 = arith.constant 0 : index
    %c0_7 = arith.constant 0 : index
    %7 = vector.load %arg4[%c0_6, %c0_7] : memref<2x128xf32, #tpu.memory_space<vmem>>, vector<1x128xf32>
    %cst_8 = arith.constant dense<0.000000e+00> : vector<128xf32>
    %8 = vector.multi_reduction <add>, %5, %cst_8 [0] : vector<512x128xf32> to vector<128xf32>
    %9 = vector.shape_cast %8 : vector<128xf32> to vector<1x128xf32>
    %10 = arith.addf %7, %9 : vector<1x128xf32>
    %c0_9 = arith.constant 0 : index
    %c0_10 = arith.constant 0 : index
    %11 = vector.load %arg4[%c0_9, %c0_10] : memref<2x128xf32, #tpu.memory_space<vmem>>, vector<1x128xf32>
    tpu.vector_store %arg4[%c0_9, %c0_10], %10 {strides = array<i32>} : memref<2x128xf32, #tpu.memory_space<vmem>>, vector<1x128xf32>,
    %c1 = arith.constant 1 : index
    %c0_11 = arith.constant 0 : index
    %12 = vector.load %arg4[%c1, %c0_11] : memref<2x128xf32, #tpu.memory_space<vmem>>, vector<1x128xf32>
    %13 = arith.mulf %5, %5 : vector<512x128xf32>
    %cst_12 = arith.constant dense<0.000000e+00> : vector<128xf32>
    %14 = vector.multi_reduction <add>, %13, %cst_12 [0] : vector<512x128xf32> to vector<128xf32>
    %15 = vector.shape_cast %14 : vector<128xf32> to vector<1x128xf32>
    %16 = arith.addf %12, %15 : vector<1x128xf32>
    %c1_13 = arith.constant 1 : index
    %c0_14 = arith.constant 0 : index
    %17 = vector.load %arg4[%c1_13, %c0_14] : memref<2x128xf32, #tpu.memory_space<vmem>>, vector<1x128xf32>
    tpu.vector_store %arg4[%c1_13, %c0_14], %16 {strides = array<i32>} : memref<2x128xf32, #tpu.memory_space<vmem>>, vector<1x128xf32>,
    return
  }
  func.func @transform_0(%arg0: i32) -> (i32, i32) {
    %c0_i32 = arith.constant 0 : i32
    %c0_i32_0 = arith.constant 0 : i32
    return %arg0, %c0_i32 : i32, i32
  }
  func.func @transform_1(%arg0: i32) -> (i32, i32) {
    %c0_i32 = arith.constant 0 : i32
    %c0_i32_0 = arith.constant 0 : i32
    %c0_i32_1 = arith.constant 0 : i32
    return %c0_i32, %c0_i32_0 : i32, i32
  }
  func.func @transform_2(%arg0: i32) -> (i32, i32) {
    %c0_i32 = arith.constant 0 : i32
    %c0_i32_0 = arith.constant 0 : i32
    return %arg0, %c0_i32 : i32, i32
  }
  func.func @transform_3(%arg0: i32) -> (i32, i32) {
    %c0_i32 = arith.constant 0 : i32
    %c0_i32_0 = arith.constant 0 : i32
    %c0_i32_1 = arith.constant 0 : i32
    return %c0_i32, %c0_i32_0 : i32, i32
  }
}

module attributes {stable_mosaic.version = 11 : i64} {
  func.func @bn_relu_kernel(%arg0: i32, %arg1: memref<512x128xf32, #tpu.memory_space<vmem>>, %arg2: memref<2x128xf32, #tpu.memory_space<vmem>>, %arg3: memref<1x128xf32, #tpu.memory_space<vmem>>, %arg4: memref<1x128xf32, #tpu.memory_space<vmem>>, %arg5: memref<512x128xbf16, #tpu.memory_space<vmem>>) attributes {dimension_semantics = [#tpu.dimension_semantics<parallel>], iteration_bounds = array<i64: 2>, scalar_prefetch = 0 : i64, scratch_operands = 0 : i64, tpu.core_type = #tpu.core_type<tc>, window_params = [{transform_indices = @transform_0, window_bounds = array<i64: 512, 128>}, {pipeline_mode = #tpu.pipeline_mode<synchronous>, transform_indices = @transform_1, window_bounds = array<i64: 2, 128>}, {pipeline_mode = #tpu.pipeline_mode<synchronous>, transform_indices = @transform_2, window_bounds = array<i64: 1, 128>}, {pipeline_mode = #tpu.pipeline_mode<synchronous>, transform_indices = @transform_3, window_bounds = array<i64: 1, 128>}, {transform_indices = @transform_4, window_bounds = array<i64: 512, 128>}]} {
    %c0 = arith.constant 0 : index
    %c0_0 = arith.constant 0 : index
    %0 = vector.load %arg2[%c0, %c0_0] : memref<2x128xf32, #tpu.memory_space<vmem>>, vector<1x128xf32>
    %cst = arith.constant 1.250000e-03 : f32
    %1 = vector.broadcast %cst : f32 to vector<1x128xf32>
    %2 = arith.mulf %0, %1 : vector<1x128xf32>
    %c1 = arith.constant 1 : index
    %c0_1 = arith.constant 0 : index
    %3 = vector.load %arg2[%c1, %c0_1] : memref<2x128xf32, #tpu.memory_space<vmem>>, vector<1x128xf32>
    %cst_2 = arith.constant 1.250000e-03 : f32
    %4 = vector.broadcast %cst_2 : f32 to vector<1x128xf32>
    %5 = arith.mulf %3, %4 : vector<1x128xf32>
    %6 = arith.mulf %2, %2 : vector<1x128xf32>
    %7 = arith.subf %5, %6 : vector<1x128xf32>
    %cst_3 = arith.constant 0.000000e+00 : f32
    %8 = vector.broadcast %cst_3 : f32 to vector<1x128xf32>
    %9 = arith.maximumf %7, %8 : vector<1x128xf32>
    %c0_4 = arith.constant 0 : index
    %c0_5 = arith.constant 0 : index
    %10 = vector.load %arg3[%c0_4, %c0_5] : memref<1x128xf32, #tpu.memory_space<vmem>>, vector<1x128xf32>
    %cst_6 = arith.constant 9.99999974E-6 : f32
    %11 = vector.broadcast %cst_6 : f32 to vector<1x128xf32>
    %12 = arith.addf %9, %11 : vector<1x128xf32>
    %13 = math.rsqrt %12 : vector<1x128xf32>
    %14 = arith.mulf %10, %13 : vector<1x128xf32>
    %c0_7 = arith.constant 0 : index
    %c0_8 = arith.constant 0 : index
    %15 = vector.load %arg4[%c0_7, %c0_8] : memref<1x128xf32, #tpu.memory_space<vmem>>, vector<1x128xf32>
    %16 = arith.mulf %2, %14 : vector<1x128xf32>
    %17 = arith.subf %15, %16 : vector<1x128xf32>
    %c0_9 = arith.constant 0 : index
    %c0_10 = arith.constant 0 : index
    %18 = vector.load %arg1[%c0_9, %c0_10] : memref<512x128xf32, #tpu.memory_space<vmem>>, vector<512x128xf32>
    %19 = vector.broadcast %14 : vector<1x128xf32> to vector<512x128xf32>
    %20 = arith.mulf %18, %19 : vector<512x128xf32>
    %21 = vector.broadcast %17 : vector<1x128xf32> to vector<512x128xf32>
    %22 = arith.addf %20, %21 : vector<512x128xf32>
    %cst_11 = arith.constant 0.000000e+00 : f32
    %23 = vector.broadcast %cst_11 : f32 to vector<512x128xf32>
    %24 = arith.maximumf %22, %23 : vector<512x128xf32>
    %25 = arith.truncf %24 : vector<512x128xf32> to vector<512x128xbf16>
    %c0_12 = arith.constant 0 : index
    %c0_13 = arith.constant 0 : index
    %26 = vector.load %arg5[%c0_12, %c0_13] : memref<512x128xbf16, #tpu.memory_space<vmem>>, vector<512x128xbf16>
    tpu.vector_store %arg5[%c0_12, %c0_13], %25 {strides = array<i32>} : memref<512x128xbf16, #tpu.memory_space<vmem>>, vector<512x128xbf16>,
    return
  }
  func.func @transform_0(%arg0: i32) -> (i32, i32) {
    %c0_i32 = arith.constant 0 : i32
    %c0_i32_0 = arith.constant 0 : i32
    return %arg0, %c0_i32 : i32, i32
  }
  func.func @transform_1(%arg0: i32) -> (i32, i32) {
    %c0_i32 = arith.constant 0 : i32
    %c0_i32_0 = arith.constant 0 : i32
    %c0_i32_1 = arith.constant 0 : i32
    return %c0_i32, %c0_i32_0 : i32, i32
  }
  func.func @transform_2(%arg0: i32) -> (i32, i32) {
    %c0_i32 = arith.constant 0 : i32
    %c0_i32_0 = arith.constant 0 : i32
    %c0_i32_1 = arith.constant 0 : i32
    return %c0_i32, %c0_i32_0 : i32, i32
  }
  func.func @transform_3(%arg0: i32) -> (i32, i32) {
    %c0_i32 = arith.constant 0 : i32
    %c0_i32_0 = arith.constant 0 : i32
    %c0_i32_1 = arith.constant 0 : i32
    return %c0_i32, %c0_i32_0 : i32, i32
  }
  func.func @transform_4(%arg0: i32) -> (i32, i32) {
    %c0_i32 = arith.constant 0 : i32
    %c0_i32_0 = arith.constant 0 : i32
    return %arg0, %c0_i32 : i32, i32
  }
}

module attributes {stable_mosaic.version = 11 : i64} {
  func.func @conv_stats_kernel(%arg0: i32, %arg1: memref<168x512xbf16, #tpu.memory_space<vmem>>, %arg2: memref<512x128xbf16, #tpu.memory_space<vmem>>, %arg3: memref<168x128xf32, #tpu.memory_space<vmem>>, %arg4: memref<2x128xf32, #tpu.memory_space<vmem>>) attributes {dimension_semantics = [#tpu.dimension_semantics<arbitrary>], iteration_bounds = array<i64: 1>, scalar_prefetch = 0 : i64, scratch_operands = 0 : i64, tpu.core_type = #tpu.core_type<tc>, window_params = [{transform_indices = @transform_0, window_bounds = array<i64: 168, 512>}, {pipeline_mode = #tpu.pipeline_mode<synchronous>, transform_indices = @transform_1, window_bounds = array<i64: 512, 128>}, {transform_indices = @transform_2, window_bounds = array<i64: 168, 128>}, {pipeline_mode = #tpu.pipeline_mode<synchronous>, transform_indices = @transform_3, window_bounds = array<i64: 2, 128>}]} {
    %c0_i32 = arith.constant 0 : i32
    %0 = arith.cmpi eq, %arg0, %c0_i32 : i32
    %1 = arith.extui %0 : i1 to i32
    %c0_i32_0 = arith.constant 0 : i32
    %2 = arith.cmpi ne, %1, %c0_i32_0 : i32
    scf.if %2 {
      %cst_15 = arith.constant 0.000000e+00 : f32
      %18 = vector.broadcast %cst_15 : f32 to vector<2x128xf32>
      %c0_16 = arith.constant 0 : index
      %c0_17 = arith.constant 0 : index
      %19 = vector.load %arg4[%c0_16, %c0_17] : memref<2x128xf32, #tpu.memory_space<vmem>>, vector<2x128xf32>
      tpu.vector_store %arg4[%c0_16, %c0_17], %18 {strides = array<i32>} : memref<2x128xf32, #tpu.memory_space<vmem>>, vector<2x128xf32>,
    } else {
    }
    %c0 = arith.constant 0 : index
    %c0_1 = arith.constant 0 : index
    %3 = vector.load %arg1[%c0, %c0_1] : memref<168x512xbf16, #tpu.memory_space<vmem>>, vector<168x512xbf16>
    %c0_2 = arith.constant 0 : index
    %c0_3 = arith.constant 0 : index
    %4 = vector.load %arg2[%c0_2, %c0_3] : memref<512x128xbf16, #tpu.memory_space<vmem>>, vector<512x128xbf16>
    %cst = arith.constant dense<0.000000e+00> : vector<168x128xf32>
    %5 = tpu.matmul %3, %4, %cst {dimension_numbers = #tpu.dot_dimension_numbers<[1], [0], [0], [1], [0, 0, 1, 1], [], []>} : vector<168x512xbf16>, vector<512x128xbf16>, vector<168x128xf32> -> vector<168x128xf32>
    %c0_4 = arith.constant 0 : index
    %c0_5 = arith.constant 0 : index
    %6 = vector.load %arg3[%c0_4, %c0_5] : memref<168x128xf32, #tpu.memory_space<vmem>>, vector<168x128xf32>
    tpu.vector_store %arg3[%c0_4, %c0_5], %5 {strides = array<i32>} : memref<168x128xf32, #tpu.memory_space<vmem>>, vector<168x128xf32>,
    %c0_6 = arith.constant 0 : index
    %c0_7 = arith.constant 0 : index
    %7 = vector.load %arg4[%c0_6, %c0_7] : memref<2x128xf32, #tpu.memory_space<vmem>>, vector<1x128xf32>
    %cst_8 = arith.constant dense<0.000000e+00> : vector<128xf32>
    %8 = vector.multi_reduction <add>, %5, %cst_8 [0] : vector<168x128xf32> to vector<128xf32>
    %9 = vector.shape_cast %8 : vector<128xf32> to vector<1x128xf32>
    %10 = arith.addf %7, %9 : vector<1x128xf32>
    %c0_9 = arith.constant 0 : index
    %c0_10 = arith.constant 0 : index
    %11 = vector.load %arg4[%c0_9, %c0_10] : memref<2x128xf32, #tpu.memory_space<vmem>>, vector<1x128xf32>
    tpu.vector_store %arg4[%c0_9, %c0_10], %10 {strides = array<i32>} : memref<2x128xf32, #tpu.memory_space<vmem>>, vector<1x128xf32>,
    %c1 = arith.constant 1 : index
    %c0_11 = arith.constant 0 : index
    %12 = vector.load %arg4[%c1, %c0_11] : memref<2x128xf32, #tpu.memory_space<vmem>>, vector<1x128xf32>
    %13 = arith.mulf %5, %5 : vector<168x128xf32>
    %cst_12 = arith.constant dense<0.000000e+00> : vector<128xf32>
    %14 = vector.multi_reduction <add>, %13, %cst_12 [0] : vector<168x128xf32> to vector<128xf32>
    %15 = vector.shape_cast %14 : vector<128xf32> to vector<1x128xf32>
    %16 = arith.addf %12, %15 : vector<1x128xf32>
    %c1_13 = arith.constant 1 : index
    %c0_14 = arith.constant 0 : index
    %17 = vector.load %arg4[%c1_13, %c0_14] : memref<2x128xf32, #tpu.memory_space<vmem>>, vector<1x128xf32>
    tpu.vector_store %arg4[%c1_13, %c0_14], %16 {strides = array<i32>} : memref<2x128xf32, #tpu.memory_space<vmem>>, vector<1x128xf32>,
    return
  }
  func.func @transform_0(%arg0: i32) -> (i32, i32) {
    %c0_i32 = arith.constant 0 : i32
    %c0_i32_0 = arith.constant 0 : i32
    return %arg0, %c0_i32 : i32, i32
  }
  func.func @transform_1(%arg0: i32) -> (i32, i32) {
    %c0_i32 = arith.constant 0 : i32
    %c0_i32_0 = arith.constant 0 : i32
    %c0_i32_1 = arith.constant 0 : i32
    return %c0_i32, %c0_i32_0 : i32, i32
  }
  func.func @transform_2(%arg0: i32) -> (i32, i32) {
    %c0_i32 = arith.constant 0 : i32
    %c0_i32_0 = arith.constant 0 : i32
    return %arg0, %c0_i32 : i32, i32
  }
  func.func @transform_3(%arg0: i32) -> (i32, i32) {
    %c0_i32 = arith.constant 0 : i32
    %c0_i32_0 = arith.constant 0 : i32
    %c0_i32_1 = arith.constant 0 : i32
    return %c0_i32, %c0_i32_0 : i32, i32
  }
}

module attributes {stable_mosaic.version = 11 : i64} {
  func.func @bn_relu_kernel(%arg0: i32, %arg1: memref<168x128xf32, #tpu.memory_space<vmem>>, %arg2: memref<2x128xf32, #tpu.memory_space<vmem>>, %arg3: memref<1x128xf32, #tpu.memory_space<vmem>>, %arg4: memref<1x128xf32, #tpu.memory_space<vmem>>, %arg5: memref<168x128xbf16, #tpu.memory_space<vmem>>) attributes {dimension_semantics = [#tpu.dimension_semantics<parallel>], iteration_bounds = array<i64: 1>, scalar_prefetch = 0 : i64, scratch_operands = 0 : i64, tpu.core_type = #tpu.core_type<tc>, window_params = [{transform_indices = @transform_0, window_bounds = array<i64: 168, 128>}, {pipeline_mode = #tpu.pipeline_mode<synchronous>, transform_indices = @transform_1, window_bounds = array<i64: 2, 128>}, {pipeline_mode = #tpu.pipeline_mode<synchronous>, transform_indices = @transform_2, window_bounds = array<i64: 1, 128>}, {pipeline_mode = #tpu.pipeline_mode<synchronous>, transform_indices = @transform_3, window_bounds = array<i64: 1, 128>}, {transform_indices = @transform_4, window_bounds = array<i64: 168, 128>}]} {
    %c0 = arith.constant 0 : index
    %c0_0 = arith.constant 0 : index
    %0 = vector.load %arg2[%c0, %c0_0] : memref<2x128xf32, #tpu.memory_space<vmem>>, vector<1x128xf32>
    %cst = arith.constant 0.00617283955 : f32
    %1 = vector.broadcast %cst : f32 to vector<1x128xf32>
    %2 = arith.mulf %0, %1 : vector<1x128xf32>
    %c1 = arith.constant 1 : index
    %c0_1 = arith.constant 0 : index
    %3 = vector.load %arg2[%c1, %c0_1] : memref<2x128xf32, #tpu.memory_space<vmem>>, vector<1x128xf32>
    %cst_2 = arith.constant 0.00617283955 : f32
    %4 = vector.broadcast %cst_2 : f32 to vector<1x128xf32>
    %5 = arith.mulf %3, %4 : vector<1x128xf32>
    %6 = arith.mulf %2, %2 : vector<1x128xf32>
    %7 = arith.subf %5, %6 : vector<1x128xf32>
    %cst_3 = arith.constant 0.000000e+00 : f32
    %8 = vector.broadcast %cst_3 : f32 to vector<1x128xf32>
    %9 = arith.maximumf %7, %8 : vector<1x128xf32>
    %c0_4 = arith.constant 0 : index
    %c0_5 = arith.constant 0 : index
    %10 = vector.load %arg3[%c0_4, %c0_5] : memref<1x128xf32, #tpu.memory_space<vmem>>, vector<1x128xf32>
    %cst_6 = arith.constant 9.99999974E-6 : f32
    %11 = vector.broadcast %cst_6 : f32 to vector<1x128xf32>
    %12 = arith.addf %9, %11 : vector<1x128xf32>
    %13 = math.rsqrt %12 : vector<1x128xf32>
    %14 = arith.mulf %10, %13 : vector<1x128xf32>
    %c0_7 = arith.constant 0 : index
    %c0_8 = arith.constant 0 : index
    %15 = vector.load %arg4[%c0_7, %c0_8] : memref<1x128xf32, #tpu.memory_space<vmem>>, vector<1x128xf32>
    %16 = arith.mulf %2, %14 : vector<1x128xf32>
    %17 = arith.subf %15, %16 : vector<1x128xf32>
    %c0_9 = arith.constant 0 : index
    %c0_10 = arith.constant 0 : index
    %18 = vector.load %arg1[%c0_9, %c0_10] : memref<168x128xf32, #tpu.memory_space<vmem>>, vector<168x128xf32>
    %19 = vector.broadcast %14 : vector<1x128xf32> to vector<168x128xf32>
    %20 = arith.mulf %18, %19 : vector<168x128xf32>
    %21 = vector.broadcast %17 : vector<1x128xf32> to vector<168x128xf32>
    %22 = arith.addf %20, %21 : vector<168x128xf32>
    %cst_11 = arith.constant 0.000000e+00 : f32
    %23 = vector.broadcast %cst_11 : f32 to vector<168x128xf32>
    %24 = arith.maximumf %22, %23 : vector<168x128xf32>
    %25 = arith.truncf %24 : vector<168x128xf32> to vector<168x128xbf16>
    %c0_12 = arith.constant 0 : index
    %c0_13 = arith.constant 0 : index
    %26 = vector.load %arg5[%c0_12, %c0_13] : memref<168x128xbf16, #tpu.memory_space<vmem>>, vector<168x128xbf16>
    tpu.vector_store %arg5[%c0_12, %c0_13], %25 {strides = array<i32>} : memref<168x128xbf16, #tpu.memory_space<vmem>>, vector<168x128xbf16>,
    return
  }
  func.func @transform_0(%arg0: i32) -> (i32, i32) {
    %c0_i32 = arith.constant 0 : i32
    %c0_i32_0 = arith.constant 0 : i32
    return %arg0, %c0_i32 : i32, i32
  }
  func.func @transform_1(%arg0: i32) -> (i32, i32) {
    %c0_i32 = arith.constant 0 : i32
    %c0_i32_0 = arith.constant 0 : i32
    %c0_i32_1 = arith.constant 0 : i32
    return %c0_i32, %c0_i32_0 : i32, i32
  }
  func.func @transform_2(%arg0: i32) -> (i32, i32) {
    %c0_i32 = arith.constant 0 : i32
    %c0_i32_0 = arith.constant 0 : i32
    %c0_i32_1 = arith.constant 0 : i32
    return %c0_i32, %c0_i32_0 : i32, i32
  }
  func.func @transform_3(%arg0: i32) -> (i32, i32) {
    %c0_i32 = arith.constant 0 : i32
    %c0_i32_0 = arith.constant 0 : i32
    %c0_i32_1 = arith.constant 0 : i32
    return %c0_i32, %c0_i32_0 : i32, i32
  }
  func.func @transform_4(%arg0: i32) -> (i32, i32) {
    %c0_i32 = arith.constant 0 : i32
    %c0_i32_0 = arith.constant 0 : i32
    return %arg0, %c0_i32 : i32, i32
  }
}

module attributes {stable_mosaic.version = 11 : i64} {
  func.func @conv_stats_kernel(%arg0: i32, %arg1: memref<104x576xbf16, #tpu.memory_space<vmem>>, %arg2: memref<576x128xbf16, #tpu.memory_space<vmem>>, %arg3: memref<104x128xf32, #tpu.memory_space<vmem>>, %arg4: memref<2x128xf32, #tpu.memory_space<vmem>>) attributes {dimension_semantics = [#tpu.dimension_semantics<arbitrary>], iteration_bounds = array<i64: 1>, scalar_prefetch = 0 : i64, scratch_operands = 0 : i64, tpu.core_type = #tpu.core_type<tc>, window_params = [{transform_indices = @transform_0, window_bounds = array<i64: 104, 576>}, {pipeline_mode = #tpu.pipeline_mode<synchronous>, transform_indices = @transform_1, window_bounds = array<i64: 576, 128>}, {transform_indices = @transform_2, window_bounds = array<i64: 104, 128>}, {pipeline_mode = #tpu.pipeline_mode<synchronous>, transform_indices = @transform_3, window_bounds = array<i64: 2, 128>}]} {
    %c0_i32 = arith.constant 0 : i32
    %0 = arith.cmpi eq, %arg0, %c0_i32 : i32
    %1 = arith.extui %0 : i1 to i32
    %c0_i32_0 = arith.constant 0 : i32
    %2 = arith.cmpi ne, %1, %c0_i32_0 : i32
    scf.if %2 {
      %cst_15 = arith.constant 0.000000e+00 : f32
      %18 = vector.broadcast %cst_15 : f32 to vector<2x128xf32>
      %c0_16 = arith.constant 0 : index
      %c0_17 = arith.constant 0 : index
      %19 = vector.load %arg4[%c0_16, %c0_17] : memref<2x128xf32, #tpu.memory_space<vmem>>, vector<2x128xf32>
      tpu.vector_store %arg4[%c0_16, %c0_17], %18 {strides = array<i32>} : memref<2x128xf32, #tpu.memory_space<vmem>>, vector<2x128xf32>,
    } else {
    }
    %c0 = arith.constant 0 : index
    %c0_1 = arith.constant 0 : index
    %3 = vector.load %arg1[%c0, %c0_1] : memref<104x576xbf16, #tpu.memory_space<vmem>>, vector<104x576xbf16>
    %c0_2 = arith.constant 0 : index
    %c0_3 = arith.constant 0 : index
    %4 = vector.load %arg2[%c0_2, %c0_3] : memref<576x128xbf16, #tpu.memory_space<vmem>>, vector<576x128xbf16>
    %cst = arith.constant dense<0.000000e+00> : vector<104x128xf32>
    %5 = tpu.matmul %3, %4, %cst {dimension_numbers = #tpu.dot_dimension_numbers<[1], [0], [0], [1], [0, 0, 1, 1], [], []>} : vector<104x576xbf16>, vector<576x128xbf16>, vector<104x128xf32> -> vector<104x128xf32>
    %c0_4 = arith.constant 0 : index
    %c0_5 = arith.constant 0 : index
    %6 = vector.load %arg3[%c0_4, %c0_5] : memref<104x128xf32, #tpu.memory_space<vmem>>, vector<104x128xf32>
    tpu.vector_store %arg3[%c0_4, %c0_5], %5 {strides = array<i32>} : memref<104x128xf32, #tpu.memory_space<vmem>>, vector<104x128xf32>,
    %c0_6 = arith.constant 0 : index
    %c0_7 = arith.constant 0 : index
    %7 = vector.load %arg4[%c0_6, %c0_7] : memref<2x128xf32, #tpu.memory_space<vmem>>, vector<1x128xf32>
    %cst_8 = arith.constant dense<0.000000e+00> : vector<128xf32>
    %8 = vector.multi_reduction <add>, %5, %cst_8 [0] : vector<104x128xf32> to vector<128xf32>
    %9 = vector.shape_cast %8 : vector<128xf32> to vector<1x128xf32>
    %10 = arith.addf %7, %9 : vector<1x128xf32>
    %c0_9 = arith.constant 0 : index
    %c0_10 = arith.constant 0 : index
    %11 = vector.load %arg4[%c0_9, %c0_10] : memref<2x128xf32, #tpu.memory_space<vmem>>, vector<1x128xf32>
    tpu.vector_store %arg4[%c0_9, %c0_10], %10 {strides = array<i32>} : memref<2x128xf32, #tpu.memory_space<vmem>>, vector<1x128xf32>,
    %c1 = arith.constant 1 : index
    %c0_11 = arith.constant 0 : index
    %12 = vector.load %arg4[%c1, %c0_11] : memref<2x128xf32, #tpu.memory_space<vmem>>, vector<1x128xf32>
    %13 = arith.mulf %5, %5 : vector<104x128xf32>
    %cst_12 = arith.constant dense<0.000000e+00> : vector<128xf32>
    %14 = vector.multi_reduction <add>, %13, %cst_12 [0] : vector<104x128xf32> to vector<128xf32>
    %15 = vector.shape_cast %14 : vector<128xf32> to vector<1x128xf32>
    %16 = arith.addf %12, %15 : vector<1x128xf32>
    %c1_13 = arith.constant 1 : index
    %c0_14 = arith.constant 0 : index
    %17 = vector.load %arg4[%c1_13, %c0_14] : memref<2x128xf32, #tpu.memory_space<vmem>>, vector<1x128xf32>
    tpu.vector_store %arg4[%c1_13, %c0_14], %16 {strides = array<i32>} : memref<2x128xf32, #tpu.memory_space<vmem>>, vector<1x128xf32>,
    return
  }
  func.func @transform_0(%arg0: i32) -> (i32, i32) {
    %c0_i32 = arith.constant 0 : i32
    %c0_i32_0 = arith.constant 0 : i32
    return %arg0, %c0_i32 : i32, i32
  }
  func.func @transform_1(%arg0: i32) -> (i32, i32) {
    %c0_i32 = arith.constant 0 : i32
    %c0_i32_0 = arith.constant 0 : i32
    %c0_i32_1 = arith.constant 0 : i32
    return %c0_i32, %c0_i32_0 : i32, i32
  }
  func.func @transform_2(%arg0: i32) -> (i32, i32) {
    %c0_i32 = arith.constant 0 : i32
    %c0_i32_0 = arith.constant 0 : i32
    return %arg0, %c0_i32 : i32, i32
  }
  func.func @transform_3(%arg0: i32) -> (i32, i32) {
    %c0_i32 = arith.constant 0 : i32
    %c0_i32_0 = arith.constant 0 : i32
    %c0_i32_1 = arith.constant 0 : i32
    return %c0_i32, %c0_i32_0 : i32, i32
  }
}

module attributes {stable_mosaic.version = 11 : i64} {
  func.func @bn_relu_kernel(%arg0: i32, %arg1: memref<104x128xf32, #tpu.memory_space<vmem>>, %arg2: memref<2x128xf32, #tpu.memory_space<vmem>>, %arg3: memref<1x128xf32, #tpu.memory_space<vmem>>, %arg4: memref<1x128xf32, #tpu.memory_space<vmem>>, %arg5: memref<104x128xbf16, #tpu.memory_space<vmem>>) attributes {dimension_semantics = [#tpu.dimension_semantics<parallel>], iteration_bounds = array<i64: 1>, scalar_prefetch = 0 : i64, scratch_operands = 0 : i64, tpu.core_type = #tpu.core_type<tc>, window_params = [{transform_indices = @transform_0, window_bounds = array<i64: 104, 128>}, {pipeline_mode = #tpu.pipeline_mode<synchronous>, transform_indices = @transform_1, window_bounds = array<i64: 2, 128>}, {pipeline_mode = #tpu.pipeline_mode<synchronous>, transform_indices = @transform_2, window_bounds = array<i64: 1, 128>}, {pipeline_mode = #tpu.pipeline_mode<synchronous>, transform_indices = @transform_3, window_bounds = array<i64: 1, 128>}, {transform_indices = @transform_4, window_bounds = array<i64: 104, 128>}]} {
    %c0 = arith.constant 0 : index
    %c0_0 = arith.constant 0 : index
    %0 = vector.load %arg2[%c0, %c0_0] : memref<2x128xf32, #tpu.memory_space<vmem>>, vector<1x128xf32>
    %cst = arith.constant 0.0102040814 : f32
    %1 = vector.broadcast %cst : f32 to vector<1x128xf32>
    %2 = arith.mulf %0, %1 : vector<1x128xf32>
    %c1 = arith.constant 1 : index
    %c0_1 = arith.constant 0 : index
    %3 = vector.load %arg2[%c1, %c0_1] : memref<2x128xf32, #tpu.memory_space<vmem>>, vector<1x128xf32>
    %cst_2 = arith.constant 0.0102040814 : f32
    %4 = vector.broadcast %cst_2 : f32 to vector<1x128xf32>
    %5 = arith.mulf %3, %4 : vector<1x128xf32>
    %6 = arith.mulf %2, %2 : vector<1x128xf32>
    %7 = arith.subf %5, %6 : vector<1x128xf32>
    %cst_3 = arith.constant 0.000000e+00 : f32
    %8 = vector.broadcast %cst_3 : f32 to vector<1x128xf32>
    %9 = arith.maximumf %7, %8 : vector<1x128xf32>
    %c0_4 = arith.constant 0 : index
    %c0_5 = arith.constant 0 : index
    %10 = vector.load %arg3[%c0_4, %c0_5] : memref<1x128xf32, #tpu.memory_space<vmem>>, vector<1x128xf32>
    %cst_6 = arith.constant 9.99999974E-6 : f32
    %11 = vector.broadcast %cst_6 : f32 to vector<1x128xf32>
    %12 = arith.addf %9, %11 : vector<1x128xf32>
    %13 = math.rsqrt %12 : vector<1x128xf32>
    %14 = arith.mulf %10, %13 : vector<1x128xf32>
    %c0_7 = arith.constant 0 : index
    %c0_8 = arith.constant 0 : index
    %15 = vector.load %arg4[%c0_7, %c0_8] : memref<1x128xf32, #tpu.memory_space<vmem>>, vector<1x128xf32>
    %16 = arith.mulf %2, %14 : vector<1x128xf32>
    %17 = arith.subf %15, %16 : vector<1x128xf32>
    %c0_9 = arith.constant 0 : index
    %c0_10 = arith.constant 0 : index
    %18 = vector.load %arg1[%c0_9, %c0_10] : memref<104x128xf32, #tpu.memory_space<vmem>>, vector<104x128xf32>
    %19 = vector.broadcast %14 : vector<1x128xf32> to vector<104x128xf32>
    %20 = arith.mulf %18, %19 : vector<104x128xf32>
    %21 = vector.broadcast %17 : vector<1x128xf32> to vector<104x128xf32>
    %22 = arith.addf %20, %21 : vector<104x128xf32>
    %cst_11 = arith.constant 0.000000e+00 : f32
    %23 = vector.broadcast %cst_11 : f32 to vector<104x128xf32>
    %24 = arith.maximumf %22, %23 : vector<104x128xf32>
    %25 = arith.truncf %24 : vector<104x128xf32> to vector<104x128xbf16>
    %c0_12 = arith.constant 0 : index
    %c0_13 = arith.constant 0 : index
    %26 = vector.load %arg5[%c0_12, %c0_13] : memref<104x128xbf16, #tpu.memory_space<vmem>>, vector<104x128xbf16>
    tpu.vector_store %arg5[%c0_12, %c0_13], %25 {strides = array<i32>} : memref<104x128xbf16, #tpu.memory_space<vmem>>, vector<104x128xbf16>,
    return
  }
  func.func @transform_0(%arg0: i32) -> (i32, i32) {
    %c0_i32 = arith.constant 0 : i32
    %c0_i32_0 = arith.constant 0 : i32
    return %arg0, %c0_i32 : i32, i32
  }
  func.func @transform_1(%arg0: i32) -> (i32, i32) {
    %c0_i32 = arith.constant 0 : i32
    %c0_i32_0 = arith.constant 0 : i32
    %c0_i32_1 = arith.constant 0 : i32
    return %c0_i32, %c0_i32_0 : i32, i32
  }
  func.func @transform_2(%arg0: i32) -> (i32, i32) {
    %c0_i32 = arith.constant 0 : i32
    %c0_i32_0 = arith.constant 0 : i32
    %c0_i32_1 = arith.constant 0 : i32
    return %c0_i32, %c0_i32_0 : i32, i32
  }
  func.func @transform_3(%arg0: i32) -> (i32, i32) {
    %c0_i32 = arith.constant 0 : i32
    %c0_i32_0 = arith.constant 0 : i32
    %c0_i32_1 = arith.constant 0 : i32
    return %c0_i32, %c0_i32_0 : i32, i32
  }
  func.func @transform_4(%arg0: i32) -> (i32, i32) {
    %c0_i32 = arith.constant 0 : i32
    %c0_i32_0 = arith.constant 0 : i32
    return %arg0, %c0_i32 : i32, i32
  }
}

module attributes {stable_mosaic.version = 11 : i64} {
  func.func @mlp_kernel(%arg0: memref<2x3136xbf16, #tpu.memory_space<vmem>>, %arg1: memref<3136x512xbf16, #tpu.memory_space<vmem>>, %arg2: memref<1x512xf32, #tpu.memory_space<vmem>>, %arg3: memref<512x128xbf16, #tpu.memory_space<vmem>>, %arg4: memref<1x128xf32, #tpu.memory_space<vmem>>, %arg5: memref<2x128xf32, #tpu.memory_space<vmem>>) attributes {dimension_semantics = [], scalar_prefetch = 0 : i64, scratch_operands = 0 : i64, tpu.core_type = #tpu.core_type<tc>} {
    %c0 = arith.constant 0 : index
    %c0_0 = arith.constant 0 : index
    %0 = vector.load %arg0[%c0, %c0_0] : memref<2x3136xbf16, #tpu.memory_space<vmem>>, vector<2x3136xbf16>
    %c0_1 = arith.constant 0 : index
    %c0_2 = arith.constant 0 : index
    %1 = vector.load %arg1[%c0_1, %c0_2] : memref<3136x512xbf16, #tpu.memory_space<vmem>>, vector<3136x512xbf16>
    %cst = arith.constant dense<0.000000e+00> : vector<2x512xf32>
    %2 = tpu.matmul %0, %1, %cst {dimension_numbers = #tpu.dot_dimension_numbers<[1], [0], [0], [1], [0, 0, 1, 1], [], []>} : vector<2x3136xbf16>, vector<3136x512xbf16>, vector<2x512xf32> -> vector<2x512xf32>
    %c0_3 = arith.constant 0 : index
    %c0_4 = arith.constant 0 : index
    %3 = vector.load %arg2[%c0_3, %c0_4] : memref<1x512xf32, #tpu.memory_space<vmem>>, vector<1x512xf32>
    %4 = vector.broadcast %3 : vector<1x512xf32> to vector<2x512xf32>
    %5 = arith.addf %2, %4 : vector<2x512xf32>
    %cst_5 = arith.constant 0.000000e+00 : f32
    %6 = vector.broadcast %cst_5 : f32 to vector<2x512xf32>
    %7 = arith.maximumf %5, %6 : vector<2x512xf32>
    %8 = arith.truncf %7 : vector<2x512xf32> to vector<2x512xbf16>
    %c0_6 = arith.constant 0 : index
    %c0_7 = arith.constant 0 : index
    %9 = vector.load %arg3[%c0_6, %c0_7] : memref<512x128xbf16, #tpu.memory_space<vmem>>, vector<512x128xbf16>
    %cst_8 = arith.constant dense<0.000000e+00> : vector<2x128xf32>
    %10 = tpu.matmul %8, %9, %cst_8 {dimension_numbers = #tpu.dot_dimension_numbers<[1], [0], [0], [1], [0, 0, 1, 1], [], []>} : vector<2x512xbf16>, vector<512x128xbf16>, vector<2x128xf32> -> vector<2x128xf32>
    %c0_9 = arith.constant 0 : index
    %c0_10 = arith.constant 0 : index
    %11 = vector.load %arg4[%c0_9, %c0_10] : memref<1x128xf32, #tpu.memory_space<vmem>>, vector<1x128xf32>
    %12 = vector.broadcast %11 : vector<1x128xf32> to vector<2x128xf32>
    %13 = arith.addf %10, %12 : vector<2x128xf32>
    %c0_11 = arith.constant 0 : index
    %c0_12 = arith.constant 0 : index
    %14 = vector.load %arg5[%c0_11, %c0_12] : memref<2x128xf32, #tpu.memory_space<vmem>>, vector<2x128xf32>
    tpu.vector_store %arg5[%c0_11, %c0_12], %13 {strides = array<i32>} : memref<2x128xf32, #tpu.memory_space<vmem>>, vector<2x128xf32>,
    return
  }
}

</mosaic_0001>

<bundles_post_ra>
// kernel: conv_feature_extract.7
= control target key start
LH: loop header
LB: loop body
LE: loop exit
PB: predicated region body
PF: predicated region fallthrough
CT: control target
= control target key end

     0   :  { %s1594_s12 = smov 0   ;;  %s2030_s0 = inlined_call_operand.vmem [shape: bf16[1024,256], index: 0, kind: input, shape index: {}]   ;;  %s2031_s1 = inlined_call_operand.vmem [shape: bf16[256,128], index: 1, kind: input, shape index: {}]   ;;  %s2032_s2 = inlined_call_operand.vmem [shape: f32[1024,128], index: 2, kind: output, shape index: {0}]   ;;  %s2033_s3 = inlined_call_operand.vmem [shape: f32[2,128], index: 3, kind: output, shape index: {1}]  }
   0x1 LB: > { %s1316_s13 = sadd.s32 4294967295, %s1570_s12   ;;  %p1320_p0 = scmp.ge.s32.totalorder %s1570_s12, 1  ;;  %s1570_s12 = sphi %s1594_s12, %s14_s12  }
   0x2   : > { %p137_p1 = scmp.lt.s32.totalorder %s1570_s12, 3 }
   0x4   : > { %p138_p2 = pnand %p1320_p0, %p137_p1 }
   0x5   : > { %s1321_s14 = sshll.u32 (!%p138_p2), %s1316_s13, 6  ;;  %p1326_p4 = scmp.ne.s32.totalorder (!%p138_p2), %s1316_s13, 0 }
   0x6   : > { %141 = sbr.rel (%p138_p2) target bundleno = 502 (0x1f6), region = 28  ;;  %p163_p3 = scmp.lt.s32.totalorder (!%p138_p2), %s1321_s14, 127 }
   0xd   : > { %s2035_s14 = smov (!%p163_p3, %s1321_s14), 127  ;;  %179 = sbr.rel (%p1326_p4) target bundleno = 20 (0x14), region = 32 }
   0xe   : > { %s1409_s15 = sshll.u32 %s2035_s14, 3  ;;  %v1572_v0 = vmov (!%p1326_p4), 0.0  }
   0xf   : > { %s1605_s18 = scalar_lea.vmem %s2030_s0, %s1409_s15  ;;  %s1610_s21 = scalar_lea.vmem %s2032_s2, %s1409_s15  ;;  %180 = vst [vmem:[%s2033_s3] sm:$0x3] (!%p1326_p4), %v1572_v0 }
  0x14 PF: > { %v1452_v1 = vld [vmem:[%s2031_s1] sm:$0xff]   ;;  %v1573_v2 = vmov 0   ;;  %v1453_v3 = vld [vmem:[%s2031_s1 + $0x8] sm:$0xff]   ;;  %v1454_v4 = vld [vmem:[%s2031_s1 + $0x10] sm:$0xff]  }
  0x15   : > { %693 = vmatprep.subr.bf16.mxu0 %v1573_v2  ;;  %1410 = vmatprep.subr.bf16.mxu1 %v1573_v2  ;;  %v1455_v5 = vld [vmem:[%s2031_s1 + $0x18] sm:$0xff]   ;;  %v1456_v6 = vld [vmem:[%s2031_s1 + $0x20] sm:$0xff]   ;;  %v1457_v8 = vld [vmem:[%s2031_s1 + $0x28] sm:$0xff]  }
  0x16   : > { %694 = vmatpush1.bf16.msra.mxu0 %v1452_v1  ;;  %1426 = vmatpush1.bf16.msra.mxu1 %v1452_v1  ;;  %v1470_v7 = vld [vmem:[%s1605_s18 + $0x4] ss:$8 sps:$4 sm:$0xff]   ;;  %v1458_v9 = vld [vmem:[%s2031_s1 + $0x30] sm:$0xff]   ;;  %v1459_v10 = vld [vmem:[%s2031_s1 + $0x38] sm:$0xff]  }
  0x17   : > { %695 = vmatprep.subr.bf16.mxu0 %v1573_v2  ;;  %1411 = vmatprep.subr.bf16.mxu1 %v1573_v2  ;;  %v1494_v11 = vld [vmem:[%s1605_s18 + $0x104] ss:$8 sps:$4 sm:$0xff]   ;;  %v1462_v14 = vld [vmem:[%s2031_s1 + $0x50] sm:$0xff]   ;;  %v1463_v15 = vld [vmem:[%s2031_s1 + $0x58] sm:$0xff]  }
  0x18   : > { %725 = vmatprep.mubr.bf16.mxu0 %v1470_v7  ;;  %853 = vmatprep.mubr.bf16.mxu1 %v1494_v11  ;;  %v1460_v12 = vld [vmem:[%s2031_s1 + $0x40] sm:$0xff]   ;;  %v1461_v13 = vld [vmem:[%s2031_s1 + $0x48] sm:$0xff]   ;;  %v1466_v18 = vld [vmem:[%s2031_s1 + $0x70] sm:$0xff]  }
  0x19   : > { %v1464_v16 = vld [vmem:[%s2031_s1 + $0x60] sm:$0xff]   ;;  %v1465_v17 = vld [vmem:[%s2031_s1 + $0x68] sm:$0xff]   ;;  %v1467_v19 = vld [vmem:[%s2031_s1 + $0x78] sm:$0xff]  }
  0x1a   : > { %696 = vmatpush1.bf16.msra.mxu0 %v1453_v3  ;;  %1427 = vmatpush1.bf16.msra.mxu1 %v1453_v3  ;;  %v1468_v20 = vld [vmem:[%s1605_s18] ss:$8 sps:$4 sm:$0xff]   ;;  %v1471_v22 = vld [vmem:[%s1605_s18 + $0x14] ss:$8 sps:$4 sm:$0xff]   ;;  %v1473_v24 = vld [vmem:[%s1605_s18 + $0x10] ss:$8 sps:$4 sm:$0xff]  }
  0x1b   : > { %697 = vmatprep.subr.bf16.mxu0 %v1573_v2  ;;  %1412 = vmatprep.subr.bf16.mxu1 %v1573_v2  ;;  %v1492_v21 = vld [vmem:[%s1605_s18 + $0x100] ss:$8 sps:$4 sm:$0xff]   ;;  %v1498_v23 = vld [vmem:[%s1605_s18 + $0x114] ss:$8 sps:$4 sm:$0xff]   ;;  %v1500_v25 = vld [vmem:[%s1605_s18 + $0x110] ss:$8 sps:$4 sm:$0xff]  }
  0x1c   : > { %v1474_v26 = vld [vmem:[%s1605_s18 + $0x24] ss:$8 sps:$4 sm:$0xff]   ;;  %v1476_v28 = vld [vmem:[%s1605_s18 + $0x20] ss:$8 sps:$4 sm:$0xff]   ;;  %v1477_v30 = vld [vmem:[%s1605_s18 + $0x34] ss:$8 sps:$4 sm:$0xff]  }
  0x1d   : > { %v1504_v27 = vld [vmem:[%s1605_s18 + $0x124] ss:$8 sps:$4 sm:$0xff]   ;;  %v1506_v29 = vld [vmem:[%s1605_s18 + $0x120] ss:$8 sps:$4 sm:$0xff]   ;;  %v1510_v31 = vld [vmem:[%s1605_s18 + $0x134] ss:$8 sps:$4 sm:$0xff]  }
  0x1e   : > { %698 = vmatpush1.bf16.msra.mxu0 %v1454_v4  ;;  %1428 = vmatpush1.bf16.msra.mxu1 %v1454_v4  ;;  %v1479_v32 = vld [vmem:[%s1605_s18 + $0x30] ss:$8 sps:$4 sm:$0xff]   ;;  %v1480_v34 = vld [vmem:[%s1605_s18 + $0x44] ss:$8 sps:$4 sm:$0xff]   ;;  %v1482_v36 = vld [vmem:[%s1605_s18 + $0x40] ss:$8 sps:$4 sm:$0xff]  }
  0x1f   : > { %699 = vmatprep.subr.bf16.mxu0 %v1573_v2  ;;  %1413 = vmatprep.subr.bf16.mxu1 %v1573_v2  ;;  %v1512_v33 = vld [vmem:[%s1605_s18 + $0x130] ss:$8 sps:$4 sm:$0xff]   ;;  %v1516_v35 = vld [vmem:[%s1605_s18 + $0x144] ss:$8 sps:$4 sm:$0xff]   ;;  %v1518_v37 = vld [vmem:[%s1605_s18 + $0x140] ss:$8 sps:$4 sm:$0xff]  }
  0x20   : > { %v1483_v38 = vld [vmem:[%s1605_s18 + $0x54] ss:$8 sps:$4 sm:$0xff]   ;;  %v1485_v40 = vld [vmem:[%s1605_s18 + $0x50] ss:$8 sps:$4 sm:$0xff]   ;;  %v1486_v42 = vld [vmem:[%s1605_s18 + $0x64] ss:$8 sps:$4 sm:$0xff]  }
  0x21   : > { %v1522_v39 = vld [vmem:[%s1605_s18 + $0x154] ss:$8 sps:$4 sm:$0xff]   ;;  %v1524_v41 = vld [vmem:[%s1605_s18 + $0x150] ss:$8 sps:$4 sm:$0xff]   ;;  %v1528_v43 = vld [vmem:[%s1605_s18 + $0x164] ss:$8 sps:$4 sm:$0xff]  }
  0x22   : > { %700 = vmatpush1.bf16.msra.mxu0 %v1455_v5  ;;  %1429 = vmatpush1.bf16.msra.mxu1 %v1455_v5  ;;  %v1488_v44 = vld [vmem:[%s1605_s18 + $0x60] ss:$8 sps:$4 sm:$0xff]   ;;  %v1489_v46 = vld [vmem:[%s1605_s18 + $0x74] ss:$8 sps:$4 sm:$0xff]   ;;  %v1491_v48 = vld [vmem:[%s1605_s18 + $0x70] ss:$8 sps:$4 sm:$0xff]  }
  0x23   : > { %701 = vmatprep.subr.bf16.mxu0 %v1573_v2  ;;  %1414 = vmatprep.subr.bf16.mxu1 %v1573_v2  ;;  %v1530_v45 = vld [vmem:[%s1605_s18 + $0x160] ss:$8 sps:$4 sm:$0xff]   ;;  %v1534_v47 = vld [vmem:[%s1605_s18 + $0x174] ss:$8 sps:$4 sm:$0xff]   ;;  %v1536_v49 = vld [vmem:[%s1605_s18 + $0x170] ss:$8 sps:$4 sm:$0xff]  }
  0x24   : > { %v1495_v50 = vld [vmem:[%s1605_s18 + $0x84] ss:$8 sps:$4 sm:$0xff]   ;;  %v1497_v52 = vld [vmem:[%s1605_s18 + $0x80] ss:$8 sps:$4 sm:$0xff]   ;;  %v1501_v54 = vld [vmem:[%s1605_s18 + $0x94] ss:$8 sps:$4 sm:$0xff]  }
  0x25   : > { %v1540_v51 = vld [vmem:[%s1605_s18 + $0x184] ss:$8 sps:$4 sm:$0xff]   ;;  %v1542_v53 = vld [vmem:[%s1605_s18 + $0x180] ss:$8 sps:$4 sm:$0xff]   ;;  %v1543_v55 = vld [vmem:[%s1605_s18 + $0x194] ss:$8 sps:$4 sm:$0xff]  }
  0x26   : > { %702 = vmatpush1.bf16.msra.mxu0 %v1456_v6  ;;  %1430 = vmatpush1.bf16.msra.mxu1 %v1456_v6  ;;  %v1503_v56 = vld [vmem:[%s1605_s18 + $0x90] ss:$8 sps:$4 sm:$0xff]   ;;  %v1507_v58 = vld [vmem:[%s1605_s18 + $0xa4] ss:$8 sps:$4 sm:$0xff]   ;;  %v1509_v60 = vld [vmem:[%s1605_s18 + $0xa0] ss:$8 sps:$4 sm:$0xff]  }
  0x27   : > { %703 = vmatprep.subr.bf16.mxu0 %v1573_v2  ;;  %1415 = vmatprep.subr.bf16.mxu1 %v1573_v2  ;;  %v1545_v57 = vld [vmem:[%s1605_s18 + $0x190] ss:$8 sps:$4 sm:$0xff]   ;;  %v1546_v59 = vld [vmem:[%s1605_s18 + $0x1a4] ss:$8 sps:$4 sm:$0xff]   ;;  %v1548_v61 = vld [vmem:[%s1605_s18 + $0x1a0] ss:$8 sps:$4 sm:$0xff]  }
  0x28   : > { %v1513_v62 = vld [vmem:[%s1605_s18 + $0xb4] ss:$8 sps:$4 sm:$0xff]   ;;  %v1515_v0 = vld [vmem:[%s1605_s18 + $0xb0] ss:$8 sps:$4 sm:$0xff]   ;;  %v1552_v3 = vld [vmem:[%s1605_s18 + $0x1c4] ss:$8 sps:$4 sm:$0xff]  }
  0x29   : > { %v1549_v63 = vld [vmem:[%s1605_s18 + $0x1b4] ss:$8 sps:$4 sm:$0xff]   ;;  %v1551_v1 = vld [vmem:[%s1605_s18 + $0x1b0] ss:$8 sps:$4 sm:$0xff]   ;;  %v1521_v4 = vld [vmem:[%s1605_s18 + $0xc0] ss:$8 sps:$4 sm:$0xff]  }
  0x2a   : > { %704 = vmatpush1.bf16.msra.mxu0 %v1457_v8  ;;  %1431 = vmatpush1.bf16.msra.mxu1 %v1457_v8  ;;  %v1554_v5 = vld [vmem:[%s1605_s18 + $0x1c0] ss:$8 sps:$4 sm:$0xff]   ;;  %v1525_v6 = vld [vmem:[%s1605_s18 + $0xd4] ss:$8 sps:$4 sm:$0xff]   ;;  %v1527_v8 = vld [vmem:[%s1605_s18 + $0xd0] ss:$8 sps:$4 sm:$0xff]  }
  0x2b   : > { %705 = vmatprep.subr.bf16.mxu0 %v1573_v2  ;;  %1416 = vmatprep.subr.bf16.mxu1 %v1573_v2  ;;  %v1555_v7 = vld [vmem:[%s1605_s18 + $0x1d4] ss:$8 sps:$4 sm:$0xff]   ;;  %v1558_v11 = vld [vmem:[%s1605_s18 + $0x1e4] ss:$8 sps:$4 sm:$0xff]  }
  0x2e   : > { %706 = vmatpush1.bf16.msra.mxu0 %v1458_v9  ;;  %1432 = vmatpush1.bf16.msra.mxu1 %v1458_v9  ;;  %v1557_v9 = vld [vmem:[%s1605_s18 + $0x1d0] ss:$8 sps:$4 sm:$0xff]  }
  0x2f   : > { %707 = vmatprep.subr.bf16.mxu0 %v1573_v2  ;;  %1417 = vmatprep.subr.bf16.mxu1 %v1573_v2 }
  0x32   : > { %708 = vmatpush1.bf16.msra.mxu0 %v1459_v10  ;;  %1433 = vmatpush1.bf16.msra.mxu1 %v1459_v10  ;;  %v1531_v10 = vld [vmem:[%s1605_s18 + $0xe4] ss:$8 sps:$4 sm:$0xff]  }
  0x33   : > { %709 = vmatprep.subr.bf16.mxu0 %v1573_v2  ;;  %1418 = vmatprep.subr.bf16.mxu1 %v1573_v2 }
  0x36   : > { %710 = vmatpush1.bf16.msra.mxu0 %v1460_v12  ;;  %1434 = vmatpush1.bf16.msra.mxu1 %v1460_v12  ;;  %v1533_v12 = vld [vmem:[%s1605_s18 + $0xe0] ss:$8 sps:$4 sm:$0xff]  }
  0x37   : > { %711 = vmatprep.subr.bf16.mxu0 %v1573_v2  ;;  %1419 = vmatprep.subr.bf16.mxu1 %v1573_v2 }
  0x3a   : > { %712 = vmatpush1.bf16.msra.mxu0 %v1461_v13  ;;  %1435 = vmatpush1.bf16.msra.mxu1 %v1461_v13  ;;  %v1560_v13 = vld [vmem:[%s1605_s18 + $0x1e0] ss:$8 sps:$4 sm:$0xff]  }
  0x3b   : > { %713 = vmatprep.subr.bf16.mxu0 %v1573_v2  ;;  %1420 = vmatprep.subr.bf16.mxu1 %v1573_v2 }
  0x3e   : > { %714 = vmatpush1.bf16.msra.mxu0 %v1462_v14  ;;  %1436 = vmatpush1.bf16.msra.mxu1 %v1462_v14  ;;  %v1537_v14 = vld [vmem:[%s1605_s18 + $0xf4] ss:$8 sps:$4 sm:$0xff]  }
  0x3f   : > { %715 = vmatprep.subr.bf16.mxu0 %v1573_v2  ;;  %1421 = vmatprep.subr.bf16.mxu1 %v1573_v2 }
  0x42   : > { %716 = vmatpush1.bf16.msra.mxu0 %v1463_v15  ;;  %1437 = vmatpush1.bf16.msra.mxu1 %v1463_v15  ;;  %v1561_v15 = vld [vmem:[%s1605_s18 + $0x1f4] ss:$8 sps:$4 sm:$0xff]  }
  0x43   : > { %717 = vmatprep.subr.bf16.mxu0 %v1573_v2  ;;  %1422 = vmatprep.subr.bf16.mxu1 %v1573_v2 }
  0x46   : > { %718 = vmatpush1.bf16.msra.mxu0 %v1464_v16  ;;  %1438 = vmatpush1.bf16.msra.mxu1 %v1464_v16  ;;  %v1539_v16 = vld [vmem:[%s1605_s18 + $0xf0] ss:$8 sps:$4 sm:$0xff]  }
  0x47   : > { %719 = vmatprep.subr.bf16.mxu0 %v1573_v2  ;;  %1423 = vmatprep.subr.bf16.mxu1 %v1573_v2 }
  0x4a   : > { %720 = vmatpush1.bf16.msra.mxu0 %v1465_v17  ;;  %1439 = vmatpush1.bf16.msra.mxu1 %v1465_v17  ;;  %v1563_v17 = vld [vmem:[%s1605_s18 + $0x1f0] ss:$8 sps:$4 sm:$0xff]  }
  0x4b   : > { %721 = vmatprep.subr.bf16.mxu0 %v1573_v2  ;;  %1424 = vmatprep.subr.bf16.mxu1 %v1573_v2 }
  0x4e   : > { %722 = vmatpush1.bf16.msra.mxu0 %v1466_v18  ;;  %1440 = vmatpush1.bf16.msra.mxu1 %v1466_v18 }
  0x4f   : > { %723 = vmatprep.subr.bf16.mxu0 %v1573_v2  ;;  %1425 = vmatprep.subr.bf16.mxu1 %v1573_v2  ;;  %v1519_v2 = vld [vmem:[%s1605_s18 + $0xc4] ss:$8 sps:$4 sm:$0xff]  }
  0x52   : > { %724 = vmatpush1.bf16.msra.mxu0 %v1467_v19  ;;  %1441 = vmatpush1.bf16.msra.mxu1 %v1467_v19 }
  0x55   : > { %726 = vmatmul.mubr.bf16.vlgmr.msra.gmra.mrb[0].mxu0 %v1468_v20  ;;  %854 = vmatmul.mubr.bf16.vlgmr.msra.gmra.mrb[0].mxu1 %v1492_v21 }
  0x56   : > { %733 = vmatprep.mubr.bf16.mxu0 %v1471_v22  ;;  %861 = vmatprep.mubr.bf16.mxu1 %v1498_v23 }
  0x5d   : > { %734 = vmatmul.mubr.bf16.gmra.mrb[4].mxu0 %v1473_v24  ;;  %862 = vmatmul.mubr.bf16.gmra.mrb[4].mxu1 %v1500_v25 }
  0x5e   : > { %741 = vmatprep.mubr.bf16.mxu0 %v1474_v26  ;;  %869 = vmatprep.mubr.bf16.mxu1 %v1504_v27 }
  0x65   : > { %742 = vmatmul.mubr.bf16.gmra.mrb[8].mxu0 %v1476_v28  ;;  %870 = vmatmul.mubr.bf16.gmra.mrb[8].mxu1 %v1506_v29 }
  0x66   : > { %749 = vmatprep.mubr.bf16.mxu0 %v1477_v30  ;;  %877 = vmatprep.mubr.bf16.mxu1 %v1510_v31 }
  0x6d   : > { %750 = vmatmul.mubr.bf16.gmra.mrb[12].mxu0 %v1479_v32  ;;  %878 = vmatmul.mubr.bf16.gmra.mrb[12].mxu1 %v1512_v33 }
  0x6e   : > { %757 = vmatprep.mubr.bf16.mxu0 %v1480_v34  ;;  %885 = vmatprep.mubr.bf16.mxu1 %v1516_v35 }
  0x75   : > { %758 = vmatmul.mubr.bf16.gmra.mrb[16].mxu0 %v1482_v36  ;;  %886 = vmatmul.mubr.bf16.gmra.mrb[16].mxu1 %v1518_v37 }
  0x76   : > { %765 = vmatprep.mubr.bf16.mxu0 %v1483_v38  ;;  %893 = vmatprep.mubr.bf16.mxu1 %v1522_v39 }
  0x7d   : > { %766 = vmatmul.mubr.bf16.gmra.mrb[20].mxu0 %v1485_v40  ;;  %894 = vmatmul.mubr.bf16.gmra.mrb[20].mxu1 %v1524_v41 }
  0x7e   : > { %773 = vmatprep.mubr.bf16.mxu0 %v1486_v42  ;;  %901 = vmatprep.mubr.bf16.mxu1 %v1528_v43 }
  0x85   : > { %774 = vmatmul.mubr.bf16.gmra.mrb[24].mxu0 %v1488_v44  ;;  %902 = vmatmul.mubr.bf16.gmra.mrb[24].mxu1 %v1530_v45 }
  0x86   : > { %781 = vmatprep.mubr.bf16.mxu0 %v1489_v46  ;;  %909 = vmatprep.mubr.bf16.mxu1 %v1534_v47 }
  0x8d   : > { %782 = vmatmul.mubr.bf16.gmra.mrb[28].mxu0 %v1491_v48  ;;  %910 = vmatmul.mubr.bf16.gmra.mrb[28].mxu1 %v1536_v49 }
  0x8e   : > { %789 = vmatprep.mubr.bf16.mxu0 %v1495_v50  ;;  %917 = vmatprep.mubr.bf16.mxu1 %v1540_v51 }
  0x95   : > { %790 = vmatmul.mubr.bf16.gmra.mrb[32].mxu0 %v1497_v52  ;;  %918 = vmatmul.mubr.bf16.gmra.mrb[32].mxu1 %v1542_v53 }
  0x96   : > { %797 = vmatprep.mubr.bf16.mxu0 %v1501_v54  ;;  %925 = vmatprep.mubr.bf16.mxu1 %v1543_v55 }
  0x9d   : > { %798 = vmatmul.mubr.bf16.gmra.mrb[36].mxu0 %v1503_v56  ;;  %926 = vmatmul.mubr.bf16.gmra.mrb[36].mxu1 %v1545_v57 }
  0x9e   : > { %805 = vmatprep.mubr.bf16.mxu0 %v1507_v58  ;;  %933 = vmatprep.mubr.bf16.mxu1 %v1546_v59 }
  0xa5   : > { %806 = vmatmul.mubr.bf16.gmra.mrb[40].mxu0 %v1509_v60  ;;  %934 = vmatmul.mubr.bf16.gmra.mrb[40].mxu1 %v1548_v61 }
  0xa6   : > { %813 = vmatprep.mubr.bf16.mxu0 %v1513_v62  ;;  %941 = vmatprep.mubr.bf16.mxu1 %v1549_v63 }
  0xad   : > { %814 = vmatmul.mubr.bf16.gmra.mrb[44].mxu0 %v1515_v0  ;;  %942 = vmatmul.mubr.bf16.gmra.mrb[44].mxu1 %v1551_v1 }
  0xae   : > { %821 = vmatprep.mubr.bf16.mxu0 %v1519_v2  ;;  %949 = vmatprep.mubr.bf16.mxu1 %v1552_v3 }
  0xb5   : > { %822 = vmatmul.mubr.bf16.gmra.mrb[48].mxu0 %v1521_v4  ;;  %950 = vmatmul.mubr.bf16.gmra.mrb[48].mxu1 %v1554_v5 }
  0xb6   : > { %829 = vmatprep.mubr.bf16.mxu0 %v1525_v6  ;;  %957 = vmatprep.mubr.bf16.mxu1 %v1555_v7 }
  0xbd   : > { %830 = vmatmul.mubr.bf16.gmra.mrb[52].mxu0 %v1527_v8  ;;  %958 = vmatmul.mubr.bf16.gmra.mrb[52].mxu1 %v1557_v9 }
  0xbe   : > { %837 = vmatprep.mubr.bf16.mxu0 %v1531_v10  ;;  %965 = vmatprep.mubr.bf16.mxu1 %v1558_v11 }
  0xc5   : > { %838 = vmatmul.mubr.bf16.gmra.mrb[56].mxu0 %v1533_v12  ;;  %966 = vmatmul.mubr.bf16.gmra.mrb[56].mxu1 %v1560_v13 }
  0xc6   : > { %845 = vmatprep.mubr.bf16.mxu0 %v1537_v14  ;;  %973 = vmatprep.mubr.bf16.mxu1 %v1561_v15 }
  0xcd   : > { %846 = vmatmul.mubr.bf16.gmra.mrb[60].mxu0 %v1539_v16  ;;  %974 = vmatmul.mubr.bf16.gmra.mrb[60].mxu1 %v1563_v17 }
 0x128   : > { %v727_v18 = vpop.f32.mrb[0].mxu0  ;;  %v1759_v19 = vpop.f32.mrb[0].mxu1 }
 0x129   : > { %982 = vst [vmem:[%s1610_s21] sm:$0xff] %v727_v18  ;;  %v729_v20 = vpop.f32.mrb[1].mxu0  ;;  %1014 = vst [vmem:[%s1610_s21 + $0x100] sm:$0xff] %v1759_v19  ;;  %v857_v21 = vpop.f32.mrb[1].mxu1  ;;  %v1119_v24 = vmul.f32 %v727_v18, %v727_v18 }
 0x12a   : > { %v730_v22 = vpop.f32.mrb[2].mxu0  ;;  %v1764_v23 = vpop.f32.mrb[2].mxu1 }
 0x12b   : > { %983 = vst [vmem:[%s1610_s21 + $0x8] sm:$0xff] %v730_v22  ;;  %v1047_v25 = vadd.f32 %v730_v22, %v727_v18  ;;  %v1120_v26 = vmul.f32 %v730_v22, %v730_v22  ;;  %v732_v27 = vpop.f32.mrb[3].mxu0  ;;  %1015 = vst [vmem:[%s1610_s21 + $0x108] sm:$0xff] %v1764_v23  ;;  %v860_v28 = vpop.f32.mrb[3].mxu1 }
 0x12d   : > { %v1183_v29 = vadd.f32 %v1120_v26, %v1119_v24 }
 0x130   : > { %v735_v30 = vpop.f32.mrb[4].mxu0  ;;  %v1769_v31 = vpop.f32.mrb[4].mxu1 }
 0x131   : > { %984 = vst [vmem:[%s1610_s21 + $0x10] sm:$0xff] %v735_v30  ;;  %v1048_v32 = vadd.f32 %v1047_v25, %v735_v30  ;;  %v1121_v33 = vmul.f32 %v735_v30, %v735_v30  ;;  %v737_v34 = vpop.f32.mrb[5].mxu0  ;;  %1016 = vst [vmem:[%s1610_s21 + $0x110] sm:$0xff] %v1769_v31  ;;  %v865_v35 = vpop.f32.mrb[5].mxu1 }
 0x132   : > { %v738_v36 = vpop.f32.mrb[6].mxu0  ;;  %v1774_v37 = vpop.f32.mrb[6].mxu1 }
 0x133   : > { %v1184_v38 = vadd.f32 %v1183_v29, %v1121_v33  ;;  %985 = vst [vmem:[%s1610_s21 + $0x18] sm:$0xff] %v738_v36  ;;  %v1049_v39 = vadd.f32 %v1048_v32, %v738_v36  ;;  %v1122_v40 = vmul.f32 %v738_v36, %v738_v36  ;;  %v740_v41 = vpop.f32.mrb[7].mxu0  ;;  %1017 = vst [vmem:[%s1610_s21 + $0x118] sm:$0xff] %v1774_v37  ;;  %v868_v42 = vpop.f32.mrb[7].mxu1 }
 0x135   : > { %v1185_v43 = vadd.f32 %v1184_v38, %v1122_v40 }
 0x138   : > { %v743_v44 = vpop.f32.mrb[8].mxu0  ;;  %v1779_v45 = vpop.f32.mrb[8].mxu1 }
 0x139   : > { %986 = vst [vmem:[%s1610_s21 + $0x20] sm:$0xff] %v743_v44  ;;  %v1050_v46 = vadd.f32 %v1049_v39, %v743_v44  ;;  %v1123_v47 = vmul.f32 %v743_v44, %v743_v44  ;;  %v745_v48 = vpop.f32.mrb[9].mxu0  ;;  %1018 = vst [vmem:[%s1610_s21 + $0x120] sm:$0xff] %v1779_v45  ;;  %v873_v49 = vpop.f32.mrb[9].mxu1 }
 0x13a   : > { %v746_v50 = vpop.f32.mrb[10].mxu0  ;;  %v1784_v51 = vpop.f32.mrb[10].mxu1 }
 0x13b   : > { %v1186_v52 = vadd.f32 %v1185_v43, %v1123_v47  ;;  %987 = vst [vmem:[%s1610_s21 + $0x28] sm:$0xff] %v746_v50  ;;  %v1051_v53 = vadd.f32 %v1050_v46, %v746_v50  ;;  %v1124_v54 = vmul.f32 %v746_v50, %v746_v50  ;;  %v748_v55 = vpop.f32.mrb[11].mxu0  ;;  %1019 = vst [vmem:[%s1610_s21 + $0x128] sm:$0xff] %v1784_v51  ;;  %v876_v56 = vpop.f32.mrb[11].mxu1 }
 0x13d   : > { %v1187_v57 = vadd.f32 %v1186_v52, %v1124_v54 }
 0x140   : > { %v751_v58 = vpop.f32.mrb[12].mxu0  ;;  %v1789_v59 = vpop.f32.mrb[12].mxu1 }
 0x141   : > { %988 = vst [vmem:[%s1610_s21 + $0x30] sm:$0xff] %v751_v58  ;;  %v1052_v60 = vadd.f32 %v1051_v53, %v751_v58  ;;  %v1125_v61 = vmul.f32 %v751_v58, %v751_v58  ;;  %v753_v62 = vpop.f32.mrb[13].mxu0  ;;  %1020 = vst [vmem:[%s1610_s21 + $0x130] sm:$0xff] %v1789_v59  ;;  %v881_v63 = vpop.f32.mrb[13].mxu1 }
 0x142   : > { %v754_v0 = vpop.f32.mrb[14].mxu0  ;;  %v1794_v1 = vpop.f32.mrb[14].mxu1 }
 0x143   : > { %v1188_v2 = vadd.f32 %v1187_v57, %v1125_v61  ;;  %989 = vst [vmem:[%s1610_s21 + $0x38] sm:$0xff] %v754_v0  ;;  %v1053_v3 = vadd.f32 %v1052_v60, %v754_v0  ;;  %v1126_v4 = vmul.f32 %v754_v0, %v754_v0  ;;  %v756_v5 = vpop.f32.mrb[15].mxu0  ;;  %1021 = vst [vmem:[%s1610_s21 + $0x138] sm:$0xff] %v1794_v1  ;;  %v884_v6 = vpop.f32.mrb[15].mxu1 }
 0x145   : > { %v1189_v7 = vadd.f32 %v1188_v2, %v1126_v4 }
 0x148   : > { %v759_v8 = vpop.f32.mrb[16].mxu0  ;;  %v1799_v9 = vpop.f32.mrb[16].mxu1 }
 0x149   : > { %990 = vst [vmem:[%s1610_s21 + $0x40] sm:$0xff] %v759_v8  ;;  %v1054_v10 = vadd.f32 %v1053_v3, %v759_v8  ;;  %v1127_v11 = vmul.f32 %v759_v8, %v759_v8  ;;  %v761_v12 = vpop.f32.mrb[17].mxu0  ;;  %1022 = vst [vmem:[%s1610_s21 + $0x140] sm:$0xff] %v1799_v9  ;;  %v889_v13 = vpop.f32.mrb[17].mxu1 }
 0x14a   : > { %v762_v14 = vpop.f32.mrb[18].mxu0  ;;  %v1804_v15 = vpop.f32.mrb[18].mxu1 }
 0x14b   : > { %v1190_v16 = vadd.f32 %v1189_v7, %v1127_v11  ;;  %991 = vst [vmem:[%s1610_s21 + $0x48] sm:$0xff] %v762_v14  ;;  %v1055_v17 = vadd.f32 %v1054_v10, %v762_v14  ;;  %v1128_v18 = vmul.f32 %v762_v14, %v762_v14  ;;  %v764_v20 = vpop.f32.mrb[19].mxu0  ;;  %1023 = vst [vmem:[%s1610_s21 + $0x148] sm:$0xff] %v1804_v15  ;;  %v892_v21 = vpop.f32.mrb[19].mxu1 }
 0x14d   : > { %v1191_v22 = vadd.f32 %v1190_v16, %v1128_v18 }
 0x150   : > { %v767_v24 = vpop.f32.mrb[20].mxu0  ;;  %v1809_v25 = vpop.f32.mrb[20].mxu1 }
 0x151   : > { %992 = vst [vmem:[%s1610_s21 + $0x50] sm:$0xff] %v767_v24  ;;  %v1056_v26 = vadd.f32 %v1055_v17, %v767_v24  ;;  %v1129_v27 = vmul.f32 %v767_v24, %v767_v24  ;;  %v769_v28 = vpop.f32.mrb[21].mxu0  ;;  %1024 = vst [vmem:[%s1610_s21 + $0x150] sm:$0xff] %v1809_v25  ;;  %v897_v29 = vpop.f32.mrb[21].mxu1 }
 0x152   : > { %v770_v30 = vpop.f32.mrb[22].mxu0  ;;  %v1814_v32 = vpop.f32.mrb[22].mxu1 }
 0x153   : > { %v1192_v33 = vadd.f32 %v1191_v22, %v1129_v27  ;;  %993 = vst [vmem:[%s1610_s21 + $0x58] sm:$0xff] %v770_v30  ;;  %v1057_v34 = vadd.f32 %v1056_v26, %v770_v30  ;;  %v1130_v35 = vmul.f32 %v770_v30, %v770_v30  ;;  %v772_v36 = vpop.f32.mrb[23].mxu0  ;;  %1025 = vst [vmem:[%s1610_s21 + $0x158] sm:$0xff] %v1814_v32  ;;  %v900_v38 = vpop.f32.mrb[23].mxu1 }
 0x155   : > { %v1193_v39 = vadd.f32 %v1192_v33, %v1130_v35 }
 0x158   : > { %v775_v40 = vpop.f32.mrb[24].mxu0  ;;  %v1819_v41 = vpop.f32.mrb[24].mxu1 }
 0x159   : > { %994 = vst [vmem:[%s1610_s21 + $0x60] sm:$0xff] %v775_v40  ;;  %v1058_v42 = vadd.f32 %v1057_v34, %v775_v40  ;;  %v1131_v43 = vmul.f32 %v775_v40, %v775_v40  ;;  %v777_v44 = vpop.f32.mrb[25].mxu0  ;;  %1026 = vst [vmem:[%s1610_s21 + $0x160] sm:$0xff] %v1819_v41  ;;  %v905_v46 = vpop.f32.mrb[25].mxu1 }
 0x15a   : > { %v778_v47 = vpop.f32.mrb[26].mxu0  ;;  %v1824_v48 = vpop.f32.mrb[26].mxu1 }
 0x15b   : > { %v1194_v49 = vadd.f32 %v1193_v39, %v1131_v43  ;;  %995 = vst [vmem:[%s1610_s21 + $0x68] sm:$0xff] %v778_v47  ;;  %v1059_v50 = vadd.f32 %v1058_v42, %v778_v47  ;;  %v1132_v52 = vmul.f32 %v778_v47, %v778_v47  ;;  %v780_v53 = vpop.f32.mrb[27].mxu0  ;;  %1027 = vst [vmem:[%s1610_s21 + $0x168] sm:$0xff] %v1824_v48  ;;  %v908_v54 = vpop.f32.mrb[27].mxu1 }
 0x15d   : > { %v1195_v55 = vadd.f32 %v1194_v49, %v1132_v52 }
 0x160   : > { %v783_v56 = vpop.f32.mrb[28].mxu0  ;;  %v1829_v57 = vpop.f32.mrb[28].mxu1 }
 0x161   : > { %996 = vst [vmem:[%s1610_s21 + $0x70] sm:$0xff] %v783_v56  ;;  %v1060_v58 = vadd.f32 %v1059_v50, %v783_v56  ;;  %v1133_v60 = vmul.f32 %v783_v56, %v783_v56  ;;  %v785_v61 = vpop.f32.mrb[29].mxu0  ;;  %1028 = vst [vmem:[%s1610_s21 + $0x170] sm:$0xff] %v1829_v57  ;;  %v913_v62 = vpop.f32.mrb[29].mxu1 }
 0x162   : > { %v786_v63 = vpop.f32.mrb[30].mxu0  ;;  %v1834_v0 = vpop.f32.mrb[30].mxu1 }
 0x163   : > { %v1196_v2 = vadd.f32 %v1195_v55, %v1133_v60  ;;  %997 = vst [vmem:[%s1610_s21 + $0x78] sm:$0xff] %v786_v63  ;;  %v1061_v3 = vadd.f32 %v1060_v58, %v786_v63  ;;  %v1134_v4 = vmul.f32 %v786_v63, %v786_v63  ;;  %v788_v5 = vpop.f32.mrb[31].mxu0  ;;  %1029 = vst [vmem:[%s1610_s21 + $0x178] sm:$0xff] %v1834_v0  ;;  %v916_v6 = vpop.f32.mrb[31].mxu1 }
 0x165   : > { %v1197_v7 = vadd.f32 %v1196_v2, %v1134_v4 }
 0x168   : > { %v791_v8 = vpop.f32.mrb[32].mxu0  ;;  %v1839_v10 = vpop.f32.mrb[32].mxu1 }
 0x169   : > { %998 = vst [vmem:[%s1610_s21 + $0x80] sm:$0xff] %v791_v8  ;;  %v1062_v11 = vadd.f32 %v1061_v3, %v791_v8  ;;  %v1135_v12 = vmul.f32 %v791_v8, %v791_v8  ;;  %v793_v13 = vpop.f32.mrb[33].mxu0  ;;  %1030 = vst [vmem:[%s1610_s21 + $0x180] sm:$0xff] %v1839_v10  ;;  %v921_v14 = vpop.f32.mrb[33].mxu1 }
 0x16a   : > { %v794_v16 = vpop.f32.mrb[34].mxu0  ;;  %v1844_v17 = vpop.f32.mrb[34].mxu1 }
 0x16b   : > { %v1198_v18 = vadd.f32 %v1197_v7, %v1135_v12  ;;  %999 = vst [vmem:[%s1610_s21 + $0x88] sm:$0xff] %v794_v16  ;;  %v1063_v20 = vadd.f32 %v1062_v11, %v794_v16  ;;  %v1136_v21 = vmul.f32 %v794_v16, %v794_v16  ;;  %v796_v22 = vpop.f32.mrb[35].mxu0  ;;  %1031 = vst [vmem:[%s1610_s21 + $0x188] sm:$0xff] %v1844_v17  ;;  %v924_v24 = vpop.f32.mrb[35].mxu1 }
 0x16d   : > { %v1199_v26 = vadd.f32 %v1198_v18, %v1136_v21 }
 0x170   : > { %v799_v27 = vpop.f32.mrb[36].mxu0  ;;  %v1849_v28 = vpop.f32.mrb[36].mxu1 }
 0x171   : > { %1000 = vst [vmem:[%s1610_s21 + $0x90] sm:$0xff] %v799_v27  ;;  %v1064_v29 = vadd.f32 %v1063_v20, %v799_v27  ;;  %v1137_v30 = vmul.f32 %v799_v27, %v799_v27  ;;  %v801_v33 = vpop.f32.mrb[37].mxu0  ;;  %1032 = vst [vmem:[%s1610_s21 + $0x190] sm:$0xff] %v1849_v28  ;;  %v929_v34 = vpop.f32.mrb[37].mxu1 }
 0x172   : > { %v802_v35 = vpop.f32.mrb[38].mxu0  ;;  %v1854_v36 = vpop.f32.mrb[38].mxu1 }
 0x173   : > { %v1200_v38 = vadd.f32 %v1199_v26, %v1137_v30  ;;  %1001 = vst [vmem:[%s1610_s21 + $0x98] sm:$0xff] %v802_v35  ;;  %v1065_v39 = vadd.f32 %v1064_v29, %v802_v35  ;;  %v1138_v40 = vmul.f32 %v802_v35, %v802_v35  ;;  %v804_v42 = vpop.f32.mrb[39].mxu0  ;;  %1033 = vst [vmem:[%s1610_s21 + $0x198] sm:$0xff] %v1854_v36  ;;  %v932_v43 = vpop.f32.mrb[39].mxu1 }
 0x175   : > { %v1201_v44 = vadd.f32 %v1200_v38, %v1138_v40 }
 0x178   : > { %v807_v46 = vpop.f32.mrb[40].mxu0  ;;  %v1859_v47 = vpop.f32.mrb[40].mxu1 }
 0x179   : > { %1002 = vst [vmem:[%s1610_s21 + $0xa0] sm:$0xff] %v807_v46  ;;  %v1066_v49 = vadd.f32 %v1065_v39, %v807_v46  ;;  %v1139_v50 = vmul.f32 %v807_v46, %v807_v46  ;;  %v809_v52 = vpop.f32.mrb[41].mxu0  ;;  %1034 = vst [vmem:[%s1610_s21 + $0x1a0] sm:$0xff] %v1859_v47  ;;  %v937_v53 = vpop.f32.mrb[41].mxu1 }
 0x17a   : > { %v810_v54 = vpop.f32.mrb[42].mxu0  ;;  %v1864_v55 = vpop.f32.mrb[42].mxu1 }
 0x17b   : > { %v1202_v56 = vadd.f32 %v1201_v44, %v1139_v50  ;;  %1003 = vst [vmem:[%s1610_s21 + $0xa8] sm:$0xff] %v810_v54  ;;  %v1067_v58 = vadd.f32 %v1066_v49, %v810_v54  ;;  %v1140_v60 = vmul.f32 %v810_v54, %v810_v54  ;;  %v812_v61 = vpop.f32.mrb[43].mxu0  ;;  %1035 = vst [vmem:[%s1610_s21 + $0x1a8] sm:$0xff] %v1864_v55  ;;  %v940_v62 = vpop.f32.mrb[43].mxu1 }
 0x17d   : > { %v1203_v63 = vadd.f32 %v1202_v56, %v1140_v60 }
 0x180   : > { %v815_v2 = vpop.f32.mrb[44].mxu0  ;;  %v1869_v3 = vpop.f32.mrb[44].mxu1 }
 0x181   : > { %1004 = vst [vmem:[%s1610_s21 + $0xb0] sm:$0xff] %v815_v2  ;;  %v1068_v4 = vadd.f32 %v1067_v58, %v815_v2  ;;  %v1141_v5 = vmul.f32 %v815_v2, %v815_v2  ;;  %v817_v6 = vpop.f32.mrb[45].mxu0  ;;  %1036 = vst [vmem:[%s1610_s21 + $0x1b0] sm:$0xff] %v1869_v3  ;;  %v945_v7 = vpop.f32.mrb[45].mxu1 }
 0x182   : > { %v818_v8 = vpop.f32.mrb[46].mxu0  ;;  %v1874_v11 = vpop.f32.mrb[46].mxu1 }
 0x183   : > { %v1204_v12 = vadd.f32 %v1203_v63, %v1141_v5  ;;  %1005 = vst [vmem:[%s1610_s21 + $0xb8] sm:$0xff] %v818_v8  ;;  %v1069_v13 = vadd.f32 %v1068_v4, %v818_v8  ;;  %v1142_v14 = vmul.f32 %v818_v8, %v818_v8  ;;  %v820_v16 = vpop.f32.mrb[47].mxu0  ;;  %1037 = vst [vmem:[%s1610_s21 + $0x1b8] sm:$0xff] %v1874_v11  ;;  %v948_v18 = vpop.f32.mrb[47].mxu1 }
 0x185   : > { %v1205_v20 = vadd.f32 %v1204_v12, %v1142_v14 }
 0x188   : > { %v823_v21 = vpop.f32.mrb[48].mxu0  ;;  %v1879_v22 = vpop.f32.mrb[48].mxu1 }
 0x189   : > { %1006 = vst [vmem:[%s1610_s21 + $0xc0] sm:$0xff] %v823_v21  ;;  %v1070_v24 = vadd.f32 %v1069_v13, %v823_v21  ;;  %v1143_v26 = vmul.f32 %v823_v21, %v823_v21  ;;  %v825_v27 = vpop.f32.mrb[49].mxu0  ;;  %1038 = vst [vmem:[%s1610_s21 + $0x1c0] sm:$0xff] %v1879_v22  ;;  %v953_v29 = vpop.f32.mrb[49].mxu1 }
 0x18a   : > { %v826_v30 = vpop.f32.mrb[50].mxu0  ;;  %v1884_v33 = vpop.f32.mrb[50].mxu1 }
 0x18b   : > { %v1206_v34 = vadd.f32 %v1205_v20, %v1143_v26  ;;  %1007 = vst [vmem:[%s1610_s21 + $0xc8] sm:$0xff] %v826_v30  ;;  %v1071_v35 = vadd.f32 %v1070_v24, %v826_v30  ;;  %v1144_v38 = vmul.f32 %v826_v30, %v826_v30  ;;  %v828_v39 = vpop.f32.mrb[51].mxu0  ;;  %1039 = vst [vmem:[%s1610_s21 + $0x1c8] sm:$0xff] %v1884_v33  ;;  %v956_v40 = vpop.f32.mrb[51].mxu1 }
 0x18d   : > { %v1207_v42 = vadd.f32 %v1206_v34, %v1144_v38 }
 0x190   : > { %v831_v43 = vpop.f32.mrb[52].mxu0  ;;  %v1889_v44 = vpop.f32.mrb[52].mxu1 }
 0x191   : > { %1008 = vst [vmem:[%s1610_s21 + $0xd0] sm:$0xff] %v831_v43  ;;  %v1072_v46 = vadd.f32 %v1071_v35, %v831_v43  ;;  %v1145_v49 = vmul.f32 %v831_v43, %v831_v43  ;;  %v833_v50 = vpop.f32.mrb[53].mxu0  ;;  %1040 = vst [vmem:[%s1610_s21 + $0x1d0] sm:$0xff] %v1889_v44  ;;  %v961_v52 = vpop.f32.mrb[53].mxu1 }
 0x192   : > { %v834_v53 = vpop.f32.mrb[54].mxu0  ;;  %v1894_v54 = vpop.f32.mrb[54].mxu1  ;;  %v1151_v50 = vmul.f32 %v1759_v19, %v1759_v19 }
 0x193   : > { %v1208_v56 = vadd.f32 %v1207_v42, %v1145_v49  ;;  %1009 = vst [vmem:[%s1610_s21 + $0xd8] sm:$0xff] %v834_v53  ;;  %v1073_v58 = vadd.f32 %v1072_v46, %v834_v53  ;;  %v1146_v60 = vmul.f32 %v834_v53, %v834_v53  ;;  %v836_v61 = vpop.f32.mrb[55].mxu0  ;;  %1041 = vst [vmem:[%s1610_s21 + $0x1d8] sm:$0xff] %v1894_v54  ;;  %v964_v62 = vpop.f32.mrb[55].mxu1 }
 0x194   : > { %v1153_v61 = vmul.f32 %v1769_v31, %v1769_v31 }
 0x195   : > { %v1209_v63 = vadd.f32 %v1208_v56, %v1146_v60  ;;  %v1152_v56 = vmul.f32 %v1764_v23, %v1764_v23 }
 0x198   : > { %v839_v2 = vpop.f32.mrb[56].mxu0  ;;  %v1899_v4 = vpop.f32.mrb[56].mxu1 }
 0x199   : > { %1010 = vst [vmem:[%s1610_s21 + $0xe0] sm:$0xff] %v839_v2  ;;  %v1074_v5 = vadd.f32 %v1073_v58, %v839_v2  ;;  %v1147_v6 = vmul.f32 %v839_v2, %v839_v2  ;;  %v841_v7 = vpop.f32.mrb[57].mxu0  ;;  %1042 = vst [vmem:[%s1610_s21 + $0x1e0] sm:$0xff] %v1899_v4  ;;  %v969_v8 = vpop.f32.mrb[57].mxu1  ;;  %v1154_v2 = vmul.f32 %v1774_v37, %v1774_v37 }
 0x19a   : > { %v842_v12 = vpop.f32.mrb[58].mxu0  ;;  %v1904_v13 = vpop.f32.mrb[58].mxu1 }
 0x19b   : > { %v1210_v14 = vadd.f32 %v1209_v63, %v1147_v6  ;;  %1011 = vst [vmem:[%s1610_s21 + $0xe8] sm:$0xff] %v842_v12  ;;  %v1075_v16 = vadd.f32 %v1074_v5, %v842_v12  ;;  %v1148_v18 = vmul.f32 %v842_v12, %v842_v12  ;;  %v844_v20 = vpop.f32.mrb[59].mxu0  ;;  %1043 = vst [vmem:[%s1610_s21 + $0x1e8] sm:$0xff] %v1904_v13  ;;  %v972_v21 = vpop.f32.mrb[59].mxu1 }
 0x19d   : > { %v1211_v24 = vadd.f32 %v1210_v14, %v1148_v18 }
 0x1a0   : > { %v847_v26 = vpop.f32.mrb[60].mxu0  ;;  %v1909_v27 = vpop.f32.mrb[60].mxu1 }
 0x1a1   : > { %1012 = vst [vmem:[%s1610_s21 + $0xf0] sm:$0xff] %v847_v26  ;;  %v1076_v29 = vadd.f32 %v1075_v16, %v847_v26  ;;  %v1149_v30 = vmul.f32 %v847_v26, %v847_v26  ;;  %v849_v34 = vpop.f32.mrb[61].mxu0  ;;  %1044 = vst [vmem:[%s1610_s21 + $0x1f0] sm:$0xff] %v1909_v27  ;;  %v977_v35 = vpop.f32.mrb[61].mxu1 }
 0x1a2   : > { %v850_v38 = vpop.f32.mrb[62].mxu0  ;;  %v1914_v39 = vpop.f32.mrb[62].mxu1 }
 0x1a3   : > { %v1212_v40 = vadd.f32 %v1211_v24, %v1149_v30  ;;  %1013 = vst [vmem:[%s1610_s21 + $0xf8] sm:$0xff] %v850_v38  ;;  %v1077_v42 = vadd.f32 %v1076_v29, %v850_v38  ;;  %v1150_v43 = vmul.f32 %v850_v38, %v850_v38  ;;  %v852_v46 = vpop.f32.mrb[63].mxu0  ;;  %1045 = vst [vmem:[%s1610_s21 + $0x1f8] sm:$0xff] %v1914_v39  ;;  %v980_v49 = vpop.f32.mrb[63].mxu1 }
 0x1a5   : > { %v1078_v52 = vadd.f32 %v1077_v42, %v1759_v19  ;;  %v1213_v53 = vadd.f32 %v1212_v40, %v1150_v43  ;;  %v1155_v19 = vmul.f32 %v1779_v45, %v1779_v45 }
 0x1a7   : > { %v1079_v58 = vadd.f32 %v1078_v52, %v1764_v23  ;;  %v1214_v60 = vadd.f32 %v1213_v53, %v1151_v50  ;;  %v1156_v23 = vmul.f32 %v1784_v51, %v1784_v51 }
 0x1a9   : > { %v1080_v62 = vadd.f32 %v1079_v58, %v1769_v31  ;;  %v1215_v63 = vadd.f32 %v1214_v60, %v1152_v56  ;;  %v1157_v31 = vmul.f32 %v1789_v59, %v1789_v59  ;;  %v1167_v58 = vmul.f32 %v1839_v10, %v1839_v10 }
 0x1ab   : > { %v1081_v5 = vadd.f32 %v1080_v62, %v1774_v37  ;;  %v1216_v6 = vadd.f32 %v1215_v63, %v1153_v61  ;;  %v1158_v37 = vmul.f32 %v1794_v1, %v1794_v1  ;;  %v1168_v62 = vmul.f32 %v1844_v17, %v1844_v17 }
 0x1ad   : > { %v1082_v7 = vadd.f32 %v1081_v5, %v1779_v45  ;;  %v1217_v8 = vadd.f32 %v1216_v6, %v1154_v2  ;;  %v1159_v45 = vmul.f32 %v1799_v9, %v1799_v9  ;;  %v1169_v2 = vmul.f32 %v1849_v28, %v1849_v28 }
 0x1ae   : > { %v1170_v6 = vmul.f32 %v1854_v36, %v1854_v36 }
 0x1af   : > { %v1083_v12 = vadd.f32 %v1082_v7, %v1784_v51  ;;  %v1218_v14 = vadd.f32 %v1217_v8, %v1155_v19  ;;  %v1160_v51 = vmul.f32 %v1804_v15, %v1804_v15  ;;  %v1171_v7 = vmul.f32 %v1859_v47, %v1859_v47 }
 0x1b1   : > { %v1084_v16 = vadd.f32 %v1083_v12, %v1789_v59  ;;  %v1219_v18 = vadd.f32 %v1218_v14, %v1156_v23  ;;  %v1161_v59 = vmul.f32 %v1809_v25, %v1809_v25  ;;  %v1172_v23 = vmul.f32 %v1864_v55, %v1864_v55 }
 0x1b2   : > { %v1173_v14 = vmul.f32 %v1869_v3, %v1869_v3 }
 0x1b3   : > { %v1085_v20 = vadd.f32 %v1084_v16, %v1794_v1  ;;  %v1220_v21 = vadd.f32 %v1219_v18, %v1157_v31  ;;  %v1162_v1 = vmul.f32 %v1814_v32, %v1814_v32  ;;  %v1174_v16 = vmul.f32 %v1874_v11, %v1874_v11 }
 0x1b5   : > { %v1221_v24 = vadd.f32 %v1220_v21, %v1158_v37  ;;  %v1086_v26 = vadd.f32 %v1085_v20, %v1799_v9  ;;  %v1163_v9 = vmul.f32 %v1819_v41, %v1819_v41  ;;  %v1175_v37 = vmul.f32 %v1879_v22, %v1879_v22 }
 0x1b6   : > { %v1176_v21 = vmul.f32 %v1884_v33, %v1884_v33 }
 0x1b7   : > { %v1087_v29 = vadd.f32 %v1086_v26, %v1804_v15  ;;  %v1222_v30 = vadd.f32 %v1221_v24, %v1159_v45  ;;  %v1164_v15 = vmul.f32 %v1824_v48, %v1824_v48  ;;  %v1177_v24 = vmul.f32 %v1889_v44, %v1889_v44 }
 0x1b9   : > { %v1088_v34 = vadd.f32 %v1087_v29, %v1809_v25  ;;  %v1223_v35 = vadd.f32 %v1222_v30, %v1160_v51  ;;  %v1165_v25 = vmul.f32 %v1829_v57, %v1829_v57  ;;  %v1178_v51 = vmul.f32 %v1894_v54, %v1894_v54 }
 0x1ba   : > { %v1179_v30 = vmul.f32 %v1899_v4, %v1899_v4 }
 0x1bb   : > { %v1089_v38 = vadd.f32 %v1088_v34, %v1814_v32  ;;  %v1224_v40 = vadd.f32 %v1223_v35, %v1161_v59  ;;  %v1166_v32 = vmul.f32 %v1834_v0, %v1834_v0  ;;  %v1180_v34 = vmul.f32 %v1904_v13, %v1904_v13 }
 0x1bd   : > { %v1090_v42 = vadd.f32 %v1089_v38, %v1819_v41  ;;  %v1225_v43 = vadd.f32 %v1224_v40, %v1162_v1  ;;  %v1182_v40 = vmul.f32 %v1914_v39, %v1914_v39 }
 0x1bf   : > { %v1091_v46 = vadd.f32 %v1090_v42, %v1824_v48  ;;  %v1226_v49 = vadd.f32 %v1225_v43, %v1163_v9 }
 0x1c1   : > { %v1092_v50 = vadd.f32 %v1091_v46, %v1829_v57  ;;  %v1227_v52 = vadd.f32 %v1226_v49, %v1164_v15 }
 0x1c3   : > { %v1093_v53 = vadd.f32 %v1092_v50, %v1834_v0  ;;  %v1228_v56 = vadd.f32 %v1227_v52, %v1165_v25 }
 0x1c5   : > { %v1094_v41 = vadd.f32 %v1093_v53, %v1839_v10  ;;  %v1229_v60 = vadd.f32 %v1228_v56, %v1166_v32 }
 0x1c7   : > { %v1230_v48 = vadd.f32 %v1229_v60, %v1167_v58  ;;  %v1095_v61 = vadd.f32 %v1094_v41, %v1844_v17 }
 0x1c9   : > { %v1231_v57 = vadd.f32 %v1230_v48, %v1168_v62  ;;  %v1096_v63 = vadd.f32 %v1095_v61, %v1849_v28 }
 0x1cb   : > { %v1232_v0 = vadd.f32 %v1231_v57, %v1169_v2  ;;  %v1097_v5 = vadd.f32 %v1096_v63, %v1854_v36 }
 0x1cd   : > { %v1233_v10 = vadd.f32 %v1232_v0, %v1170_v6  ;;  %v1098_v19 = vadd.f32 %v1097_v5, %v1859_v47 }
 0x1cf   : > { %v1234_v8 = vadd.f32 %v1233_v10, %v1171_v7  ;;  %v1099_v17 = vadd.f32 %v1098_v19, %v1864_v55 }
 0x1d1   : > { %v1235_v12 = vadd.f32 %v1234_v8, %v1172_v23  ;;  %v1100_v28 = vadd.f32 %v1099_v17, %v1869_v3 }
 0x1d3   : > { %v1236_v31 = vadd.f32 %v1235_v12, %v1173_v14  ;;  %v1101_v36 = vadd.f32 %v1100_v28, %v1874_v11 }
 0x1d5   : > { %v1237_v18 = vadd.f32 %v1236_v31, %v1174_v16  ;;  %v1102_v47 = vadd.f32 %v1101_v36, %v1879_v22 }
 0x1d7   : > { %v1238_v20 = vadd.f32 %v1237_v18, %v1175_v37  ;;  %v1103_v55 = vadd.f32 %v1102_v47, %v1884_v33 }
 0x1d9   : > { %v1239_v45 = vadd.f32 %v1238_v20, %v1176_v21  ;;  %v1104_v3 = vadd.f32 %v1103_v55, %v1889_v44  ;;  %v1181_v44 = vmul.f32 %v1909_v27, %v1909_v27 }
 0x1db   : > { %v1240_v26 = vadd.f32 %v1239_v45, %v1177_v24  ;;  %v1105_v11 = vadd.f32 %v1104_v3, %v1894_v54 }
 0x1dd   : > { %v1241_v29 = vadd.f32 %v1240_v26, %v1178_v51  ;;  %v1106_v22 = vadd.f32 %v1105_v11, %v1899_v4 }
 0x1df   : > { %v1242_v59 = vadd.f32 %v1241_v29, %v1179_v30  ;;  %v1107_v33 = vadd.f32 %v1106_v22, %v1904_v13 }
 0x1e1   : > { %v1243_v35 = vadd.f32 %v1242_v59, %v1180_v34  ;;  %v1108_v1 = vadd.f32 %v1107_v33, %v1909_v27  ;;  %v1046_v27 = vld [vmem:[%s2033_s3] sm:$0x1] }
 0x1e3   : > { %v1244_v38 = vadd.f32 %v1243_v35, %v1181_v44  ;;  %v1109_v54 = vadd.f32 %v1108_v1, %v1914_v39  ;;  %v1118_v39 = vld [vmem:[%s2033_s3 + $0x1] sm:$0x1] }
 0x1e5   : > { %v1110_v9 = vrot.slane %v1109_v54, 4  ;;  %v1245_v4 = vadd.f32 %v1244_v38, %v1182_v40 }
 0x1e7   : > { %v1111_v42 = vadd.f32 %v1110_v9, %v1109_v54  ;;  %v1246_v43 = vrot.slane %v1245_v4, 4 }
 0x1e9   : > { %v1112_v15 = vrot.slane %v1111_v42, 2  ;;  %v1247_v46 = vadd.f32 %v1246_v43, %v1245_v4 }
 0x1eb   : > { %v1113_v49 = vadd.f32 %v1112_v15, %v1111_v42  ;;  %v1248_v13 = vrot.slane %v1247_v46, 2 }
 0x1ed   : > { %v1114_v25 = vrot.slane %v1113_v49, 1  ;;  %v1249_v50 = vadd.f32 %v1248_v13, %v1247_v46 }
 0x1ef   : > { %v1115_v52 = vadd.f32 %v1114_v25, %v1113_v49  ;;  %v1250_v32 = vrot.slane %v1249_v50, 1 }
 0x1f1   : > { %v1116_v53 = vadd.f32 %v1115_v52, %v1046_v27  ;;  %v1251_v56 = vadd.f32 %v1250_v32, %v1249_v50 }
 0x1f3   : > { %1117 = vst [vmem:[%s2033_s3] sm:$0x1] %v1116_v53  ;;  %v1252_v41 = vadd.f32 %v1251_v56, %v1118_v39 }
 0x1f5   : > { %1253 = vst [vmem:[%s2033_s3 + $0x1] sm:$0x1] %v1252_v41 }
 0x1f6 PF: > { %s14_s12 = sadd.s32 1, %s1570_s12  }
 0x1f7   : > { %p11_p5 = scmp.ge.s32.totalorder %s14_s12, 4  }
 0x1f9   :  { %13 = sbr.rel (!%p11_p5) target bundleno = 1 (0x1), region = 70 }

// kernel: conv_feature_extract.8
= control target key start
LH: loop header
LB: loop body
LE: loop exit
PB: predicated region body
PF: predicated region fallthrough
CT: control target
= control target key end

     0   :  { %s1232_s15 = smov 0   ;;  %s1497_s0 = inlined_call_operand.vmem [shape: f32[1024,128], index: 0, kind: input, shape index: {}]   ;;  %s1498_s1 = inlined_call_operand.vmem [shape: f32[2,128], index: 1, kind: input, shape index: {}]   ;;  %s1499_s2 = inlined_call_operand.vmem [shape: f32[1,128], index: 2, kind: input, shape index: {}]   ;;  %s1500_s3 = inlined_call_operand.vmem [shape: f32[1,128], index: 3, kind: input, shape index: {}]   ;;  %s1501_s4 = inlined_call_operand.vmem [shape: bf16[1024,128], index: 4, kind: output, shape index: {}]  }
   0x1 LB: > { %s859_s16 = sadd.s32 4294967295, %s1205_s15   ;;  %p863_p0 = scmp.ge.s32.totalorder %s1205_s15, 1  ;;  %s1205_s15 = sphi %s1232_s15, %s14_s15  }
   0x2   : > { %p163_p1 = scmp.lt.s32.totalorder %s1205_s15, 3 }
   0x4   : > { %p164_p2 = pnand %p863_p0, %p163_p1 }
   0x5   : > { %v201_v0 = vld [vmem:[%s1498_s1] sm:$0x1] (!%p164_p2)  ;;  %v203_v1 = vld [vmem:[%s1498_s1 + $0x1] sm:$0x1] (!%p164_p2)  ;;  %s864_s21 = sshll.u32 (!%p164_p2), %s859_s16, 6  ;;  %v280_v8 = vlaneseq (!%p164_p2) }
   0x6   : > { %167 = sbr.rel (%p164_p2) target bundleno = 93 (0x5d), region = 36  ;;  %v202_v2 = vmul.f32 (!%p164_p2), 0.00125, %v201_v0  ;;  %v204_v3 = vmul.f32 (!%p164_p2), 0.00125, %v203_v1  ;;  %p190_p3 = scmp.lt.s32.totalorder (!%p164_p2), %s864_s21, 127 }
   0x7   : > { %v281_v9 = vshrl.u32 (!%p164_p2), %v280_v8, 7  ;;  %v208_v10 = vld [vmem:[%s1499_s2] sm:$0x1] (!%p164_p2) }
   0x8   : > { %v205_v4 = vmul.f32 (!%p164_p2), %v202_v2, %v202_v2  ;;  %v212_v14 = vld [vmem:[%s1500_s3] sm:$0x1] (!%p164_p2) }
   0x9   : > { %v282_v11 = vsub.s32 (!%p164_p2), 0, %v281_v9 }
   0xa   : > { %v206_v5 = vsub.f32 (!%p164_p2), %v204_v3, %v205_v4 }
   0xc   : > { %v207_v6 = vmax.f32 (!%p164_p2), %v206_v5, 0.0 }
   0xd   : > { %s1503_s21 = smov (!%p190_p3, %s864_s21), 127 }
   0xe   : > { %v209_v7 = vadd.f32 1e-05, %v207_v6  ;;  %s865_s22 = sshll.u32 %s1503_s21, 3  ;;  %s867_s30 = sshll.u32 %s1503_s21, 2 }
   0xf   : > { %s1252_s25 = scalar_lea.vmem %s1497_s0, %s865_s22  ;;  %s1304_s7 = scalar_lea.vmem %s1501_s4, %s867_s30 }
  0x10   : > { %1197 = vrsqrt.f32 %v209_v7  ;;  %v215_v15 = vld [vmem:[%s1252_s25] sm:$0xff]  ;;  %v216_v16 = vld [vmem:[%s1252_s25 + $0x8] sm:$0xff]  ;;  %v217_v17 = vld [vmem:[%s1252_s25 + $0x10] sm:$0xff] }
  0x11   : > { %v218_v18 = vld [vmem:[%s1252_s25 + $0x18] sm:$0xff]  ;;  %v219_v19 = vld [vmem:[%s1252_s25 + $0x20] sm:$0xff]  ;;  %v220_v22 = vld [vmem:[%s1252_s25 + $0x28] sm:$0xff] }
  0x12   : > { %v221_v23 = vld [vmem:[%s1252_s25 + $0x30] sm:$0xff]  ;;  %v222_v24 = vld [vmem:[%s1252_s25 + $0x38] sm:$0xff]  ;;  %v223_v25 = vld [vmem:[%s1252_s25 + $0x40] sm:$0xff] }
  0x13   : > { %v224_v26 = vld [vmem:[%s1252_s25 + $0x48] sm:$0xff]  ;;  %v225_v27 = vld [vmem:[%s1252_s25 + $0x50] sm:$0xff]  ;;  %v226_v32 = vld [vmem:[%s1252_s25 + $0x58] sm:$0xff] }
  0x14   : > { %v227_v33 = vld [vmem:[%s1252_s25 + $0x60] sm:$0xff]  ;;  %v228_v34 = vld [vmem:[%s1252_s25 + $0x68] sm:$0xff]  ;;  %v229_v3 = vld [vmem:[%s1252_s25 + $0x70] sm:$0xff] }
  0x15   : > { %v230_v4 = vld [vmem:[%s1252_s25 + $0x78] sm:$0xff]  ;;  %v231_v9 = vld [vmem:[%s1252_s25 + $0x80] sm:$0xff] }
  0x1a   : > { %v1198_v12 = vpop.eup %1197 }
  0x1b   : > { %v211_v13 = vmul.f32 %v1198_v12, %v208_v10 }
  0x1d   : > { %v213_v20 = vmul.f32 %v211_v13, %v202_v2  ;;  %v1265_v21 = vrot.slane %v211_v13, %v282_v11 }
  0x1f   : > { %v214_v28 = vsub.f32 %v212_v14, %v213_v20  ;;  %v285_v29 = vmul.f32 %v1265_v21, %v215_v15  ;;  %v286_v30 = vmul.f32 %v1265_v21, %v216_v16  ;;  %v287_v31 = vmul.f32 %v1265_v21, %v217_v17  ;;  %v232_v14 = vld [vmem:[%s1252_s25 + $0x88] sm:$0xff]  ;;  %v234_v20 = vld [vmem:[%s1252_s25 + $0x98] sm:$0xff] }
  0x20   : > { %v288_v35 = vmul.f32 %v1265_v21, %v218_v18  ;;  %v289_v36 = vmul.f32 %v1265_v21, %v219_v19  ;;  %v290_v37 = vmul.f32 %v1265_v21, %v220_v22  ;;  %v291_v38 = vmul.f32 %v1265_v21, %v221_v23  ;;  %v233_v19 = vld [vmem:[%s1252_s25 + $0x90] sm:$0xff] }
  0x21   : > { %v1283_v39 = vrot.slane %v214_v28, %v282_v11  ;;  %v292_v40 = vmul.f32 %v1265_v21, %v222_v24  ;;  %v293_v41 = vmul.f32 %v1265_v21, %v223_v25  ;;  %v294_v42 = vmul.f32 %v1265_v21, %v224_v26  ;;  %v235_v26 = vld [vmem:[%s1252_s25 + $0xa0] sm:$0xff] }
  0x22   : > { %v295_v43 = vmul.f32 %v1265_v21, %v225_v27  ;;  %v296_v44 = vmul.f32 %v1265_v21, %v226_v32  ;;  %v297_v45 = vmul.f32 %v1265_v21, %v227_v33  ;;  %v298_v46 = vmul.f32 %v1265_v21, %v228_v34 }
  0x23   : > { %v355_v47 = vadd.f32 %v1283_v39, %v285_v29  ;;  %v356_v48 = vadd.f32 %v1283_v39, %v286_v30  ;;  %v357_v49 = vadd.f32 %v1283_v39, %v287_v31  ;;  %v358_v50 = vadd.f32 %v1283_v39, %v288_v35  ;;  %v236_v31 = vld [vmem:[%s1252_s25 + $0xa8] sm:$0xff] }
  0x24   : > { %v359_v51 = vadd.f32 %v1283_v39, %v289_v36  ;;  %v360_v52 = vadd.f32 %v1283_v39, %v290_v37  ;;  %v361_v53 = vadd.f32 %v1283_v39, %v291_v38  ;;  %v362_v54 = vadd.f32 %v1283_v39, %v292_v40  ;;  %v237_v36 = vld [vmem:[%s1252_s25 + $0xb0] sm:$0xff] }
  0x25   : > { %v419_v55 = vmax.f32 %v355_v47, 0.0  ;;  %v420_v56 = vmax.f32 %v356_v48, 0.0  ;;  %v421_v57 = vmax.f32 %v357_v49, 0.0  ;;  %v422_v58 = vmax.f32 %v358_v50, 0.0  ;;  %v239_v47 = vld [vmem:[%s1252_s25 + $0xc0] sm:$0xff] }
  0x26   : > { %v423_v59 = vmax.f32 %v359_v51, 0.0  ;;  %v424_v60 = vmax.f32 %v360_v52, 0.0  ;;  %v425_v61 = vmax.f32 %v361_v53, 0.0  ;;  %v426_v62 = vmax.f32 %v362_v54, 0.0  ;;  %v240_v52 = vld [vmem:[%s1252_s25 + $0xc8] sm:$0xff] }
  0x27   : > { %v1001_v63 = vpack.c.bf16 %v420_v56, %v419_v55  ;;  %v1006_v0 = vpack.c.bf16 %v422_v58, %v421_v57  ;;  %v363_v1 = vadd.f32 %v1283_v39, %v293_v41  ;;  %v364_v2 = vadd.f32 %v1283_v39, %v294_v42  ;;  %v238_v42 = vld [vmem:[%s1252_s25 + $0xb8] sm:$0xff]  ;;  %v241_v57 = vld [vmem:[%s1252_s25 + $0xd0] sm:$0xff] }
  0x28   : > { %v1011_v5 = vpack.c.bf16 %v424_v60, %v423_v59  ;;  %v1016_v6 = vpack.c.bf16 %v426_v62, %v425_v61  ;;  %v365_v7 = vadd.f32 %v1283_v39, %v295_v43  ;;  %v366_v8 = vadd.f32 %v1283_v39, %v296_v44  ;;  %v242_v58 = vld [vmem:[%s1252_s25 + $0xd8] sm:$0xff] }
  0x29   : > { %1002 = vst [vmem:[%s1304_s7] sm:$0xff] %v1001_v63   ;;  %1158 = vst [vmem:[%s1304_s7 + $0x8] sm:$0xff] %v1006_v0   ;;  %v427_v10 = vmax.f32 %v363_v1, 0.0  ;;  %v428_v11 = vmax.f32 %v364_v2, 0.0  ;;  %v367_v12 = vadd.f32 %v1283_v39, %v297_v45  ;;  %v368_v13 = vadd.f32 %v1283_v39, %v298_v46  ;;  %v243_v63 = vld [vmem:[%s1252_s25 + $0xe0] sm:$0xff] }
  0x2a   : > { %1159 = vst [vmem:[%s1304_s7 + $0x10] sm:$0xff] %v1011_v5   ;;  %1160 = vst [vmem:[%s1304_s7 + $0x18] sm:$0xff] %v1016_v6   ;;  %v429_v15 = vmax.f32 %v365_v7, 0.0  ;;  %v430_v16 = vmax.f32 %v366_v8, 0.0  ;;  %v299_v17 = vmul.f32 %v1265_v21, %v229_v3  ;;  %v300_v18 = vmul.f32 %v1265_v21, %v230_v4  ;;  %v244_v4 = vld [vmem:[%s1252_s25 + $0xe8] sm:$0xff] }
  0x2b   : > { %v1021_v22 = vpack.c.bf16 %v428_v11, %v427_v10  ;;  %v431_v23 = vmax.f32 %v367_v12, 0.0  ;;  %v432_v24 = vmax.f32 %v368_v13, 0.0  ;;  %v301_v25 = vmul.f32 %v1265_v21, %v231_v9  ;;  %v245_v9 = vld [vmem:[%s1252_s25 + $0xf0] sm:$0xff] }
  0x2c   : > { %v1026_v27 = vpack.c.bf16 %v430_v16, %v429_v15  ;;  %v369_v28 = vadd.f32 %v1283_v39, %v299_v17  ;;  %v370_v29 = vadd.f32 %v1283_v39, %v300_v18  ;;  %v302_v30 = vmul.f32 %v1265_v21, %v232_v14  ;;  %v246_v14 = vld [vmem:[%s1252_s25 + $0xf8] sm:$0xff] }
  0x2d   : > { %1161 = vst [vmem:[%s1304_s7 + $0x20] sm:$0xff] %v1021_v22   ;;  %v1031_v32 = vpack.c.bf16 %v432_v24, %v431_v23  ;;  %v371_v33 = vadd.f32 %v1283_v39, %v301_v25  ;;  %v303_v34 = vmul.f32 %v1265_v21, %v233_v19  ;;  %v304_v35 = vmul.f32 %v1265_v21, %v234_v20  ;;  %v247_v19 = vld [vmem:[%s1252_s25 + $0x100] sm:$0xff]  ;;  %v248_v25 = vld [vmem:[%s1252_s25 + $0x108] sm:$0xff] }
  0x2e   : > { %1162 = vst [vmem:[%s1304_s7 + $0x28] sm:$0xff] %v1026_v27   ;;  %v433_v37 = vmax.f32 %v369_v28, 0.0  ;;  %v434_v38 = vmax.f32 %v370_v29, 0.0  ;;  %v372_v40 = vadd.f32 %v1283_v39, %v302_v30  ;;  %v305_v41 = vmul.f32 %v1265_v21, %v235_v26  ;;  %v249_v30 = vld [vmem:[%s1252_s25 + $0x110] sm:$0xff] }
  0x2f   : > { %1163 = vst [vmem:[%s1304_s7 + $0x30] sm:$0xff] %v1031_v32   ;;  %v435_v43 = vmax.f32 %v371_v33, 0.0  ;;  %v373_v44 = vadd.f32 %v1283_v39, %v303_v34  ;;  %v374_v45 = vadd.f32 %v1283_v39, %v304_v35  ;;  %v306_v46 = vmul.f32 %v1265_v21, %v236_v31  ;;  %v250_v31 = vld [vmem:[%s1252_s25 + $0x118] sm:$0xff] }
  0x30   : > { %v1036_v48 = vpack.c.bf16 %v434_v38, %v433_v37  ;;  %v436_v49 = vmax.f32 %v372_v40, 0.0  ;;  %v375_v50 = vadd.f32 %v1283_v39, %v305_v41  ;;  %v307_v51 = vmul.f32 %v1265_v21, %v237_v36  ;;  %v251_v36 = vld [vmem:[%s1252_s25 + $0x120] sm:$0xff] }
  0x31   : > { %v437_v53 = vmax.f32 %v373_v44, 0.0  ;;  %v438_v54 = vmax.f32 %v374_v45, 0.0  ;;  %v376_v55 = vadd.f32 %v1283_v39, %v306_v46  ;;  %v308_v56 = vmul.f32 %v1265_v21, %v238_v42  ;;  %v252_v42 = vld [vmem:[%s1252_s25 + $0x128] sm:$0xff] }
  0x32   : > { %1164 = vst [vmem:[%s1304_s7 + $0x38] sm:$0xff] %v1036_v48   ;;  %v1041_v59 = vpack.c.bf16 %v436_v49, %v435_v43  ;;  %v439_v60 = vmax.f32 %v375_v50, 0.0  ;;  %v377_v61 = vadd.f32 %v1283_v39, %v307_v51  ;;  %v309_v62 = vmul.f32 %v1265_v21, %v239_v47  ;;  %v253_v47 = vld [vmem:[%s1252_s25 + $0x130] sm:$0xff] }
  0x33   : > { %v1046_v0 = vpack.c.bf16 %v438_v54, %v437_v53  ;;  %v440_v1 = vmax.f32 %v376_v55, 0.0  ;;  %v378_v2 = vadd.f32 %v1283_v39, %v308_v56  ;;  %v310_v3 = vmul.f32 %v1265_v21, %v240_v52  ;;  %v254_v52 = vld [vmem:[%s1252_s25 + $0x138] sm:$0xff] }
  0x34   : > { %1165 = vst [vmem:[%s1304_s7 + $0x40] sm:$0xff] %v1041_v59   ;;  %v441_v5 = vmax.f32 %v377_v61, 0.0  ;;  %v379_v6 = vadd.f32 %v1283_v39, %v309_v62  ;;  %v311_v7 = vmul.f32 %v1265_v21, %v241_v57  ;;  %v312_v8 = vmul.f32 %v1265_v21, %v242_v58  ;;  %v255_v57 = vld [vmem:[%s1252_s25 + $0x140] sm:$0xff]  ;;  %v256_v62 = vld [vmem:[%s1252_s25 + $0x148] sm:$0xff] }
  0x35   : > { %1166 = vst [vmem:[%s1304_s7 + $0x48] sm:$0xff] %v1046_v0   ;;  %v1051_v10 = vpack.c.bf16 %v440_v1, %v439_v60  ;;  %v442_v11 = vmax.f32 %v378_v2, 0.0  ;;  %v380_v12 = vadd.f32 %v1283_v39, %v310_v3  ;;  %v313_v13 = vmul.f32 %v1265_v21, %v243_v63  ;;  %v257_v3 = vld [vmem:[%s1252_s25 + $0x150] sm:$0xff] }
  0x36   : > { %v443_v15 = vmax.f32 %v379_v6, 0.0  ;;  %v381_v16 = vadd.f32 %v1283_v39, %v311_v7  ;;  %v382_v17 = vadd.f32 %v1283_v39, %v312_v8  ;;  %v314_v18 = vmul.f32 %v1265_v21, %v244_v4  ;;  %v258_v4 = vld [vmem:[%s1252_s25 + $0x158] sm:$0xff] }
  0x37   : > { %1167 = vst [vmem:[%s1304_s7 + $0x50] sm:$0xff] %v1051_v10   ;;  %v1056_v20 = vpack.c.bf16 %v442_v11, %v441_v5  ;;  %v444_v22 = vmax.f32 %v380_v12, 0.0  ;;  %v383_v23 = vadd.f32 %v1283_v39, %v313_v13  ;;  %v315_v24 = vmul.f32 %v1265_v21, %v245_v9  ;;  %v259_v9 = vld [vmem:[%s1252_s25 + $0x160] sm:$0xff] }
  0x38   : > { %v445_v26 = vmax.f32 %v381_v16, 0.0  ;;  %v446_v27 = vmax.f32 %v382_v17, 0.0  ;;  %v384_v28 = vadd.f32 %v1283_v39, %v314_v18  ;;  %v316_v29 = vmul.f32 %v1265_v21, %v246_v14  ;;  %v260_v14 = vld [vmem:[%s1252_s25 + $0x168] sm:$0xff] }
  0x39   : > { %1168 = vst [vmem:[%s1304_s7 + $0x58] sm:$0xff] %v1056_v20   ;;  %v1061_v32 = vpack.c.bf16 %v444_v22, %v443_v15  ;;  %v447_v33 = vmax.f32 %v383_v23, 0.0  ;;  %v385_v34 = vadd.f32 %v1283_v39, %v315_v24  ;;  %v317_v35 = vmul.f32 %v1265_v21, %v247_v19  ;;  %v261_v19 = vld [vmem:[%s1252_s25 + $0x170] sm:$0xff] }
  0x3a   : > { %v1066_v37 = vpack.c.bf16 %v446_v27, %v445_v26  ;;  %v448_v38 = vmax.f32 %v384_v28, 0.0  ;;  %v386_v40 = vadd.f32 %v1283_v39, %v316_v29  ;;  %v318_v41 = vmul.f32 %v1265_v21, %v248_v25  ;;  %v262_v25 = vld [vmem:[%s1252_s25 + $0x178] sm:$0xff] }
  0x3b   : > { %1169 = vst [vmem:[%s1304_s7 + $0x60] sm:$0xff] %v1061_v32   ;;  %v449_v43 = vmax.f32 %v385_v34, 0.0  ;;  %v387_v44 = vadd.f32 %v1283_v39, %v317_v35  ;;  %v319_v45 = vmul.f32 %v1265_v21, %v249_v30  ;;  %v320_v46 = vmul.f32 %v1265_v21, %v250_v31  ;;  %v263_v30 = vld [vmem:[%s1252_s25 + $0x180] sm:$0xff]  ;;  %v264_v35 = vld [vmem:[%s1252_s25 + $0x188] sm:$0xff] }
  0x3c   : > { %1170 = vst [vmem:[%s1304_s7 + $0x68] sm:$0xff] %v1066_v37   ;;  %v1071_v48 = vpack.c.bf16 %v448_v38, %v447_v33  ;;  %v450_v49 = vmax.f32 %v386_v40, 0.0  ;;  %v388_v50 = vadd.f32 %v1283_v39, %v318_v41  ;;  %v321_v51 = vmul.f32 %v1265_v21, %v251_v36  ;;  %v265_v41 = vld [vmem:[%s1252_s25 + $0x190] sm:$0xff] }
  0x3d   : > { %v451_v53 = vmax.f32 %v387_v44, 0.0  ;;  %v389_v54 = vadd.f32 %v1283_v39, %v319_v45  ;;  %v390_v55 = vadd.f32 %v1283_v39, %v320_v46  ;;  %v322_v56 = vmul.f32 %v1265_v21, %v252_v42  ;;  %v266_v42 = vld [vmem:[%s1252_s25 + $0x198] sm:$0xff] }
  0x3e   : > { %1171 = vst [vmem:[%s1304_s7 + $0x70] sm:$0xff] %v1071_v48   ;;  %v1076_v58 = vpack.c.bf16 %v450_v49, %v449_v43  ;;  %v452_v59 = vmax.f32 %v388_v50, 0.0  ;;  %v391_v60 = vadd.f32 %v1283_v39, %v321_v51  ;;  %v323_v61 = vmul.f32 %v1265_v21, %v253_v47  ;;  %v267_v47 = vld [vmem:[%s1252_s25 + $0x1a0] sm:$0xff] }
  0x3f   : > { %v453_v63 = vmax.f32 %v389_v54, 0.0  ;;  %v454_v0 = vmax.f32 %v390_v55, 0.0  ;;  %v392_v1 = vadd.f32 %v1283_v39, %v322_v56  ;;  %v324_v2 = vmul.f32 %v1265_v21, %v254_v52  ;;  %v268_v52 = vld [vmem:[%s1252_s25 + $0x1a8] sm:$0xff] }
  0x40   : > { %1172 = vst [vmem:[%s1304_s7 + $0x78] sm:$0xff] %v1076_v58   ;;  %v1081_v5 = vpack.c.bf16 %v452_v59, %v451_v53  ;;  %v455_v6 = vmax.f32 %v391_v60, 0.0  ;;  %v393_v7 = vadd.f32 %v1283_v39, %v323_v61  ;;  %v325_v8 = vmul.f32 %v1265_v21, %v255_v57  ;;  %v269_v57 = vld [vmem:[%s1252_s25 + $0x1b0] sm:$0xff] }
  0x41   : > { %v1086_v10 = vpack.c.bf16 %v454_v0, %v453_v63  ;;  %v456_v11 = vmax.f32 %v392_v1, 0.0  ;;  %v394_v12 = vadd.f32 %v1283_v39, %v324_v2  ;;  %v326_v13 = vmul.f32 %v1265_v21, %v256_v62  ;;  %v270_v62 = vld [vmem:[%s1252_s25 + $0x1b8] sm:$0xff] }
  0x42   : > { %1173 = vst [vmem:[%s1304_s7 + $0x80] sm:$0xff] %v1081_v5   ;;  %v457_v15 = vmax.f32 %v393_v7, 0.0  ;;  %v395_v16 = vadd.f32 %v1283_v39, %v325_v8  ;;  %v327_v17 = vmul.f32 %v1265_v21, %v257_v3  ;;  %v328_v18 = vmul.f32 %v1265_v21, %v258_v4  ;;  %v271_v3 = vld [vmem:[%s1252_s25 + $0x1c0] sm:$0xff]  ;;  %v272_v8 = vld [vmem:[%s1252_s25 + $0x1c8] sm:$0xff] }
  0x43   : > { %1174 = vst [vmem:[%s1304_s7 + $0x88] sm:$0xff] %v1086_v10   ;;  %v1091_v20 = vpack.c.bf16 %v456_v11, %v455_v6  ;;  %v458_v22 = vmax.f32 %v394_v12, 0.0  ;;  %v396_v23 = vadd.f32 %v1283_v39, %v326_v13  ;;  %v329_v24 = vmul.f32 %v1265_v21, %v259_v9  ;;  %v273_v13 = vld [vmem:[%s1252_s25 + $0x1d0] sm:$0xff] }
  0x44   : > { %v459_v26 = vmax.f32 %v395_v16, 0.0  ;;  %v397_v27 = vadd.f32 %v1283_v39, %v327_v17  ;;  %v398_v28 = vadd.f32 %v1283_v39, %v328_v18  ;;  %v330_v29 = vmul.f32 %v1265_v21, %v260_v14  ;;  %v274_v14 = vld [vmem:[%s1252_s25 + $0x1d8] sm:$0xff] }
  0x45   : > { %1175 = vst [vmem:[%s1304_s7 + $0x90] sm:$0xff] %v1091_v20   ;;  %v1096_v31 = vpack.c.bf16 %v458_v22, %v457_v15  ;;  %v460_v32 = vmax.f32 %v396_v23, 0.0  ;;  %v399_v33 = vadd.f32 %v1283_v39, %v329_v24  ;;  %v331_v34 = vmul.f32 %v1265_v21, %v261_v19  ;;  %v275_v19 = vld [vmem:[%s1252_s25 + $0x1e0] sm:$0xff] }
  0x46   : > { %v461_v36 = vmax.f32 %v397_v27, 0.0  ;;  %v462_v37 = vmax.f32 %v398_v28, 0.0  ;;  %v400_v38 = vadd.f32 %v1283_v39, %v330_v29  ;;  %v332_v40 = vmul.f32 %v1265_v21, %v262_v25  ;;  %v276_v25 = vld [vmem:[%s1252_s25 + $0x1e8] sm:$0xff] }
  0x47   : > { %1176 = vst [vmem:[%s1304_s7 + $0x98] sm:$0xff] %v1096_v31   ;;  %v1101_v43 = vpack.c.bf16 %v460_v32, %v459_v26  ;;  %v463_v44 = vmax.f32 %v399_v33, 0.0  ;;  %v401_v45 = vadd.f32 %v1283_v39, %v331_v34  ;;  %v333_v46 = vmul.f32 %v1265_v21, %v263_v30  ;;  %v277_v30 = vld [vmem:[%s1252_s25 + $0x1f0] sm:$0xff] }
  0x48   : > { %v1106_v48 = vpack.c.bf16 %v462_v37, %v461_v36  ;;  %v464_v49 = vmax.f32 %v400_v38, 0.0  ;;  %v402_v50 = vadd.f32 %v1283_v39, %v332_v40  ;;  %v334_v51 = vmul.f32 %v1265_v21, %v264_v35  ;;  %v278_v35 = vld [vmem:[%s1252_s25 + $0x1f8] sm:$0xff] }
  0x49   : > { %1177 = vst [vmem:[%s1304_s7 + $0xa0] sm:$0xff] %v1101_v43   ;;  %v465_v53 = vmax.f32 %v401_v45, 0.0  ;;  %v403_v54 = vadd.f32 %v1283_v39, %v333_v46  ;;  %v335_v55 = vmul.f32 %v1265_v21, %v265_v41  ;;  %v336_v56 = vmul.f32 %v1265_v21, %v266_v42 }
  0x4a   : > { %1178 = vst [vmem:[%s1304_s7 + $0xa8] sm:$0xff] %v1106_v48   ;;  %v1111_v58 = vpack.c.bf16 %v464_v49, %v463_v44  ;;  %v466_v59 = vmax.f32 %v402_v50, 0.0  ;;  %v404_v60 = vadd.f32 %v1283_v39, %v334_v51  ;;  %v337_v61 = vmul.f32 %v1265_v21, %v267_v47 }
  0x4b   : > { %v467_v63 = vmax.f32 %v403_v54, 0.0  ;;  %v405_v0 = vadd.f32 %v1283_v39, %v335_v55  ;;  %v406_v1 = vadd.f32 %v1283_v39, %v336_v56  ;;  %v338_v2 = vmul.f32 %v1265_v21, %v268_v52 }
  0x4c   : > { %1179 = vst [vmem:[%s1304_s7 + $0xb0] sm:$0xff] %v1111_v58   ;;  %v1116_v4 = vpack.c.bf16 %v466_v59, %v465_v53  ;;  %v468_v5 = vmax.f32 %v404_v60, 0.0  ;;  %v407_v6 = vadd.f32 %v1283_v39, %v337_v61  ;;  %v339_v7 = vmul.f32 %v1265_v21, %v269_v57 }
  0x4d   : > { %v469_v9 = vmax.f32 %v405_v0, 0.0  ;;  %v470_v10 = vmax.f32 %v406_v1, 0.0  ;;  %v408_v11 = vadd.f32 %v1283_v39, %v338_v2  ;;  %v340_v12 = vmul.f32 %v1265_v21, %v270_v62 }
  0x4e   : > { %1180 = vst [vmem:[%s1304_s7 + $0xb8] sm:$0xff] %v1116_v4   ;;  %v1121_v15 = vpack.c.bf16 %v468_v5, %v467_v63  ;;  %v471_v16 = vmax.f32 %v407_v6, 0.0  ;;  %v409_v17 = vadd.f32 %v1283_v39, %v339_v7  ;;  %v341_v18 = vmul.f32 %v1265_v21, %v271_v3 }
  0x4f   : > { %v1126_v20 = vpack.c.bf16 %v470_v10, %v469_v9  ;;  %v472_v22 = vmax.f32 %v408_v11, 0.0  ;;  %v410_v23 = vadd.f32 %v1283_v39, %v340_v12  ;;  %v342_v24 = vmul.f32 %v1265_v21, %v272_v8 }
  0x50   : > { %1181 = vst [vmem:[%s1304_s7 + $0xc0] sm:$0xff] %v1121_v15   ;;  %v473_v26 = vmax.f32 %v409_v17, 0.0  ;;  %v411_v27 = vadd.f32 %v1283_v39, %v341_v18  ;;  %v343_v28 = vmul.f32 %v1265_v21, %v273_v13  ;;  %v344_v29 = vmul.f32 %v1265_v21, %v274_v14 }
  0x51   : > { %1182 = vst [vmem:[%s1304_s7 + $0xc8] sm:$0xff] %v1126_v20   ;;  %v1131_v31 = vpack.c.bf16 %v472_v22, %v471_v16  ;;  %v474_v32 = vmax.f32 %v410_v23, 0.0  ;;  %v412_v33 = vadd.f32 %v1283_v39, %v342_v24  ;;  %v345_v34 = vmul.f32 %v1265_v21, %v275_v19 }
  0x52   : > { %v475_v36 = vmax.f32 %v411_v27, 0.0  ;;  %v413_v37 = vadd.f32 %v1283_v39, %v343_v28  ;;  %v414_v38 = vadd.f32 %v1283_v39, %v344_v29  ;;  %v346_v40 = vmul.f32 %v1265_v21, %v276_v25 }
  0x53   : > { %1183 = vst [vmem:[%s1304_s7 + $0xd0] sm:$0xff] %v1131_v31   ;;  %v1136_v41 = vpack.c.bf16 %v474_v32, %v473_v26  ;;  %v476_v42 = vmax.f32 %v412_v33, 0.0  ;;  %v415_v43 = vadd.f32 %v1283_v39, %v345_v34  ;;  %v347_v44 = vmul.f32 %v1265_v21, %v277_v30 }
  0x54   : > { %v477_v45 = vmax.f32 %v413_v37, 0.0  ;;  %v478_v46 = vmax.f32 %v414_v38, 0.0  ;;  %v416_v47 = vadd.f32 %v1283_v39, %v346_v40  ;;  %v348_v48 = vmul.f32 %v1265_v21, %v278_v35 }
  0x55   : > { %1184 = vst [vmem:[%s1304_s7 + $0xd8] sm:$0xff] %v1136_v41   ;;  %v1141_v49 = vpack.c.bf16 %v476_v42, %v475_v36  ;;  %v479_v50 = vmax.f32 %v415_v43, 0.0  ;;  %v417_v51 = vadd.f32 %v1283_v39, %v347_v44 }
  0x56   : > { %v1146_v52 = vpack.c.bf16 %v478_v46, %v477_v45  ;;  %v480_v53 = vmax.f32 %v416_v47, 0.0  ;;  %v418_v54 = vadd.f32 %v1283_v39, %v348_v48 }
  0x57   : > { %1185 = vst [vmem:[%s1304_s7 + $0xe0] sm:$0xff] %v1141_v49   ;;  %v481_v55 = vmax.f32 %v417_v51, 0.0 }
  0x58   : > { %1186 = vst [vmem:[%s1304_s7 + $0xe8] sm:$0xff] %v1146_v52   ;;  %v1151_v56 = vpack.c.bf16 %v480_v53, %v479_v50  ;;  %v482_v57 = vmax.f32 %v418_v54, 0.0 }
  0x5a   : > { %1187 = vst [vmem:[%s1304_s7 + $0xf0] sm:$0xff] %v1151_v56   ;;  %v1156_v58 = vpack.c.bf16 %v482_v57, %v481_v55 }
  0x5c   : > { %1188 = vst [vmem:[%s1304_s7 + $0xf8] sm:$0xff] %v1156_v58  }
  0x5d PF: > { %s14_s15 = sadd.s32 1, %s1205_s15  }
  0x5e   : > { %p11_p4 = scmp.ge.s32.totalorder %s14_s15, 4  }
  0x60   :  { %13 = sbr.rel (!%p11_p4) target bundleno = 1 (0x1), region = 66 }

// kernel: conv_feature_extract.9
= control target key start
LH: loop header
LB: loop body
LE: loop exit
PB: predicated region body
PF: predicated region fallthrough
CT: control target
= control target key end

     0   :  { %s1537_s1 = inlined_call_operand.vmem [shape: bf16[512,128], index: 1, kind: input, shape index: {}]   ;;  %s1538_s0 = inlined_call_operand.vmem [shape: bf16[168,512], index: 0, kind: input, shape index: {}]   ;;  %s1539_s3 = inlined_call_operand.vmem [shape: f32[2,128], index: 3, kind: output, shape index: {1}]   ;;  %s1540_s2 = inlined_call_operand.vmem [shape: f32[168,128], index: 2, kind: output, shape index: {0}]  }
   0x1   :  { %v1120_v0 = vld [vmem:[%s1537_s1 + $0x40] sm:$0xff]   ;;  %v1124_v4 = vld [vmem:[%s1537_s1 + $0x48] sm:$0xff]   ;;  %v1128_v8 = vld [vmem:[%s1537_s1 + $0x50] sm:$0xff]  }
   0x2   :  { %v1121_v1 = vld [vmem:[%s1537_s1 + $0xc0] sm:$0xff]   ;;  %955 = vmatprep.subr.bf16.mxu0 %v1120_v0  ;;  %v1125_v5 = vld [vmem:[%s1537_s1 + $0xc8] sm:$0xff]   ;;  %v1129_v9 = vld [vmem:[%s1537_s1 + $0xd0] sm:$0xff]  }
   0x3   :  { %v1122_v2 = vld [vmem:[%s1537_s1] sm:$0xff]   ;;  %1037 = vmatprep.subr.bf16.mxu1 %v1121_v1  ;;  %v1126_v6 = vld [vmem:[%s1537_s1 + $0x8] sm:$0xff]   ;;  %v1130_v10 = vld [vmem:[%s1537_s1 + $0x10] sm:$0xff]  }
   0x4   :  { %v1123_v3 = vld [vmem:[%s1537_s1 + $0x80] sm:$0xff]   ;;  %956 = vmatpush3.bf16.msra.mxu0 %v1122_v2  ;;  %v1127_v7 = vld [vmem:[%s1537_s1 + $0x88] sm:$0xff]   ;;  %v1131_v11 = vld [vmem:[%s1537_s1 + $0x90] sm:$0xff]  }
   0x5   :  { %1038 = vmatpush3.bf16.msra.mxu1 %v1123_v3  ;;  %957 = vmatprep.subr.bf16.mxu0 %v1124_v4  ;;  %v1132_v12 = vld [vmem:[%s1537_s1 + $0x58] sm:$0xff]   ;;  %v1136_v16 = vld [vmem:[%s1537_s1 + $0x60] sm:$0xff]   ;;  %v1140_v20 = vld [vmem:[%s1537_s1 + $0x68] sm:$0xff]  }
   0x6   :  { %1039 = vmatprep.subr.bf16.mxu1 %v1125_v5  ;;  %v1133_v13 = vld [vmem:[%s1537_s1 + $0xd8] sm:$0xff]   ;;  %v1137_v17 = vld [vmem:[%s1537_s1 + $0xe0] sm:$0xff]   ;;  %v1141_v21 = vld [vmem:[%s1537_s1 + $0xe8] sm:$0xff]  }
   0x7   :  { %v1134_v14 = vld [vmem:[%s1537_s1 + $0x18] sm:$0xff]   ;;  %v1138_v18 = vld [vmem:[%s1537_s1 + $0x20] sm:$0xff]   ;;  %v1142_v22 = vld [vmem:[%s1537_s1 + $0x28] sm:$0xff]  }
   0x8   :  { %958 = vmatpush3.bf16.msra.mxu0 %v1126_v6  ;;  %v1135_v15 = vld [vmem:[%s1537_s1 + $0x98] sm:$0xff]   ;;  %v1139_v19 = vld [vmem:[%s1537_s1 + $0xa0] sm:$0xff]   ;;  %v1143_v23 = vld [vmem:[%s1537_s1 + $0xa8] sm:$0xff]  }
   0x9   :  { %1040 = vmatpush3.bf16.msra.mxu1 %v1127_v7  ;;  %959 = vmatprep.subr.bf16.mxu0 %v1128_v8  ;;  %v1144_v24 = vld [vmem:[%s1537_s1 + $0x70] sm:$0xff]   ;;  %v1148_v28 = vld [vmem:[%s1537_s1 + $0x78] sm:$0xff]   ;;  %v59_v6 = vld [vmem:[%s1538_s0 + $0x140] sm:$0xff] }
   0xa   :  { %1041 = vmatprep.subr.bf16.mxu1 %v1129_v9  ;;  %v1145_v25 = vld [vmem:[%s1537_s1 + $0xf0] sm:$0xff]   ;;  %v1149_v29 = vld [vmem:[%s1537_s1 + $0xf8] sm:$0xff]   ;;  %v60_v7 = vld [vmem:[%s1538_s0 + $0x148] sm:$0xff] }
   0xb   :  { %v1146_v26 = vld [vmem:[%s1537_s1 + $0x30] sm:$0xff]   ;;  %v1150_v30 = vld [vmem:[%s1537_s1 + $0x38] sm:$0xff]  }
   0xc   :  { %960 = vmatpush3.bf16.msra.mxu0 %v1130_v10  ;;  %v1147_v27 = vld [vmem:[%s1537_s1 + $0xb0] sm:$0xff]   ;;  %v1151_v31 = vld [vmem:[%s1537_s1 + $0xb8] sm:$0xff]   ;;  %v920_v10 = vcombine.high %v59_v6, %v59_v6 }
   0xd   :  { %1042 = vmatpush3.bf16.msra.mxu1 %v1131_v11  ;;  %961 = vmatprep.subr.bf16.mxu0 %v1132_v12  ;;  %v1152_v32 = vld [vmem:[%s1538_s0] ss:$16 sps:$4 sm:$0xff]   ;;  %v1154_v33 = vld [vmem:[%s1538_s0 + $0x4] ss:$16 sps:$4 sm:$0xff]   ;;  %v1155_v34 = vld [vmem:[%s1538_s0 + $0x8] ss:$16 sps:$4 sm:$0xff]   ;;  %v922_v11 = vcombine.high %v60_v7, %v60_v7  ;;  %v919_v12 = vcombine.low %v59_v6, %v59_v6 }
   0xe   :  { %1043 = vmatprep.subr.bf16.mxu1 %v1133_v13  ;;  %v1157_v35 = vld [vmem:[%s1538_s0 + $0xc] ss:$16 sps:$4 sm:$0xff]   ;;  %563 = vmatprep.mubr.bf16.mxu0 %v1154_v33  ;;  %v1158_v36 = vld [vmem:[%s1538_s0 + $0x24] ss:$16 sps:$4 sm:$0xff]   ;;  %v1162_v38 = vld [vmem:[%s1538_s0 + $0x20] ss:$16 sps:$4 sm:$0xff]   ;;  %v921_v13 = vcombine.low %v60_v7, %v60_v7 }
   0xf   :  { %683 = vmatprep.mubr.bf16.mxu1 %v1157_v35  ;;  %v1160_v37 = vld [vmem:[%s1538_s0 + $0x2c] ss:$16 sps:$4 sm:$0xff]   ;;  %v1163_v39 = vld [vmem:[%s1538_s0 + $0x28] ss:$16 sps:$4 sm:$0xff]   ;;  %v1164_v40 = vld [vmem:[%s1538_s0 + $0x44] ss:$16 sps:$4 sm:$0xff]  }
  0x10   :  { %962 = vmatpush3.bf16.msra.mxu0 %v1134_v14  ;;  %v1166_v41 = vld [vmem:[%s1538_s0 + $0x4c] ss:$16 sps:$4 sm:$0xff]   ;;  %v1168_v42 = vld [vmem:[%s1538_s0 + $0x40] ss:$16 sps:$4 sm:$0xff]   ;;  %v1169_v43 = vld [vmem:[%s1538_s0 + $0x48] ss:$16 sps:$4 sm:$0xff]  }
  0x11   :  { %1044 = vmatpush3.bf16.msra.mxu1 %v1135_v15  ;;  %963 = vmatprep.subr.bf16.mxu0 %v1136_v16  ;;  %v1170_v44 = vld [vmem:[%s1538_s0 + $0x64] ss:$16 sps:$4 sm:$0xff]   ;;  %v1172_v45 = vld [vmem:[%s1538_s0 + $0x6c] ss:$16 sps:$4 sm:$0xff]   ;;  %v1174_v46 = vld [vmem:[%s1538_s0 + $0x60] ss:$16 sps:$4 sm:$0xff]  }
  0x12   :  { %1045 = vmatprep.subr.bf16.mxu1 %v1137_v17  ;;  %v1175_v47 = vld [vmem:[%s1538_s0 + $0x68] ss:$16 sps:$4 sm:$0xff]   ;;  %v1176_v48 = vld [vmem:[%s1538_s0 + $0x84] ss:$16 sps:$4 sm:$0xff]   ;;  %v1178_v49 = vld [vmem:[%s1538_s0 + $0x8c] ss:$16 sps:$4 sm:$0xff]  }
  0x13   :  { %v1180_v50 = vld [vmem:[%s1538_s0 + $0x80] ss:$16 sps:$4 sm:$0xff]   ;;  %v1181_v51 = vld [vmem:[%s1538_s0 + $0x88] ss:$16 sps:$4 sm:$0xff]   ;;  %v1182_v52 = vld [vmem:[%s1538_s0 + $0xa4] ss:$16 sps:$4 sm:$0xff]  }
  0x14   :  { %964 = vmatpush3.bf16.msra.mxu0 %v1138_v18  ;;  %v1184_v53 = vld [vmem:[%s1538_s0 + $0xac] ss:$16 sps:$4 sm:$0xff]   ;;  %v1186_v54 = vld [vmem:[%s1538_s0 + $0xa0] ss:$16 sps:$4 sm:$0xff]   ;;  %v1187_v55 = vld [vmem:[%s1538_s0 + $0xa8] ss:$16 sps:$4 sm:$0xff]  }
  0x15   :  { %1046 = vmatpush3.bf16.msra.mxu1 %v1139_v19  ;;  %965 = vmatprep.subr.bf16.mxu0 %v1140_v20  ;;  %v1188_v56 = vld [vmem:[%s1538_s0 + $0xc4] ss:$16 sps:$4 sm:$0xff]   ;;  %v1190_v57 = vld [vmem:[%s1538_s0 + $0xcc] ss:$16 sps:$4 sm:$0xff]   ;;  %v1192_v58 = vld [vmem:[%s1538_s0 + $0xc0] ss:$16 sps:$4 sm:$0xff]  }
  0x16   :  { %1047 = vmatprep.subr.bf16.mxu1 %v1141_v21  ;;  %v1193_v59 = vld [vmem:[%s1538_s0 + $0xc8] ss:$16 sps:$4 sm:$0xff]   ;;  %v1194_v60 = vld [vmem:[%s1538_s0 + $0xe4] ss:$16 sps:$4 sm:$0xff]   ;;  %v1196_v61 = vld [vmem:[%s1538_s0 + $0xec] ss:$16 sps:$4 sm:$0xff]  }
  0x17   :  { %v1198_v62 = vld [vmem:[%s1538_s0 + $0xe0] ss:$16 sps:$4 sm:$0xff]   ;;  %v1199_v63 = vld [vmem:[%s1538_s0 + $0xe8] ss:$16 sps:$4 sm:$0xff]   ;;  %v1200_v0 = vld [vmem:[%s1538_s0 + $0x104] ss:$16 sps:$4 sm:$0xff]  }
  0x18   :  { %966 = vmatpush3.bf16.msra.mxu0 %v1142_v22  ;;  %v1202_v1 = vld [vmem:[%s1538_s0 + $0x10c] ss:$16 sps:$4 sm:$0xff]   ;;  %v1204_v2 = vld [vmem:[%s1538_s0 + $0x100] ss:$16 sps:$4 sm:$0xff]   ;;  %v1205_v3 = vld [vmem:[%s1538_s0 + $0x108] ss:$16 sps:$4 sm:$0xff]  }
  0x19   :  { %1048 = vmatpush3.bf16.msra.mxu1 %v1143_v23  ;;  %967 = vmatprep.subr.bf16.mxu0 %v1144_v24  ;;  %v1206_v4 = vld [vmem:[%s1538_s0 + $0x124] ss:$16 sps:$4 sm:$0xff]   ;;  %v1208_v5 = vld [vmem:[%s1538_s0 + $0x12c] ss:$16 sps:$4 sm:$0xff]   ;;  %v1210_v8 = vld [vmem:[%s1538_s0 + $0x120] ss:$16 sps:$4 sm:$0xff]  }
  0x1a   :  { %1049 = vmatprep.subr.bf16.mxu1 %v1145_v25  ;;  %v1211_v9 = vld [vmem:[%s1538_s0 + $0x128] ss:$16 sps:$4 sm:$0xff]   ;;  %v1216_v14 = vmov 0.0  }
  0x1b   :  { %18 = vst [vmem:[%s1539_s3] sm:$0x3] %v1216_v14 }
  0x1c   :  { %968 = vmatpush3.bf16.msra.mxu0 %v1146_v26 }
  0x1d   :  { %1050 = vmatpush3.bf16.msra.mxu1 %v1147_v27  ;;  %969 = vmatprep.subr.bf16.mxu0 %v1148_v28 }
  0x1e   :  { %1051 = vmatprep.subr.bf16.mxu1 %v1149_v29 }
  0x20   :  { %970 = vmatpush3.bf16.msra.mxu0 %v1150_v30 }
  0x21   :  { %1052 = vmatpush3.bf16.msra.mxu1 %v1151_v31 }
  0x23   :  { %564 = vmatmul.mubr.bf16.vlgmr.msra.gmra.mrb[0].mxu0 %v1152_v32 }
  0x24   :  { %684 = vmatmul.mubr.bf16.vlgmr.msra.gmra.mrb[0].mxu1 %v1155_v34  ;;  %571 = vmatprep.mubr.bf16.mxu0 %v1158_v36 }
  0x25   :  { %691 = vmatprep.mubr.bf16.mxu1 %v1160_v37 }
  0x2b   :  { %572 = vmatmul.mubr.bf16.gmra.mrb[4].mxu0 %v1162_v38 }
  0x2c   :  { %692 = vmatmul.mubr.bf16.gmra.mrb[4].mxu1 %v1163_v39  ;;  %579 = vmatprep.mubr.bf16.mxu0 %v1164_v40 }
  0x2d   :  { %699 = vmatprep.mubr.bf16.mxu1 %v1166_v41 }
  0x33   :  { %580 = vmatmul.mubr.bf16.gmra.mrb[8].mxu0 %v1168_v42 }
  0x34   :  { %700 = vmatmul.mubr.bf16.gmra.mrb[8].mxu1 %v1169_v43  ;;  %587 = vmatprep.mubr.bf16.mxu0 %v1170_v44 }
  0x35   :  { %707 = vmatprep.mubr.bf16.mxu1 %v1172_v45 }
  0x3b   :  { %588 = vmatmul.mubr.bf16.gmra.mrb[12].mxu0 %v1174_v46 }
  0x3c   :  { %708 = vmatmul.mubr.bf16.gmra.mrb[12].mxu1 %v1175_v47  ;;  %595 = vmatprep.mubr.bf16.mxu0 %v1176_v48 }
  0x3d   :  { %715 = vmatprep.mubr.bf16.mxu1 %v1178_v49 }
  0x43   :  { %596 = vmatmul.mubr.bf16.gmra.mrb[16].mxu0 %v1180_v50 }
  0x44   :  { %716 = vmatmul.mubr.bf16.gmra.mrb[16].mxu1 %v1181_v51  ;;  %603 = vmatprep.mubr.bf16.mxu0 %v1182_v52 }
  0x45   :  { %723 = vmatprep.mubr.bf16.mxu1 %v1184_v53 }
  0x4b   :  { %604 = vmatmul.mubr.bf16.gmra.mrb[20].mxu0 %v1186_v54 }
  0x4c   :  { %724 = vmatmul.mubr.bf16.gmra.mrb[20].mxu1 %v1187_v55  ;;  %611 = vmatprep.mubr.bf16.mxu0 %v1188_v56 }
  0x4d   :  { %731 = vmatprep.mubr.bf16.mxu1 %v1190_v57 }
  0x53   :  { %612 = vmatmul.mubr.bf16.gmra.mrb[24].mxu0 %v1192_v58 }
  0x54   :  { %732 = vmatmul.mubr.bf16.gmra.mrb[24].mxu1 %v1193_v59  ;;  %619 = vmatprep.mubr.bf16.mxu0 %v1194_v60 }
  0x55   :  { %739 = vmatprep.mubr.bf16.mxu1 %v1196_v61 }
  0x5b   :  { %620 = vmatmul.mubr.bf16.gmra.mrb[28].mxu0 %v1198_v62 }
  0x5c   :  { %740 = vmatmul.mubr.bf16.gmra.mrb[28].mxu1 %v1199_v63  ;;  %627 = vmatprep.mubr.bf16.mxu0 %v1200_v0 }
  0x5d   :  { %747 = vmatprep.mubr.bf16.mxu1 %v1202_v1 }
  0x63   :  { %628 = vmatmul.mubr.bf16.gmra.mrb[32].mxu0 %v1204_v2 }
  0x64   :  { %748 = vmatmul.mubr.bf16.gmra.mrb[32].mxu1 %v1205_v3  ;;  %635 = vmatprep.mubr.bf16.mxu0 %v1206_v4 }
  0x65   :  { %755 = vmatprep.mubr.bf16.mxu1 %v1208_v5 }
  0x6b   :  { %636 = vmatmul.mubr.bf16.gmra.mrb[36].mxu0 %v1210_v8 }
  0x6c   :  { %756 = vmatmul.mubr.bf16.gmra.mrb[36].mxu1 %v1211_v9  ;;  %643 = vmatprep.mubr.bf16.mxu0 %v920_v10 }
  0x6d   :  { %763 = vmatprep.mubr.bf16.mxu1 %v922_v11 }
  0x73   :  { %644 = vmatmul.mubr.bf16.gmra.mrb[40].mxu0 %v919_v12 }
  0x74   :  { %764 = vmatmul.mubr.bf16.gmra.mrb[40].mxu1 %v921_v13 }
  0xf6   :  { %v971_v15 = vpop.f32.mrb[0].mxu0 }
  0xf7   :  { %v1053_v16 = vpop.f32.mrb[0].mxu1  ;;  %v972_v17 = vpop.f32.mrb[1].mxu0 }
  0xf8   :  { %v973_v18 = vadd.f32 %v972_v17, %v971_v15  ;;  %v1054_v19 = vpop.f32.mrb[1].mxu1  ;;  %v974_v20 = vpop.f32.mrb[2].mxu0 }
  0xf9   :  { %v1055_v21 = vadd.f32 %v1054_v19, %v1053_v16  ;;  %v1056_v22 = vpop.f32.mrb[2].mxu1  ;;  %v975_v23 = vpop.f32.mrb[3].mxu0 }
  0xfa   :  { %v976_v24 = vadd.f32 %v975_v23, %v974_v20  ;;  %v1057_v25 = vpop.f32.mrb[3].mxu1 }
  0xfb   :  { %v686_v26 = vadd.f32 %v1055_v21, %v973_v18  ;;  %v1058_v27 = vadd.f32 %v1057_v25, %v1056_v22 }
  0xfd   :  { %771 = vst [vmem:[%s1540_s2] sm:$0xff] %v686_v26  ;;  %v689_v28 = vadd.f32 %v1058_v27, %v976_v24  ;;  %v822_v30 = vmul.f32 %v686_v26, %v686_v26 }
  0xfe   :  { %v977_v29 = vpop.f32.mrb[4].mxu0 }
  0xff   :  { %772 = vst [vmem:[%s1540_s2 + $0x8] sm:$0xff] %v689_v28  ;;  %v793_v31 = vadd.f32 %v689_v28, %v686_v26  ;;  %v823_v32 = vmul.f32 %v689_v28, %v689_v28  ;;  %v1059_v33 = vpop.f32.mrb[4].mxu1  ;;  %v978_v34 = vpop.f32.mrb[5].mxu0 }
 0x100   :  { %v979_v35 = vadd.f32 %v978_v34, %v977_v29  ;;  %v1060_v36 = vpop.f32.mrb[5].mxu1  ;;  %v980_v37 = vpop.f32.mrb[6].mxu0 }
 0x101   :  { %v843_v38 = vadd.f32 %v823_v32, %v822_v30  ;;  %v1061_v39 = vadd.f32 %v1060_v36, %v1059_v33  ;;  %v1062_v40 = vpop.f32.mrb[6].mxu1  ;;  %v981_v41 = vpop.f32.mrb[7].mxu0 }
 0x102   :  { %v982_v42 = vadd.f32 %v981_v41, %v980_v37  ;;  %v1063_v43 = vpop.f32.mrb[7].mxu1 }
 0x103   :  { %v694_v44 = vadd.f32 %v1061_v39, %v979_v35  ;;  %v1064_v45 = vadd.f32 %v1063_v43, %v1062_v40 }
 0x105   :  { %773 = vst [vmem:[%s1540_s2 + $0x10] sm:$0xff] %v694_v44  ;;  %v794_v46 = vadd.f32 %v793_v31, %v694_v44  ;;  %v824_v47 = vmul.f32 %v694_v44, %v694_v44  ;;  %v697_v48 = vadd.f32 %v1064_v45, %v982_v42 }
 0x106   :  { %v983_v49 = vpop.f32.mrb[8].mxu0 }
 0x107   :  { %v844_v50 = vadd.f32 %v843_v38, %v824_v47  ;;  %774 = vst [vmem:[%s1540_s2 + $0x18] sm:$0xff] %v697_v48  ;;  %v795_v51 = vadd.f32 %v794_v46, %v697_v48  ;;  %v825_v52 = vmul.f32 %v697_v48, %v697_v48  ;;  %v1065_v53 = vpop.f32.mrb[8].mxu1  ;;  %v984_v54 = vpop.f32.mrb[9].mxu0 }
 0x108   :  { %v985_v55 = vadd.f32 %v984_v54, %v983_v49  ;;  %v1066_v56 = vpop.f32.mrb[9].mxu1  ;;  %v986_v57 = vpop.f32.mrb[10].mxu0 }
 0x109   :  { %v845_v58 = vadd.f32 %v844_v50, %v825_v52  ;;  %v1067_v59 = vadd.f32 %v1066_v56, %v1065_v53  ;;  %v1068_v60 = vpop.f32.mrb[10].mxu1  ;;  %v987_v61 = vpop.f32.mrb[11].mxu0 }
 0x10a   :  { %v988_v62 = vadd.f32 %v987_v61, %v986_v57  ;;  %v1069_v63 = vpop.f32.mrb[11].mxu1 }
 0x10b   :  { %v702_v0 = vadd.f32 %v1067_v59, %v985_v55  ;;  %v1070_v1 = vadd.f32 %v1069_v63, %v1068_v60 }
 0x10d   :  { %775 = vst [vmem:[%s1540_s2 + $0x20] sm:$0xff] %v702_v0  ;;  %v796_v2 = vadd.f32 %v795_v51, %v702_v0  ;;  %v826_v3 = vmul.f32 %v702_v0, %v702_v0  ;;  %v705_v4 = vadd.f32 %v1070_v1, %v988_v62 }
 0x10e   :  { %v989_v5 = vpop.f32.mrb[12].mxu0 }
 0x10f   :  { %v846_v6 = vadd.f32 %v845_v58, %v826_v3  ;;  %776 = vst [vmem:[%s1540_s2 + $0x28] sm:$0xff] %v705_v4  ;;  %v797_v7 = vadd.f32 %v796_v2, %v705_v4  ;;  %v827_v8 = vmul.f32 %v705_v4, %v705_v4  ;;  %v1071_v9 = vpop.f32.mrb[12].mxu1  ;;  %v990_v10 = vpop.f32.mrb[13].mxu0 }
 0x110   :  { %v991_v11 = vadd.f32 %v990_v10, %v989_v5  ;;  %v1072_v12 = vpop.f32.mrb[13].mxu1  ;;  %v992_v13 = vpop.f32.mrb[14].mxu0 }
 0x111   :  { %v847_v14 = vadd.f32 %v846_v6, %v827_v8  ;;  %v1073_v15 = vadd.f32 %v1072_v12, %v1071_v9  ;;  %v1074_v16 = vpop.f32.mrb[14].mxu1  ;;  %v993_v17 = vpop.f32.mrb[15].mxu0 }
 0x112   :  { %v994_v18 = vadd.f32 %v993_v17, %v992_v13  ;;  %v1075_v19 = vpop.f32.mrb[15].mxu1 }
 0x113   :  { %v710_v20 = vadd.f32 %v1073_v15, %v991_v11  ;;  %v1076_v21 = vadd.f32 %v1075_v19, %v1074_v16 }
 0x115   :  { %777 = vst [vmem:[%s1540_s2 + $0x30] sm:$0xff] %v710_v20  ;;  %v798_v22 = vadd.f32 %v797_v7, %v710_v20  ;;  %v828_v23 = vmul.f32 %v710_v20, %v710_v20  ;;  %v713_v24 = vadd.f32 %v1076_v21, %v994_v18 }
 0x116   :  { %v995_v25 = vpop.f32.mrb[16].mxu0 }
 0x117   :  { %v848_v26 = vadd.f32 %v847_v14, %v828_v23  ;;  %778 = vst [vmem:[%s1540_s2 + $0x38] sm:$0xff] %v713_v24  ;;  %v799_v27 = vadd.f32 %v798_v22, %v713_v24  ;;  %v829_v28 = vmul.f32 %v713_v24, %v713_v24  ;;  %v1077_v29 = vpop.f32.mrb[16].mxu1  ;;  %v996_v30 = vpop.f32.mrb[17].mxu0 }
 0x118   :  { %v997_v31 = vadd.f32 %v996_v30, %v995_v25  ;;  %v1078_v32 = vpop.f32.mrb[17].mxu1  ;;  %v998_v33 = vpop.f32.mrb[18].mxu0 }
 0x119   :  { %v849_v34 = vadd.f32 %v848_v26, %v829_v28  ;;  %v1079_v35 = vadd.f32 %v1078_v32, %v1077_v29  ;;  %v1080_v36 = vpop.f32.mrb[18].mxu1  ;;  %v999_v37 = vpop.f32.mrb[19].mxu0 }
 0x11a   :  { %v1000_v38 = vadd.f32 %v999_v37, %v998_v33  ;;  %v1081_v39 = vpop.f32.mrb[19].mxu1 }
 0x11b   :  { %v718_v40 = vadd.f32 %v1079_v35, %v997_v31  ;;  %v1082_v41 = vadd.f32 %v1081_v39, %v1080_v36 }
 0x11d   :  { %779 = vst [vmem:[%s1540_s2 + $0x40] sm:$0xff] %v718_v40  ;;  %v800_v42 = vadd.f32 %v799_v27, %v718_v40  ;;  %v830_v43 = vmul.f32 %v718_v40, %v718_v40  ;;  %v721_v44 = vadd.f32 %v1082_v41, %v1000_v38 }
 0x11e   :  { %v1001_v45 = vpop.f32.mrb[20].mxu0 }
 0x11f   :  { %v850_v46 = vadd.f32 %v849_v34, %v830_v43  ;;  %780 = vst [vmem:[%s1540_s2 + $0x48] sm:$0xff] %v721_v44  ;;  %v801_v47 = vadd.f32 %v800_v42, %v721_v44  ;;  %v831_v48 = vmul.f32 %v721_v44, %v721_v44  ;;  %v1083_v49 = vpop.f32.mrb[20].mxu1  ;;  %v1002_v50 = vpop.f32.mrb[21].mxu0 }
 0x120   :  { %v1003_v51 = vadd.f32 %v1002_v50, %v1001_v45  ;;  %v1084_v52 = vpop.f32.mrb[21].mxu1  ;;  %v1004_v53 = vpop.f32.mrb[22].mxu0 }
 0x121   :  { %v851_v54 = vadd.f32 %v850_v46, %v831_v48  ;;  %v1085_v55 = vadd.f32 %v1084_v52, %v1083_v49  ;;  %v1086_v56 = vpop.f32.mrb[22].mxu1  ;;  %v1005_v57 = vpop.f32.mrb[23].mxu0 }
 0x122   :  { %v1006_v58 = vadd.f32 %v1005_v57, %v1004_v53  ;;  %v1087_v59 = vpop.f32.mrb[23].mxu1 }
 0x123   :  { %v726_v60 = vadd.f32 %v1085_v55, %v1003_v51  ;;  %v1088_v61 = vadd.f32 %v1087_v59, %v1086_v56 }
 0x125   :  { %781 = vst [vmem:[%s1540_s2 + $0x50] sm:$0xff] %v726_v60  ;;  %v802_v62 = vadd.f32 %v801_v47, %v726_v60  ;;  %v832_v63 = vmul.f32 %v726_v60, %v726_v60  ;;  %v729_v0 = vadd.f32 %v1088_v61, %v1006_v58 }
 0x126   :  { %v1007_v1 = vpop.f32.mrb[24].mxu0 }
 0x127   :  { %v852_v2 = vadd.f32 %v851_v54, %v832_v63  ;;  %782 = vst [vmem:[%s1540_s2 + $0x58] sm:$0xff] %v729_v0  ;;  %v803_v3 = vadd.f32 %v802_v62, %v729_v0  ;;  %v833_v4 = vmul.f32 %v729_v0, %v729_v0  ;;  %v1089_v5 = vpop.f32.mrb[24].mxu1  ;;  %v1008_v6 = vpop.f32.mrb[25].mxu0 }
 0x128   :  { %v1009_v7 = vadd.f32 %v1008_v6, %v1007_v1  ;;  %v1090_v8 = vpop.f32.mrb[25].mxu1  ;;  %v1010_v9 = vpop.f32.mrb[26].mxu0 }
 0x129   :  { %v853_v10 = vadd.f32 %v852_v2, %v833_v4  ;;  %v1091_v11 = vadd.f32 %v1090_v8, %v1089_v5  ;;  %v1092_v12 = vpop.f32.mrb[26].mxu1  ;;  %v1011_v13 = vpop.f32.mrb[27].mxu0 }
 0x12a   :  { %v1012_v14 = vadd.f32 %v1011_v13, %v1010_v9  ;;  %v1093_v15 = vpop.f32.mrb[27].mxu1 }
 0x12b   :  { %v734_v16 = vadd.f32 %v1091_v11, %v1009_v7  ;;  %v1094_v17 = vadd.f32 %v1093_v15, %v1092_v12 }
 0x12d   :  { %783 = vst [vmem:[%s1540_s2 + $0x60] sm:$0xff] %v734_v16  ;;  %v804_v18 = vadd.f32 %v803_v3, %v734_v16  ;;  %v834_v19 = vmul.f32 %v734_v16, %v734_v16  ;;  %v737_v20 = vadd.f32 %v1094_v17, %v1012_v14 }
 0x12e   :  { %v1013_v21 = vpop.f32.mrb[28].mxu0 }
 0x12f   :  { %v854_v22 = vadd.f32 %v853_v10, %v834_v19  ;;  %784 = vst [vmem:[%s1540_s2 + $0x68] sm:$0xff] %v737_v20  ;;  %v805_v23 = vadd.f32 %v804_v18, %v737_v20  ;;  %v835_v24 = vmul.f32 %v737_v20, %v737_v20  ;;  %v1095_v25 = vpop.f32.mrb[28].mxu1  ;;  %v1014_v26 = vpop.f32.mrb[29].mxu0 }
 0x130   :  { %v1015_v27 = vadd.f32 %v1014_v26, %v1013_v21  ;;  %v1096_v28 = vpop.f32.mrb[29].mxu1  ;;  %v1016_v29 = vpop.f32.mrb[30].mxu0 }
 0x131   :  { %v855_v30 = vadd.f32 %v854_v22, %v835_v24  ;;  %v1097_v31 = vadd.f32 %v1096_v28, %v1095_v25  ;;  %v1098_v32 = vpop.f32.mrb[30].mxu1  ;;  %v1017_v33 = vpop.f32.mrb[31].mxu0 }
 0x132   :  { %v1018_v34 = vadd.f32 %v1017_v33, %v1016_v29  ;;  %v1099_v35 = vpop.f32.mrb[31].mxu1 }
 0x133   :  { %v742_v36 = vadd.f32 %v1097_v31, %v1015_v27  ;;  %v1100_v37 = vadd.f32 %v1099_v35, %v1098_v32 }
 0x135   :  { %785 = vst [vmem:[%s1540_s2 + $0x70] sm:$0xff] %v742_v36  ;;  %v806_v38 = vadd.f32 %v805_v23, %v742_v36  ;;  %v836_v39 = vmul.f32 %v742_v36, %v742_v36  ;;  %v745_v40 = vadd.f32 %v1100_v37, %v1018_v34 }
 0x136   :  { %v1019_v41 = vpop.f32.mrb[32].mxu0 }
 0x137   :  { %v856_v42 = vadd.f32 %v855_v30, %v836_v39  ;;  %786 = vst [vmem:[%s1540_s2 + $0x78] sm:$0xff] %v745_v40  ;;  %v807_v43 = vadd.f32 %v806_v38, %v745_v40  ;;  %v837_v44 = vmul.f32 %v745_v40, %v745_v40  ;;  %v1101_v45 = vpop.f32.mrb[32].mxu1  ;;  %v1020_v46 = vpop.f32.mrb[33].mxu0 }
 0x138   :  { %v1021_v47 = vadd.f32 %v1020_v46, %v1019_v41  ;;  %v1102_v48 = vpop.f32.mrb[33].mxu1  ;;  %v1022_v49 = vpop.f32.mrb[34].mxu0 }
 0x139   :  { %v857_v50 = vadd.f32 %v856_v42, %v837_v44  ;;  %v1103_v51 = vadd.f32 %v1102_v48, %v1101_v45  ;;  %v1104_v52 = vpop.f32.mrb[34].mxu1  ;;  %v1023_v53 = vpop.f32.mrb[35].mxu0  ;;  %v792_v44 = vld [vmem:[%s1539_s3] sm:$0x1] }
 0x13a   :  { %v1024_v54 = vadd.f32 %v1023_v53, %v1022_v49  ;;  %v1105_v55 = vpop.f32.mrb[35].mxu1 }
 0x13b   :  { %v750_v56 = vadd.f32 %v1103_v51, %v1021_v47  ;;  %v1106_v57 = vadd.f32 %v1105_v55, %v1104_v52  ;;  %v821_v47 = vld [vmem:[%s1539_s3 + $0x1] sm:$0x1] }
 0x13d   :  { %787 = vst [vmem:[%s1540_s2 + $0x80] sm:$0xff] %v750_v56  ;;  %v808_v58 = vadd.f32 %v807_v43, %v750_v56  ;;  %v838_v59 = vmul.f32 %v750_v56, %v750_v56  ;;  %v753_v60 = vadd.f32 %v1106_v57, %v1024_v54 }
 0x13e   :  { %v1025_v61 = vpop.f32.mrb[36].mxu0 }
 0x13f   :  { %v858_v62 = vadd.f32 %v857_v50, %v838_v59  ;;  %788 = vst [vmem:[%s1540_s2 + $0x88] sm:$0xff] %v753_v60  ;;  %v809_v63 = vadd.f32 %v808_v58, %v753_v60  ;;  %v839_v0 = vmul.f32 %v753_v60, %v753_v60  ;;  %v1107_v1 = vpop.f32.mrb[36].mxu1  ;;  %v1026_v2 = vpop.f32.mrb[37].mxu0 }
 0x140   :  { %v1027_v3 = vadd.f32 %v1026_v2, %v1025_v61  ;;  %v1108_v4 = vpop.f32.mrb[37].mxu1  ;;  %v1028_v5 = vpop.f32.mrb[38].mxu0 }
 0x141   :  { %v859_v6 = vadd.f32 %v858_v62, %v839_v0  ;;  %v1109_v7 = vadd.f32 %v1108_v4, %v1107_v1  ;;  %v1110_v8 = vpop.f32.mrb[38].mxu1  ;;  %v1029_v9 = vpop.f32.mrb[39].mxu0 }
 0x142   :  { %v1030_v10 = vadd.f32 %v1029_v9, %v1028_v5  ;;  %v1111_v11 = vpop.f32.mrb[39].mxu1 }
 0x143   :  { %v758_v12 = vadd.f32 %v1109_v7, %v1027_v3  ;;  %v1112_v13 = vadd.f32 %v1111_v11, %v1110_v8 }
 0x145   :  { %789 = vst [vmem:[%s1540_s2 + $0x90] sm:$0xff] %v758_v12  ;;  %v810_v14 = vadd.f32 %v809_v63, %v758_v12  ;;  %v840_v15 = vmul.f32 %v758_v12, %v758_v12  ;;  %v761_v16 = vadd.f32 %v1112_v13, %v1030_v10 }
 0x146   :  { %v1031_v17 = vpop.f32.mrb[40].mxu0 }
 0x147   :  { %v860_v18 = vadd.f32 %v859_v6, %v840_v15  ;;  %790 = vst [vmem:[%s1540_s2 + $0x98] sm:$0xff] %v761_v16  ;;  %v811_v19 = vadd.f32 %v810_v14, %v761_v16  ;;  %v841_v20 = vmul.f32 %v761_v16, %v761_v16  ;;  %v1113_v21 = vpop.f32.mrb[40].mxu1  ;;  %v1032_v22 = vpop.f32.mrb[41].mxu0 }
 0x148   :  { %v1033_v23 = vadd.f32 %v1032_v22, %v1031_v17  ;;  %v1114_v24 = vpop.f32.mrb[41].mxu1  ;;  %v1034_v25 = vpop.f32.mrb[42].mxu0 }
 0x149   :  { %v861_v26 = vadd.f32 %v860_v18, %v841_v20  ;;  %v1115_v27 = vadd.f32 %v1114_v24, %v1113_v21  ;;  %v1116_v28 = vpop.f32.mrb[42].mxu1  ;;  %v1035_v29 = vpop.f32.mrb[43].mxu0 }
 0x14a   :  { %v1117_v30 = vpop.f32.mrb[43].mxu1 }
 0x14b   :  { %v766_v31 = vadd.f32 %v1115_v27, %v1033_v23 }
 0x14d   :  { %791 = vst [vmem:[%s1540_s2 + $0xa0] sm:$0xff] %v766_v31  ;;  %v812_v32 = vadd.f32 %v811_v19, %v766_v31  ;;  %v842_v33 = vmul.f32 %v766_v31, %v766_v31 }
 0x14f   :  { %v813_v34 = vrot.slane %v812_v32, 4  ;;  %v862_v35 = vadd.f32 %v861_v26, %v842_v33 }
 0x151   :  { %v814_v36 = vadd.f32 %v813_v34, %v812_v32  ;;  %v863_v37 = vrot.slane %v862_v35, 4 }
 0x153   :  { %v815_v38 = vrot.slane %v814_v36, 2  ;;  %v864_v39 = vadd.f32 %v863_v37, %v862_v35 }
 0x155   :  { %v816_v40 = vadd.f32 %v815_v38, %v814_v36  ;;  %v865_v41 = vrot.slane %v864_v39, 2 }
 0x157   :  { %v817_v42 = vrot.slane %v816_v40, 1  ;;  %v866_v43 = vadd.f32 %v865_v41, %v864_v39 }
 0x159   :  { %v818_v45 = vadd.f32 %v817_v42, %v816_v40  ;;  %v867_v46 = vrot.slane %v866_v43, 1 }
 0x15b   :  { %v819_v48 = vadd.f32 %v818_v45, %v792_v44  ;;  %v868_v49 = vadd.f32 %v867_v46, %v866_v43 }
 0x15d   :  { %820 = vst [vmem:[%s1539_s3] sm:$0x1] %v819_v48  ;;  %v869_v50 = vadd.f32 %v868_v49, %v821_v47 }
 0x15f   :  { %870 = vst [vmem:[%s1539_s3 + $0x1] sm:$0x1] %v869_v50 }

// kernel: conv_feature_extract.10
= control target key start
LH: loop header
LB: loop body
LE: loop exit
PB: predicated region body
PF: predicated region fallthrough
CT: control target
= control target key end

     0   :  { %v53_v8 = vlaneseq  ;;  %s519_s1 = inlined_call_operand.vmem [shape: f32[2,128], index: 1, kind: input, shape index: {}]   ;;  %s520_s2 = inlined_call_operand.vmem [shape: f32[1,128], index: 2, kind: input, shape index: {}]   ;;  %s521_s0 = inlined_call_operand.vmem [shape: f32[168,128], index: 0, kind: input, shape index: {}]   ;;  %s522_s3 = inlined_call_operand.vmem [shape: f32[1,128], index: 3, kind: input, shape index: {}]   ;;  %s523_s4 = inlined_call_operand.vmem [shape: bf16[168,128], index: 4, kind: output, shape index: {}]  }
   0x1   :  { %v17_v0 = vld [vmem:[%s519_s1] sm:$0x1]  ;;  %v19_v1 = vld [vmem:[%s519_s1 + $0x1] sm:$0x1]  ;;  %v32_v16 = vld [vmem:[%s521_s0 + $0x8] sm:$0xff] }
   0x2   :  { %v18_v2 = vmul.f32 0.0061728396, %v17_v0  ;;  %v20_v3 = vmul.f32 0.0061728396, %v19_v1  ;;  %v54_v9 = vshrl.u32 %v53_v8, 7  ;;  %v31_v15 = vld [vmem:[%s521_s0] sm:$0xff] }
   0x3   :  { %v24_v10 = vld [vmem:[%s520_s2] sm:$0x1]  ;;  %v33_v17 = vld [vmem:[%s521_s0 + $0x10] sm:$0xff]  ;;  %v34_v18 = vld [vmem:[%s521_s0 + $0x18] sm:$0xff] }
   0x4   :  { %v21_v4 = vmul.f32 %v18_v2, %v18_v2  ;;  %v55_v11 = vsub.s32 0, %v54_v9  ;;  %v28_v14 = vld [vmem:[%s522_s3] sm:$0x1]  ;;  %v36_v22 = vld [vmem:[%s521_s0 + $0x28] sm:$0xff]  ;;  %v37_v23 = vld [vmem:[%s521_s0 + $0x30] sm:$0xff] }
   0x5   :  { %v35_v19 = vld [vmem:[%s521_s0 + $0x20] sm:$0xff]  ;;  %v38_v24 = vld [vmem:[%s521_s0 + $0x38] sm:$0xff]  ;;  %v40_v26 = vld [vmem:[%s521_s0 + $0x48] sm:$0xff] }
   0x6   :  { %v22_v5 = vsub.f32 %v20_v3, %v21_v4  ;;  %v39_v25 = vld [vmem:[%s521_s0 + $0x40] sm:$0xff]  ;;  %v41_v27 = vld [vmem:[%s521_s0 + $0x50] sm:$0xff]  ;;  %v42_v32 = vld [vmem:[%s521_s0 + $0x58] sm:$0xff] }
   0x7   :  { %v43_v33 = vld [vmem:[%s521_s0 + $0x60] sm:$0xff]  ;;  %v44_v34 = vld [vmem:[%s521_s0 + $0x68] sm:$0xff]  ;;  %v45_v3 = vld [vmem:[%s521_s0 + $0x70] sm:$0xff] }
   0x8   :  { %v23_v6 = vmax.f32 %v22_v5, 0.0  ;;  %v46_v4 = vld [vmem:[%s521_s0 + $0x78] sm:$0xff]  ;;  %v47_v9 = vld [vmem:[%s521_s0 + $0x80] sm:$0xff] }
   0xa   :  { %v25_v7 = vadd.f32 1e-05, %v23_v6 }
   0xc   :  { %338 = vrsqrt.f32 %v25_v7 }
  0x16   :  { %v339_v12 = vpop.eup %338 }
  0x17   :  { %v27_v13 = vmul.f32 %v339_v12, %v24_v10 }
  0x19   :  { %v29_v20 = vmul.f32 %v27_v13, %v18_v2  ;;  %v392_v21 = vrot.slane %v27_v13, %v55_v11 }
  0x1b   :  { %v30_v28 = vsub.f32 %v28_v14, %v29_v20  ;;  %v58_v29 = vmul.f32 %v392_v21, %v31_v15  ;;  %v59_v30 = vmul.f32 %v392_v21, %v32_v16  ;;  %v60_v31 = vmul.f32 %v392_v21, %v33_v17  ;;  %v48_v14 = vld [vmem:[%s521_s0 + $0x88] sm:$0xff]  ;;  %v50_v20 = vld [vmem:[%s521_s0 + $0x98] sm:$0xff] }
  0x1c   :  { %v61_v35 = vmul.f32 %v392_v21, %v34_v18  ;;  %v62_v36 = vmul.f32 %v392_v21, %v35_v19  ;;  %v63_v37 = vmul.f32 %v392_v21, %v36_v22  ;;  %v64_v38 = vmul.f32 %v392_v21, %v37_v23  ;;  %v49_v19 = vld [vmem:[%s521_s0 + $0x90] sm:$0xff] }
  0x1d   :  { %v428_v39 = vrot.slane %v30_v28, %v55_v11  ;;  %v65_v40 = vmul.f32 %v392_v21, %v38_v24  ;;  %v66_v41 = vmul.f32 %v392_v21, %v39_v25  ;;  %v67_v42 = vmul.f32 %v392_v21, %v40_v26  ;;  %v51_v26 = vld [vmem:[%s521_s0 + $0xa0] sm:$0xff] }
  0x1e   :  { %v68_v43 = vmul.f32 %v392_v21, %v41_v27  ;;  %v69_v44 = vmul.f32 %v392_v21, %v42_v32  ;;  %v70_v45 = vmul.f32 %v392_v21, %v43_v33  ;;  %v71_v46 = vmul.f32 %v392_v21, %v44_v34 }
  0x1f   :  { %v85_v47 = vadd.f32 %v428_v39, %v58_v29  ;;  %v86_v48 = vadd.f32 %v428_v39, %v59_v30  ;;  %v87_v49 = vadd.f32 %v428_v39, %v60_v31  ;;  %v88_v50 = vadd.f32 %v428_v39, %v61_v35 }
  0x20   :  { %v89_v51 = vadd.f32 %v428_v39, %v62_v36  ;;  %v90_v52 = vadd.f32 %v428_v39, %v63_v37  ;;  %v91_v53 = vadd.f32 %v428_v39, %v64_v38  ;;  %v92_v54 = vadd.f32 %v428_v39, %v65_v40 }
  0x21   :  { %v106_v55 = vmax.f32 %v85_v47, 0.0  ;;  %v107_v56 = vmax.f32 %v86_v48, 0.0  ;;  %v108_v57 = vmax.f32 %v87_v49, 0.0  ;;  %v109_v58 = vmax.f32 %v88_v50, 0.0 }
  0x22   :  { %v110_v59 = vmax.f32 %v89_v51, 0.0  ;;  %v111_v60 = vmax.f32 %v90_v52, 0.0  ;;  %v112_v61 = vmax.f32 %v91_v53, 0.0  ;;  %v113_v62 = vmax.f32 %v92_v54, 0.0 }
  0x23   :  { %v282_v63 = vpack.c.bf16 %v107_v56, %v106_v55  ;;  %v287_v0 = vpack.c.bf16 %v109_v58, %v108_v57  ;;  %v93_v1 = vadd.f32 %v428_v39, %v66_v41  ;;  %v94_v2 = vadd.f32 %v428_v39, %v67_v42 }
  0x24   :  { %v292_v5 = vpack.c.bf16 %v111_v60, %v110_v59  ;;  %v297_v6 = vpack.c.bf16 %v113_v62, %v112_v61  ;;  %v95_v7 = vadd.f32 %v428_v39, %v68_v43  ;;  %v96_v8 = vadd.f32 %v428_v39, %v69_v44 }
  0x25   :  { %283 = vst [vmem:[%s523_s4] sm:$0xff] %v282_v63   ;;  %329 = vst [vmem:[%s523_s4 + $0x8] sm:$0xff] %v287_v0   ;;  %v114_v10 = vmax.f32 %v93_v1, 0.0  ;;  %v115_v11 = vmax.f32 %v94_v2, 0.0  ;;  %v97_v12 = vadd.f32 %v428_v39, %v70_v45  ;;  %v98_v13 = vadd.f32 %v428_v39, %v71_v46 }
  0x26   :  { %330 = vst [vmem:[%s523_s4 + $0x10] sm:$0xff] %v292_v5   ;;  %331 = vst [vmem:[%s523_s4 + $0x18] sm:$0xff] %v297_v6   ;;  %v116_v15 = vmax.f32 %v95_v7, 0.0  ;;  %v117_v16 = vmax.f32 %v96_v8, 0.0  ;;  %v72_v17 = vmul.f32 %v392_v21, %v45_v3  ;;  %v73_v18 = vmul.f32 %v392_v21, %v46_v4 }
  0x27   :  { %v302_v22 = vpack.c.bf16 %v115_v11, %v114_v10  ;;  %v118_v23 = vmax.f32 %v97_v12, 0.0  ;;  %v119_v24 = vmax.f32 %v98_v13, 0.0  ;;  %v74_v25 = vmul.f32 %v392_v21, %v47_v9 }
  0x28   :  { %v307_v27 = vpack.c.bf16 %v117_v16, %v116_v15  ;;  %v99_v28 = vadd.f32 %v428_v39, %v72_v17  ;;  %v100_v29 = vadd.f32 %v428_v39, %v73_v18  ;;  %v75_v30 = vmul.f32 %v392_v21, %v48_v14 }
  0x29   :  { %332 = vst [vmem:[%s523_s4 + $0x20] sm:$0xff] %v302_v22   ;;  %v312_v31 = vpack.c.bf16 %v119_v24, %v118_v23  ;;  %v101_v32 = vadd.f32 %v428_v39, %v74_v25  ;;  %v76_v33 = vmul.f32 %v392_v21, %v49_v19  ;;  %v77_v34 = vmul.f32 %v392_v21, %v50_v20 }
  0x2a   :  { %333 = vst [vmem:[%s523_s4 + $0x28] sm:$0xff] %v307_v27   ;;  %v120_v35 = vmax.f32 %v99_v28, 0.0  ;;  %v121_v36 = vmax.f32 %v100_v29, 0.0  ;;  %v102_v37 = vadd.f32 %v428_v39, %v75_v30  ;;  %v78_v38 = vmul.f32 %v392_v21, %v51_v26 }
  0x2b   :  { %334 = vst [vmem:[%s523_s4 + $0x30] sm:$0xff] %v312_v31   ;;  %v122_v40 = vmax.f32 %v101_v32, 0.0  ;;  %v103_v41 = vadd.f32 %v428_v39, %v76_v33  ;;  %v104_v42 = vadd.f32 %v428_v39, %v77_v34 }
  0x2c   :  { %v317_v43 = vpack.c.bf16 %v121_v36, %v120_v35  ;;  %v123_v44 = vmax.f32 %v102_v37, 0.0  ;;  %v105_v45 = vadd.f32 %v428_v39, %v78_v38 }
  0x2d   :  { %v124_v46 = vmax.f32 %v103_v41, 0.0  ;;  %v125_v47 = vmax.f32 %v104_v42, 0.0 }
  0x2e   :  { %335 = vst [vmem:[%s523_s4 + $0x38] sm:$0xff] %v317_v43   ;;  %v322_v21 = vpack.c.bf16 %v123_v44, %v122_v40  ;;  %v126_v48 = vmax.f32 %v105_v45, 0.0 }
  0x2f   :  { %v327_v49 = vpack.c.bf16 %v125_v47, %v124_v46 }
  0x30   :  { %336 = vst [vmem:[%s523_s4 + $0x40] sm:$0xff] %v322_v21   ;;  %v278_v50 = vpack.c.bf16 %v126_v48, %v126_v48 }
  0x31   :  { %337 = vst [vmem:[%s523_s4 + $0x48] sm:$0xff] %v327_v49  }
  0x32   :  { %232 = vst [vmem:[%s523_s4 + $0x50] sm:$0xf] %v278_v50 }

// kernel: conv_feature_extract.12
= control target key start
LH: loop header
LB: loop body
LE: loop exit
PB: predicated region body
PF: predicated region fallthrough
CT: control target
= control target key end

     0   :  { %v45_v8 = vlaneseq  ;;  %s325_s1 = inlined_call_operand.vmem [shape: f32[2,128], index: 1, kind: input, shape index: {}]   ;;  %s326_s2 = inlined_call_operand.vmem [shape: f32[1,128], index: 2, kind: input, shape index: {}]   ;;  %s327_s0 = inlined_call_operand.vmem [shape: f32[104,128], index: 0, kind: input, shape index: {}]   ;;  %s328_s3 = inlined_call_operand.vmem [shape: f32[1,128], index: 3, kind: input, shape index: {}]   ;;  %s329_s4 = inlined_call_operand.vmem [shape: bf16[104,128], index: 4, kind: output, shape index: {}]  }
   0x1   :  { %v17_v0 = vld [vmem:[%s325_s1] sm:$0x1]  ;;  %v19_v1 = vld [vmem:[%s325_s1 + $0x1] sm:$0x1]  ;;  %v32_v16 = vld [vmem:[%s327_s0 + $0x8] sm:$0xff] }
   0x2   :  { %v18_v2 = vmul.f32 0.010204081, %v17_v0  ;;  %v20_v3 = vmul.f32 0.010204081, %v19_v1  ;;  %v46_v9 = vshrl.u32 %v45_v8, 7  ;;  %v31_v15 = vld [vmem:[%s327_s0] sm:$0xff] }
   0x3   :  { %v24_v10 = vld [vmem:[%s326_s2] sm:$0x1]  ;;  %v33_v17 = vld [vmem:[%s327_s0 + $0x10] sm:$0xff]  ;;  %v34_v18 = vld [vmem:[%s327_s0 + $0x18] sm:$0xff] }
   0x4   :  { %v21_v4 = vmul.f32 %v18_v2, %v18_v2  ;;  %v47_v11 = vsub.s32 0, %v46_v9  ;;  %v28_v14 = vld [vmem:[%s328_s3] sm:$0x1]  ;;  %v36_v22 = vld [vmem:[%s327_s0 + $0x28] sm:$0xff]  ;;  %v37_v23 = vld [vmem:[%s327_s0 + $0x30] sm:$0xff] }
   0x5   :  { %v35_v21 = vld [vmem:[%s327_s0 + $0x20] sm:$0xff]  ;;  %v38_v24 = vld [vmem:[%s327_s0 + $0x38] sm:$0xff]  ;;  %v40_v26 = vld [vmem:[%s327_s0 + $0x48] sm:$0xff] }
   0x6   :  { %v22_v5 = vsub.f32 %v20_v3, %v21_v4  ;;  %v39_v25 = vld [vmem:[%s327_s0 + $0x40] sm:$0xff]  ;;  %v41_v31 = vld [vmem:[%s327_s0 + $0x50] sm:$0xff]  ;;  %v42_v32 = vld [vmem:[%s327_s0 + $0x58] sm:$0xff] }
   0x7   :  { %v43_v33 = vld [vmem:[%s327_s0 + $0x60] sm:$0xff] }
   0x8   :  { %v23_v6 = vmax.f32 %v22_v5, 0.0 }
   0xa   :  { %v25_v7 = vadd.f32 1e-05, %v23_v6 }
   0xc   :  { %226 = vrsqrt.f32 %v25_v7 }
  0x16   :  { %v227_v12 = vpop.eup %226 }
  0x17   :  { %v27_v13 = vmul.f32 %v227_v12, %v24_v10 }
  0x19   :  { %v29_v19 = vmul.f32 %v27_v13, %v18_v2  ;;  %v48_v20 = vrot.slane %v27_v13, %v47_v11 }
  0x1b   :  { %v30_v27 = vsub.f32 %v28_v14, %v29_v19  ;;  %v50_v28 = vmul.f32 %v48_v20, %v31_v15  ;;  %v51_v29 = vmul.f32 %v48_v20, %v32_v16  ;;  %v52_v30 = vmul.f32 %v48_v20, %v33_v17 }
  0x1c   :  { %v53_v34 = vmul.f32 %v48_v20, %v34_v18  ;;  %v54_v35 = vmul.f32 %v48_v20, %v35_v21  ;;  %v55_v36 = vmul.f32 %v48_v20, %v36_v22  ;;  %v56_v37 = vmul.f32 %v48_v20, %v37_v23 }
  0x1d   :  { %v67_v38 = vrot.slane %v30_v27, %v47_v11  ;;  %v57_v39 = vmul.f32 %v48_v20, %v38_v24  ;;  %v58_v40 = vmul.f32 %v48_v20, %v39_v25  ;;  %v59_v41 = vmul.f32 %v48_v20, %v40_v26 }
  0x1e   :  { %v60_v42 = vmul.f32 %v48_v20, %v41_v31  ;;  %v61_v43 = vmul.f32 %v48_v20, %v42_v32  ;;  %v62_v44 = vmul.f32 %v48_v20, %v43_v33 }
  0x1f   :  { %v69_v45 = vadd.f32 %v67_v38, %v50_v28  ;;  %v70_v46 = vadd.f32 %v67_v38, %v51_v29  ;;  %v71_v47 = vadd.f32 %v67_v38, %v52_v30  ;;  %v72_v48 = vadd.f32 %v67_v38, %v53_v34 }
  0x20   :  { %v73_v49 = vadd.f32 %v67_v38, %v54_v35  ;;  %v74_v50 = vadd.f32 %v67_v38, %v55_v36  ;;  %v75_v51 = vadd.f32 %v67_v38, %v56_v37  ;;  %v76_v52 = vadd.f32 %v67_v38, %v57_v39 }
  0x21   :  { %v82_v53 = vmax.f32 %v69_v45, 0.0  ;;  %v83_v54 = vmax.f32 %v70_v46, 0.0  ;;  %v84_v55 = vmax.f32 %v71_v47, 0.0  ;;  %v85_v56 = vmax.f32 %v72_v48, 0.0 }
  0x22   :  { %v86_v57 = vmax.f32 %v73_v49, 0.0  ;;  %v87_v58 = vmax.f32 %v74_v50, 0.0  ;;  %v88_v59 = vmax.f32 %v75_v51, 0.0  ;;  %v89_v60 = vmax.f32 %v76_v52, 0.0 }
  0x23   :  { %v194_v61 = vpack.c.bf16 %v83_v54, %v82_v53  ;;  %v199_v62 = vpack.c.bf16 %v85_v56, %v84_v55  ;;  %v77_v63 = vadd.f32 %v67_v38, %v58_v40  ;;  %v78_v0 = vadd.f32 %v67_v38, %v59_v41 }
  0x24   :  { %v204_v1 = vpack.c.bf16 %v87_v58, %v86_v57  ;;  %v209_v2 = vpack.c.bf16 %v89_v60, %v88_v59  ;;  %v79_v3 = vadd.f32 %v67_v38, %v60_v42  ;;  %v80_v4 = vadd.f32 %v67_v38, %v61_v43 }
  0x25   :  { %195 = vst [vmem:[%s329_s4] sm:$0xff] %v194_v61   ;;  %221 = vst [vmem:[%s329_s4 + $0x8] sm:$0xff] %v199_v62   ;;  %v90_v5 = vmax.f32 %v77_v63, 0.0  ;;  %v91_v6 = vmax.f32 %v78_v0, 0.0  ;;  %v81_v7 = vadd.f32 %v67_v38, %v62_v44 }
  0x26   :  { %222 = vst [vmem:[%s329_s4 + $0x10] sm:$0xff] %v204_v1   ;;  %223 = vst [vmem:[%s329_s4 + $0x18] sm:$0xff] %v209_v2   ;;  %v92_v8 = vmax.f32 %v79_v3, 0.0  ;;  %v93_v9 = vmax.f32 %v80_v4, 0.0 }
  0x27   :  { %v214_v10 = vpack.c.bf16 %v91_v6, %v90_v5  ;;  %v94_v11 = vmax.f32 %v81_v7, 0.0 }
  0x28   :  { %v219_v12 = vpack.c.bf16 %v93_v9, %v92_v8 }
  0x29   :  { %224 = vst [vmem:[%s329_s4 + $0x20] sm:$0xff] %v214_v10   ;;  %v190_v13 = vpack.c.bf16 %v94_v11, %v94_v11 }
  0x2a   :  { %225 = vst [vmem:[%s329_s4 + $0x28] sm:$0xff] %v219_v12  }
  0x2b   :  { %160 = vst [vmem:[%s329_s4 + $0x30] sm:$0xf] %v190_v13 }

// kernel: conv_feature_extract.11
= control target key start
LH: loop header
LB: loop body
LE: loop exit
PB: predicated region body
PF: predicated region fallthrough
CT: control target
= control target key end

     0   :  { %v1209_v34 = vmov 0.0   ;;  %vm1210_vm0 = vmmov 0   ;;  %vm513_vm1 = vcmask 523264   ;;  %s1558_s1 = inlined_call_operand.vmem [shape: bf16[576,128], index: 1, kind: input, shape index: {}]   ;;  %s1559_s0 = inlined_call_operand.vmem [shape: bf16[104,576], index: 0, kind: input, shape index: {}]   ;;  %s1560_s3 = inlined_call_operand.vmem [shape: f32[2,128], index: 3, kind: output, shape index: {1}]   ;;  %s1561_s2 = inlined_call_operand.vmem [shape: f32[104,128], index: 2, kind: output, shape index: {0}]  }
   0x1   :  { %v1126_v0 = vld [vmem:[%s1558_s1 + $0x40] sm:$0xff]   ;;  %v1130_v4 = vld [vmem:[%s1558_s1 + $0x48] sm:$0xff]   ;;  %v1134_v8 = vld [vmem:[%s1558_s1 + $0x50] sm:$0xff]   ;;  %18 = vst [vmem:[%s1560_s3] sm:$0x3] %v1209_v34 }
   0x2   :  { %v1127_v1 = vld [vmem:[%s1558_s1 + $0xc0] sm:$0xff]   ;;  %953 = vmatprep.subr.bf16.mxu0 %v1126_v0  ;;  %v1131_v5 = vld [vmem:[%s1558_s1 + $0xc8] sm:$0xff]   ;;  %v1135_v9 = vld [vmem:[%s1558_s1 + $0xd0] sm:$0xff]  }
   0x3   :  { %v1128_v2 = vld [vmem:[%s1558_s1] sm:$0xff]   ;;  %1011 = vmatprep.subr.bf16.mxu1 %v1127_v1  ;;  %v1132_v6 = vld [vmem:[%s1558_s1 + $0x8] sm:$0xff]   ;;  %v1136_v10 = vld [vmem:[%s1558_s1 + $0x10] sm:$0xff]  }
   0x4   :  { %v1129_v3 = vld [vmem:[%s1558_s1 + $0x80] sm:$0xff]   ;;  %954 = vmatpush3.bf16.msra.mxu0 %v1128_v2  ;;  %v1133_v7 = vld [vmem:[%s1558_s1 + $0x88] sm:$0xff]   ;;  %v1137_v11 = vld [vmem:[%s1558_s1 + $0x90] sm:$0xff]  }
   0x5   :  { %1012 = vmatpush3.bf16.msra.mxu1 %v1129_v3  ;;  %955 = vmatprep.subr.bf16.mxu0 %v1130_v4  ;;  %v1138_v12 = vld [vmem:[%s1558_s1 + $0x58] sm:$0xff]   ;;  %v1142_v16 = vld [vmem:[%s1558_s1 + $0x60] sm:$0xff]   ;;  %v1146_v20 = vld [vmem:[%s1558_s1 + $0x68] sm:$0xff]  }
   0x6   :  { %1013 = vmatprep.subr.bf16.mxu1 %v1131_v5  ;;  %v1139_v13 = vld [vmem:[%s1558_s1 + $0xd8] sm:$0xff]   ;;  %v1143_v17 = vld [vmem:[%s1558_s1 + $0xe0] sm:$0xff]   ;;  %v1147_v21 = vld [vmem:[%s1558_s1 + $0xe8] sm:$0xff]  }
   0x7   :  { %v1140_v14 = vld [vmem:[%s1558_s1 + $0x18] sm:$0xff]   ;;  %v1144_v18 = vld [vmem:[%s1558_s1 + $0x20] sm:$0xff]   ;;  %v1148_v22 = vld [vmem:[%s1558_s1 + $0x28] sm:$0xff]  }
   0x8   :  { %956 = vmatpush3.bf16.msra.mxu0 %v1132_v6  ;;  %v1141_v15 = vld [vmem:[%s1558_s1 + $0x98] sm:$0xff]   ;;  %v1145_v19 = vld [vmem:[%s1558_s1 + $0xa0] sm:$0xff]   ;;  %v1149_v23 = vld [vmem:[%s1558_s1 + $0xa8] sm:$0xff]  }
   0x9   :  { %1014 = vmatpush3.bf16.msra.mxu1 %v1133_v7  ;;  %957 = vmatprep.subr.bf16.mxu0 %v1134_v8  ;;  %v1150_v24 = vld [vmem:[%s1558_s1 + $0x70] sm:$0xff]   ;;  %v1154_v28 = vld [vmem:[%s1558_s1 + $0x78] sm:$0xff]   ;;  %v1163_v36 = vld [vmem:[%s1559_s0 + $0xc] ss:$20 sps:$4 sm:$0xff]  }
   0xa   :  { %1015 = vmatprep.subr.bf16.mxu1 %v1135_v9  ;;  %v1151_v25 = vld [vmem:[%s1558_s1 + $0xf0] sm:$0xff]   ;;  %v1155_v29 = vld [vmem:[%s1558_s1 + $0xf8] sm:$0xff]   ;;  %v1164_v37 = vld [vmem:[%s1558_s1 + $0x100] sm:$0xff]   ;;  %655 = vmatprep.mubr.bf16.mxu1 %v1163_v36 }
   0xb   :  { %v1152_v26 = vld [vmem:[%s1558_s1 + $0x30] sm:$0xff]   ;;  %v1156_v30 = vld [vmem:[%s1558_s1 + $0x38] sm:$0xff]   ;;  %v1165_v38 = vld [vmem:[%s1559_s0 + $0x2c] ss:$20 sps:$4 sm:$0xff]  }
   0xc   :  { %958 = vmatpush3.bf16.msra.mxu0 %v1136_v10  ;;  %v1153_v27 = vld [vmem:[%s1558_s1 + $0xb0] sm:$0xff]   ;;  %v1157_v31 = vld [vmem:[%s1558_s1 + $0xb8] sm:$0xff]   ;;  %v1175_v43 = vld [vmem:[%s1558_s1 + $0x108] sm:$0xff]  }
   0xd   :  { %1016 = vmatpush3.bf16.msra.mxu1 %v1137_v11  ;;  %959 = vmatprep.subr.bf16.mxu0 %v1138_v12  ;;  %v1158_v32 = vld [vmem:[%s1559_s0] ss:$20 sps:$4 sm:$0xff]   ;;  %v1160_v33 = vld [vmem:[%s1559_s0 + $0x4] ss:$20 sps:$4 sm:$0xff]   ;;  %v1161_v35 = vld [vmem:[%s1559_s0 + $0x8] ss:$20 sps:$4 sm:$0xff]  }
   0xe   :  { %1017 = vmatprep.subr.bf16.mxu1 %v1139_v13  ;;  %567 = vmatprep.mubr.bf16.mxu0 %v1160_v33  ;;  %v1167_v39 = vld [vmem:[%s1559_s0 + $0x34] ss:$20 sps:$4 sm:$0xff]   ;;  %v1170_v41 = vld [vmem:[%s1559_s0 + $0x30] ss:$20 sps:$4 sm:$0xff]   ;;  %v1177_v47 = vld [vmem:[%s1559_s0 + $0x58] ss:$20 sps:$4 sm:$0xff]  }
   0xf   :  { %v1169_v40 = vld [vmem:[%s1559_s0 + $0x28] ss:$20 sps:$4 sm:$0xff]   ;;  %v1184_v45 = vld [vmem:[%s1558_s1 + $0x110] sm:$0xff]   ;;  %v1180_v49 = vld [vmem:[%s1559_s0 + $0x84] ss:$20 sps:$4 sm:$0xff]  }
  0x10   :  { %960 = vmatpush3.bf16.msra.mxu0 %v1140_v14  ;;  %v1171_v42 = vld [vmem:[%s1559_s0 + $0x54] ss:$20 sps:$4 sm:$0xff]   ;;  %v1173_v44 = vld [vmem:[%s1559_s0 + $0x5c] ss:$20 sps:$4 sm:$0xff]   ;;  %v1182_v51 = vld [vmem:[%s1559_s0 + $0x78] ss:$20 sps:$4 sm:$0xff]  }
  0x11   :  { %1018 = vmatpush3.bf16.msra.mxu1 %v1141_v15  ;;  %961 = vmatprep.subr.bf16.mxu0 %v1142_v16  ;;  %v1176_v46 = vld [vmem:[%s1559_s0 + $0x50] ss:$20 sps:$4 sm:$0xff]   ;;  %v1197_v50 = vld [vmem:[%s1558_s1 + $0x118] sm:$0xff]   ;;  %v1183_v52 = vld [vmem:[%s1559_s0 + $0x80] ss:$20 sps:$4 sm:$0xff]  }
  0x12   :  { %1019 = vmatprep.subr.bf16.mxu1 %v1143_v17  ;;  %v1178_v48 = vld [vmem:[%s1559_s0 + $0x7c] ss:$20 sps:$4 sm:$0xff]   ;;  %v1185_v53 = vld [vmem:[%s1559_s0 + $0xa4] ss:$20 sps:$4 sm:$0xff]   ;;  %v1187_v54 = vld [vmem:[%s1559_s0 + $0xac] ss:$20 sps:$4 sm:$0xff]  }
  0x13   :  { %v1189_v55 = vld [vmem:[%s1559_s0 + $0xa0] ss:$20 sps:$4 sm:$0xff]   ;;  %v1190_v56 = vld [vmem:[%s1559_s0 + $0xa8] ss:$20 sps:$4 sm:$0xff]   ;;  %v1196_v62 = vld [vmem:[%s1559_s0 + $0xd0] ss:$20 sps:$4 sm:$0xff]  }
  0x14   :  { %962 = vmatpush3.bf16.msra.mxu0 %v1144_v18  ;;  %v1191_v57 = vld [vmem:[%s1559_s0 + $0xcc] ss:$20 sps:$4 sm:$0xff]   ;;  %v1193_v58 = vld [vmem:[%s1559_s0 + $0xd4] ss:$20 sps:$4 sm:$0xff]   ;;  %v56_v60 = vld [vmem:[%s1559_s0 + $0xf8] sm:$0xff] }
  0x15   :  { %1020 = vmatpush3.bf16.msra.mxu1 %v1145_v19  ;;  %963 = vmatprep.subr.bf16.mxu0 %v1146_v20  ;;  %v55_v59 = vld [vmem:[%s1559_s0 + $0xf0] sm:$0xff]  ;;  %v1195_v61 = vld [vmem:[%s1559_s0 + $0xc8] ss:$20 sps:$4 sm:$0xff]   ;;  %v908_v0 = vcombine.high %v56_v60, %v56_v60  ;;  %v907_v2 = vcombine.low %v56_v60, %v56_v60  ;;  %v1204_v5 = vld [vmem:[%s1559_s0 + $0x38] ss:$20 sps:$4 sm:$0xff]  }
  0x16   :  { %1021 = vmatprep.subr.bf16.mxu1 %v1147_v21  ;;  %v906_v63 = vcombine.high %v55_v59, %v55_v59  ;;  %v905_v1 = vcombine.low %v55_v59, %v55_v59  ;;  %v1202_v3 = vld [vmem:[%s1559_s0 + $0x10] ss:$20 sps:$4 sm:$0xff]   ;;  %v1205_v6 = vld [vmem:[%s1559_s0 + $0xd8] ss:$20 sps:$4 sm:$0xff]   ;;  %v1206_v7 = vld [vmem:[%s1559_s0 + $0x60] ss:$20 sps:$4 sm:$0xff]  }
  0x17   :  { %v1203_v4 = vld [vmem:[%s1559_s0 + $0xb0] ss:$20 sps:$4 sm:$0xff]   ;;  %v1207_v8 = vld [vmem:[%s1559_s0 + $0x100] ss:$0 sps:$4 sm:$0xff]   ;;  %v1208_v9 = vld [vmem:[%s1559_s0 + $0x88] ss:$20 sps:$4 sm:$0xff]  }
  0x18   :  { %964 = vmatpush3.bf16.msra.mxu0 %v1148_v22 }
  0x19   :  { %1022 = vmatpush3.bf16.msra.mxu1 %v1149_v23  ;;  %965 = vmatprep.subr.bf16.mxu0 %v1150_v24 }
  0x1a   :  { %1023 = vmatprep.subr.bf16.mxu1 %v1151_v25 }
  0x1c   :  { %966 = vmatpush3.bf16.msra.mxu0 %v1152_v26 }
  0x1d   :  { %1024 = vmatpush3.bf16.msra.mxu1 %v1153_v27  ;;  %967 = vmatprep.subr.bf16.mxu0 %v1154_v28 }
  0x1e   :  { %1025 = vmatprep.subr.bf16.mxu1 %v1155_v29 }
  0x20   :  { %968 = vmatpush3.bf16.msra.mxu0 %v1156_v30 }
  0x21   :  { %1026 = vmatpush3.bf16.msra.mxu1 %v1157_v31  ;;  %1080 = vmatprep.subr.bf16.mxu0 %v1209_v34 }
  0x22   :  { %1116 = vmatprep.subr.bf16.mxu1 %v1209_v34 }
  0x23   :  { %568 = vmatmul.mubr.bf16.vlgmr.msra.gmra.mrb[0].mxu0 %v1158_v32 }
  0x24   :  { %656 = vmatmul.mubr.bf16.vlgmr.msra.gmra.mrb[0].mxu1 %v1161_v35  ;;  %1081 = vmatpush3.bf16.msra.mxu0 %v1164_v37 }
  0x25   :  { %575 = vmatprep.mubr.bf16.mxu0 %v1165_v38  ;;  %1082 = vmatprep.subr.bf16.mxu0 %v1209_v34 }
  0x26   :  { %663 = vmatprep.mubr.bf16.mxu1 %v1167_v39  ;;  %1120 = vmatpush3.bf16.msra.mxu1 %v1164_v37 }
  0x27   :  { %1117 = vmatprep.subr.bf16.mxu1 %v1209_v34 }
  0x28   :  { %1083 = vmatpush3.bf16.msra.mxu0 %v1175_v43 }
  0x29   :  { %1084 = vmatprep.subr.bf16.mxu0 %v1209_v34 }
  0x2a   :  { %1121 = vmatpush3.bf16.msra.mxu1 %v1175_v43 }
  0x2b   :  { %576 = vmatmul.mubr.bf16.gmra.mrb[4].mxu0 %v1169_v40  ;;  %1118 = vmatprep.subr.bf16.mxu1 %v1209_v34 }
  0x2c   :  { %664 = vmatmul.mubr.bf16.gmra.mrb[4].mxu1 %v1170_v41  ;;  %583 = vmatprep.mubr.bf16.mxu0 %v1171_v42 }
  0x2d   :  { %671 = vmatprep.mubr.bf16.mxu1 %v1173_v44  ;;  %1085 = vmatpush3.bf16.msra.mxu0 %v1184_v45 }
  0x2e   :  { %1122 = vmatpush3.bf16.msra.mxu1 %v1184_v45  ;;  %1086 = vmatprep.subr.bf16.mxu0 %v1209_v34 }
  0x2f   :  { %1119 = vmatprep.subr.bf16.mxu1 %v1209_v34 }
  0x31   :  { %1087 = vmatpush3.bf16.msra.mxu0 %v1197_v50 }
  0x32   :  { %1123 = vmatpush3.bf16.msra.mxu1 %v1197_v50 }
  0x33   :  { %584 = vmatmul.mubr.bf16.gmra.mrb[8].mxu0 %v1176_v46 }
  0x34   :  { %672 = vmatmul.mubr.bf16.gmra.mrb[8].mxu1 %v1177_v47  ;;  %591 = vmatprep.mubr.bf16.mxu0 %v1178_v48 }
  0x35   :  { %679 = vmatprep.mubr.bf16.mxu1 %v1180_v49 }
  0x3b   :  { %592 = vmatmul.mubr.bf16.gmra.mrb[12].mxu0 %v1182_v51 }
  0x3c   :  { %680 = vmatmul.mubr.bf16.gmra.mrb[12].mxu1 %v1183_v52  ;;  %599 = vmatprep.mubr.bf16.mxu0 %v1185_v53 }
  0x3d   :  { %687 = vmatprep.mubr.bf16.mxu1 %v1187_v54 }
  0x43   :  { %600 = vmatmul.mubr.bf16.gmra.mrb[16].mxu0 %v1189_v55 }
  0x44   :  { %688 = vmatmul.mubr.bf16.gmra.mrb[16].mxu1 %v1190_v56  ;;  %607 = vmatprep.mubr.bf16.mxu0 %v1191_v57 }
  0x45   :  { %695 = vmatprep.mubr.bf16.mxu1 %v1193_v58 }
  0x4b   :  { %608 = vmatmul.mubr.bf16.gmra.mrb[20].mxu0 %v1195_v61 }
  0x4c   :  { %696 = vmatmul.mubr.bf16.gmra.mrb[20].mxu1 %v1196_v62  ;;  %615 = vmatprep.mubr.bf16.mxu0 %v906_v63 }
  0x4d   :  { %703 = vmatprep.mubr.bf16.mxu1 %v908_v0 }
  0x53   :  { %616 = vmatmul.mubr.bf16.gmra.mrb[24].mxu0 %v905_v1 }
  0x54   :  { %704 = vmatmul.mubr.bf16.gmra.mrb[24].mxu1 %v907_v2  ;;  %1088 = vmatprep.mubr.msk.bf16.mxu0 %vm1210_vm0, %v1209_v34 }
  0x55   :  { %1104 = vmatprep.mubr.msk.bf16.mxu1 %vm1210_vm0, %v1209_v34 }
  0x5b   :  { %1089 = vmatmul.mubr.msk.bf16.vlgmr.msra.gmra.mrb[28].mxu0 %vm513_vm1, %v1202_v3 }
  0x5c   :  { %1105 = vmatmul.mubr.msk.bf16.vlgmr.msra.gmra.mrb[28].mxu1 %vm513_vm1, %v1203_v4  ;;  %1092 = vmatprep.mubr.msk.bf16.mxu0 %vm1210_vm0, %v1209_v34 }
  0x5d   :  { %1108 = vmatprep.mubr.msk.bf16.mxu1 %vm1210_vm0, %v1209_v34 }
  0x63   :  { %1093 = vmatmul.mubr.msk.bf16.gmra.mrb[32].mxu0 %vm513_vm1, %v1204_v5 }
  0x64   :  { %1109 = vmatmul.mubr.msk.bf16.gmra.mrb[32].mxu1 %vm513_vm1, %v1205_v6  ;;  %1096 = vmatprep.mubr.msk.bf16.mxu0 %vm1210_vm0, %v1209_v34 }
  0x65   :  { %1112 = vmatprep.mubr.msk.bf16.mxu1 %vm1210_vm0, %v1209_v34 }
  0x6b   :  { %1097 = vmatmul.mubr.msk.bf16.gmra.mrb[36].mxu0 %vm513_vm1, %v1206_v7 }
  0x6c   :  { %1113 = vmatmul.mubr.msk.bf16.gmra.mrb[36].mxu1 %vm513_vm1, %v1207_v8  ;;  %1100 = vmatprep.mubr.msk.bf16.mxu0 %vm1210_vm0, %v1209_v34 }
  0x73   :  { %1101 = vmatmul.mubr.msk.bf16.gmra.mrb[40].mxu0 %vm513_vm1, %v1208_v9 }
  0xf6   :  { %v969_v10 = vpop.f32.mrb[0].mxu0 }
  0xf7   :  { %v1027_v11 = vpop.f32.mrb[0].mxu1  ;;  %v970_v12 = vpop.f32.mrb[1].mxu0 }
  0xf8   :  { %v971_v13 = vadd.f32 %v970_v12, %v969_v10  ;;  %v1028_v14 = vpop.f32.mrb[1].mxu1  ;;  %v972_v15 = vpop.f32.mrb[2].mxu0 }
  0xf9   :  { %v1029_v16 = vadd.f32 %v1028_v14, %v1027_v11  ;;  %v1030_v17 = vpop.f32.mrb[2].mxu1  ;;  %v973_v18 = vpop.f32.mrb[3].mxu0 }
  0xfa   :  { %v974_v19 = vadd.f32 %v973_v18, %v972_v15  ;;  %v1031_v20 = vpop.f32.mrb[3].mxu1 }
  0xfb   :  { %v1032_v21 = vadd.f32 %v1031_v20, %v1030_v17  ;;  %v1471_v22 = vadd.f32 %v1029_v16, %v971_v13 }
  0xfd   :  { %v1473_v23 = vadd.f32 %v1032_v21, %v974_v19 }
  0xfe   :  { %v975_v24 = vpop.f32.mrb[4].mxu0 }
  0xff   :  { %v1033_v25 = vpop.f32.mrb[4].mxu1  ;;  %v976_v26 = vpop.f32.mrb[5].mxu0 }
 0x100   :  { %v977_v27 = vadd.f32 %v976_v26, %v975_v24  ;;  %v1034_v28 = vpop.f32.mrb[5].mxu1  ;;  %v978_v29 = vpop.f32.mrb[6].mxu0 }
 0x101   :  { %v1035_v30 = vadd.f32 %v1034_v28, %v1033_v25  ;;  %v1036_v31 = vpop.f32.mrb[6].mxu1  ;;  %v979_v32 = vpop.f32.mrb[7].mxu0 }
 0x102   :  { %v980_v33 = vadd.f32 %v979_v32, %v978_v29  ;;  %v1037_v34 = vpop.f32.mrb[7].mxu1 }
 0x103   :  { %v1038_v35 = vadd.f32 %v1037_v34, %v1036_v31  ;;  %v1475_v36 = vadd.f32 %v1035_v30, %v977_v27 }
 0x105   :  { %v1477_v37 = vadd.f32 %v1038_v35, %v980_v33 }
 0x106   :  { %v981_v38 = vpop.f32.mrb[8].mxu0 }
 0x107   :  { %v1039_v39 = vpop.f32.mrb[8].mxu1  ;;  %v982_v40 = vpop.f32.mrb[9].mxu0 }
 0x108   :  { %v983_v41 = vadd.f32 %v982_v40, %v981_v38  ;;  %v1040_v42 = vpop.f32.mrb[9].mxu1  ;;  %v984_v43 = vpop.f32.mrb[10].mxu0 }
 0x109   :  { %v1041_v44 = vadd.f32 %v1040_v42, %v1039_v39  ;;  %v1042_v45 = vpop.f32.mrb[10].mxu1  ;;  %v985_v46 = vpop.f32.mrb[11].mxu0 }
 0x10a   :  { %v986_v47 = vadd.f32 %v985_v46, %v984_v43  ;;  %v1043_v48 = vpop.f32.mrb[11].mxu1 }
 0x10b   :  { %v1044_v49 = vadd.f32 %v1043_v48, %v1042_v45  ;;  %v1479_v50 = vadd.f32 %v1041_v44, %v983_v41 }
 0x10d   :  { %v1481_v51 = vadd.f32 %v1044_v49, %v986_v47 }
 0x10e   :  { %v987_v52 = vpop.f32.mrb[12].mxu0 }
 0x10f   :  { %v1045_v53 = vpop.f32.mrb[12].mxu1  ;;  %v988_v54 = vpop.f32.mrb[13].mxu0 }
 0x110   :  { %v989_v55 = vadd.f32 %v988_v54, %v987_v52  ;;  %v1046_v56 = vpop.f32.mrb[13].mxu1  ;;  %v990_v57 = vpop.f32.mrb[14].mxu0 }
 0x111   :  { %v1047_v58 = vadd.f32 %v1046_v56, %v1045_v53  ;;  %v1048_v59 = vpop.f32.mrb[14].mxu1  ;;  %v991_v60 = vpop.f32.mrb[15].mxu0 }
 0x112   :  { %v992_v61 = vadd.f32 %v991_v60, %v990_v57  ;;  %v1049_v62 = vpop.f32.mrb[15].mxu1 }
 0x113   :  { %v1050_v63 = vadd.f32 %v1049_v62, %v1048_v59  ;;  %v1483_v0 = vadd.f32 %v1047_v58, %v989_v55 }
 0x115   :  { %v1485_v1 = vadd.f32 %v1050_v63, %v992_v61 }
 0x116   :  { %v993_v2 = vpop.f32.mrb[16].mxu0 }
 0x117   :  { %v1051_v3 = vpop.f32.mrb[16].mxu1  ;;  %v994_v4 = vpop.f32.mrb[17].mxu0 }
 0x118   :  { %v995_v5 = vadd.f32 %v994_v4, %v993_v2  ;;  %v1052_v6 = vpop.f32.mrb[17].mxu1  ;;  %v996_v7 = vpop.f32.mrb[18].mxu0 }
 0x119   :  { %v1053_v8 = vadd.f32 %v1052_v6, %v1051_v3  ;;  %v1054_v9 = vpop.f32.mrb[18].mxu1  ;;  %v997_v10 = vpop.f32.mrb[19].mxu0 }
 0x11a   :  { %v998_v11 = vadd.f32 %v997_v10, %v996_v7  ;;  %v1055_v12 = vpop.f32.mrb[19].mxu1 }
 0x11b   :  { %v1056_v13 = vadd.f32 %v1055_v12, %v1054_v9  ;;  %v690_v14 = vadd.f32 %v1053_v8, %v995_v5 }
 0x11d   :  { %v693_v15 = vadd.f32 %v1056_v13, %v998_v11 }
 0x11e   :  { %v999_v16 = vpop.f32.mrb[20].mxu0 }
 0x11f   :  { %v1057_v17 = vpop.f32.mrb[20].mxu1  ;;  %v1000_v18 = vpop.f32.mrb[21].mxu0 }
 0x120   :  { %v1001_v19 = vadd.f32 %v1000_v18, %v999_v16  ;;  %v1058_v20 = vpop.f32.mrb[21].mxu1  ;;  %v1002_v21 = vpop.f32.mrb[22].mxu0 }
 0x121   :  { %v1059_v24 = vadd.f32 %v1058_v20, %v1057_v17  ;;  %v1060_v25 = vpop.f32.mrb[22].mxu1  ;;  %v1003_v26 = vpop.f32.mrb[23].mxu0 }
 0x122   :  { %v1004_v27 = vadd.f32 %v1003_v26, %v1002_v21  ;;  %v1061_v28 = vpop.f32.mrb[23].mxu1 }
 0x123   :  { %v1062_v29 = vadd.f32 %v1061_v28, %v1060_v25  ;;  %v698_v30 = vadd.f32 %v1059_v24, %v1001_v19 }
 0x125   :  { %v701_v31 = vadd.f32 %v1062_v29, %v1004_v27 }
 0x126   :  { %v1005_v32 = vpop.f32.mrb[24].mxu0 }
 0x127   :  { %v1063_v33 = vpop.f32.mrb[24].mxu1  ;;  %v1006_v34 = vpop.f32.mrb[25].mxu0 }
 0x128   :  { %v1007_v35 = vadd.f32 %v1006_v34, %v1005_v32  ;;  %v1064_v38 = vpop.f32.mrb[25].mxu1  ;;  %v1008_v39 = vpop.f32.mrb[26].mxu0 }
 0x129   :  { %v1065_v40 = vadd.f32 %v1064_v38, %v1063_v33  ;;  %v1009_v41 = vpop.f32.mrb[27].mxu0  ;;  %v1066_v42 = vpop.f32.mrb[26].mxu1 }
 0x12a   :  { %v1067_v43 = vpop.f32.mrb[27].mxu1 }
 0x12b   :  { %v706_v44 = vadd.f32 %v1065_v40, %v1007_v35 }
 0x12e   :  { %v745_v45 = vpop.f32.mrb[28].mxu0 }
 0x12f   :  { %v746_v46 = vadd.f32 %v745_v45, %v1471_v22  ;;  %v777_v47 = vpop.f32.mrb[28].mxu1  ;;  %v1090_v48 = vpop.f32.mrb[29].mxu0 }
 0x130   :  { %v1488_v49 = vadd.f32 %v777_v47, %v690_v14  ;;  %v1106_v52 = vpop.f32.mrb[29].mxu1  ;;  %v748_v53 = vpop.f32.mrb[30].mxu0 }
 0x131   :  { %799 = vst [vmem:[%s1561_s2] sm:$0xff] %v746_v46  ;;  %v749_v54 = vadd.f32 %v748_v53, %v1473_v23  ;;  %v780_v55 = vpop.f32.mrb[30].mxu1  ;;  %v1091_v56 = vpop.f32.mrb[31].mxu0  ;;  %v834_v58 = vmul.f32 %v746_v46, %v746_v46 }
 0x132   :  { %807 = vst [vmem:[%s1561_s2 + $0x40] sm:$0xff] %v1488_v49  ;;  %v1498_v22 = vadd.f32 %v780_v55, %v693_v15  ;;  %v1107_v57 = vpop.f32.mrb[31].mxu1 }
 0x133   :  { %800 = vst [vmem:[%s1561_s2 + $0x8] sm:$0xff] %v749_v54  ;;  %v813_v59 = vadd.f32 %v749_v54, %v746_v46  ;;  %v835_v60 = vmul.f32 %v749_v54, %v749_v54 }
 0x134   :  { %808 = vst [vmem:[%s1561_s2 + $0x48] sm:$0xff] %v1498_v22  ;;  %v843_v47 = vmul.f32 %v1498_v22, %v1498_v22 }
 0x135   :  { %v847_v23 = vadd.f32 %v835_v60, %v834_v58 }
 0x136   :  { %v753_v61 = vpop.f32.mrb[32].mxu0 }
 0x137   :  { %v754_v62 = vadd.f32 %v753_v61, %v1475_v36  ;;  %v785_v63 = vpop.f32.mrb[32].mxu1  ;;  %v1094_v2 = vpop.f32.mrb[33].mxu0 }
 0x138   :  { %v786_v3 = vadd.f32 %v785_v63, %v698_v30  ;;  %v1110_v4 = vpop.f32.mrb[33].mxu1  ;;  %v756_v5 = vpop.f32.mrb[34].mxu0 }
 0x139   :  { %801 = vst [vmem:[%s1561_s2 + $0x10] sm:$0xff] %v754_v62  ;;  %v814_v6 = vadd.f32 %v813_v59, %v754_v62  ;;  %v836_v7 = vmul.f32 %v754_v62, %v754_v62  ;;  %v757_v8 = vadd.f32 %v756_v5, %v1477_v37  ;;  %v788_v9 = vpop.f32.mrb[34].mxu1  ;;  %v1095_v10 = vpop.f32.mrb[35].mxu0 }
 0x13a   :  { %809 = vst [vmem:[%s1561_s2 + $0x50] sm:$0xff] %v786_v3  ;;  %v789_v36 = vadd.f32 %v788_v9, %v701_v31  ;;  %v1111_v11 = vpop.f32.mrb[35].mxu1  ;;  %v844_v52 = vmul.f32 %v786_v3, %v786_v3  ;;  %v833_v9 = vld [vmem:[%s1560_s3 + $0x1] sm:$0x1] }
 0x13b   :  { %v848_v12 = vadd.f32 %v847_v23, %v836_v7  ;;  %802 = vst [vmem:[%s1561_s2 + $0x18] sm:$0xff] %v757_v8  ;;  %v815_v13 = vadd.f32 %v814_v6, %v757_v8  ;;  %v837_v14 = vmul.f32 %v757_v8, %v757_v8 }
 0x13c   :  { %810 = vst [vmem:[%s1561_s2 + $0x58] sm:$0xff] %v789_v36  ;;  %v845_v55 = vmul.f32 %v789_v36, %v789_v36 }
 0x13d   :  { %v849_v37 = vadd.f32 %v848_v12, %v837_v14 }
 0x13e   :  { %v761_v15 = vpop.f32.mrb[36].mxu0 }
 0x13f   :  { %v762_v16 = vadd.f32 %v761_v15, %v1479_v50  ;;  %v793_v17 = vpop.f32.mrb[36].mxu1  ;;  %v1098_v18 = vpop.f32.mrb[37].mxu0 }
 0x140   :  { %v794_v19 = vadd.f32 %v793_v17, %v706_v44  ;;  %v764_v20 = vpop.f32.mrb[38].mxu0  ;;  %v1114_v21 = vpop.f32.mrb[37].mxu1 }
 0x141   :  { %803 = vst [vmem:[%s1561_s2 + $0x20] sm:$0xff] %v762_v16  ;;  %v816_v24 = vadd.f32 %v815_v13, %v762_v16  ;;  %v838_v25 = vmul.f32 %v762_v16, %v762_v16  ;;  %v765_v26 = vadd.f32 %v764_v20, %v1481_v51  ;;  %v1099_v27 = vpop.f32.mrb[39].mxu0  ;;  %v796_v28 = vpop.f32.mrb[38].mxu1 }
 0x142   :  { %811 = vst [vmem:[%s1561_s2 + $0x60] sm:$0xff] %v794_v19  ;;  %v1115_v50 = vpop.f32.mrb[39].mxu1  ;;  %v846_v58 = vmul.f32 %v794_v19, %v794_v19 }
 0x143   :  { %v850_v29 = vadd.f32 %v849_v37, %v838_v25  ;;  %804 = vst [vmem:[%s1561_s2 + $0x28] sm:$0xff] %v765_v26  ;;  %v817_v30 = vadd.f32 %v816_v24, %v765_v26  ;;  %v839_v31 = vmul.f32 %v765_v26, %v765_v26 }
 0x145   :  { %v851_v32 = vadd.f32 %v850_v29, %v839_v31 }
 0x146   :  { %v769_v33 = vpop.f32.mrb[40].mxu0 }
 0x147   :  { %v770_v34 = vadd.f32 %v769_v33, %v1483_v0  ;;  %v1102_v35 = vpop.f32.mrb[41].mxu0  ;;  %v842_v0 = vmul.f32 %v1488_v49, %v1488_v49 }
 0x148   :  { %v772_v51 = vpop.f32.mrb[42].mxu0 }
 0x149   :  { %805 = vst [vmem:[%s1561_s2 + $0x30] sm:$0xff] %v770_v34  ;;  %v818_v38 = vadd.f32 %v817_v30, %v770_v34  ;;  %v840_v39 = vmul.f32 %v770_v34, %v770_v34  ;;  %v773_v40 = vadd.f32 %v772_v51, %v1485_v1  ;;  %v1103_v41 = vpop.f32.mrb[43].mxu0 }
 0x14b   :  { %v852_v42 = vadd.f32 %v851_v32, %v840_v39  ;;  %806 = vst [vmem:[%s1561_s2 + $0x38] sm:$0xff] %v773_v40  ;;  %v819_v43 = vadd.f32 %v818_v38, %v773_v40  ;;  %v841_v44 = vmul.f32 %v773_v40, %v773_v40 }
 0x14d   :  { %v820_v45 = vadd.f32 %v819_v43, %v1488_v49  ;;  %v853_v46 = vadd.f32 %v852_v42, %v841_v44 }
 0x14f   :  { %v821_v48 = vadd.f32 %v820_v45, %v1498_v22  ;;  %v854_v1 = vadd.f32 %v853_v46, %v842_v0 }
 0x151   :  { %v822_v53 = vadd.f32 %v821_v48, %v786_v3  ;;  %v855_v54 = vadd.f32 %v854_v1, %v843_v47  ;;  %v812_v3 = vld [vmem:[%s1560_s3] sm:$0x1] }
 0x153   :  { %v823_v56 = vadd.f32 %v822_v53, %v789_v36  ;;  %v856_v57 = vadd.f32 %v855_v54, %v844_v52 }
 0x155   :  { %v824_v59 = vadd.f32 %v823_v56, %v794_v19  ;;  %v857_v60 = vadd.f32 %v856_v57, %v845_v55 }
 0x157   :  { %v825_v23 = vrot.slane %v824_v59, 4  ;;  %v858_v61 = vadd.f32 %v857_v60, %v846_v58 }
 0x159   :  { %v826_v62 = vadd.f32 %v825_v23, %v824_v59  ;;  %v859_v49 = vrot.slane %v858_v61, 4 }
 0x15b   :  { %v827_v63 = vrot.slane %v826_v62, 2  ;;  %v860_v2 = vadd.f32 %v859_v49, %v858_v61 }
 0x15d   :  { %v828_v4 = vadd.f32 %v827_v63, %v826_v62  ;;  %v861_v5 = vrot.slane %v860_v2, 2 }
 0x15f   :  { %v829_v6 = vrot.slane %v828_v4, 1  ;;  %v862_v22 = vadd.f32 %v861_v5, %v860_v2 }
 0x161   :  { %v830_v7 = vadd.f32 %v829_v6, %v828_v4  ;;  %v863_v8 = vrot.slane %v862_v22, 1 }
 0x163   :  { %v831_v10 = vadd.f32 %v830_v7, %v812_v3  ;;  %v864_v36 = vadd.f32 %v863_v8, %v862_v22 }
 0x165   :  { %832 = vst [vmem:[%s1560_s3] sm:$0x1] %v831_v10  ;;  %v865_v11 = vadd.f32 %v864_v36, %v833_v9 }
 0x167   :  { %866 = vst [vmem:[%s1560_s3 + $0x1] sm:$0x1] %v865_v11 }

// kernel: conv_feature_extract.13
= control target key start
LH: loop header
LB: loop body
LE: loop exit
PB: predicated region body
PF: predicated region fallthrough
CT: control target
= control target key end

     0   :  { %v812_v36 = vlaneseq  ;;  %v8581_v37 = vmov 1966171168   ;;  %s11223_s0 = inlined_call_operand.vmem [shape: bf16[2,3136], index: 0, kind: input, shape index: {}]   ;;  %s11224_s1 = inlined_call_operand.vmem [shape: bf16[3136,512], index: 1, kind: input, shape index: {}]   ;;  %s11225_s2 = inlined_call_operand.vmem [shape: f32[1,512], index: 2, kind: input, shape index: {}]   ;;  %s11226_s3 = inlined_call_operand.vmem [shape: bf16[512,128], index: 3, kind: input, shape index: {}]   ;;  %s11227_s4 = inlined_call_operand.vmem [shape: f32[1,128], index: 4, kind: input, shape index: {}]   ;;  %s11228_s5 = inlined_call_operand.hbm [shape: f32[2,128], index: 5, kind: output, shape index: {}]  }
   0x1   :  { %v7344_v0 = vld [vmem:[%s11224_s1 + $0x4] ss:$16 sps:$4 sm:$0xff]   ;;  %v7346_v1 = vld [vmem:[%s11224_s1 + $0xc] ss:$16 sps:$4 sm:$0xff]   ;;  %v7348_v2 = vld [vmem:[%s11224_s1] ss:$16 sps:$4 sm:$0xff]   ;;  %v838_v38 = vunpack.c.l.s4 %v8581_v37 }
   0x2   :  { %4945 = vmatprep.subr.bf16.mxu0 %v7344_v0  ;;  %v7349_v3 = vld [vmem:[%s11224_s1 + $0x8] ss:$16 sps:$4 sm:$0xff]   ;;  %5478 = vmatprep.subr.bf16.mxu1 %v7346_v1  ;;  %v7350_v4 = vld [vmem:[%s11224_s1 + $0x24] ss:$16 sps:$4 sm:$0xff]   ;;  %v7352_v5 = vld [vmem:[%s11224_s1 + $0x2c] ss:$16 sps:$4 sm:$0xff]  }
   0x3   :  { %4946 = vmatpush1.bf16.msra.mxu0 %v7348_v2  ;;  %5479 = vmatpush1.bf16.msra.mxu1 %v7349_v3  ;;  %v7354_v6 = vld [vmem:[%s11224_s1 + $0x20] ss:$16 sps:$4 sm:$0xff]   ;;  %v7355_v7 = vld [vmem:[%s11224_s1 + $0x28] ss:$16 sps:$4 sm:$0xff]   ;;  %v7356_v8 = vld [vmem:[%s11224_s1 + $0x44] ss:$16 sps:$4 sm:$0xff]   ;;  %v839_v43 = vunpack.c.0.s8 %v838_v38 }
   0x4   :  { %4947 = vmatprep.subr.bf16.mxu0 %v7350_v4  ;;  %5480 = vmatprep.subr.bf16.mxu1 %v7352_v5  ;;  %v7358_v9 = vld [vmem:[%s11224_s1 + $0x4c] ss:$16 sps:$4 sm:$0xff]   ;;  %v7360_v10 = vld [vmem:[%s11224_s1 + $0x40] ss:$16 sps:$4 sm:$0xff]   ;;  %v7361_v11 = vld [vmem:[%s11224_s1 + $0x48] ss:$16 sps:$4 sm:$0xff]  }
   0x5   :  { %v7362_v12 = vld [vmem:[%s11224_s1 + $0x64] ss:$16 sps:$4 sm:$0xff]   ;;  %v7364_v13 = vld [vmem:[%s11224_s1 + $0x6c] ss:$16 sps:$4 sm:$0xff]   ;;  %v7366_v14 = vld [vmem:[%s11224_s1 + $0x60] ss:$16 sps:$4 sm:$0xff]  }
   0x6   :  { %v7367_v15 = vld [vmem:[%s11224_s1 + $0x68] ss:$16 sps:$4 sm:$0xff]   ;;  %v7368_v16 = vld [vmem:[%s11224_s1 + $0x84] ss:$16 sps:$4 sm:$0xff]   ;;  %v7370_v17 = vld [vmem:[%s11224_s1 + $0x8c] ss:$16 sps:$4 sm:$0xff]  }
   0x7   :  { %4948 = vmatpush1.bf16.msra.mxu0 %v7354_v6  ;;  %5481 = vmatpush1.bf16.msra.mxu1 %v7355_v7  ;;  %v7372_v18 = vld [vmem:[%s11224_s1 + $0x80] ss:$16 sps:$4 sm:$0xff]   ;;  %v7373_v19 = vld [vmem:[%s11224_s1 + $0x88] ss:$16 sps:$4 sm:$0xff]   ;;  %v7374_v20 = vld [vmem:[%s11224_s1 + $0xa4] ss:$16 sps:$4 sm:$0xff]  }
   0x8   :  { %4949 = vmatprep.subr.bf16.mxu0 %v7356_v8  ;;  %5482 = vmatprep.subr.bf16.mxu1 %v7358_v9  ;;  %v7376_v21 = vld [vmem:[%s11224_s1 + $0xac] ss:$16 sps:$4 sm:$0xff]   ;;  %v7378_v22 = vld [vmem:[%s11224_s1 + $0xa0] ss:$16 sps:$4 sm:$0xff]   ;;  %v7379_v23 = vld [vmem:[%s11224_s1 + $0xa8] ss:$16 sps:$4 sm:$0xff]  }
   0x9   :  { %v7380_v24 = vld [vmem:[%s11224_s1 + $0xc4] ss:$16 sps:$4 sm:$0xff]   ;;  %v7382_v25 = vld [vmem:[%s11224_s1 + $0xcc] ss:$16 sps:$4 sm:$0xff]   ;;  %v7384_v26 = vld [vmem:[%s11224_s1 + $0xc0] ss:$16 sps:$4 sm:$0xff]  }
   0xa   :  { %v7385_v27 = vld [vmem:[%s11224_s1 + $0xc8] ss:$16 sps:$4 sm:$0xff]   ;;  %v7386_v28 = vld [vmem:[%s11224_s1 + $0xe4] ss:$16 sps:$4 sm:$0xff]   ;;  %v7388_v29 = vld [vmem:[%s11224_s1 + $0xec] ss:$16 sps:$4 sm:$0xff]  }
   0xb   :  { %4950 = vmatpush1.bf16.msra.mxu0 %v7360_v10  ;;  %5483 = vmatpush1.bf16.msra.mxu1 %v7361_v11  ;;  %v7390_v30 = vld [vmem:[%s11224_s1 + $0xe0] ss:$16 sps:$4 sm:$0xff]   ;;  %v7391_v31 = vld [vmem:[%s11224_s1 + $0xe8] ss:$16 sps:$4 sm:$0xff]   ;;  %v7392_v32 = vld [vmem:[%s11224_s1 + $0x104] ss:$16 sps:$4 sm:$0xff]  }
   0xc   :  { %4951 = vmatprep.subr.bf16.mxu0 %v7362_v12  ;;  %5484 = vmatprep.subr.bf16.mxu1 %v7364_v13  ;;  %v7394_v33 = vld [vmem:[%s11224_s1 + $0x10c] ss:$16 sps:$4 sm:$0xff]   ;;  %v7396_v34 = vld [vmem:[%s11224_s1 + $0x100] ss:$16 sps:$4 sm:$0xff]   ;;  %v7397_v35 = vld [vmem:[%s11224_s1 + $0x108] ss:$16 sps:$4 sm:$0xff]  }
   0xd   :  { %v7398_v39 = vld [vmem:[%s11224_s1 + $0x124] ss:$16 sps:$4 sm:$0xff]   ;;  %v7400_v40 = vld [vmem:[%s11224_s1 + $0x12c] ss:$16 sps:$4 sm:$0xff]   ;;  %v7402_v41 = vld [vmem:[%s11224_s1 + $0x120] ss:$16 sps:$4 sm:$0xff]  }
   0xe   :  { %v8731_v42 = vshrl.u32 %v812_v36, 7  ;;  %v7403_v44 = vld [vmem:[%s11224_s1 + $0x128] ss:$16 sps:$4 sm:$0xff]   ;;  %v7404_v45 = vld [vmem:[%s11224_s1 + $0x144] ss:$16 sps:$4 sm:$0xff]  }
   0xf   :  { %4952 = vmatpush1.bf16.msra.mxu0 %v7366_v14  ;;  %5485 = vmatpush1.bf16.msra.mxu1 %v7367_v15  ;;  %v7406_v46 = vld [vmem:[%s11224_s1 + $0x14c] ss:$16 sps:$4 sm:$0xff]   ;;  %v7408_v47 = vld [vmem:[%s11224_s1 + $0x140] ss:$16 sps:$4 sm:$0xff]   ;;  %v7409_v48 = vld [vmem:[%s11224_s1 + $0x148] ss:$16 sps:$4 sm:$0xff]  }
  0x10   :  { %4953 = vmatprep.subr.bf16.mxu0 %v7368_v16  ;;  %5486 = vmatprep.subr.bf16.mxu1 %v7370_v17  ;;  %v8749_v49 = vsub.s32 %v839_v43, %v8731_v42  ;;  %v7410_v50 = vld [vmem:[%s11224_s1 + $0x164] ss:$16 sps:$4 sm:$0xff]   ;;  %v7412_v51 = vld [vmem:[%s11224_s1 + $0x16c] ss:$16 sps:$4 sm:$0xff]   ;;  %v7414_v53 = vld [vmem:[%s11224_s1 + $0x160] ss:$16 sps:$4 sm:$0xff]  }
  0x11   :  { %v8760_v52 = vld [vmem:[%s11223_s0] sm:$0xff]  ;;  %v7415_v55 = vld [vmem:[%s11224_s1 + $0x168] ss:$16 sps:$4 sm:$0xff]   ;;  %v7418_v57 = vld [vmem:[%s11224_s1 + $0x18c] ss:$16 sps:$4 sm:$0xff]  }
  0x12   :  { %v843_v54 = vrot.slane %v8760_v52, %v8749_v49  ;;  %v7416_v56 = vld [vmem:[%s11224_s1 + $0x184] ss:$16 sps:$4 sm:$0xff]   ;;  %v7420_v59 = vld [vmem:[%s11224_s1 + $0x180] ss:$16 sps:$4 sm:$0xff]   ;;  %v7421_v61 = vld [vmem:[%s11224_s1 + $0x188] ss:$16 sps:$4 sm:$0xff]  }
  0x13   :  { %4954 = vmatpush1.bf16.msra.mxu0 %v7372_v18  ;;  %5487 = vmatpush1.bf16.msra.mxu1 %v7373_v19  ;;  %v7422_v62 = vld [vmem:[%s11224_s1 + $0x1a4] ss:$16 sps:$4 sm:$0xff]   ;;  %v7424_v63 = vld [vmem:[%s11224_s1 + $0x1ac] ss:$16 sps:$4 sm:$0xff]   ;;  %v7426_v0 = vld [vmem:[%s11224_s1 + $0x1a0] ss:$16 sps:$4 sm:$0xff]  }
  0x14   :  { %4955 = vmatprep.subr.bf16.mxu0 %v7374_v20  ;;  %5488 = vmatprep.subr.bf16.mxu1 %v7376_v21  ;;  %v851_v58 = vcombine.high %v843_v54, %v843_v54  ;;  %v7427_v1 = vld [vmem:[%s11224_s1 + $0x1a8] ss:$16 sps:$4 sm:$0xff]   ;;  %v7428_v2 = vld [vmem:[%s11224_s1 + $0x1c4] ss:$16 sps:$4 sm:$0xff]   ;;  %v7430_v3 = vld [vmem:[%s11224_s1 + $0x1cc] ss:$16 sps:$4 sm:$0xff]   ;;  %v8829_v13 = vrot.slane %v843_v54, %v8749_v49 }
  0x15   :  { %v7432_v4 = vld [vmem:[%s11224_s1 + $0x1c0] ss:$16 sps:$4 sm:$0xff]   ;;  %v7433_v5 = vld [vmem:[%s11224_s1 + $0x1c8] ss:$16 sps:$4 sm:$0xff]   ;;  %v7434_v6 = vld [vmem:[%s11224_s1 + $0x1e4] ss:$16 sps:$4 sm:$0xff]  }
  0x16   :  { %v873_v60 = vrot.slane %v851_v58, %v8749_v49  ;;  %v7436_v7 = vld [vmem:[%s11224_s1 + $0x1ec] ss:$16 sps:$4 sm:$0xff]   ;;  %v7438_v8 = vld [vmem:[%s11224_s1 + $0x1e0] ss:$16 sps:$4 sm:$0xff]   ;;  %v7439_v9 = vld [vmem:[%s11224_s1 + $0x1e8] ss:$16 sps:$4 sm:$0xff]  }
  0x17   :  { %4956 = vmatpush1.bf16.msra.mxu0 %v7378_v22  ;;  %5489 = vmatpush1.bf16.msra.mxu1 %v7379_v23  ;;  %v7442_v10 = vld [vmem:[%s11224_s1 + $0x204] ss:$16 sps:$4 sm:$0xff]   ;;  %v7445_v11 = vld [vmem:[%s11224_s1 + $0x20c] ss:$16 sps:$4 sm:$0xff]   ;;  %v7440_v12 = vld [vmem:[%s11224_s1 + $0x200] ss:$16 sps:$4 sm:$0xff]  }
  0x18   :  { %4957 = vmatprep.subr.bf16.mxu0 %v7380_v24  ;;  %5490 = vmatprep.subr.bf16.mxu1 %v7382_v25  ;;  %v7443_v14 = vld [vmem:[%s11224_s1 + $0x208] ss:$16 sps:$4 sm:$0xff]   ;;  %v7448_v15 = vld [vmem:[%s11224_s1 + $0x224] ss:$16 sps:$4 sm:$0xff]   ;;  %v7451_v16 = vld [vmem:[%s11224_s1 + $0x22c] ss:$16 sps:$4 sm:$0xff]   ;;  %v883_v17 = vcombine.high %v873_v60, %v873_v60 }
  0x19   :  { %4977 = vmatprep.mubr.bf16.mxu0 %v873_v60  ;;  %5510 = vmatprep.mubr.bf16.mxu1 %v873_v60  ;;  %v7446_v18 = vld [vmem:[%s11224_s1 + $0x220] ss:$16 sps:$4 sm:$0xff]   ;;  %v7449_v19 = vld [vmem:[%s11224_s1 + $0x228] ss:$16 sps:$4 sm:$0xff]   ;;  %v7454_v20 = vld [vmem:[%s11224_s1 + $0x244] ss:$16 sps:$4 sm:$0xff]  }
  0x1a   :  { %v7457_v21 = vld [vmem:[%s11224_s1 + $0x24c] ss:$16 sps:$4 sm:$0xff]   ;;  %v7452_v22 = vld [vmem:[%s11224_s1 + $0x240] ss:$16 sps:$4 sm:$0xff]   ;;  %v7455_v23 = vld [vmem:[%s11224_s1 + $0x248] ss:$16 sps:$4 sm:$0xff]  }
  0x1b   :  { %4958 = vmatpush1.bf16.msra.mxu0 %v7384_v26  ;;  %5491 = vmatpush1.bf16.msra.mxu1 %v7385_v27  ;;  %v7460_v24 = vld [vmem:[%s11224_s1 + $0x264] ss:$16 sps:$4 sm:$0xff]   ;;  %v7463_v25 = vld [vmem:[%s11224_s1 + $0x26c] ss:$16 sps:$4 sm:$0xff]   ;;  %v7458_v26 = vld [vmem:[%s11224_s1 + $0x260] ss:$16 sps:$4 sm:$0xff]  }
  0x1c   :  { %4959 = vmatprep.subr.bf16.mxu0 %v7386_v28  ;;  %5492 = vmatprep.subr.bf16.mxu1 %v7388_v29  ;;  %v7461_v27 = vld [vmem:[%s11224_s1 + $0x268] ss:$16 sps:$4 sm:$0xff]   ;;  %v7466_v28 = vld [vmem:[%s11224_s1 + $0x284] ss:$16 sps:$4 sm:$0xff]   ;;  %v7469_v29 = vld [vmem:[%s11224_s1 + $0x28c] ss:$16 sps:$4 sm:$0xff]  }
  0x1d   :  { %v7478_v36 = vld [vmem:[%s11224_s1 + $0x2c4] ss:$16 sps:$4 sm:$0xff]   ;;  %v7481_v37 = vld [vmem:[%s11224_s1 + $0x2cc] ss:$16 sps:$4 sm:$0xff]   ;;  %v7476_v38 = vld [vmem:[%s11224_s1 + $0x2c0] ss:$16 sps:$4 sm:$0xff]  }
  0x1e   :  { %v7482_v43 = vld [vmem:[%s11224_s1 + $0x2e0] ss:$16 sps:$4 sm:$0xff]   ;;  %v7497_v54 = vld [vmem:[%s11224_s1 + $0x328] ss:$16 sps:$4 sm:$0xff]   ;;  %v7511_v60 = vld [vmem:[%s11224_s1 + $0x36c] ss:$16 sps:$4 sm:$0xff]  }
  0x1f   :  { %4960 = vmatpush1.bf16.msra.mxu0 %v7390_v30  ;;  %5493 = vmatpush1.bf16.msra.mxu1 %v7391_v31  ;;  %v7464_v30 = vld [vmem:[%s11224_s1 + $0x280] ss:$16 sps:$4 sm:$0xff]   ;;  %v7467_v31 = vld [vmem:[%s11224_s1 + $0x288] ss:$16 sps:$4 sm:$0xff]  }
  0x20   :  { %4961 = vmatprep.subr.bf16.mxu0 %v7392_v32  ;;  %5494 = vmatprep.subr.bf16.mxu1 %v7394_v33  ;;  %v7472_v32 = vld [vmem:[%s11224_s1 + $0x2a4] ss:$16 sps:$4 sm:$0xff]   ;;  %v7475_v33 = vld [vmem:[%s11224_s1 + $0x2ac] ss:$16 sps:$4 sm:$0xff]   ;;  %v7503_v58 = vld [vmem:[%s11224_s1 + $0x348] ss:$16 sps:$4 sm:$0xff]  }
  0x23   :  { %4962 = vmatpush1.bf16.msra.mxu0 %v7396_v34  ;;  %5495 = vmatpush1.bf16.msra.mxu1 %v7397_v35  ;;  %v7470_v34 = vld [vmem:[%s11224_s1 + $0x2a0] ss:$16 sps:$4 sm:$0xff]   ;;  %v7473_v35 = vld [vmem:[%s11224_s1 + $0x2a8] ss:$16 sps:$4 sm:$0xff]  }
  0x24   :  { %4963 = vmatprep.subr.bf16.mxu0 %v7398_v39  ;;  %5496 = vmatprep.subr.bf16.mxu1 %v7400_v40  ;;  %v7479_v39 = vld [vmem:[%s11224_s1 + $0x2c8] ss:$16 sps:$4 sm:$0xff]   ;;  %v7484_v40 = vld [vmem:[%s11224_s1 + $0x2e4] ss:$16 sps:$4 sm:$0xff]  }
  0x27   :  { %4964 = vmatpush1.bf16.msra.mxu0 %v7402_v41  ;;  %5497 = vmatpush1.bf16.msra.mxu1 %v7403_v44  ;;  %v7487_v41 = vld [vmem:[%s11224_s1 + $0x2ec] ss:$16 sps:$4 sm:$0xff]   ;;  %v7485_v44 = vld [vmem:[%s11224_s1 + $0x2e8] ss:$16 sps:$4 sm:$0xff]  }
  0x28   :  { %4965 = vmatprep.subr.bf16.mxu0 %v7404_v45  ;;  %5498 = vmatprep.subr.bf16.mxu1 %v7406_v46  ;;  %v7490_v45 = vld [vmem:[%s11224_s1 + $0x304] ss:$16 sps:$4 sm:$0xff]   ;;  %v7493_v46 = vld [vmem:[%s11224_s1 + $0x30c] ss:$16 sps:$4 sm:$0xff]  }
  0x2b   :  { %4966 = vmatpush1.bf16.msra.mxu0 %v7408_v47  ;;  %5499 = vmatpush1.bf16.msra.mxu1 %v7409_v48  ;;  %v7488_v47 = vld [vmem:[%s11224_s1 + $0x300] ss:$16 sps:$4 sm:$0xff]   ;;  %v7491_v48 = vld [vmem:[%s11224_s1 + $0x308] ss:$16 sps:$4 sm:$0xff]  }
  0x2c   :  { %4967 = vmatprep.subr.bf16.mxu0 %v7410_v50  ;;  %5500 = vmatprep.subr.bf16.mxu1 %v7412_v51  ;;  %v7496_v50 = vld [vmem:[%s11224_s1 + $0x324] ss:$16 sps:$4 sm:$0xff]   ;;  %v7499_v51 = vld [vmem:[%s11224_s1 + $0x32c] ss:$16 sps:$4 sm:$0xff]  }
  0x2f   :  { %4968 = vmatpush1.bf16.msra.mxu0 %v7414_v53  ;;  %5501 = vmatpush1.bf16.msra.mxu1 %v7415_v55  ;;  %v7494_v53 = vld [vmem:[%s11224_s1 + $0x320] ss:$16 sps:$4 sm:$0xff]   ;;  %v7502_v55 = vld [vmem:[%s11224_s1 + $0x344] ss:$16 sps:$4 sm:$0xff]  }
  0x30   :  { %4969 = vmatprep.subr.bf16.mxu0 %v7416_v56  ;;  %5502 = vmatprep.subr.bf16.mxu1 %v7418_v57  ;;  %v7505_v56 = vld [vmem:[%s11224_s1 + $0x34c] ss:$16 sps:$4 sm:$0xff]   ;;  %v7500_v57 = vld [vmem:[%s11224_s1 + $0x340] ss:$16 sps:$4 sm:$0xff]  }
  0x33   :  { %4970 = vmatpush1.bf16.msra.mxu0 %v7420_v59  ;;  %5503 = vmatpush1.bf16.msra.mxu1 %v7421_v61  ;;  %v7508_v59 = vld [vmem:[%s11224_s1 + $0x364] ss:$16 sps:$4 sm:$0xff]   ;;  %v7506_v61 = vld [vmem:[%s11224_s1 + $0x360] ss:$16 sps:$4 sm:$0xff]  }
  0x34   :  { %4971 = vmatprep.subr.bf16.mxu0 %v7422_v62  ;;  %5504 = vmatprep.subr.bf16.mxu1 %v7424_v63  ;;  %v7509_v62 = vld [vmem:[%s11224_s1 + $0x368] ss:$16 sps:$4 sm:$0xff]   ;;  %v7514_v63 = vld [vmem:[%s11224_s1 + $0x384] ss:$16 sps:$4 sm:$0xff]  }
  0x37   :  { %4972 = vmatpush1.bf16.msra.mxu0 %v7426_v0  ;;  %5505 = vmatpush1.bf16.msra.mxu1 %v7427_v1  ;;  %v7517_v0 = vld [vmem:[%s11224_s1 + $0x38c] ss:$16 sps:$4 sm:$0xff]   ;;  %v7512_v1 = vld [vmem:[%s11224_s1 + $0x380] ss:$16 sps:$4 sm:$0xff]  }
  0x38   :  { %4973 = vmatprep.subr.bf16.mxu0 %v7428_v2  ;;  %5506 = vmatprep.subr.bf16.mxu1 %v7430_v3  ;;  %v7515_v2 = vld [vmem:[%s11224_s1 + $0x388] ss:$16 sps:$4 sm:$0xff]   ;;  %v7520_v3 = vld [vmem:[%s11224_s1 + $0x3a4] ss:$16 sps:$4 sm:$0xff]  }
  0x3b   :  { %4974 = vmatpush1.bf16.msra.mxu0 %v7432_v4  ;;  %5507 = vmatpush1.bf16.msra.mxu1 %v7433_v5  ;;  %v7523_v4 = vld [vmem:[%s11224_s1 + $0x3ac] ss:$16 sps:$4 sm:$0xff]   ;;  %v7518_v5 = vld [vmem:[%s11224_s1 + $0x3a0] ss:$16 sps:$4 sm:$0xff]  }
  0x3c   :  { %4975 = vmatprep.subr.bf16.mxu0 %v7434_v6  ;;  %5508 = vmatprep.subr.bf16.mxu1 %v7436_v7  ;;  %v7521_v6 = vld [vmem:[%s11224_s1 + $0x3a8] ss:$16 sps:$4 sm:$0xff]   ;;  %v7526_v7 = vld [vmem:[%s11224_s1 + $0x3c4] ss:$16 sps:$4 sm:$0xff]  }
  0x3f   :  { %4976 = vmatpush1.bf16.msra.mxu0 %v7438_v8  ;;  %5509 = vmatpush1.bf16.msra.mxu1 %v7439_v9  ;;  %v7529_v8 = vld [vmem:[%s11224_s1 + $0x3cc] ss:$16 sps:$4 sm:$0xff]   ;;  %v836_v9 = vcombine.high %v8760_v52, %v8760_v52 }
  0x40   :  { %4986 = vmatprep.subr.bf16.mxu0 %v7442_v10  ;;  %5519 = vmatprep.subr.bf16.mxu1 %v7445_v11  ;;  %v7524_v10 = vld [vmem:[%s11224_s1 + $0x3c0] ss:$16 sps:$4 sm:$0xff]   ;;  %v7527_v11 = vld [vmem:[%s11224_s1 + $0x3c8] ss:$16 sps:$4 sm:$0xff]   ;;  %v7535_v52 = vld [vmem:[%s11224_s1 + $0x3ec] ss:$16 sps:$4 sm:$0xff]  }
  0x42   :  { %4978 = vmatmul.mubr.bf16.vlgmr.msra.gmra.mrb[0].mxu0 %v8829_v13  ;;  %5511 = vmatmul.mubr.bf16.vlgmr.msra.gmra.mrb[0].mxu1 %v8829_v13 }
  0x43   :  { %4987 = vmatpush1.bf16.msra.mxu0 %v7440_v12  ;;  %5520 = vmatpush1.bf16.msra.mxu1 %v7443_v14  ;;  %v7532_v12 = vld [vmem:[%s11224_s1 + $0x3e4] ss:$16 sps:$4 sm:$0xff]   ;;  %v9013_v14 = vrot.slane %v836_v9, %v8749_v49  ;;  %v7611_v9 = vld [vmem:[%s11224_s1 + $0x588] ss:$16 sps:$4 sm:$0xff]  }
  0x44   :  { %4988 = vmatprep.subr.bf16.mxu0 %v7448_v15  ;;  %5521 = vmatprep.subr.bf16.mxu1 %v7451_v16  ;;  %v7530_v15 = vld [vmem:[%s11224_s1 + $0x3e0] ss:$16 sps:$4 sm:$0xff]   ;;  %v7533_v16 = vld [vmem:[%s11224_s1 + $0x3e8] ss:$16 sps:$4 sm:$0xff]  }
  0x45   :  { %5018 = vmatprep.mubr.bf16.mxu0 %v883_v17  ;;  %5551 = vmatprep.mubr.bf16.mxu1 %v883_v17  ;;  %v7538_v17 = vld [vmem:[%s11224_s1 + $0x404] ss:$16 sps:$4 sm:$0xff]  }
  0x47   :  { %4989 = vmatpush1.bf16.msra.mxu0 %v7446_v18  ;;  %5522 = vmatpush1.bf16.msra.mxu1 %v7449_v19  ;;  %v7541_v18 = vld [vmem:[%s11224_s1 + $0x40c] ss:$16 sps:$4 sm:$0xff]   ;;  %v852_v19 = vcombine.high %v9013_v14, %v9013_v14 }
  0x48   :  { %4990 = vmatprep.subr.bf16.mxu0 %v7454_v20  ;;  %5523 = vmatprep.subr.bf16.mxu1 %v7457_v21  ;;  %v7536_v20 = vld [vmem:[%s11224_s1 + $0x400] ss:$16 sps:$4 sm:$0xff]   ;;  %v881_v21 = vcombine.high %v8829_v13, %v8829_v13 }
  0x49   :  { %v7542_v13 = vld [vmem:[%s11224_s1 + $0x420] ss:$16 sps:$4 sm:$0xff]  }
  0x4b   :  { %4991 = vmatpush1.bf16.msra.mxu0 %v7452_v22  ;;  %5524 = vmatpush1.bf16.msra.mxu1 %v7455_v23  ;;  %v7539_v22 = vld [vmem:[%s11224_s1 + $0x408] ss:$16 sps:$4 sm:$0xff]   ;;  %v7544_v23 = vld [vmem:[%s11224_s1 + $0x424] ss:$16 sps:$4 sm:$0xff]  }
  0x4c   :  { %4992 = vmatprep.subr.bf16.mxu0 %v7460_v24  ;;  %5525 = vmatprep.subr.bf16.mxu1 %v7463_v25  ;;  %v7547_v24 = vld [vmem:[%s11224_s1 + $0x42c] ss:$16 sps:$4 sm:$0xff]   ;;  %v9044_v25 = vrot.slane %v852_v19, %v8749_v49  ;;  %v7628_v19 = vld [vmem:[%s11224_s1 + $0x5e4] ss:$16 sps:$4 sm:$0xff]  }
  0x4f   :  { %4993 = vmatpush1.bf16.msra.mxu0 %v7458_v26  ;;  %5526 = vmatpush1.bf16.msra.mxu1 %v7461_v27  ;;  %v7545_v26 = vld [vmem:[%s11224_s1 + $0x428] ss:$16 sps:$4 sm:$0xff]   ;;  %v7550_v27 = vld [vmem:[%s11224_s1 + $0x444] ss:$16 sps:$4 sm:$0xff]  }
  0x50   :  { %4994 = vmatprep.subr.bf16.mxu0 %v7466_v28  ;;  %5527 = vmatprep.subr.bf16.mxu1 %v7469_v29  ;;  %v7553_v28 = vld [vmem:[%s11224_s1 + $0x44c] ss:$16 sps:$4 sm:$0xff]   ;;  %v7548_v29 = vld [vmem:[%s11224_s1 + $0x440] ss:$16 sps:$4 sm:$0xff]  }
  0x53   :  { %4995 = vmatpush1.bf16.msra.mxu0 %v7464_v30  ;;  %5528 = vmatpush1.bf16.msra.mxu1 %v7467_v31  ;;  %v7551_v30 = vld [vmem:[%s11224_s1 + $0x448] ss:$16 sps:$4 sm:$0xff]   ;;  %v7556_v31 = vld [vmem:[%s11224_s1 + $0x464] ss:$16 sps:$4 sm:$0xff]  }
  0x54   :  { %4996 = vmatprep.subr.bf16.mxu0 %v7472_v32  ;;  %5529 = vmatprep.subr.bf16.mxu1 %v7475_v33  ;;  %v7559_v32 = vld [vmem:[%s11224_s1 + $0x46c] ss:$16 sps:$4 sm:$0xff]   ;;  %v7554_v33 = vld [vmem:[%s11224_s1 + $0x460] ss:$16 sps:$4 sm:$0xff]  }
  0x57   :  { %4997 = vmatpush1.bf16.msra.mxu0 %v7470_v34  ;;  %5530 = vmatpush1.bf16.msra.mxu1 %v7473_v35  ;;  %v7557_v34 = vld [vmem:[%s11224_s1 + $0x468] ss:$16 sps:$4 sm:$0xff]   ;;  %v7562_v35 = vld [vmem:[%s11224_s1 + $0x484] ss:$16 sps:$4 sm:$0xff]  }
  0x58   :  { %4998 = vmatprep.subr.bf16.mxu0 %v7478_v36  ;;  %5531 = vmatprep.subr.bf16.mxu1 %v7481_v37  ;;  %v7565_v36 = vld [vmem:[%s11224_s1 + $0x48c] ss:$16 sps:$4 sm:$0xff]   ;;  %v7560_v37 = vld [vmem:[%s11224_s1 + $0x480] ss:$16 sps:$4 sm:$0xff]  }
  0x5b   :  { %4999 = vmatpush1.bf16.msra.mxu0 %v7476_v38  ;;  %5532 = vmatpush1.bf16.msra.mxu1 %v7479_v39  ;;  %v7563_v38 = vld [vmem:[%s11224_s1 + $0x488] ss:$16 sps:$4 sm:$0xff]   ;;  %v7568_v39 = vld [vmem:[%s11224_s1 + $0x4a4] ss:$16 sps:$4 sm:$0xff]  }
  0x5c   :  { %5000 = vmatprep.subr.bf16.mxu0 %v7484_v40  ;;  %5533 = vmatprep.subr.bf16.mxu1 %v7487_v41  ;;  %v7571_v40 = vld [vmem:[%s11224_s1 + $0x4ac] ss:$16 sps:$4 sm:$0xff]   ;;  %v7566_v41 = vld [vmem:[%s11224_s1 + $0x4a0] ss:$16 sps:$4 sm:$0xff]  }
  0x5f   :  { %5001 = vmatpush1.bf16.msra.mxu0 %v7482_v43  ;;  %5534 = vmatpush1.bf16.msra.mxu1 %v7485_v44  ;;  %v7569_v43 = vld [vmem:[%s11224_s1 + $0x4a8] ss:$16 sps:$4 sm:$0xff]   ;;  %v7574_v44 = vld [vmem:[%s11224_s1 + $0x4c4] ss:$16 sps:$4 sm:$0xff]  }
  0x60   :  { %5002 = vmatprep.subr.bf16.mxu0 %v7490_v45  ;;  %5535 = vmatprep.subr.bf16.mxu1 %v7493_v46  ;;  %v7577_v45 = vld [vmem:[%s11224_s1 + $0x4cc] ss:$16 sps:$4 sm:$0xff]   ;;  %v7572_v46 = vld [vmem:[%s11224_s1 + $0x4c0] ss:$16 sps:$4 sm:$0xff]  }
  0x63   :  { %5003 = vmatpush1.bf16.msra.mxu0 %v7488_v47  ;;  %5536 = vmatpush1.bf16.msra.mxu1 %v7491_v48  ;;  %v7575_v47 = vld [vmem:[%s11224_s1 + $0x4c8] ss:$16 sps:$4 sm:$0xff]   ;;  %v7580_v48 = vld [vmem:[%s11224_s1 + $0x4e4] ss:$16 sps:$4 sm:$0xff]  }
  0x64   :  { %5004 = vmatprep.subr.bf16.mxu0 %v7496_v50  ;;  %5537 = vmatprep.subr.bf16.mxu1 %v7499_v51  ;;  %v7583_v50 = vld [vmem:[%s11224_s1 + $0x4ec] ss:$16 sps:$4 sm:$0xff]   ;;  %v7578_v51 = vld [vmem:[%s11224_s1 + $0x4e0] ss:$16 sps:$4 sm:$0xff]  }
  0x67   :  { %5005 = vmatpush1.bf16.msra.mxu0 %v7494_v53  ;;  %5538 = vmatpush1.bf16.msra.mxu1 %v7497_v54  ;;  %v7581_v53 = vld [vmem:[%s11224_s1 + $0x4e8] ss:$16 sps:$4 sm:$0xff]   ;;  %v7586_v54 = vld [vmem:[%s11224_s1 + $0x504] ss:$16 sps:$4 sm:$0xff]  }
  0x68   :  { %5006 = vmatprep.subr.bf16.mxu0 %v7502_v55  ;;  %5539 = vmatprep.subr.bf16.mxu1 %v7505_v56  ;;  %v7589_v55 = vld [vmem:[%s11224_s1 + $0x50c] ss:$16 sps:$4 sm:$0xff]   ;;  %v7584_v56 = vld [vmem:[%s11224_s1 + $0x500] ss:$16 sps:$4 sm:$0xff]  }
  0x6b   :  { %5007 = vmatpush1.bf16.msra.mxu0 %v7500_v57  ;;  %5540 = vmatpush1.bf16.msra.mxu1 %v7503_v58  ;;  %v7587_v57 = vld [vmem:[%s11224_s1 + $0x508] ss:$16 sps:$4 sm:$0xff]   ;;  %v7592_v58 = vld [vmem:[%s11224_s1 + $0x524] ss:$16 sps:$4 sm:$0xff]  }
  0x6c   :  { %5008 = vmatprep.subr.bf16.mxu0 %v7508_v59  ;;  %5541 = vmatprep.subr.bf16.mxu1 %v7511_v60  ;;  %v7595_v59 = vld [vmem:[%s11224_s1 + $0x52c] ss:$16 sps:$4 sm:$0xff]   ;;  %v7590_v60 = vld [vmem:[%s11224_s1 + $0x520] ss:$16 sps:$4 sm:$0xff]  }
  0x6f   :  { %5009 = vmatpush1.bf16.msra.mxu0 %v7506_v61  ;;  %5542 = vmatpush1.bf16.msra.mxu1 %v7509_v62  ;;  %v7593_v61 = vld [vmem:[%s11224_s1 + $0x528] ss:$16 sps:$4 sm:$0xff]   ;;  %v7598_v62 = vld [vmem:[%s11224_s1 + $0x544] ss:$16 sps:$4 sm:$0xff]  }
  0x70   :  { %5010 = vmatprep.subr.bf16.mxu0 %v7514_v63  ;;  %5543 = vmatprep.subr.bf16.mxu1 %v7517_v0  ;;  %v7601_v63 = vld [vmem:[%s11224_s1 + $0x54c] ss:$16 sps:$4 sm:$0xff]   ;;  %v7596_v0 = vld [vmem:[%s11224_s1 + $0x540] ss:$16 sps:$4 sm:$0xff]  }
  0x73   :  { %5011 = vmatpush1.bf16.msra.mxu0 %v7512_v1  ;;  %5544 = vmatpush1.bf16.msra.mxu1 %v7515_v2  ;;  %v7599_v1 = vld [vmem:[%s11224_s1 + $0x548] ss:$16 sps:$4 sm:$0xff]   ;;  %v7604_v2 = vld [vmem:[%s11224_s1 + $0x564] ss:$16 sps:$4 sm:$0xff]  }
  0x74   :  { %5012 = vmatprep.subr.bf16.mxu0 %v7520_v3  ;;  %5545 = vmatprep.subr.bf16.mxu1 %v7523_v4  ;;  %v7607_v3 = vld [vmem:[%s11224_s1 + $0x56c] ss:$16 sps:$4 sm:$0xff]   ;;  %v7602_v4 = vld [vmem:[%s11224_s1 + $0x560] ss:$16 sps:$4 sm:$0xff]  }
  0x77   :  { %5013 = vmatpush1.bf16.msra.mxu0 %v7518_v5  ;;  %5546 = vmatpush1.bf16.msra.mxu1 %v7521_v6  ;;  %v7605_v5 = vld [vmem:[%s11224_s1 + $0x568] ss:$16 sps:$4 sm:$0xff]   ;;  %v7610_v6 = vld [vmem:[%s11224_s1 + $0x584] ss:$16 sps:$4 sm:$0xff]  }
  0x78   :  { %5014 = vmatprep.subr.bf16.mxu0 %v7526_v7  ;;  %5547 = vmatprep.subr.bf16.mxu1 %v7529_v8  ;;  %v7613_v7 = vld [vmem:[%s11224_s1 + $0x58c] ss:$16 sps:$4 sm:$0xff]   ;;  %v7608_v8 = vld [vmem:[%s11224_s1 + $0x580] ss:$16 sps:$4 sm:$0xff]  }
  0x7b   :  { %5015 = vmatpush1.bf16.msra.mxu0 %v7524_v10  ;;  %5548 = vmatpush1.bf16.msra.mxu1 %v7527_v11  ;;  %v7616_v10 = vld [vmem:[%s11224_s1 + $0x5a4] ss:$16 sps:$4 sm:$0xff]   ;;  %v7619_v11 = vld [vmem:[%s11224_s1 + $0x5ac] ss:$16 sps:$4 sm:$0xff]  }
  0x7c   :  { %5016 = vmatprep.subr.bf16.mxu0 %v7532_v12  ;;  %5549 = vmatprep.subr.bf16.mxu1 %v7535_v52  ;;  %v7614_v12 = vld [vmem:[%s11224_s1 + $0x5a0] ss:$16 sps:$4 sm:$0xff]   ;;  %v7617_v52 = vld [vmem:[%s11224_s1 + $0x5a8] ss:$16 sps:$4 sm:$0xff]  }
  0x7f   :  { %5017 = vmatpush1.bf16.msra.mxu0 %v7530_v15  ;;  %5550 = vmatpush1.bf16.msra.mxu1 %v7533_v16  ;;  %v7622_v15 = vld [vmem:[%s11224_s1 + $0x5c4] ss:$16 sps:$4 sm:$0xff]   ;;  %v7625_v16 = vld [vmem:[%s11224_s1 + $0x5cc] ss:$16 sps:$4 sm:$0xff]  }
  0x80   :  { %5027 = vmatprep.subr.bf16.mxu0 %v7538_v17  ;;  %5560 = vmatprep.subr.bf16.mxu1 %v7541_v18  ;;  %v7620_v17 = vld [vmem:[%s11224_s1 + $0x5c0] ss:$16 sps:$4 sm:$0xff]   ;;  %v7623_v18 = vld [vmem:[%s11224_s1 + $0x5c8] ss:$16 sps:$4 sm:$0xff]  }
  0x82   :  { %5019 = vmatmul.mubr.bf16.vlgmr.msra.gmra.mrb[0].mxu0 %v881_v21  ;;  %5552 = vmatmul.mubr.bf16.vlgmr.msra.gmra.mrb[0].mxu1 %v881_v21  ;;  %v7626_v21 = vld [vmem:[%s11224_s1 + $0x5e0] ss:$16 sps:$4 sm:$0xff]  }
  0x83   :  { %5028 = vmatpush1.bf16.msra.mxu0 %v7536_v20  ;;  %5561 = vmatpush1.bf16.msra.mxu1 %v7539_v22  ;;  %v7631_v20 = vld [vmem:[%s11224_s1 + $0x5ec] ss:$16 sps:$4 sm:$0xff]   ;;  %v7629_v22 = vld [vmem:[%s11224_s1 + $0x5e8] ss:$16 sps:$4 sm:$0xff]  }
  0x84   :  { %5029 = vmatprep.subr.bf16.mxu0 %v7544_v23  ;;  %5562 = vmatprep.subr.bf16.mxu1 %v7547_v24  ;;  %v7635_v23 = vld [vmem:[%s11224_s1 + $0x604] ss:$16 sps:$4 sm:$0xff]   ;;  %v7638_v24 = vld [vmem:[%s11224_s1 + $0x60c] ss:$16 sps:$4 sm:$0xff]  }
  0x85   :  { %5059 = vmatprep.mubr.bf16.mxu0 %v9044_v25  ;;  %5592 = vmatprep.mubr.bf16.mxu1 %v9044_v25 }
  0x87   :  { %5030 = vmatpush1.bf16.msra.mxu0 %v7542_v13  ;;  %5563 = vmatpush1.bf16.msra.mxu1 %v7545_v26  ;;  %v7633_v13 = vld [vmem:[%s11224_s1 + $0x600] ss:$16 sps:$4 sm:$0xff]   ;;  %v9233_v26 = vrot.slane %v9013_v14, %v8749_v49  ;;  %v884_v14 = vcombine.high %v9044_v25, %v9044_v25  ;;  %v7647_v25 = vld [vmem:[%s11224_s1 + $0x644] ss:$16 sps:$4 sm:$0xff]  }
  0x88   :  { %5031 = vmatprep.subr.bf16.mxu0 %v7550_v27  ;;  %5564 = vmatprep.subr.bf16.mxu1 %v7553_v28  ;;  %v7636_v27 = vld [vmem:[%s11224_s1 + $0x608] ss:$16 sps:$4 sm:$0xff]   ;;  %v7641_v28 = vld [vmem:[%s11224_s1 + $0x624] ss:$16 sps:$4 sm:$0xff]  }
  0x8b   :  { %5032 = vmatpush1.bf16.msra.mxu0 %v7548_v29  ;;  %5565 = vmatpush1.bf16.msra.mxu1 %v7551_v30  ;;  %v7644_v29 = vld [vmem:[%s11224_s1 + $0x62c] ss:$16 sps:$4 sm:$0xff]   ;;  %v7639_v30 = vld [vmem:[%s11224_s1 + $0x620] ss:$16 sps:$4 sm:$0xff]  }
  0x8c   :  { %5033 = vmatprep.subr.bf16.mxu0 %v7556_v31  ;;  %5566 = vmatprep.subr.bf16.mxu1 %v7559_v32  ;;  %v7642_v31 = vld [vmem:[%s11224_s1 + $0x628] ss:$16 sps:$4 sm:$0xff]   ;;  %v7650_v32 = vld [vmem:[%s11224_s1 + $0x64c] ss:$16 sps:$4 sm:$0xff]  }
  0x8f   :  { %5034 = vmatpush1.bf16.msra.mxu0 %v7554_v33  ;;  %5567 = vmatpush1.bf16.msra.mxu1 %v7557_v34  ;;  %v7645_v33 = vld [vmem:[%s11224_s1 + $0x640] ss:$16 sps:$4 sm:$0xff]   ;;  %v7648_v34 = vld [vmem:[%s11224_s1 + $0x648] ss:$16 sps:$4 sm:$0xff]  }
  0x90   :  { %5035 = vmatprep.subr.bf16.mxu0 %v7562_v35  ;;  %5568 = vmatprep.subr.bf16.mxu1 %v7565_v36  ;;  %v7653_v35 = vld [vmem:[%s11224_s1 + $0x664] ss:$16 sps:$4 sm:$0xff]   ;;  %v7656_v36 = vld [vmem:[%s11224_s1 + $0x66c] ss:$16 sps:$4 sm:$0xff]  }
  0x93   :  { %5036 = vmatpush1.bf16.msra.mxu0 %v7560_v37  ;;  %5569 = vmatpush1.bf16.msra.mxu1 %v7563_v38  ;;  %v7651_v37 = vld [vmem:[%s11224_s1 + $0x660] ss:$16 sps:$4 sm:$0xff]   ;;  %v7654_v38 = vld [vmem:[%s11224_s1 + $0x668] ss:$16 sps:$4 sm:$0xff]  }
  0x94   :  { %5037 = vmatprep.subr.bf16.mxu0 %v7568_v39  ;;  %5570 = vmatprep.subr.bf16.mxu1 %v7571_v40  ;;  %v7659_v39 = vld [vmem:[%s11224_s1 + $0x684] ss:$16 sps:$4 sm:$0xff]   ;;  %v7662_v40 = vld [vmem:[%s11224_s1 + $0x68c] ss:$16 sps:$4 sm:$0xff]  }
  0x97   :  { %5038 = vmatpush1.bf16.msra.mxu0 %v7566_v41  ;;  %5571 = vmatpush1.bf16.msra.mxu1 %v7569_v43  ;;  %v7657_v41 = vld [vmem:[%s11224_s1 + $0x680] ss:$16 sps:$4 sm:$0xff]   ;;  %v7660_v43 = vld [vmem:[%s11224_s1 + $0x688] ss:$16 sps:$4 sm:$0xff]  }
  0x98   :  { %5039 = vmatprep.subr.bf16.mxu0 %v7574_v44  ;;  %5572 = vmatprep.subr.bf16.mxu1 %v7577_v45  ;;  %v7665_v44 = vld [vmem:[%s11224_s1 + $0x6a4] ss:$16 sps:$4 sm:$0xff]   ;;  %v7668_v45 = vld [vmem:[%s11224_s1 + $0x6ac] ss:$16 sps:$4 sm:$0xff]  }
  0x9b   :  { %5040 = vmatpush1.bf16.msra.mxu0 %v7572_v46  ;;  %5573 = vmatpush1.bf16.msra.mxu1 %v7575_v47  ;;  %v7663_v46 = vld [vmem:[%s11224_s1 + $0x6a0] ss:$16 sps:$4 sm:$0xff]   ;;  %v7666_v47 = vld [vmem:[%s11224_s1 + $0x6a8] ss:$16 sps:$4 sm:$0xff]  }
  0x9c   :  { %5041 = vmatprep.subr.bf16.mxu0 %v7580_v48  ;;  %5574 = vmatprep.subr.bf16.mxu1 %v7583_v50  ;;  %v7671_v48 = vld [vmem:[%s11224_s1 + $0x6c4] ss:$16 sps:$4 sm:$0xff]   ;;  %v7674_v50 = vld [vmem:[%s11224_s1 + $0x6cc] ss:$16 sps:$4 sm:$0xff]  }
  0x9f   :  { %5042 = vmatpush1.bf16.msra.mxu0 %v7578_v51  ;;  %5575 = vmatpush1.bf16.msra.mxu1 %v7581_v53  ;;  %v7669_v51 = vld [vmem:[%s11224_s1 + $0x6c0] ss:$16 sps:$4 sm:$0xff]   ;;  %v7672_v53 = vld [vmem:[%s11224_s1 + $0x6c8] ss:$16 sps:$4 sm:$0xff]  }
  0xa0   :  { %5043 = vmatprep.subr.bf16.mxu0 %v7586_v54  ;;  %5576 = vmatprep.subr.bf16.mxu1 %v7589_v55  ;;  %v7677_v54 = vld [vmem:[%s11224_s1 + $0x6e4] ss:$16 sps:$4 sm:$0xff]   ;;  %v7680_v55 = vld [vmem:[%s11224_s1 + $0x6ec] ss:$16 sps:$4 sm:$0xff]  }
  0xa3   :  { %5044 = vmatpush1.bf16.msra.mxu0 %v7584_v56  ;;  %5577 = vmatpush1.bf16.msra.mxu1 %v7587_v57  ;;  %v7675_v56 = vld [vmem:[%s11224_s1 + $0x6e0] ss:$16 sps:$4 sm:$0xff]   ;;  %v7678_v57 = vld [vmem:[%s11224_s1 + $0x6e8] ss:$16 sps:$4 sm:$0xff]  }
  0xa4   :  { %5045 = vmatprep.subr.bf16.mxu0 %v7592_v58  ;;  %5578 = vmatprep.subr.bf16.mxu1 %v7595_v59  ;;  %v7683_v58 = vld [vmem:[%s11224_s1 + $0x704] ss:$16 sps:$4 sm:$0xff]   ;;  %v7686_v59 = vld [vmem:[%s11224_s1 + $0x70c] ss:$16 sps:$4 sm:$0xff]  }
  0xa7   :  { %5046 = vmatpush1.bf16.msra.mxu0 %v7590_v60  ;;  %5579 = vmatpush1.bf16.msra.mxu1 %v7593_v61  ;;  %v7681_v60 = vld [vmem:[%s11224_s1 + $0x700] ss:$16 sps:$4 sm:$0xff]   ;;  %v7684_v61 = vld [vmem:[%s11224_s1 + $0x708] ss:$16 sps:$4 sm:$0xff]  }
  0xa8   :  { %5047 = vmatprep.subr.bf16.mxu0 %v7598_v62  ;;  %5580 = vmatprep.subr.bf16.mxu1 %v7601_v63  ;;  %v7689_v62 = vld [vmem:[%s11224_s1 + $0x724] ss:$16 sps:$4 sm:$0xff]   ;;  %v7692_v63 = vld [vmem:[%s11224_s1 + $0x72c] ss:$16 sps:$4 sm:$0xff]  }
  0xab   :  { %5048 = vmatpush1.bf16.msra.mxu0 %v7596_v0  ;;  %5581 = vmatpush1.bf16.msra.mxu1 %v7599_v1  ;;  %v7687_v0 = vld [vmem:[%s11224_s1 + $0x720] ss:$16 sps:$4 sm:$0xff]   ;;  %v7690_v1 = vld [vmem:[%s11224_s1 + $0x728] ss:$16 sps:$4 sm:$0xff]  }
  0xac   :  { %5049 = vmatprep.subr.bf16.mxu0 %v7604_v2  ;;  %5582 = vmatprep.subr.bf16.mxu1 %v7607_v3  ;;  %v7695_v2 = vld [vmem:[%s11224_s1 + $0x744] ss:$16 sps:$4 sm:$0xff]   ;;  %v7698_v3 = vld [vmem:[%s11224_s1 + $0x74c] ss:$16 sps:$4 sm:$0xff]  }
  0xaf   :  { %5050 = vmatpush1.bf16.msra.mxu0 %v7602_v4  ;;  %5583 = vmatpush1.bf16.msra.mxu1 %v7605_v5  ;;  %v7693_v4 = vld [vmem:[%s11224_s1 + $0x740] ss:$16 sps:$4 sm:$0xff]   ;;  %v7696_v5 = vld [vmem:[%s11224_s1 + $0x748] ss:$16 sps:$4 sm:$0xff]  }
  0xb0   :  { %5051 = vmatprep.subr.bf16.mxu0 %v7610_v6  ;;  %5584 = vmatprep.subr.bf16.mxu1 %v7613_v7  ;;  %v7701_v6 = vld [vmem:[%s11224_s1 + $0x764] ss:$16 sps:$4 sm:$0xff]   ;;  %v7704_v7 = vld [vmem:[%s11224_s1 + $0x76c] ss:$16 sps:$4 sm:$0xff]  }
  0xb3   :  { %5052 = vmatpush1.bf16.msra.mxu0 %v7608_v8  ;;  %5585 = vmatpush1.bf16.msra.mxu1 %v7611_v9  ;;  %v7699_v8 = vld [vmem:[%s11224_s1 + $0x760] ss:$16 sps:$4 sm:$0xff]   ;;  %v7702_v9 = vld [vmem:[%s11224_s1 + $0x768] ss:$16 sps:$4 sm:$0xff]  }
  0xb4   :  { %5053 = vmatprep.subr.bf16.mxu0 %v7616_v10  ;;  %5586 = vmatprep.subr.bf16.mxu1 %v7619_v11  ;;  %v7707_v10 = vld [vmem:[%s11224_s1 + $0x784] ss:$16 sps:$4 sm:$0xff]   ;;  %v7710_v11 = vld [vmem:[%s11224_s1 + $0x78c] ss:$16 sps:$4 sm:$0xff]  }
  0xb7   :  { %5054 = vmatpush1.bf16.msra.mxu0 %v7614_v12  ;;  %5587 = vmatpush1.bf16.msra.mxu1 %v7617_v52  ;;  %v7705_v12 = vld [vmem:[%s11224_s1 + $0x780] ss:$16 sps:$4 sm:$0xff]   ;;  %v7708_v52 = vld [vmem:[%s11224_s1 + $0x788] ss:$16 sps:$4 sm:$0xff]  }
  0xb8   :  { %5055 = vmatprep.subr.bf16.mxu0 %v7622_v15  ;;  %5588 = vmatprep.subr.bf16.mxu1 %v7625_v16  ;;  %v7713_v15 = vld [vmem:[%s11224_s1 + $0x7a4] ss:$16 sps:$4 sm:$0xff]   ;;  %v7716_v16 = vld [vmem:[%s11224_s1 + $0x7ac] ss:$16 sps:$4 sm:$0xff]  }
  0xbb   :  { %5056 = vmatpush1.bf16.msra.mxu0 %v7620_v17  ;;  %5589 = vmatpush1.bf16.msra.mxu1 %v7623_v18  ;;  %v7711_v17 = vld [vmem:[%s11224_s1 + $0x7a0] ss:$16 sps:$4 sm:$0xff]   ;;  %v7714_v18 = vld [vmem:[%s11224_s1 + $0x7a8] ss:$16 sps:$4 sm:$0xff]  }
  0xbc   :  { %5057 = vmatprep.subr.bf16.mxu0 %v7628_v19  ;;  %5590 = vmatprep.subr.bf16.mxu1 %v7631_v20  ;;  %v7719_v19 = vld [vmem:[%s11224_s1 + $0x7c4] ss:$16 sps:$4 sm:$0xff]   ;;  %v7722_v20 = vld [vmem:[%s11224_s1 + $0x7cc] ss:$16 sps:$4 sm:$0xff]  }
  0xbf   :  { %5058 = vmatpush1.bf16.msra.mxu0 %v7626_v21  ;;  %5591 = vmatpush1.bf16.msra.mxu1 %v7629_v22  ;;  %v9407_v21 = vld.sshfl [vmem:[%s11223_s0 + $0x8] sm:$0xff pattern:$0x75316420]  ;;  %v7717_v22 = vld [vmem:[%s11224_s1 + $0x7c0] ss:$16 sps:$4 sm:$0xff]  }
  0xc0   :  { %5068 = vmatprep.subr.bf16.mxu0 %v7635_v23  ;;  %5601 = vmatprep.subr.bf16.mxu1 %v7638_v24  ;;  %v7720_v23 = vld [vmem:[%s11224_s1 + $0x7c8] ss:$16 sps:$4 sm:$0xff]   ;;  %v7725_v24 = vld [vmem:[%s11224_s1 + $0x7e4] ss:$16 sps:$4 sm:$0xff]  }
  0xc2   :  { %5060 = vmatmul.mubr.bf16.vlgmr.msra.gmra.mrb[0].mxu0 %v9233_v26  ;;  %5593 = vmatmul.mubr.bf16.vlgmr.msra.gmra.mrb[0].mxu1 %v9233_v26 }
  0xc3   :  { %5069 = vmatpush1.bf16.msra.mxu0 %v7633_v13  ;;  %5602 = vmatpush1.bf16.msra.mxu1 %v7636_v27  ;;  %v7728_v13 = vld [vmem:[%s11224_s1 + $0x7ec] ss:$16 sps:$4 sm:$0xff]   ;;  %v7723_v27 = vld [vmem:[%s11224_s1 + $0x7e0] ss:$16 sps:$4 sm:$0xff]  }
  0xc4   :  { %5070 = vmatprep.subr.bf16.mxu0 %v7641_v28  ;;  %5603 = vmatprep.subr.bf16.mxu1 %v7644_v29  ;;  %v7726_v28 = vld [vmem:[%s11224_s1 + $0x7e8] ss:$16 sps:$4 sm:$0xff]   ;;  %v7731_v29 = vld [vmem:[%s11224_s1 + $0x804] ss:$16 sps:$4 sm:$0xff]  }
  0xc5   :  { %5100 = vmatprep.mubr.bf16.mxu0 %v884_v14  ;;  %5633 = vmatprep.mubr.bf16.mxu1 %v884_v14  ;;  %v7734_v14 = vld [vmem:[%s11224_s1 + $0x80c] ss:$16 sps:$4 sm:$0xff]  }
  0xc7   :  { %5071 = vmatpush1.bf16.msra.mxu0 %v7639_v30  ;;  %5604 = vmatpush1.bf16.msra.mxu1 %v7642_v31  ;;  %v900_v30 = vcombine.high %v9407_v21, %v9407_v21  ;;  %v882_v31 = vcombine.high %v9233_v26, %v9233_v26  ;;  %v7740_v26 = vld [vmem:[%s11224_s1 + $0x82c] ss:$16 sps:$4 sm:$0xff]  }
  0xc8   :  { %5072 = vmatprep.subr.bf16.mxu0 %v7647_v25  ;;  %5605 = vmatprep.subr.bf16.mxu1 %v7650_v32  ;;  %v7729_v25 = vld [vmem:[%s11224_s1 + $0x800] ss:$16 sps:$4 sm:$0xff]   ;;  %v7732_v32 = vld [vmem:[%s11224_s1 + $0x808] ss:$16 sps:$4 sm:$0xff]  }
  0xcb   :  { %5073 = vmatpush1.bf16.msra.mxu0 %v7645_v33  ;;  %5606 = vmatpush1.bf16.msra.mxu1 %v7648_v34  ;;  %v7737_v33 = vld [vmem:[%s11224_s1 + $0x824] ss:$16 sps:$4 sm:$0xff]   ;;  %v9450_v34 = vrot.slane %v900_v30, %v8749_v49 }
  0xcc   :  { %5074 = vmatprep.subr.bf16.mxu0 %v7653_v35  ;;  %5607 = vmatprep.subr.bf16.mxu1 %v7656_v36  ;;  %v7735_v35 = vld [vmem:[%s11224_s1 + $0x820] ss:$16 sps:$4 sm:$0xff]   ;;  %v7738_v36 = vld [vmem:[%s11224_s1 + $0x828] ss:$16 sps:$4 sm:$0xff]   ;;  %v7821_v30 = vld [vmem:[%s11224_s1 + $0x9e4] ss:$16 sps:$4 sm:$0xff]  }
  0xcf   :  { %5075 = vmatpush1.bf16.msra.mxu0 %v7651_v37  ;;  %5608 = vmatpush1.bf16.msra.mxu1 %v7654_v38  ;;  %v7743_v37 = vld [vmem:[%s11224_s1 + $0x844] ss:$16 sps:$4 sm:$0xff]   ;;  %v7746_v38 = vld [vmem:[%s11224_s1 + $0x84c] ss:$16 sps:$4 sm:$0xff]  }
  0xd0   :  { %5076 = vmatprep.subr.bf16.mxu0 %v7659_v39  ;;  %5609 = vmatprep.subr.bf16.mxu1 %v7662_v40  ;;  %v7741_v39 = vld [vmem:[%s11224_s1 + $0x840] ss:$16 sps:$4 sm:$0xff]   ;;  %v7744_v40 = vld [vmem:[%s11224_s1 + $0x848] ss:$16 sps:$4 sm:$0xff]  }
  0xd3   :  { %5077 = vmatpush1.bf16.msra.mxu0 %v7657_v41  ;;  %5610 = vmatpush1.bf16.msra.mxu1 %v7660_v43  ;;  %v7749_v41 = vld [vmem:[%s11224_s1 + $0x864] ss:$16 sps:$4 sm:$0xff]   ;;  %v7752_v43 = vld [vmem:[%s11224_s1 + $0x86c] ss:$16 sps:$4 sm:$0xff]  }
  0xd4   :  { %5078 = vmatprep.subr.bf16.mxu0 %v7665_v44  ;;  %5611 = vmatprep.subr.bf16.mxu1 %v7668_v45  ;;  %v7747_v44 = vld [vmem:[%s11224_s1 + $0x860] ss:$16 sps:$4 sm:$0xff]   ;;  %v7750_v45 = vld [vmem:[%s11224_s1 + $0x868] ss:$16 sps:$4 sm:$0xff]  }
  0xd7   :  { %5079 = vmatpush1.bf16.msra.mxu0 %v7663_v46  ;;  %5612 = vmatpush1.bf16.msra.mxu1 %v7666_v47  ;;  %v7755_v46 = vld [vmem:[%s11224_s1 + $0x884] ss:$16 sps:$4 sm:$0xff]   ;;  %v7758_v47 = vld [vmem:[%s11224_s1 + $0x88c] ss:$16 sps:$4 sm:$0xff]  }
  0xd8   :  { %5080 = vmatprep.subr.bf16.mxu0 %v7671_v48  ;;  %5613 = vmatprep.subr.bf16.mxu1 %v7674_v50  ;;  %v7753_v48 = vld [vmem:[%s11224_s1 + $0x880] ss:$16 sps:$4 sm:$0xff]   ;;  %v7756_v50 = vld [vmem:[%s11224_s1 + $0x888] ss:$16 sps:$4 sm:$0xff]  }
  0xdb   :  { %5081 = vmatpush1.bf16.msra.mxu0 %v7669_v51  ;;  %5614 = vmatpush1.bf16.msra.mxu1 %v7672_v53  ;;  %v7761_v51 = vld [vmem:[%s11224_s1 + $0x8a4] ss:$16 sps:$4 sm:$0xff]   ;;  %v7764_v53 = vld [vmem:[%s11224_s1 + $0x8ac] ss:$16 sps:$4 sm:$0xff]  }
  0xdc   :  { %5082 = vmatprep.subr.bf16.mxu0 %v7677_v54  ;;  %5615 = vmatprep.subr.bf16.mxu1 %v7680_v55  ;;  %v7759_v54 = vld [vmem:[%s11224_s1 + $0x8a0] ss:$16 sps:$4 sm:$0xff]   ;;  %v7762_v55 = vld [vmem:[%s11224_s1 + $0x8a8] ss:$16 sps:$4 sm:$0xff]  }
  0xdf   :  { %5083 = vmatpush1.bf16.msra.mxu0 %v7675_v56  ;;  %5616 = vmatpush1.bf16.msra.mxu1 %v7678_v57  ;;  %v7767_v56 = vld [vmem:[%s11224_s1 + $0x8c4] ss:$16 sps:$4 sm:$0xff]   ;;  %v7770_v57 = vld [vmem:[%s11224_s1 + $0x8cc] ss:$16 sps:$4 sm:$0xff]  }
  0xe0   :  { %5084 = vmatprep.subr.bf16.mxu0 %v7683_v58  ;;  %5617 = vmatprep.subr.bf16.mxu1 %v7686_v59  ;;  %v7765_v58 = vld [vmem:[%s11224_s1 + $0x8c0] ss:$16 sps:$4 sm:$0xff]   ;;  %v7768_v59 = vld [vmem:[%s11224_s1 + $0x8c8] ss:$16 sps:$4 sm:$0xff]  }
  0xe3   :  { %5085 = vmatpush1.bf16.msra.mxu0 %v7681_v60  ;;  %5618 = vmatpush1.bf16.msra.mxu1 %v7684_v61  ;;  %v7773_v60 = vld [vmem:[%s11224_s1 + $0x8e4] ss:$16 sps:$4 sm:$0xff]   ;;  %v7776_v61 = vld [vmem:[%s11224_s1 + $0x8ec] ss:$16 sps:$4 sm:$0xff]  }
  0xe4   :  { %5086 = vmatprep.subr.bf16.mxu0 %v7689_v62  ;;  %5619 = vmatprep.subr.bf16.mxu1 %v7692_v63  ;;  %v7771_v62 = vld [vmem:[%s11224_s1 + $0x8e0] ss:$16 sps:$4 sm:$0xff]   ;;  %v7774_v63 = vld [vmem:[%s11224_s1 + $0x8e8] ss:$16 sps:$4 sm:$0xff]  }
  0xe7   :  { %5087 = vmatpush1.bf16.msra.mxu0 %v7687_v0  ;;  %5620 = vmatpush1.bf16.msra.mxu1 %v7690_v1  ;;  %v7779_v0 = vld [vmem:[%s11224_s1 + $0x904] ss:$16 sps:$4 sm:$0xff]   ;;  %v7782_v1 = vld [vmem:[%s11224_s1 + $0x90c] ss:$16 sps:$4 sm:$0xff]  }
  0xe8   :  { %5088 = vmatprep.subr.bf16.mxu0 %v7695_v2  ;;  %5621 = vmatprep.subr.bf16.mxu1 %v7698_v3  ;;  %v7777_v2 = vld [vmem:[%s11224_s1 + $0x900] ss:$16 sps:$4 sm:$0xff]   ;;  %v7780_v3 = vld [vmem:[%s11224_s1 + $0x908] ss:$16 sps:$4 sm:$0xff]  }
  0xeb   :  { %5089 = vmatpush1.bf16.msra.mxu0 %v7693_v4  ;;  %5622 = vmatpush1.bf16.msra.mxu1 %v7696_v5  ;;  %v7785_v4 = vld [vmem:[%s11224_s1 + $0x924] ss:$16 sps:$4 sm:$0xff]   ;;  %v7788_v5 = vld [vmem:[%s11224_s1 + $0x92c] ss:$16 sps:$4 sm:$0xff]  }
  0xec   :  { %5090 = vmatprep.subr.bf16.mxu0 %v7701_v6  ;;  %5623 = vmatprep.subr.bf16.mxu1 %v7704_v7  ;;  %v7783_v6 = vld [vmem:[%s11224_s1 + $0x920] ss:$16 sps:$4 sm:$0xff]   ;;  %v7786_v7 = vld [vmem:[%s11224_s1 + $0x928] ss:$16 sps:$4 sm:$0xff]  }
  0xef   :  { %5091 = vmatpush1.bf16.msra.mxu0 %v7699_v8  ;;  %5624 = vmatpush1.bf16.msra.mxu1 %v7702_v9  ;;  %v7791_v8 = vld [vmem:[%s11224_s1 + $0x944] ss:$16 sps:$4 sm:$0xff]   ;;  %v7794_v9 = vld [vmem:[%s11224_s1 + $0x94c] ss:$16 sps:$4 sm:$0xff]  }
  0xf0   :  { %5092 = vmatprep.subr.bf16.mxu0 %v7707_v10  ;;  %5625 = vmatprep.subr.bf16.mxu1 %v7710_v11  ;;  %v7789_v10 = vld [vmem:[%s11224_s1 + $0x940] ss:$16 sps:$4 sm:$0xff]   ;;  %v7792_v11 = vld [vmem:[%s11224_s1 + $0x948] ss:$16 sps:$4 sm:$0xff]  }
  0xf3   :  { %5093 = vmatpush1.bf16.msra.mxu0 %v7705_v12  ;;  %5626 = vmatpush1.bf16.msra.mxu1 %v7708_v52  ;;  %v7797_v12 = vld [vmem:[%s11224_s1 + $0x964] ss:$16 sps:$4 sm:$0xff]   ;;  %v7800_v52 = vld [vmem:[%s11224_s1 + $0x96c] ss:$16 sps:$4 sm:$0xff]  }
  0xf4   :  { %5094 = vmatprep.subr.bf16.mxu0 %v7713_v15  ;;  %5627 = vmatprep.subr.bf16.mxu1 %v7716_v16  ;;  %v7795_v15 = vld [vmem:[%s11224_s1 + $0x960] ss:$16 sps:$4 sm:$0xff]   ;;  %v7798_v16 = vld [vmem:[%s11224_s1 + $0x968] ss:$16 sps:$4 sm:$0xff]  }
  0xf7   :  { %5095 = vmatpush1.bf16.msra.mxu0 %v7711_v17  ;;  %5628 = vmatpush1.bf16.msra.mxu1 %v7714_v18  ;;  %v7803_v17 = vld [vmem:[%s11224_s1 + $0x984] ss:$16 sps:$4 sm:$0xff]   ;;  %v7806_v18 = vld [vmem:[%s11224_s1 + $0x98c] ss:$16 sps:$4 sm:$0xff]  }
  0xf8   :  { %5096 = vmatprep.subr.bf16.mxu0 %v7719_v19  ;;  %5629 = vmatprep.subr.bf16.mxu1 %v7722_v20  ;;  %v7801_v19 = vld [vmem:[%s11224_s1 + $0x980] ss:$16 sps:$4 sm:$0xff]   ;;  %v7804_v20 = vld [vmem:[%s11224_s1 + $0x988] ss:$16 sps:$4 sm:$0xff]  }
  0xfb   :  { %5097 = vmatpush1.bf16.msra.mxu0 %v7717_v22  ;;  %5630 = vmatpush1.bf16.msra.mxu1 %v7720_v23  ;;  %v7809_v22 = vld [vmem:[%s11224_s1 + $0x9a4] ss:$16 sps:$4 sm:$0xff]   ;;  %v7812_v23 = vld [vmem:[%s11224_s1 + $0x9ac] ss:$16 sps:$4 sm:$0xff]  }
  0xfc   :  { %5098 = vmatprep.subr.bf16.mxu0 %v7725_v24  ;;  %5631 = vmatprep.subr.bf16.mxu1 %v7728_v13  ;;  %v7807_v24 = vld [vmem:[%s11224_s1 + $0x9a0] ss:$16 sps:$4 sm:$0xff]   ;;  %v7810_v13 = vld [vmem:[%s11224_s1 + $0x9a8] ss:$16 sps:$4 sm:$0xff]  }
  0xff   :  { %5099 = vmatpush1.bf16.msra.mxu0 %v7723_v27  ;;  %5632 = vmatpush1.bf16.msra.mxu1 %v7726_v28  ;;  %v7815_v27 = vld [vmem:[%s11224_s1 + $0x9c4] ss:$16 sps:$4 sm:$0xff]   ;;  %v7818_v28 = vld [vmem:[%s11224_s1 + $0x9cc] ss:$16 sps:$4 sm:$0xff]  }
 0x100   :  { %5109 = vmatprep.subr.bf16.mxu0 %v7731_v29  ;;  %5642 = vmatprep.subr.bf16.mxu1 %v7734_v14  ;;  %v7813_v29 = vld [vmem:[%s11224_s1 + $0x9c0] ss:$16 sps:$4 sm:$0xff]   ;;  %v7816_v14 = vld [vmem:[%s11224_s1 + $0x9c8] ss:$16 sps:$4 sm:$0xff]  }
 0x102   :  { %5101 = vmatmul.mubr.bf16.vlgmr.msra.gmra.mrb[0].mxu0 %v882_v31  ;;  %5634 = vmatmul.mubr.bf16.vlgmr.msra.gmra.mrb[0].mxu1 %v882_v31  ;;  %v7824_v31 = vld [vmem:[%s11224_s1 + $0x9ec] ss:$16 sps:$4 sm:$0xff]  }
 0x103   :  { %5110 = vmatpush1.bf16.msra.mxu0 %v7729_v25  ;;  %5643 = vmatpush1.bf16.msra.mxu1 %v7732_v32  ;;  %v7819_v25 = vld [vmem:[%s11224_s1 + $0x9e0] ss:$16 sps:$4 sm:$0xff]   ;;  %v7822_v32 = vld [vmem:[%s11224_s1 + $0x9e8] ss:$16 sps:$4 sm:$0xff]  }
 0x104   :  { %5111 = vmatprep.subr.bf16.mxu0 %v7737_v33  ;;  %5644 = vmatprep.subr.bf16.mxu1 %v7740_v26  ;;  %v7827_v33 = vld [vmem:[%s11224_s1 + $0xa04] ss:$16 sps:$4 sm:$0xff]   ;;  %v7830_v26 = vld [vmem:[%s11224_s1 + $0xa0c] ss:$16 sps:$4 sm:$0xff]  }
 0x105   :  { %5141 = vmatprep.mubr.bf16.mxu0 %v9450_v34  ;;  %5674 = vmatprep.mubr.bf16.mxu1 %v9450_v34 }
 0x107   :  { %5112 = vmatpush1.bf16.msra.mxu0 %v7735_v35  ;;  %5645 = vmatpush1.bf16.msra.mxu1 %v7738_v36  ;;  %v9636_v35 = vrot.slane %v9407_v21, %v8749_v49  ;;  %v7825_v36 = vld [vmem:[%s11224_s1 + $0xa00] ss:$16 sps:$4 sm:$0xff]   ;;  %v7836_v21 = vld [vmem:[%s11224_s1 + $0xa2c] ss:$16 sps:$4 sm:$0xff]  }
 0x108   :  { %5113 = vmatprep.subr.bf16.mxu0 %v7743_v37  ;;  %5646 = vmatprep.subr.bf16.mxu1 %v7746_v38  ;;  %v7828_v37 = vld [vmem:[%s11224_s1 + $0xa08] ss:$16 sps:$4 sm:$0xff]   ;;  %v7833_v38 = vld [vmem:[%s11224_s1 + $0xa24] ss:$16 sps:$4 sm:$0xff]  }
 0x10b   :  { %5114 = vmatpush1.bf16.msra.mxu0 %v7741_v39  ;;  %5647 = vmatpush1.bf16.msra.mxu1 %v7744_v40  ;;  %v932_v39 = vcombine.high %v9450_v34, %v9450_v34  ;;  %v7831_v40 = vld [vmem:[%s11224_s1 + $0xa20] ss:$16 sps:$4 sm:$0xff]   ;;  %v7839_v34 = vld [vmem:[%s11224_s1 + $0xa44] ss:$16 sps:$4 sm:$0xff]  }
 0x10c   :  { %5115 = vmatprep.subr.bf16.mxu0 %v7749_v41  ;;  %5648 = vmatprep.subr.bf16.mxu1 %v7752_v43  ;;  %v7834_v41 = vld [vmem:[%s11224_s1 + $0xa28] ss:$16 sps:$4 sm:$0xff]   ;;  %v7842_v43 = vld [vmem:[%s11224_s1 + $0xa4c] ss:$16 sps:$4 sm:$0xff]  }
 0x10f   :  { %5116 = vmatpush1.bf16.msra.mxu0 %v7747_v44  ;;  %5649 = vmatpush1.bf16.msra.mxu1 %v7750_v45  ;;  %v7837_v44 = vld [vmem:[%s11224_s1 + $0xa40] ss:$16 sps:$4 sm:$0xff]   ;;  %v7840_v45 = vld [vmem:[%s11224_s1 + $0xa48] ss:$16 sps:$4 sm:$0xff]  }
 0x110   :  { %5117 = vmatprep.subr.bf16.mxu0 %v7755_v46  ;;  %5650 = vmatprep.subr.bf16.mxu1 %v7758_v47  ;;  %v7845_v46 = vld [vmem:[%s11224_s1 + $0xa64] ss:$16 sps:$4 sm:$0xff]   ;;  %v7848_v47 = vld [vmem:[%s11224_s1 + $0xa6c] ss:$16 sps:$4 sm:$0xff]  }
 0x113   :  { %5118 = vmatpush1.bf16.msra.mxu0 %v7753_v48  ;;  %5651 = vmatpush1.bf16.msra.mxu1 %v7756_v50  ;;  %v7843_v48 = vld [vmem:[%s11224_s1 + $0xa60] ss:$16 sps:$4 sm:$0xff]   ;;  %v7846_v50 = vld [vmem:[%s11224_s1 + $0xa68] ss:$16 sps:$4 sm:$0xff]  }
 0x114   :  { %5119 = vmatprep.subr.bf16.mxu0 %v7761_v51  ;;  %5652 = vmatprep.subr.bf16.mxu1 %v7764_v53  ;;  %v7851_v51 = vld [vmem:[%s11224_s1 + $0xa84] ss:$16 sps:$4 sm:$0xff]   ;;  %v7854_v53 = vld [vmem:[%s11224_s1 + $0xa8c] ss:$16 sps:$4 sm:$0xff]  }
 0x117   :  { %5120 = vmatpush1.bf16.msra.mxu0 %v7759_v54  ;;  %5653 = vmatpush1.bf16.msra.mxu1 %v7762_v55  ;;  %v7849_v54 = vld [vmem:[%s11224_s1 + $0xa80] ss:$16 sps:$4 sm:$0xff]   ;;  %v7852_v55 = vld [vmem:[%s11224_s1 + $0xa88] ss:$16 sps:$4 sm:$0xff]  }
 0x118   :  { %5121 = vmatprep.subr.bf16.mxu0 %v7767_v56  ;;  %5654 = vmatprep.subr.bf16.mxu1 %v7770_v57  ;;  %v7857_v56 = vld [vmem:[%s11224_s1 + $0xaa4] ss:$16 sps:$4 sm:$0xff]   ;;  %v7860_v57 = vld [vmem:[%s11224_s1 + $0xaac] ss:$16 sps:$4 sm:$0xff]  }
 0x11b   :  { %5122 = vmatpush1.bf16.msra.mxu0 %v7765_v58  ;;  %5655 = vmatpush1.bf16.msra.mxu1 %v7768_v59  ;;  %v7855_v58 = vld [vmem:[%s11224_s1 + $0xaa0] ss:$16 sps:$4 sm:$0xff]   ;;  %v7858_v59 = vld [vmem:[%s11224_s1 + $0xaa8] ss:$16 sps:$4 sm:$0xff]  }
 0x11c   :  { %5123 = vmatprep.subr.bf16.mxu0 %v7773_v60  ;;  %5656 = vmatprep.subr.bf16.mxu1 %v7776_v61  ;;  %v7863_v60 = vld [vmem:[%s11224_s1 + $0xac4] ss:$16 sps:$4 sm:$0xff]   ;;  %v7866_v61 = vld [vmem:[%s11224_s1 + $0xacc] ss:$16 sps:$4 sm:$0xff]  }
 0x11f   :  { %5124 = vmatpush1.bf16.msra.mxu0 %v7771_v62  ;;  %5657 = vmatpush1.bf16.msra.mxu1 %v7774_v63  ;;  %v7861_v62 = vld [vmem:[%s11224_s1 + $0xac0] ss:$16 sps:$4 sm:$0xff]   ;;  %v7864_v63 = vld [vmem:[%s11224_s1 + $0xac8] ss:$16 sps:$4 sm:$0xff]  }
 0x120   :  { %5125 = vmatprep.subr.bf16.mxu0 %v7779_v0  ;;  %5658 = vmatprep.subr.bf16.mxu1 %v7782_v1  ;;  %v7869_v0 = vld [vmem:[%s11224_s1 + $0xae4] ss:$16 sps:$4 sm:$0xff]   ;;  %v7872_v1 = vld [vmem:[%s11224_s1 + $0xaec] ss:$16 sps:$4 sm:$0xff]  }
 0x123   :  { %5126 = vmatpush1.bf16.msra.mxu0 %v7777_v2  ;;  %5659 = vmatpush1.bf16.msra.mxu1 %v7780_v3  ;;  %v7867_v2 = vld [vmem:[%s11224_s1 + $0xae0] ss:$16 sps:$4 sm:$0xff]   ;;  %v7870_v3 = vld [vmem:[%s11224_s1 + $0xae8] ss:$16 sps:$4 sm:$0xff]  }
 0x124   :  { %5127 = vmatprep.subr.bf16.mxu0 %v7785_v4  ;;  %5660 = vmatprep.subr.bf16.mxu1 %v7788_v5  ;;  %v7875_v4 = vld [vmem:[%s11224_s1 + $0xb04] ss:$16 sps:$4 sm:$0xff]   ;;  %v7878_v5 = vld [vmem:[%s11224_s1 + $0xb0c] ss:$16 sps:$4 sm:$0xff]  }
 0x127   :  { %5128 = vmatpush1.bf16.msra.mxu0 %v7783_v6  ;;  %5661 = vmatpush1.bf16.msra.mxu1 %v7786_v7  ;;  %v7873_v6 = vld [vmem:[%s11224_s1 + $0xb00] ss:$16 sps:$4 sm:$0xff]   ;;  %v7876_v7 = vld [vmem:[%s11224_s1 + $0xb08] ss:$16 sps:$4 sm:$0xff]  }
 0x128   :  { %5129 = vmatprep.subr.bf16.mxu0 %v7791_v8  ;;  %5662 = vmatprep.subr.bf16.mxu1 %v7794_v9  ;;  %v7881_v8 = vld [vmem:[%s11224_s1 + $0xb24] ss:$16 sps:$4 sm:$0xff]   ;;  %v7884_v9 = vld [vmem:[%s11224_s1 + $0xb2c] ss:$16 sps:$4 sm:$0xff]  }
 0x12b   :  { %5130 = vmatpush1.bf16.msra.mxu0 %v7789_v10  ;;  %5663 = vmatpush1.bf16.msra.mxu1 %v7792_v11  ;;  %v7879_v10 = vld [vmem:[%s11224_s1 + $0xb20] ss:$16 sps:$4 sm:$0xff]   ;;  %v7882_v11 = vld [vmem:[%s11224_s1 + $0xb28] ss:$16 sps:$4 sm:$0xff]  }
 0x12c   :  { %5131 = vmatprep.subr.bf16.mxu0 %v7797_v12  ;;  %5664 = vmatprep.subr.bf16.mxu1 %v7800_v52  ;;  %v7887_v12 = vld [vmem:[%s11224_s1 + $0xb44] ss:$16 sps:$4 sm:$0xff]   ;;  %v7890_v52 = vld [vmem:[%s11224_s1 + $0xb4c] ss:$16 sps:$4 sm:$0xff]  }
 0x12f   :  { %5132 = vmatpush1.bf16.msra.mxu0 %v7795_v15  ;;  %5665 = vmatpush1.bf16.msra.mxu1 %v7798_v16  ;;  %v7885_v15 = vld [vmem:[%s11224_s1 + $0xb40] ss:$16 sps:$4 sm:$0xff]   ;;  %v7888_v16 = vld [vmem:[%s11224_s1 + $0xb48] ss:$16 sps:$4 sm:$0xff]  }
 0x130   :  { %5133 = vmatprep.subr.bf16.mxu0 %v7803_v17  ;;  %5666 = vmatprep.subr.bf16.mxu1 %v7806_v18  ;;  %v7893_v17 = vld [vmem:[%s11224_s1 + $0xb64] ss:$16 sps:$4 sm:$0xff]   ;;  %v7896_v18 = vld [vmem:[%s11224_s1 + $0xb6c] ss:$16 sps:$4 sm:$0xff]  }
 0x133   :  { %5134 = vmatpush1.bf16.msra.mxu0 %v7801_v19  ;;  %5667 = vmatpush1.bf16.msra.mxu1 %v7804_v20  ;;  %v7891_v19 = vld [vmem:[%s11224_s1 + $0xb60] ss:$16 sps:$4 sm:$0xff]   ;;  %v7894_v20 = vld [vmem:[%s11224_s1 + $0xb68] ss:$16 sps:$4 sm:$0xff]  }
 0x134   :  { %5135 = vmatprep.subr.bf16.mxu0 %v7809_v22  ;;  %5668 = vmatprep.subr.bf16.mxu1 %v7812_v23  ;;  %v7899_v22 = vld [vmem:[%s11224_s1 + $0xb84] ss:$16 sps:$4 sm:$0xff]   ;;  %v7902_v23 = vld [vmem:[%s11224_s1 + $0xb8c] ss:$16 sps:$4 sm:$0xff]  }
 0x137   :  { %5136 = vmatpush1.bf16.msra.mxu0 %v7807_v24  ;;  %5669 = vmatpush1.bf16.msra.mxu1 %v7810_v13  ;;  %v7897_v24 = vld [vmem:[%s11224_s1 + $0xb80] ss:$16 sps:$4 sm:$0xff]   ;;  %v7900_v13 = vld [vmem:[%s11224_s1 + $0xb88] ss:$16 sps:$4 sm:$0xff]  }
 0x138   :  { %5137 = vmatprep.subr.bf16.mxu0 %v7815_v27  ;;  %5670 = vmatprep.subr.bf16.mxu1 %v7818_v28  ;;  %v7905_v27 = vld [vmem:[%s11224_s1 + $0xba4] ss:$16 sps:$4 sm:$0xff]   ;;  %v7908_v28 = vld [vmem:[%s11224_s1 + $0xbac] ss:$16 sps:$4 sm:$0xff]  }
 0x13b   :  { %5138 = vmatpush1.bf16.msra.mxu0 %v7813_v29  ;;  %5671 = vmatpush1.bf16.msra.mxu1 %v7816_v14  ;;  %v7903_v29 = vld [vmem:[%s11224_s1 + $0xba0] ss:$16 sps:$4 sm:$0xff]   ;;  %v7906_v14 = vld [vmem:[%s11224_s1 + $0xba8] ss:$16 sps:$4 sm:$0xff]  }
 0x13c   :  { %5139 = vmatprep.subr.bf16.mxu0 %v7821_v30  ;;  %5672 = vmatprep.subr.bf16.mxu1 %v7824_v31  ;;  %v7911_v30 = vld [vmem:[%s11224_s1 + $0xbc4] ss:$16 sps:$4 sm:$0xff]   ;;  %v7914_v31 = vld [vmem:[%s11224_s1 + $0xbcc] ss:$16 sps:$4 sm:$0xff]  }
 0x13f   :  { %5140 = vmatpush1.bf16.msra.mxu0 %v7819_v25  ;;  %5673 = vmatpush1.bf16.msra.mxu1 %v7822_v32  ;;  %v8555_v25 = vld [vmem:[%s11223_s0 + $0x8] sm:$0xff] }
 0x140   :  { %5150 = vmatprep.subr.bf16.mxu0 %v7827_v33  ;;  %5683 = vmatprep.subr.bf16.mxu1 %v7830_v26  ;;  %v885_v32 = vcombine.high %v8555_v25, %v8555_v25  ;;  %v7909_v33 = vld [vmem:[%s11224_s1 + $0xbc0] ss:$16 sps:$4 sm:$0xff]   ;;  %v7912_v26 = vld [vmem:[%s11224_s1 + $0xbc8] ss:$16 sps:$4 sm:$0xff]  }
 0x141   :  { %v7993_v25 = vld [vmem:[%s11224_s1 + $0xd80] ss:$16 sps:$4 sm:$0xff]  }
 0x142   :  { %5142 = vmatmul.mubr.bf16.vlgmr.msra.gmra.mrb[0].mxu0 %v9636_v35  ;;  %5675 = vmatmul.mubr.bf16.vlgmr.msra.gmra.mrb[0].mxu1 %v9636_v35 }
 0x143   :  { %5151 = vmatpush1.bf16.msra.mxu0 %v7825_v36  ;;  %5684 = vmatpush1.bf16.msra.mxu1 %v7828_v37  ;;  %v7917_v36 = vld [vmem:[%s11224_s1 + $0xbe4] ss:$16 sps:$4 sm:$0xff]   ;;  %v7920_v37 = vld [vmem:[%s11224_s1 + $0xbec] ss:$16 sps:$4 sm:$0xff]  }
 0x144   :  { %5152 = vmatprep.subr.bf16.mxu0 %v7833_v38  ;;  %5685 = vmatprep.subr.bf16.mxu1 %v7836_v21  ;;  %v9826_v38 = vrot.slane %v885_v32, %v8749_v49  ;;  %v7915_v21 = vld [vmem:[%s11224_s1 + $0xbe0] ss:$16 sps:$4 sm:$0xff]   ;;  %v7996_v32 = vld [vmem:[%s11224_s1 + $0xd88] ss:$16 sps:$4 sm:$0xff]  }
 0x145   :  { %5182 = vmatprep.mubr.bf16.mxu0 %v932_v39  ;;  %5715 = vmatprep.mubr.bf16.mxu1 %v932_v39  ;;  %v7918_v39 = vld [vmem:[%s11224_s1 + $0xbe8] ss:$16 sps:$4 sm:$0xff]  }
 0x147   :  { %5153 = vmatpush1.bf16.msra.mxu0 %v7831_v40  ;;  %5686 = vmatpush1.bf16.msra.mxu1 %v7834_v41  ;;  %v7923_v40 = vld [vmem:[%s11224_s1 + $0xc04] ss:$16 sps:$4 sm:$0xff]   ;;  %v7926_v41 = vld [vmem:[%s11224_s1 + $0xc0c] ss:$16 sps:$4 sm:$0xff]  }
 0x148   :  { %5154 = vmatprep.subr.bf16.mxu0 %v7839_v34  ;;  %5687 = vmatprep.subr.bf16.mxu1 %v7842_v43  ;;  %v901_v34 = vcombine.high %v9826_v38, %v9826_v38  ;;  %v930_v43 = vcombine.high %v9636_v35, %v9636_v35  ;;  %v7932_v35 = vld [vmem:[%s11224_s1 + $0xc2c] ss:$16 sps:$4 sm:$0xff]  }
 0x14b   :  { %5155 = vmatpush1.bf16.msra.mxu0 %v7837_v44  ;;  %5688 = vmatpush1.bf16.msra.mxu1 %v7840_v45  ;;  %v7921_v44 = vld [vmem:[%s11224_s1 + $0xc00] ss:$16 sps:$4 sm:$0xff]   ;;  %v7924_v45 = vld [vmem:[%s11224_s1 + $0xc08] ss:$16 sps:$4 sm:$0xff]  }
 0x14c   :  { %5156 = vmatprep.subr.bf16.mxu0 %v7845_v46  ;;  %5689 = vmatprep.subr.bf16.mxu1 %v7848_v47  ;;  %v7929_v46 = vld [vmem:[%s11224_s1 + $0xc24] ss:$16 sps:$4 sm:$0xff]   ;;  %v9857_v47 = vrot.slane %v901_v34, %v8749_v49 }
 0x14d   :  { %v8013_v34 = vld [vmem:[%s11224_s1 + $0xde4] ss:$16 sps:$4 sm:$0xff]  }
 0x14f   :  { %5157 = vmatpush1.bf16.msra.mxu0 %v7843_v48  ;;  %5690 = vmatpush1.bf16.msra.mxu1 %v7846_v50  ;;  %v7927_v48 = vld [vmem:[%s11224_s1 + $0xc20] ss:$16 sps:$4 sm:$0xff]   ;;  %v7930_v50 = vld [vmem:[%s11224_s1 + $0xc28] ss:$16 sps:$4 sm:$0xff]  }
 0x150   :  { %5158 = vmatprep.subr.bf16.mxu0 %v7851_v51  ;;  %5691 = vmatprep.subr.bf16.mxu1 %v7854_v53  ;;  %v7935_v51 = vld [vmem:[%s11224_s1 + $0xc44] ss:$16 sps:$4 sm:$0xff]   ;;  %v7938_v53 = vld [vmem:[%s11224_s1 + $0xc4c] ss:$16 sps:$4 sm:$0xff]  }
 0x153   :  { %5159 = vmatpush1.bf16.msra.mxu0 %v7849_v54  ;;  %5692 = vmatpush1.bf16.msra.mxu1 %v7852_v55  ;;  %v7933_v54 = vld [vmem:[%s11224_s1 + $0xc40] ss:$16 sps:$4 sm:$0xff]   ;;  %v7936_v55 = vld [vmem:[%s11224_s1 + $0xc48] ss:$16 sps:$4 sm:$0xff]  }
 0x154   :  { %5160 = vmatprep.subr.bf16.mxu0 %v7857_v56  ;;  %5693 = vmatprep.subr.bf16.mxu1 %v7860_v57  ;;  %v7941_v56 = vld [vmem:[%s11224_s1 + $0xc64] ss:$16 sps:$4 sm:$0xff]   ;;  %v7944_v57 = vld [vmem:[%s11224_s1 + $0xc6c] ss:$16 sps:$4 sm:$0xff]  }
 0x157   :  { %5161 = vmatpush1.bf16.msra.mxu0 %v7855_v58  ;;  %5694 = vmatpush1.bf16.msra.mxu1 %v7858_v59  ;;  %v7939_v58 = vld [vmem:[%s11224_s1 + $0xc60] ss:$16 sps:$4 sm:$0xff]   ;;  %v7942_v59 = vld [vmem:[%s11224_s1 + $0xc68] ss:$16 sps:$4 sm:$0xff]  }
 0x158   :  { %5162 = vmatprep.subr.bf16.mxu0 %v7863_v60  ;;  %5695 = vmatprep.subr.bf16.mxu1 %v7866_v61  ;;  %v7947_v60 = vld [vmem:[%s11224_s1 + $0xc84] ss:$16 sps:$4 sm:$0xff]   ;;  %v7950_v61 = vld [vmem:[%s11224_s1 + $0xc8c] ss:$16 sps:$4 sm:$0xff]  }
 0x15b   :  { %5163 = vmatpush1.bf16.msra.mxu0 %v7861_v62  ;;  %5696 = vmatpush1.bf16.msra.mxu1 %v7864_v63  ;;  %v7945_v62 = vld [vmem:[%s11224_s1 + $0xc80] ss:$16 sps:$4 sm:$0xff]   ;;  %v7948_v63 = vld [vmem:[%s11224_s1 + $0xc88] ss:$16 sps:$4 sm:$0xff]  }
 0x15c   :  { %5164 = vmatprep.subr.bf16.mxu0 %v7869_v0  ;;  %5697 = vmatprep.subr.bf16.mxu1 %v7872_v1  ;;  %v7953_v0 = vld [vmem:[%s11224_s1 + $0xca4] ss:$16 sps:$4 sm:$0xff]   ;;  %v7956_v1 = vld [vmem:[%s11224_s1 + $0xcac] ss:$16 sps:$4 sm:$0xff]  }
 0x15f   :  { %5165 = vmatpush1.bf16.msra.mxu0 %v7867_v2  ;;  %5698 = vmatpush1.bf16.msra.mxu1 %v7870_v3  ;;  %v7951_v2 = vld [vmem:[%s11224_s1 + $0xca0] ss:$16 sps:$4 sm:$0xff]   ;;  %v7954_v3 = vld [vmem:[%s11224_s1 + $0xca8] ss:$16 sps:$4 sm:$0xff]  }
 0x160   :  { %5166 = vmatprep.subr.bf16.mxu0 %v7875_v4  ;;  %5699 = vmatprep.subr.bf16.mxu1 %v7878_v5  ;;  %v7959_v4 = vld [vmem:[%s11224_s1 + $0xcc4] ss:$16 sps:$4 sm:$0xff]   ;;  %v7962_v5 = vld [vmem:[%s11224_s1 + $0xccc] ss:$16 sps:$4 sm:$0xff]  }
 0x163   :  { %5167 = vmatpush1.bf16.msra.mxu0 %v7873_v6  ;;  %5700 = vmatpush1.bf16.msra.mxu1 %v7876_v7  ;;  %v7957_v6 = vld [vmem:[%s11224_s1 + $0xcc0] ss:$16 sps:$4 sm:$0xff]   ;;  %v7960_v7 = vld [vmem:[%s11224_s1 + $0xcc8] ss:$16 sps:$4 sm:$0xff]  }
 0x164   :  { %5168 = vmatprep.subr.bf16.mxu0 %v7881_v8  ;;  %5701 = vmatprep.subr.bf16.mxu1 %v7884_v9  ;;  %v7965_v8 = vld [vmem:[%s11224_s1 + $0xce4] ss:$16 sps:$4 sm:$0xff]   ;;  %v7968_v9 = vld [vmem:[%s11224_s1 + $0xcec] ss:$16 sps:$4 sm:$0xff]  }
 0x167   :  { %5169 = vmatpush1.bf16.msra.mxu0 %v7879_v10  ;;  %5702 = vmatpush1.bf16.msra.mxu1 %v7882_v11  ;;  %v7963_v10 = vld [vmem:[%s11224_s1 + $0xce0] ss:$16 sps:$4 sm:$0xff]   ;;  %v7966_v11 = vld [vmem:[%s11224_s1 + $0xce8] ss:$16 sps:$4 sm:$0xff]  }
 0x168   :  { %5170 = vmatprep.subr.bf16.mxu0 %v7887_v12  ;;  %5703 = vmatprep.subr.bf16.mxu1 %v7890_v52  ;;  %v7971_v12 = vld [vmem:[%s11224_s1 + $0xd04] ss:$16 sps:$4 sm:$0xff]   ;;  %v7974_v52 = vld [vmem:[%s11224_s1 + $0xd0c] ss:$16 sps:$4 sm:$0xff]  }
 0x16b   :  { %5171 = vmatpush1.bf16.msra.mxu0 %v7885_v15  ;;  %5704 = vmatpush1.bf16.msra.mxu1 %v7888_v16  ;;  %v7969_v15 = vld [vmem:[%s11224_s1 + $0xd00] ss:$16 sps:$4 sm:$0xff]   ;;  %v7972_v16 = vld [vmem:[%s11224_s1 + $0xd08] ss:$16 sps:$4 sm:$0xff]  }
 0x16c   :  { %5172 = vmatprep.subr.bf16.mxu0 %v7893_v17  ;;  %5705 = vmatprep.subr.bf16.mxu1 %v7896_v18  ;;  %v7977_v17 = vld [vmem:[%s11224_s1 + $0xd24] ss:$16 sps:$4 sm:$0xff]   ;;  %v7980_v18 = vld [vmem:[%s11224_s1 + $0xd2c] ss:$16 sps:$4 sm:$0xff]  }
 0x16f   :  { %5173 = vmatpush1.bf16.msra.mxu0 %v7891_v19  ;;  %5706 = vmatpush1.bf16.msra.mxu1 %v7894_v20  ;;  %v7975_v19 = vld [vmem:[%s11224_s1 + $0xd20] ss:$16 sps:$4 sm:$0xff]   ;;  %v7978_v20 = vld [vmem:[%s11224_s1 + $0xd28] ss:$16 sps:$4 sm:$0xff]  }
 0x170   :  { %5174 = vmatprep.subr.bf16.mxu0 %v7899_v22  ;;  %5707 = vmatprep.subr.bf16.mxu1 %v7902_v23  ;;  %v7983_v22 = vld [vmem:[%s11224_s1 + $0xd44] ss:$16 sps:$4 sm:$0xff]   ;;  %v7986_v23 = vld [vmem:[%s11224_s1 + $0xd4c] ss:$16 sps:$4 sm:$0xff]  }
 0x173   :  { %5175 = vmatpush1.bf16.msra.mxu0 %v7897_v24  ;;  %5708 = vmatpush1.bf16.msra.mxu1 %v7900_v13  ;;  %v7981_v24 = vld [vmem:[%s11224_s1 + $0xd40] ss:$16 sps:$4 sm:$0xff]   ;;  %v7984_v13 = vld [vmem:[%s11224_s1 + $0xd48] ss:$16 sps:$4 sm:$0xff]  }
 0x174   :  { %5176 = vmatprep.subr.bf16.mxu0 %v7905_v27  ;;  %5709 = vmatprep.subr.bf16.mxu1 %v7908_v28  ;;  %v7989_v27 = vld [vmem:[%s11224_s1 + $0xd64] ss:$16 sps:$4 sm:$0xff]   ;;  %v7992_v28 = vld [vmem:[%s11224_s1 + $0xd6c] ss:$16 sps:$4 sm:$0xff]  }
 0x177   :  { %5177 = vmatpush1.bf16.msra.mxu0 %v7903_v29  ;;  %5710 = vmatpush1.bf16.msra.mxu1 %v7906_v14  ;;  %v7987_v29 = vld [vmem:[%s11224_s1 + $0xd60] ss:$16 sps:$4 sm:$0xff]   ;;  %v7990_v14 = vld [vmem:[%s11224_s1 + $0xd68] ss:$16 sps:$4 sm:$0xff]  }
 0x178   :  { %5178 = vmatprep.subr.bf16.mxu0 %v7911_v30  ;;  %5711 = vmatprep.subr.bf16.mxu1 %v7914_v31  ;;  %v7995_v30 = vld [vmem:[%s11224_s1 + $0xd84] ss:$16 sps:$4 sm:$0xff]   ;;  %v7998_v31 = vld [vmem:[%s11224_s1 + $0xd8c] ss:$16 sps:$4 sm:$0xff]  }
 0x17b   :  { %5179 = vmatpush1.bf16.msra.mxu0 %v7909_v33  ;;  %5712 = vmatpush1.bf16.msra.mxu1 %v7912_v26  ;;  %v8001_v33 = vld [vmem:[%s11224_s1 + $0xda4] ss:$16 sps:$4 sm:$0xff]   ;;  %v8004_v26 = vld [vmem:[%s11224_s1 + $0xdac] ss:$16 sps:$4 sm:$0xff]  }
 0x17c   :  { %5180 = vmatprep.subr.bf16.mxu0 %v7917_v36  ;;  %5713 = vmatprep.subr.bf16.mxu1 %v7920_v37  ;;  %v7999_v36 = vld [vmem:[%s11224_s1 + $0xda0] ss:$16 sps:$4 sm:$0xff]   ;;  %v8002_v37 = vld [vmem:[%s11224_s1 + $0xda8] ss:$16 sps:$4 sm:$0xff]  }
 0x17f   :  { %5181 = vmatpush1.bf16.msra.mxu0 %v7915_v21  ;;  %5714 = vmatpush1.bf16.msra.mxu1 %v7918_v39  ;;  %v8007_v21 = vld [vmem:[%s11224_s1 + $0xdc4] ss:$16 sps:$4 sm:$0xff]   ;;  %v8010_v39 = vld [vmem:[%s11224_s1 + $0xdcc] ss:$16 sps:$4 sm:$0xff]  }
 0x180   :  { %5191 = vmatprep.subr.bf16.mxu0 %v7923_v40  ;;  %5724 = vmatprep.subr.bf16.mxu1 %v7926_v41  ;;  %v8005_v40 = vld [vmem:[%s11224_s1 + $0xdc0] ss:$16 sps:$4 sm:$0xff]   ;;  %v8008_v41 = vld [vmem:[%s11224_s1 + $0xdc8] ss:$16 sps:$4 sm:$0xff]  }
 0x182   :  { %5183 = vmatmul.mubr.bf16.vlgmr.msra.gmra.mrb[0].mxu0 %v930_v43  ;;  %5716 = vmatmul.mubr.bf16.vlgmr.msra.gmra.mrb[0].mxu1 %v930_v43  ;;  %v8016_v43 = vld [vmem:[%s11224_s1 + $0xdec] ss:$16 sps:$4 sm:$0xff]  }
 0x183   :  { %5192 = vmatpush1.bf16.msra.mxu0 %v7921_v44  ;;  %5725 = vmatpush1.bf16.msra.mxu1 %v7924_v45  ;;  %v8011_v44 = vld [vmem:[%s11224_s1 + $0xde0] ss:$16 sps:$4 sm:$0xff]   ;;  %v8014_v45 = vld [vmem:[%s11224_s1 + $0xde8] ss:$16 sps:$4 sm:$0xff]  }
 0x184   :  { %5193 = vmatprep.subr.bf16.mxu0 %v7929_v46  ;;  %5726 = vmatprep.subr.bf16.mxu1 %v7932_v35  ;;  %v8020_v46 = vld [vmem:[%s11224_s1 + $0xe04] ss:$16 sps:$4 sm:$0xff]   ;;  %v8023_v35 = vld [vmem:[%s11224_s1 + $0xe0c] ss:$16 sps:$4 sm:$0xff]  }
 0x185   :  { %5223 = vmatprep.mubr.bf16.mxu0 %v9857_v47  ;;  %5756 = vmatprep.mubr.bf16.mxu1 %v9857_v47 }
 0x187   :  { %5194 = vmatpush1.bf16.msra.mxu0 %v7927_v48  ;;  %5727 = vmatpush1.bf16.msra.mxu1 %v7930_v50  ;;  %v10043_v48 = vrot.slane %v9826_v38, %v8749_v49  ;;  %v8018_v50 = vld [vmem:[%s11224_s1 + $0xe00] ss:$16 sps:$4 sm:$0xff]   ;;  %v8029_v38 = vld [vmem:[%s11224_s1 + $0xe2c] ss:$16 sps:$4 sm:$0xff]  }
 0x188   :  { %5195 = vmatprep.subr.bf16.mxu0 %v7935_v51  ;;  %5728 = vmatprep.subr.bf16.mxu1 %v7938_v53  ;;  %v8021_v51 = vld [vmem:[%s11224_s1 + $0xe08] ss:$16 sps:$4 sm:$0xff]   ;;  %v8026_v53 = vld [vmem:[%s11224_s1 + $0xe24] ss:$16 sps:$4 sm:$0xff]  }
 0x18b   :  { %5196 = vmatpush1.bf16.msra.mxu0 %v7933_v54  ;;  %5729 = vmatpush1.bf16.msra.mxu1 %v7936_v55  ;;  %v933_v54 = vcombine.high %v9857_v47, %v9857_v47  ;;  %v8024_v55 = vld [vmem:[%s11224_s1 + $0xe20] ss:$16 sps:$4 sm:$0xff]   ;;  %v8032_v47 = vld [vmem:[%s11224_s1 + $0xe44] ss:$16 sps:$4 sm:$0xff]  }
 0x18c   :  { %5197 = vmatprep.subr.bf16.mxu0 %v7941_v56  ;;  %5730 = vmatprep.subr.bf16.mxu1 %v7944_v57  ;;  %v8027_v56 = vld [vmem:[%s11224_s1 + $0xe28] ss:$16 sps:$4 sm:$0xff]   ;;  %v8035_v57 = vld [vmem:[%s11224_s1 + $0xe4c] ss:$16 sps:$4 sm:$0xff]  }
 0x18f   :  { %5198 = vmatpush1.bf16.msra.mxu0 %v7939_v58  ;;  %5731 = vmatpush1.bf16.msra.mxu1 %v7942_v59  ;;  %v8030_v58 = vld [vmem:[%s11224_s1 + $0xe40] ss:$16 sps:$4 sm:$0xff]   ;;  %v8033_v59 = vld [vmem:[%s11224_s1 + $0xe48] ss:$16 sps:$4 sm:$0xff]  }
 0x190   :  { %5199 = vmatprep.subr.bf16.mxu0 %v7947_v60  ;;  %5732 = vmatprep.subr.bf16.mxu1 %v7950_v61  ;;  %v8038_v60 = vld [vmem:[%s11224_s1 + $0xe64] ss:$16 sps:$4 sm:$0xff]   ;;  %v8041_v61 = vld [vmem:[%s11224_s1 + $0xe6c] ss:$16 sps:$4 sm:$0xff]  }
 0x193   :  { %5200 = vmatpush1.bf16.msra.mxu0 %v7945_v62  ;;  %5733 = vmatpush1.bf16.msra.mxu1 %v7948_v63  ;;  %v8036_v62 = vld [vmem:[%s11224_s1 + $0xe60] ss:$16 sps:$4 sm:$0xff]   ;;  %v8039_v63 = vld [vmem:[%s11224_s1 + $0xe68] ss:$16 sps:$4 sm:$0xff]  }
 0x194   :  { %5201 = vmatprep.subr.bf16.mxu0 %v7953_v0  ;;  %5734 = vmatprep.subr.bf16.mxu1 %v7956_v1  ;;  %v8044_v0 = vld [vmem:[%s11224_s1 + $0xe84] ss:$16 sps:$4 sm:$0xff]   ;;  %v8047_v1 = vld [vmem:[%s11224_s1 + $0xe8c] ss:$16 sps:$4 sm:$0xff]  }
 0x197   :  { %5202 = vmatpush1.bf16.msra.mxu0 %v7951_v2  ;;  %5735 = vmatpush1.bf16.msra.mxu1 %v7954_v3  ;;  %v8042_v2 = vld [vmem:[%s11224_s1 + $0xe80] ss:$16 sps:$4 sm:$0xff]   ;;  %v8045_v3 = vld [vmem:[%s11224_s1 + $0xe88] ss:$16 sps:$4 sm:$0xff]  }
 0x198   :  { %5203 = vmatprep.subr.bf16.mxu0 %v7959_v4  ;;  %5736 = vmatprep.subr.bf16.mxu1 %v7962_v5  ;;  %v8050_v4 = vld [vmem:[%s11224_s1 + $0xea4] ss:$16 sps:$4 sm:$0xff]   ;;  %v8053_v5 = vld [vmem:[%s11224_s1 + $0xeac] ss:$16 sps:$4 sm:$0xff]  }
 0x19b   :  { %5204 = vmatpush1.bf16.msra.mxu0 %v7957_v6  ;;  %5737 = vmatpush1.bf16.msra.mxu1 %v7960_v7  ;;  %v8048_v6 = vld [vmem:[%s11224_s1 + $0xea0] ss:$16 sps:$4 sm:$0xff]   ;;  %v8051_v7 = vld [vmem:[%s11224_s1 + $0xea8] ss:$16 sps:$4 sm:$0xff]  }
 0x19c   :  { %5205 = vmatprep.subr.bf16.mxu0 %v7965_v8  ;;  %5738 = vmatprep.subr.bf16.mxu1 %v7968_v9  ;;  %v8056_v8 = vld [vmem:[%s11224_s1 + $0xec4] ss:$16 sps:$4 sm:$0xff]   ;;  %v8059_v9 = vld [vmem:[%s11224_s1 + $0xecc] ss:$16 sps:$4 sm:$0xff]  }
 0x19f   :  { %5206 = vmatpush1.bf16.msra.mxu0 %v7963_v10  ;;  %5739 = vmatpush1.bf16.msra.mxu1 %v7966_v11  ;;  %v8054_v10 = vld [vmem:[%s11224_s1 + $0xec0] ss:$16 sps:$4 sm:$0xff]   ;;  %v8057_v11 = vld [vmem:[%s11224_s1 + $0xec8] ss:$16 sps:$4 sm:$0xff]  }
 0x1a0   :  { %5207 = vmatprep.subr.bf16.mxu0 %v7971_v12  ;;  %5740 = vmatprep.subr.bf16.mxu1 %v7974_v52  ;;  %v8062_v12 = vld [vmem:[%s11224_s1 + $0xee4] ss:$16 sps:$4 sm:$0xff]   ;;  %v8065_v52 = vld [vmem:[%s11224_s1 + $0xeec] ss:$16 sps:$4 sm:$0xff]  }
 0x1a3   :  { %5208 = vmatpush1.bf16.msra.mxu0 %v7969_v15  ;;  %5741 = vmatpush1.bf16.msra.mxu1 %v7972_v16  ;;  %v8060_v15 = vld [vmem:[%s11224_s1 + $0xee0] ss:$16 sps:$4 sm:$0xff]   ;;  %v8063_v16 = vld [vmem:[%s11224_s1 + $0xee8] ss:$16 sps:$4 sm:$0xff]  }
 0x1a4   :  { %5209 = vmatprep.subr.bf16.mxu0 %v7977_v17  ;;  %5742 = vmatprep.subr.bf16.mxu1 %v7980_v18  ;;  %v8068_v17 = vld [vmem:[%s11224_s1 + $0xf04] ss:$16 sps:$4 sm:$0xff]   ;;  %v8071_v18 = vld [vmem:[%s11224_s1 + $0xf0c] ss:$16 sps:$4 sm:$0xff]  }
 0x1a7   :  { %5210 = vmatpush1.bf16.msra.mxu0 %v7975_v19  ;;  %5743 = vmatpush1.bf16.msra.mxu1 %v7978_v20  ;;  %v8066_v19 = vld [vmem:[%s11224_s1 + $0xf00] ss:$16 sps:$4 sm:$0xff]   ;;  %v8069_v20 = vld [vmem:[%s11224_s1 + $0xf08] ss:$16 sps:$4 sm:$0xff]  }
 0x1a8   :  { %5211 = vmatprep.subr.bf16.mxu0 %v7983_v22  ;;  %5744 = vmatprep.subr.bf16.mxu1 %v7986_v23  ;;  %v8074_v22 = vld [vmem:[%s11224_s1 + $0xf24] ss:$16 sps:$4 sm:$0xff]   ;;  %v8077_v23 = vld [vmem:[%s11224_s1 + $0xf2c] ss:$16 sps:$4 sm:$0xff]  }
 0x1ab   :  { %5212 = vmatpush1.bf16.msra.mxu0 %v7981_v24  ;;  %5745 = vmatpush1.bf16.msra.mxu1 %v7984_v13  ;;  %v8072_v24 = vld [vmem:[%s11224_s1 + $0xf20] ss:$16 sps:$4 sm:$0xff]   ;;  %v8075_v13 = vld [vmem:[%s11224_s1 + $0xf28] ss:$16 sps:$4 sm:$0xff]  }
 0x1ac   :  { %5213 = vmatprep.subr.bf16.mxu0 %v7989_v27  ;;  %5746 = vmatprep.subr.bf16.mxu1 %v7992_v28  ;;  %v8080_v27 = vld [vmem:[%s11224_s1 + $0xf44] ss:$16 sps:$4 sm:$0xff]   ;;  %v8083_v28 = vld [vmem:[%s11224_s1 + $0xf4c] ss:$16 sps:$4 sm:$0xff]  }
 0x1af   :  { %5214 = vmatpush1.bf16.msra.mxu0 %v7987_v29  ;;  %5747 = vmatpush1.bf16.msra.mxu1 %v7990_v14  ;;  %v8078_v29 = vld [vmem:[%s11224_s1 + $0xf40] ss:$16 sps:$4 sm:$0xff]   ;;  %v8081_v14 = vld [vmem:[%s11224_s1 + $0xf48] ss:$16 sps:$4 sm:$0xff]  }
 0x1b0   :  { %5215 = vmatprep.subr.bf16.mxu0 %v7995_v30  ;;  %5748 = vmatprep.subr.bf16.mxu1 %v7998_v31  ;;  %v8086_v30 = vld [vmem:[%s11224_s1 + $0xf64] ss:$16 sps:$4 sm:$0xff]   ;;  %v8089_v31 = vld [vmem:[%s11224_s1 + $0xf6c] ss:$16 sps:$4 sm:$0xff]  }
 0x1b3   :  { %5216 = vmatpush1.bf16.msra.mxu0 %v7993_v25  ;;  %5749 = vmatpush1.bf16.msra.mxu1 %v7996_v32 }
 0x1b4   :  { %5217 = vmatprep.subr.bf16.mxu0 %v8001_v33  ;;  %5750 = vmatprep.subr.bf16.mxu1 %v8004_v26 }
 0x1b7   :  { %5218 = vmatpush1.bf16.msra.mxu0 %v7999_v36  ;;  %5751 = vmatpush1.bf16.msra.mxu1 %v8002_v37 }
 0x1b8   :  { %5219 = vmatprep.subr.bf16.mxu0 %v8007_v21  ;;  %5752 = vmatprep.subr.bf16.mxu1 %v8010_v39 }
 0x1bb   :  { %5220 = vmatpush1.bf16.msra.mxu0 %v8005_v40  ;;  %5753 = vmatpush1.bf16.msra.mxu1 %v8008_v41 }
 0x1bc   :  { %5221 = vmatprep.subr.bf16.mxu0 %v8013_v34  ;;  %5754 = vmatprep.subr.bf16.mxu1 %v8016_v43 }
 0x1bf   :  { %5222 = vmatpush1.bf16.msra.mxu0 %v8011_v44  ;;  %5755 = vmatpush1.bf16.msra.mxu1 %v8014_v45 }
 0x1c0   :  { %5232 = vmatprep.subr.bf16.mxu0 %v8020_v46  ;;  %5765 = vmatprep.subr.bf16.mxu1 %v8023_v35 }
 0x1c2   :  { %5224 = vmatmul.mubr.bf16.vlgmr.msra.gmra.mrb[0].mxu0 %v10043_v48  ;;  %5757 = vmatmul.mubr.bf16.vlgmr.msra.gmra.mrb[0].mxu1 %v10043_v48 }
 0x1c3   :  { %5233 = vmatpush1.bf16.msra.mxu0 %v8018_v50  ;;  %5766 = vmatpush1.bf16.msra.mxu1 %v8021_v51 }
 0x1c4   :  { %5234 = vmatprep.subr.bf16.mxu0 %v8026_v53  ;;  %5767 = vmatprep.subr.bf16.mxu1 %v8029_v38 }
 0x1c5   :  { %5264 = vmatprep.mubr.bf16.mxu0 %v933_v54  ;;  %5797 = vmatprep.mubr.bf16.mxu1 %v933_v54 }
 0x1c7   :  { %5235 = vmatpush1.bf16.msra.mxu0 %v8024_v55  ;;  %5768 = vmatpush1.bf16.msra.mxu1 %v8027_v56 }
 0x1c8   :  { %5236 = vmatprep.subr.bf16.mxu0 %v8032_v47  ;;  %5769 = vmatprep.subr.bf16.mxu1 %v8035_v57 }
 0x1cb   :  { %5237 = vmatpush1.bf16.msra.mxu0 %v8030_v58  ;;  %5770 = vmatpush1.bf16.msra.mxu1 %v8033_v59 }
 0x1cc   :  { %5238 = vmatprep.subr.bf16.mxu0 %v8038_v60  ;;  %5771 = vmatprep.subr.bf16.mxu1 %v8041_v61 }
 0x1cf   :  { %5239 = vmatpush1.bf16.msra.mxu0 %v8036_v62  ;;  %5772 = vmatpush1.bf16.msra.mxu1 %v8039_v63 }
 0x1d0   :  { %5240 = vmatprep.subr.bf16.mxu0 %v8044_v0  ;;  %5773 = vmatprep.subr.bf16.mxu1 %v8047_v1 }
 0x1d3   :  { %5241 = vmatpush1.bf16.msra.mxu0 %v8042_v2  ;;  %5774 = vmatpush1.bf16.msra.mxu1 %v8045_v3 }
 0x1d4   :  { %5242 = vmatprep.subr.bf16.mxu0 %v8050_v4  ;;  %5775 = vmatprep.subr.bf16.mxu1 %v8053_v5 }
 0x1d7   :  { %5243 = vmatpush1.bf16.msra.mxu0 %v8048_v6  ;;  %5776 = vmatpush1.bf16.msra.mxu1 %v8051_v7 }
 0x1d8   :  { %5244 = vmatprep.subr.bf16.mxu0 %v8056_v8  ;;  %5777 = vmatprep.subr.bf16.mxu1 %v8059_v9 }
 0x1db   :  { %5245 = vmatpush1.bf16.msra.mxu0 %v8054_v10  ;;  %5778 = vmatpush1.bf16.msra.mxu1 %v8057_v11 }
 0x1dc   :  { %5246 = vmatprep.subr.bf16.mxu0 %v8062_v12  ;;  %5779 = vmatprep.subr.bf16.mxu1 %v8065_v52 }
 0x1df   :  { %5247 = vmatpush1.bf16.msra.mxu0 %v8060_v15  ;;  %5780 = vmatpush1.bf16.msra.mxu1 %v8063_v16 }
 0x1e0   :  { %5248 = vmatprep.subr.bf16.mxu0 %v8068_v17  ;;  %5781 = vmatprep.subr.bf16.mxu1 %v8071_v18 }
 0x1e3   :  { %5249 = vmatpush1.bf16.msra.mxu0 %v8066_v19  ;;  %5782 = vmatpush1.bf16.msra.mxu1 %v8069_v20 }
 0x1e4   :  { %5250 = vmatprep.subr.bf16.mxu0 %v8074_v22  ;;  %5783 = vmatprep.subr.bf16.mxu1 %v8077_v23 }
 0x1e7   :  { %5251 = vmatpush1.bf16.msra.mxu0 %v8072_v24  ;;  %5784 = vmatpush1.bf16.msra.mxu1 %v8075_v13 }
 0x1e8   :  { %5252 = vmatprep.subr.bf16.mxu0 %v8080_v27  ;;  %5785 = vmatprep.subr.bf16.mxu1 %v8083_v28 }
 0x1e9   :  { %10 = vsyncpa [#allocation3], 0  ;;  %v8084_v25 = vld [vmem:[%s11224_s1 + $0xf60] ss:$16 sps:$4 sm:$0xff]   ;;  %v8087_v32 = vld [vmem:[%s11224_s1 + $0xf68] ss:$16 sps:$4 sm:$0xff]   ;;  %v931_v47 = vcombine.high %v10043_v48, %v10043_v48 }
 0x1ea   :  { %v8092_v33 = vld [vmem:[%s11224_s1 + $0xf84] ss:$16 sps:$4 sm:$0xff]   ;;  %v8095_v26 = vld [vmem:[%s11224_s1 + $0xf8c] ss:$16 sps:$4 sm:$0xff]   ;;  %v8090_v36 = vld [vmem:[%s11224_s1 + $0xf80] ss:$16 sps:$4 sm:$0xff]  }
 0x1eb   :  { %5253 = vmatpush1.bf16.msra.mxu0 %v8078_v29  ;;  %5786 = vmatpush1.bf16.msra.mxu1 %v8081_v14  ;;  %v8093_v37 = vld [vmem:[%s11224_s1 + $0xf88] ss:$16 sps:$4 sm:$0xff]   ;;  %v8098_v21 = vld [vmem:[%s11224_s1 + $0xfa4] ss:$16 sps:$4 sm:$0xff]   ;;  %v8101_v39 = vld [vmem:[%s11224_s1 + $0xfac] ss:$16 sps:$4 sm:$0xff]  }
 0x1ec   :  { %5254 = vmatprep.subr.bf16.mxu0 %v8086_v30  ;;  %5787 = vmatprep.subr.bf16.mxu1 %v8089_v31  ;;  %v8096_v40 = vld [vmem:[%s11224_s1 + $0xfa0] ss:$16 sps:$4 sm:$0xff]   ;;  %v8099_v41 = vld [vmem:[%s11224_s1 + $0xfa8] ss:$16 sps:$4 sm:$0xff]   ;;  %v8104_v34 = vld [vmem:[%s11224_s1 + $0xfc4] ss:$16 sps:$4 sm:$0xff]  }
 0x1ed   :  { %v8107_v43 = vld [vmem:[%s11224_s1 + $0xfcc] ss:$16 sps:$4 sm:$0xff]   ;;  %v10220_v44 = vld [vmem:[%s11223_s0 + $0x10] sm:$0xff]  ;;  %v8105_v46 = vld [vmem:[%s11224_s1 + $0xfc8] ss:$16 sps:$4 sm:$0xff]   ;;  %vm4941_vm0 = vcmask 523264  }
 0x1ee   :  { %v8102_v45 = vld [vmem:[%s11224_s1 + $0xfc0] ss:$16 sps:$4 sm:$0xff]   ;;  %v8110_v35 = vld [vmem:[%s11224_s1 + $0xfe4] ss:$16 sps:$4 sm:$0xff]   ;;  %v8113_v50 = vld [vmem:[%s11224_s1 + $0xfec] ss:$16 sps:$4 sm:$0xff]   ;;  %v10236_v51 = vrot.slane %v10220_v44, %v8749_v49 }
 0x1ef   :  { %5255 = vmatpush1.bf16.msra.mxu0 %v8084_v25  ;;  %5788 = vmatpush1.bf16.msra.mxu1 %v8087_v32  ;;  %v8108_v53 = vld [vmem:[%s11224_s1 + $0xfe0] ss:$16 sps:$4 sm:$0xff]   ;;  %v8111_v38 = vld [vmem:[%s11224_s1 + $0xfe8] ss:$16 sps:$4 sm:$0xff]   ;;  %v8116_v54 = vld [vmem:[%s11224_s1 + $0x1004] ss:$16 sps:$4 sm:$0xff]  }
 0x1f0   :  { %5256 = vmatprep.subr.bf16.mxu0 %v8092_v33  ;;  %5789 = vmatprep.subr.bf16.mxu1 %v8095_v26  ;;  %v8119_v55 = vld [vmem:[%s11224_s1 + $0x100c] ss:$16 sps:$4 sm:$0xff]   ;;  %v949_v56 = vcombine.high %v10236_v51, %v10236_v51  ;;  %v8114_v57 = vld [vmem:[%s11224_s1 + $0x1000] ss:$16 sps:$4 sm:$0xff]   ;;  %v8117_v58 = vld [vmem:[%s11224_s1 + $0x1008] ss:$16 sps:$4 sm:$0xff]  }
 0x1f1   :  { %v8122_v59 = vld [vmem:[%s11224_s1 + $0x1024] ss:$16 sps:$4 sm:$0xff]   ;;  %v8125_v48 = vld [vmem:[%s11224_s1 + $0x102c] ss:$16 sps:$4 sm:$0xff]   ;;  %v8120_v61 = vld [vmem:[%s11224_s1 + $0x1020] ss:$16 sps:$4 sm:$0xff]  }
 0x1f2   :  { %v10267_v60 = vrot.slane %v949_v56, %v8749_v49  ;;  %v8123_v62 = vld [vmem:[%s11224_s1 + $0x1028] ss:$16 sps:$4 sm:$0xff]   ;;  %v8128_v63 = vld [vmem:[%s11224_s1 + $0x1044] ss:$16 sps:$4 sm:$0xff]   ;;  %v8131_v0 = vld [vmem:[%s11224_s1 + $0x104c] ss:$16 sps:$4 sm:$0xff]  }
 0x1f3   :  { %5257 = vmatpush1.bf16.msra.mxu0 %v8090_v36  ;;  %5790 = vmatpush1.bf16.msra.mxu1 %v8093_v37  ;;  %v8126_v1 = vld [vmem:[%s11224_s1 + $0x1040] ss:$16 sps:$4 sm:$0xff]   ;;  %v8129_v2 = vld [vmem:[%s11224_s1 + $0x1048] ss:$16 sps:$4 sm:$0xff]   ;;  %v8134_v3 = vld [vmem:[%s11224_s1 + $0x1064] ss:$16 sps:$4 sm:$0xff]  }
 0x1f4   :  { %5258 = vmatprep.subr.bf16.mxu0 %v8098_v21  ;;  %5791 = vmatprep.subr.bf16.mxu1 %v8101_v39  ;;  %v8137_v4 = vld [vmem:[%s11224_s1 + $0x106c] ss:$16 sps:$4 sm:$0xff]   ;;  %v8132_v5 = vld [vmem:[%s11224_s1 + $0x1060] ss:$16 sps:$4 sm:$0xff]   ;;  %v8135_v6 = vld [vmem:[%s11224_s1 + $0x1068] ss:$16 sps:$4 sm:$0xff]  }
 0x1f5   :  { %v8140_v7 = vld [vmem:[%s11224_s1 + $0x1084] ss:$16 sps:$4 sm:$0xff]   ;;  %v8143_v8 = vld [vmem:[%s11224_s1 + $0x108c] ss:$16 sps:$4 sm:$0xff]   ;;  %v8138_v9 = vld [vmem:[%s11224_s1 + $0x1080] ss:$16 sps:$4 sm:$0xff]  }
 0x1f6   :  { %v8141_v10 = vld [vmem:[%s11224_s1 + $0x1088] ss:$16 sps:$4 sm:$0xff]   ;;  %v8146_v11 = vld [vmem:[%s11224_s1 + $0x10a4] ss:$16 sps:$4 sm:$0xff]   ;;  %v8149_v12 = vld [vmem:[%s11224_s1 + $0x10ac] ss:$16 sps:$4 sm:$0xff]  }
 0x1f7   :  { %5259 = vmatpush1.bf16.msra.mxu0 %v8096_v40  ;;  %5792 = vmatpush1.bf16.msra.mxu1 %v8099_v41  ;;  %v8144_v52 = vld [vmem:[%s11224_s1 + $0x10a0] ss:$16 sps:$4 sm:$0xff]   ;;  %v8147_v15 = vld [vmem:[%s11224_s1 + $0x10a8] ss:$16 sps:$4 sm:$0xff]   ;;  %v8152_v16 = vld [vmem:[%s11224_s1 + $0x10c4] ss:$16 sps:$4 sm:$0xff]  }
 0x1f8   :  { %5260 = vmatprep.subr.bf16.mxu0 %v8104_v34  ;;  %5793 = vmatprep.subr.bf16.mxu1 %v8107_v43  ;;  %v8155_v17 = vld [vmem:[%s11224_s1 + $0x10cc] ss:$16 sps:$4 sm:$0xff]   ;;  %v8150_v18 = vld [vmem:[%s11224_s1 + $0x10c0] ss:$16 sps:$4 sm:$0xff]   ;;  %v8153_v19 = vld [vmem:[%s11224_s1 + $0x10c8] ss:$16 sps:$4 sm:$0xff]  }
 0x1f9   :  { %v8158_v20 = vld [vmem:[%s11224_s1 + $0x10e4] ss:$16 sps:$4 sm:$0xff]   ;;  %v8161_v22 = vld [vmem:[%s11224_s1 + $0x10ec] ss:$16 sps:$4 sm:$0xff]   ;;  %v8156_v23 = vld [vmem:[%s11224_s1 + $0x10e0] ss:$16 sps:$4 sm:$0xff]  }
 0x1fa   :  { %v8159_v24 = vld [vmem:[%s11224_s1 + $0x10e8] ss:$16 sps:$4 sm:$0xff]   ;;  %v8164_v13 = vld [vmem:[%s11224_s1 + $0x1104] ss:$16 sps:$4 sm:$0xff]   ;;  %v8167_v27 = vld [vmem:[%s11224_s1 + $0x110c] ss:$16 sps:$4 sm:$0xff]  }
 0x1fb   :  { %5261 = vmatpush1.bf16.msra.mxu0 %v8102_v45  ;;  %5794 = vmatpush1.bf16.msra.mxu1 %v8105_v46  ;;  %v8162_v28 = vld [vmem:[%s11224_s1 + $0x1100] ss:$16 sps:$4 sm:$0xff]   ;;  %v8165_v29 = vld [vmem:[%s11224_s1 + $0x1108] ss:$16 sps:$4 sm:$0xff]   ;;  %v8170_v14 = vld [vmem:[%s11224_s1 + $0x1124] ss:$16 sps:$4 sm:$0xff]  }
 0x1fc   :  { %5262 = vmatprep.subr.bf16.mxu0 %v8110_v35  ;;  %5795 = vmatprep.subr.bf16.mxu1 %v8113_v50  ;;  %v8173_v30 = vld [vmem:[%s11224_s1 + $0x112c] ss:$16 sps:$4 sm:$0xff]   ;;  %v8168_v31 = vld [vmem:[%s11224_s1 + $0x1120] ss:$16 sps:$4 sm:$0xff]   ;;  %v8171_v25 = vld [vmem:[%s11224_s1 + $0x1128] ss:$16 sps:$4 sm:$0xff]  }
 0x1fd   :  { %v8176_v32 = vld [vmem:[%s11224_s1 + $0x1144] ss:$16 sps:$4 sm:$0xff]   ;;  %v8179_v33 = vld [vmem:[%s11224_s1 + $0x114c] ss:$16 sps:$4 sm:$0xff]   ;;  %v8174_v26 = vld [vmem:[%s11224_s1 + $0x1140] ss:$16 sps:$4 sm:$0xff]  }
 0x1fe   :  { %v8177_v36 = vld [vmem:[%s11224_s1 + $0x1148] ss:$16 sps:$4 sm:$0xff]   ;;  %v8182_v37 = vld [vmem:[%s11224_s1 + $0x1164] ss:$16 sps:$4 sm:$0xff]   ;;  %v8185_v21 = vld [vmem:[%s11224_s1 + $0x116c] ss:$16 sps:$4 sm:$0xff]  }
 0x1ff   :  { %5263 = vmatpush1.bf16.msra.mxu0 %v8108_v53  ;;  %5796 = vmatpush1.bf16.msra.mxu1 %v8111_v38  ;;  %v8180_v39 = vld [vmem:[%s11224_s1 + $0x1160] ss:$16 sps:$4 sm:$0xff]   ;;  %v8183_v40 = vld [vmem:[%s11224_s1 + $0x1168] ss:$16 sps:$4 sm:$0xff]   ;;  %v8188_v41 = vld [vmem:[%s11224_s1 + $0x1184] ss:$16 sps:$4 sm:$0xff]  }
 0x200   :  { %5273 = vmatprep.subr.bf16.mxu0 %v8116_v54  ;;  %5806 = vmatprep.subr.bf16.mxu1 %v8119_v55  ;;  %v8191_v34 = vld [vmem:[%s11224_s1 + $0x118c] ss:$16 sps:$4 sm:$0xff]   ;;  %v8186_v43 = vld [vmem:[%s11224_s1 + $0x1180] ss:$16 sps:$4 sm:$0xff]   ;;  %v8189_v45 = vld [vmem:[%s11224_s1 + $0x1188] ss:$16 sps:$4 sm:$0xff]  }
 0x201   :  { %v8194_v46 = vld [vmem:[%s11224_s1 + $0x11a4] ss:$16 sps:$4 sm:$0xff]   ;;  %v8197_v35 = vld [vmem:[%s11224_s1 + $0x11ac] ss:$16 sps:$4 sm:$0xff]   ;;  %v8192_v50 = vld [vmem:[%s11224_s1 + $0x11a0] ss:$16 sps:$4 sm:$0xff]  }
 0x202   :  { %5265 = vmatmul.mubr.bf16.vlgmr.msra.gmra.mrb[0].mxu0 %v931_v47  ;;  %5798 = vmatmul.mubr.bf16.vlgmr.msra.gmra.mrb[0].mxu1 %v931_v47  ;;  %v8195_v53 = vld [vmem:[%s11224_s1 + $0x11a8] ss:$16 sps:$4 sm:$0xff]   ;;  %v8200_v38 = vld [vmem:[%s11224_s1 + $0x11c4] ss:$16 sps:$4 sm:$0xff]   ;;  %v8203_v54 = vld [vmem:[%s11224_s1 + $0x11cc] ss:$16 sps:$4 sm:$0xff]  }
 0x203   :  { %5274 = vmatpush1.bf16.msra.mxu0 %v8114_v57  ;;  %5807 = vmatpush1.bf16.msra.mxu1 %v8117_v58  ;;  %v8198_v55 = vld [vmem:[%s11224_s1 + $0x11c0] ss:$16 sps:$4 sm:$0xff]   ;;  %v8201_v56 = vld [vmem:[%s11224_s1 + $0x11c8] ss:$16 sps:$4 sm:$0xff]   ;;  %v8206_v47 = vld [vmem:[%s11224_s1 + $0x11e4] ss:$16 sps:$4 sm:$0xff]  }
 0x204   :  { %5275 = vmatprep.subr.bf16.mxu0 %v8122_v59  ;;  %5808 = vmatprep.subr.bf16.mxu1 %v8125_v48  ;;  %v8209_v57 = vld [vmem:[%s11224_s1 + $0x11ec] ss:$16 sps:$4 sm:$0xff]   ;;  %v8204_v58 = vld [vmem:[%s11224_s1 + $0x11e0] ss:$16 sps:$4 sm:$0xff]   ;;  %v8207_v59 = vld [vmem:[%s11224_s1 + $0x11e8] ss:$16 sps:$4 sm:$0xff]  }
 0x205   :  { %5305 = vmatprep.mubr.bf16.mxu0 %v10267_v60  ;;  %5838 = vmatprep.mubr.bf16.mxu1 %v10267_v60  ;;  %v8212_v48 = vld [vmem:[%s11224_s1 + $0x1204] ss:$16 sps:$4 sm:$0xff]   ;;  %s8583_s6 = smov [#allocation2]  }
 0x206   :  { %s6369_s7 = sshll.u32 %s8583_s6, 4  ;;  %s6370_s7 = int_to_ptr.vmem [resolvable:$true] %s6369_s7 }
 0x207   :  { %5276 = vmatpush1.bf16.msra.mxu0 %v8120_v61  ;;  %5809 = vmatpush1.bf16.msra.mxu1 %v8123_v62  ;;  %v8215_v61 = vld [vmem:[%s11224_s1 + $0x120c] ss:$16 sps:$4 sm:$0xff]   ;;  %v10453_v62 = vrot.slane %v10236_v51, %v8749_v49  ;;  %s8557_s8 = scalar_lea.vmem %s6370_s7, 32  ;;  %p8562_p1 = scmp.lt.s32.totalorder %s6370_s7, %s6370_s7 }
 0x208   :  { %5277 = vmatprep.subr.bf16.mxu0 %v8128_v63  ;;  %5810 = vmatprep.subr.bf16.mxu1 %v8131_v0  ;;  %v8210_v63 = vld [vmem:[%s11224_s1 + $0x1200] ss:$16 sps:$4 sm:$0xff]   ;;  %v8213_v0 = vld [vmem:[%s11224_s1 + $0x1208] ss:$16 sps:$4 sm:$0xff]   ;;  %v8221_v51 = vld [vmem:[%s11224_s1 + $0x122c] ss:$16 sps:$4 sm:$0xff]   ;;  %p8558_p0 = scmp.ne.s32.totalorder %s6370_s7, %s8557_s8  ;;  %p8563_p2 = scmp.lt.s32.totalorder %s8557_s8, %s8557_s8 }
 0x20a   :  { %p8564_p3 = por %p8563_p2, %p8562_p1 }
 0x20b   :  { %5278 = vmatpush1.bf16.msra.mxu0 %v8126_v1  ;;  %5811 = vmatpush1.bf16.msra.mxu1 %v8129_v2  ;;  %v8218_v1 = vld [vmem:[%s11224_s1 + $0x1224] ss:$16 sps:$4 sm:$0xff]   ;;  %v981_v2 = vcombine.high %v10267_v60, %v10267_v60 }
 0x20c   :  { %5279 = vmatprep.subr.bf16.mxu0 %v8134_v3  ;;  %5812 = vmatprep.subr.bf16.mxu1 %v8137_v4  ;;  %v8216_v3 = vld [vmem:[%s11224_s1 + $0x1220] ss:$16 sps:$4 sm:$0xff]   ;;  %v8219_v4 = vld [vmem:[%s11224_s1 + $0x1228] ss:$16 sps:$4 sm:$0xff]   ;;  %v8224_v60 = vld [vmem:[%s11224_s1 + $0x1244] ss:$16 sps:$4 sm:$0xff]   ;;  %p8565_p4 = pnand %p8564_p3, %p8558_p0 }
 0x20f   :  { %5280 = vmatpush1.bf16.msra.mxu0 %v8132_v5  ;;  %5813 = vmatpush1.bf16.msra.mxu1 %v8135_v6  ;;  %v8227_v5 = vld [vmem:[%s11224_s1 + $0x124c] ss:$16 sps:$4 sm:$0xff]   ;;  %v8222_v6 = vld [vmem:[%s11224_s1 + $0x1240] ss:$16 sps:$4 sm:$0xff]  }
 0x210   :  { %5281 = vmatprep.subr.bf16.mxu0 %v8140_v7  ;;  %5814 = vmatprep.subr.bf16.mxu1 %v8143_v8  ;;  %v8225_v7 = vld [vmem:[%s11224_s1 + $0x1248] ss:$16 sps:$4 sm:$0xff]   ;;  %v8230_v8 = vld [vmem:[%s11224_s1 + $0x1264] ss:$16 sps:$4 sm:$0xff]  }
 0x213   :  { %5282 = vmatpush1.bf16.msra.mxu0 %v8138_v9  ;;  %5815 = vmatpush1.bf16.msra.mxu1 %v8141_v10  ;;  %v8233_v9 = vld [vmem:[%s11224_s1 + $0x126c] ss:$16 sps:$4 sm:$0xff]   ;;  %v8228_v10 = vld [vmem:[%s11224_s1 + $0x1260] ss:$16 sps:$4 sm:$0xff]  }
 0x214   :  { %5283 = vmatprep.subr.bf16.mxu0 %v8146_v11  ;;  %5816 = vmatprep.subr.bf16.mxu1 %v8149_v12  ;;  %v8231_v11 = vld [vmem:[%s11224_s1 + $0x1268] ss:$16 sps:$4 sm:$0xff]   ;;  %v8236_v12 = vld [vmem:[%s11224_s1 + $0x1284] ss:$16 sps:$4 sm:$0xff]  }
 0x217   :  { %5284 = vmatpush1.bf16.msra.mxu0 %v8144_v52  ;;  %5817 = vmatpush1.bf16.msra.mxu1 %v8147_v15  ;;  %v8239_v52 = vld [vmem:[%s11224_s1 + $0x128c] ss:$16 sps:$4 sm:$0xff]   ;;  %v8234_v15 = vld [vmem:[%s11224_s1 + $0x1280] ss:$16 sps:$4 sm:$0xff]  }
 0x218   :  { %5285 = vmatprep.subr.bf16.mxu0 %v8152_v16  ;;  %5818 = vmatprep.subr.bf16.mxu1 %v8155_v17  ;;  %v8237_v16 = vld [vmem:[%s11224_s1 + $0x1288] ss:$16 sps:$4 sm:$0xff]   ;;  %v8242_v17 = vld [vmem:[%s11224_s1 + $0x12a4] ss:$16 sps:$4 sm:$0xff]  }
 0x21b   :  { %5286 = vmatpush1.bf16.msra.mxu0 %v8150_v18  ;;  %5819 = vmatpush1.bf16.msra.mxu1 %v8153_v19  ;;  %v8245_v18 = vld [vmem:[%s11224_s1 + $0x12ac] ss:$16 sps:$4 sm:$0xff]   ;;  %v8240_v19 = vld [vmem:[%s11224_s1 + $0x12a0] ss:$16 sps:$4 sm:$0xff]  }
 0x21c   :  { %5287 = vmatprep.subr.bf16.mxu0 %v8158_v20  ;;  %5820 = vmatprep.subr.bf16.mxu1 %v8161_v22  ;;  %v8243_v20 = vld [vmem:[%s11224_s1 + $0x12a8] ss:$16 sps:$4 sm:$0xff]   ;;  %v8248_v22 = vld [vmem:[%s11224_s1 + $0x12c4] ss:$16 sps:$4 sm:$0xff]  }
 0x21f   :  { %5288 = vmatpush1.bf16.msra.mxu0 %v8156_v23  ;;  %5821 = vmatpush1.bf16.msra.mxu1 %v8159_v24  ;;  %v8251_v23 = vld [vmem:[%s11224_s1 + $0x12cc] ss:$16 sps:$4 sm:$0xff]   ;;  %v8246_v24 = vld [vmem:[%s11224_s1 + $0x12c0] ss:$16 sps:$4 sm:$0xff]  }
 0x220   :  { %5289 = vmatprep.subr.bf16.mxu0 %v8164_v13  ;;  %5822 = vmatprep.subr.bf16.mxu1 %v8167_v27  ;;  %v8249_v13 = vld [vmem:[%s11224_s1 + $0x12c8] ss:$16 sps:$4 sm:$0xff]   ;;  %v8254_v27 = vld [vmem:[%s11224_s1 + $0x12e4] ss:$16 sps:$4 sm:$0xff]  }
 0x223   :  { %5290 = vmatpush1.bf16.msra.mxu0 %v8162_v28  ;;  %5823 = vmatpush1.bf16.msra.mxu1 %v8165_v29  ;;  %v8257_v28 = vld [vmem:[%s11224_s1 + $0x12ec] ss:$16 sps:$4 sm:$0xff]   ;;  %v8252_v29 = vld [vmem:[%s11224_s1 + $0x12e0] ss:$16 sps:$4 sm:$0xff]  }
 0x224   :  { %5291 = vmatprep.subr.bf16.mxu0 %v8170_v14  ;;  %5824 = vmatprep.subr.bf16.mxu1 %v8173_v30  ;;  %v8255_v14 = vld [vmem:[%s11224_s1 + $0x12e8] ss:$16 sps:$4 sm:$0xff]   ;;  %v8260_v30 = vld [vmem:[%s11224_s1 + $0x1304] ss:$16 sps:$4 sm:$0xff]  }
 0x227   :  { %5292 = vmatpush1.bf16.msra.mxu0 %v8168_v31  ;;  %5825 = vmatpush1.bf16.msra.mxu1 %v8171_v25  ;;  %v8263_v31 = vld [vmem:[%s11224_s1 + $0x130c] ss:$16 sps:$4 sm:$0xff]   ;;  %v8258_v25 = vld [vmem:[%s11224_s1 + $0x1300] ss:$16 sps:$4 sm:$0xff]  }
 0x228   :  { %5293 = vmatprep.subr.bf16.mxu0 %v8176_v32  ;;  %5826 = vmatprep.subr.bf16.mxu1 %v8179_v33  ;;  %v8261_v32 = vld [vmem:[%s11224_s1 + $0x1308] ss:$16 sps:$4 sm:$0xff]   ;;  %v8266_v33 = vld [vmem:[%s11224_s1 + $0x1324] ss:$16 sps:$4 sm:$0xff]  }
 0x22b   :  { %5294 = vmatpush1.bf16.msra.mxu0 %v8174_v26  ;;  %5827 = vmatpush1.bf16.msra.mxu1 %v8177_v36  ;;  %v8269_v26 = vld [vmem:[%s11224_s1 + $0x132c] ss:$16 sps:$4 sm:$0xff]   ;;  %v8264_v36 = vld [vmem:[%s11224_s1 + $0x1320] ss:$16 sps:$4 sm:$0xff]  }
 0x22c   :  { %5295 = vmatprep.subr.bf16.mxu0 %v8182_v37  ;;  %5828 = vmatprep.subr.bf16.mxu1 %v8185_v21  ;;  %v8267_v37 = vld [vmem:[%s11224_s1 + $0x1328] ss:$16 sps:$4 sm:$0xff]   ;;  %v8272_v21 = vld [vmem:[%s11224_s1 + $0x1344] ss:$16 sps:$4 sm:$0xff]  }
 0x22f   :  { %5296 = vmatpush1.bf16.msra.mxu0 %v8180_v39  ;;  %5829 = vmatpush1.bf16.msra.mxu1 %v8183_v40  ;;  %v8275_v39 = vld [vmem:[%s11224_s1 + $0x134c] ss:$16 sps:$4 sm:$0xff]   ;;  %v8270_v40 = vld [vmem:[%s11224_s1 + $0x1340] ss:$16 sps:$4 sm:$0xff]  }
 0x230   :  { %5297 = vmatprep.subr.bf16.mxu0 %v8188_v41  ;;  %5830 = vmatprep.subr.bf16.mxu1 %v8191_v34  ;;  %v8273_v41 = vld [vmem:[%s11224_s1 + $0x1348] ss:$16 sps:$4 sm:$0xff]   ;;  %v8278_v34 = vld [vmem:[%s11224_s1 + $0x1364] ss:$16 sps:$4 sm:$0xff]  }
 0x233   :  { %5298 = vmatpush1.bf16.msra.mxu0 %v8186_v43  ;;  %5831 = vmatpush1.bf16.msra.mxu1 %v8189_v45  ;;  %v8281_v43 = vld [vmem:[%s11224_s1 + $0x136c] ss:$16 sps:$4 sm:$0xff]   ;;  %v8276_v45 = vld [vmem:[%s11224_s1 + $0x1360] ss:$16 sps:$4 sm:$0xff]  }
 0x234   :  { %5299 = vmatprep.subr.bf16.mxu0 %v8194_v46  ;;  %5832 = vmatprep.subr.bf16.mxu1 %v8197_v35  ;;  %v8279_v46 = vld [vmem:[%s11224_s1 + $0x1368] ss:$16 sps:$4 sm:$0xff]   ;;  %v8284_v35 = vld [vmem:[%s11224_s1 + $0x1384] ss:$16 sps:$4 sm:$0xff]  }
 0x237   :  { %5300 = vmatpush1.bf16.msra.mxu0 %v8192_v50  ;;  %5833 = vmatpush1.bf16.msra.mxu1 %v8195_v53  ;;  %v8287_v50 = vld [vmem:[%s11224_s1 + $0x138c] ss:$16 sps:$4 sm:$0xff]   ;;  %v8282_v53 = vld [vmem:[%s11224_s1 + $0x1380] ss:$16 sps:$4 sm:$0xff]  }
 0x238   :  { %5301 = vmatprep.subr.bf16.mxu0 %v8200_v38  ;;  %5834 = vmatprep.subr.bf16.mxu1 %v8203_v54  ;;  %v8285_v38 = vld [vmem:[%s11224_s1 + $0x1388] ss:$16 sps:$4 sm:$0xff]   ;;  %v8290_v54 = vld [vmem:[%s11224_s1 + $0x13a4] ss:$16 sps:$4 sm:$0xff]  }
 0x23b   :  { %5302 = vmatpush1.bf16.msra.mxu0 %v8198_v55  ;;  %5835 = vmatpush1.bf16.msra.mxu1 %v8201_v56  ;;  %v8293_v55 = vld [vmem:[%s11224_s1 + $0x13ac] ss:$16 sps:$4 sm:$0xff]   ;;  %v8288_v56 = vld [vmem:[%s11224_s1 + $0x13a0] ss:$16 sps:$4 sm:$0xff]  }
 0x23c   :  { %5303 = vmatprep.subr.bf16.mxu0 %v8206_v47  ;;  %5836 = vmatprep.subr.bf16.mxu1 %v8209_v57  ;;  %v8291_v47 = vld [vmem:[%s11224_s1 + $0x13a8] ss:$16 sps:$4 sm:$0xff]   ;;  %v8296_v57 = vld [vmem:[%s11224_s1 + $0x13c4] ss:$16 sps:$4 sm:$0xff]  }
 0x23f   :  { %5304 = vmatpush1.bf16.msra.mxu0 %v8204_v58  ;;  %5837 = vmatpush1.bf16.msra.mxu1 %v8207_v59  ;;  %v8299_v58 = vld [vmem:[%s11224_s1 + $0x13cc] ss:$16 sps:$4 sm:$0xff]   ;;  %v934_v59 = vcombine.high %v10220_v44, %v10220_v44 }
 0x240   :  { %5314 = vmatprep.subr.bf16.mxu0 %v8212_v48  ;;  %5847 = vmatprep.subr.bf16.mxu1 %v8215_v61  ;;  %v8294_v48 = vld [vmem:[%s11224_s1 + $0x13c0] ss:$16 sps:$4 sm:$0xff]   ;;  %v8297_v61 = vld [vmem:[%s11224_s1 + $0x13c8] ss:$16 sps:$4 sm:$0xff]   ;;  %v8305_v44 = vld [vmem:[%s11224_s1 + $0x13ec] ss:$16 sps:$4 sm:$0xff]  }
 0x242   :  { %5306 = vmatmul.mubr.bf16.vlgmr.msra.gmra.mrb[0].mxu0 %v10453_v62  ;;  %5839 = vmatmul.mubr.bf16.vlgmr.msra.gmra.mrb[0].mxu1 %v10453_v62 }
 0x243   :  { %5315 = vmatpush1.bf16.msra.mxu0 %v8210_v63  ;;  %5848 = vmatpush1.bf16.msra.mxu1 %v8213_v0  ;;  %v8302_v63 = vld [vmem:[%s11224_s1 + $0x13e4] ss:$16 sps:$4 sm:$0xff]   ;;  %v10642_v0 = vrot.slane %v934_v59, %v8749_v49  ;;  %v8381_v59 = vld [vmem:[%s11224_s1 + $0x1588] ss:$16 sps:$4 sm:$0xff]  }
 0x244   :  { %5316 = vmatprep.subr.bf16.mxu0 %v8218_v1  ;;  %5849 = vmatprep.subr.bf16.mxu1 %v8221_v51  ;;  %v8300_v1 = vld [vmem:[%s11224_s1 + $0x13e0] ss:$16 sps:$4 sm:$0xff]   ;;  %v8303_v51 = vld [vmem:[%s11224_s1 + $0x13e8] ss:$16 sps:$4 sm:$0xff]  }
 0x245   :  { %5346 = vmatprep.mubr.bf16.mxu0 %v981_v2  ;;  %5879 = vmatprep.mubr.bf16.mxu1 %v981_v2  ;;  %v8308_v2 = vld [vmem:[%s11224_s1 + $0x1404] ss:$16 sps:$4 sm:$0xff]  }
 0x247   :  { %5317 = vmatpush1.bf16.msra.mxu0 %v8216_v3  ;;  %5850 = vmatpush1.bf16.msra.mxu1 %v8219_v4  ;;  %v8311_v3 = vld [vmem:[%s11224_s1 + $0x140c] ss:$16 sps:$4 sm:$0xff]   ;;  %v950_v4 = vcombine.high %v10642_v0, %v10642_v0 }
 0x248   :  { %5318 = vmatprep.subr.bf16.mxu0 %v8224_v60  ;;  %5851 = vmatprep.subr.bf16.mxu1 %v8227_v5  ;;  %v979_v60 = vcombine.high %v10453_v62, %v10453_v62  ;;  %v8306_v5 = vld [vmem:[%s11224_s1 + $0x1400] ss:$16 sps:$4 sm:$0xff]   ;;  %v8317_v62 = vld [vmem:[%s11224_s1 + $0x142c] ss:$16 sps:$4 sm:$0xff]  }
 0x24b   :  { %5319 = vmatpush1.bf16.msra.mxu0 %v8222_v6  ;;  %5852 = vmatpush1.bf16.msra.mxu1 %v8225_v7  ;;  %v8309_v6 = vld [vmem:[%s11224_s1 + $0x1408] ss:$16 sps:$4 sm:$0xff]   ;;  %v8314_v7 = vld [vmem:[%s11224_s1 + $0x1424] ss:$16 sps:$4 sm:$0xff]  }
 0x24c   :  { %5320 = vmatprep.subr.bf16.mxu0 %v8230_v8  ;;  %5853 = vmatprep.subr.bf16.mxu1 %v8233_v9  ;;  %v10673_v8 = vrot.slane %v950_v4, %v8749_v49  ;;  %v8312_v9 = vld [vmem:[%s11224_s1 + $0x1420] ss:$16 sps:$4 sm:$0xff]   ;;  %v8398_v4 = vld [vmem:[%s11224_s1 + $0x15e4] ss:$16 sps:$4 sm:$0xff]  }
 0x24f   :  { %5321 = vmatpush1.bf16.msra.mxu0 %v8228_v10  ;;  %5854 = vmatpush1.bf16.msra.mxu1 %v8231_v11  ;;  %v8315_v10 = vld [vmem:[%s11224_s1 + $0x1428] ss:$16 sps:$4 sm:$0xff]   ;;  %v8320_v11 = vld [vmem:[%s11224_s1 + $0x1444] ss:$16 sps:$4 sm:$0xff]  }
 0x250   :  { %5322 = vmatprep.subr.bf16.mxu0 %v8236_v12  ;;  %5855 = vmatprep.subr.bf16.mxu1 %v8239_v52  ;;  %v8323_v12 = vld [vmem:[%s11224_s1 + $0x144c] ss:$16 sps:$4 sm:$0xff]   ;;  %v8318_v52 = vld [vmem:[%s11224_s1 + $0x1440] ss:$16 sps:$4 sm:$0xff]  }
 0x253   :  { %5323 = vmatpush1.bf16.msra.mxu0 %v8234_v15  ;;  %5856 = vmatpush1.bf16.msra.mxu1 %v8237_v16  ;;  %v8321_v15 = vld [vmem:[%s11224_s1 + $0x1448] ss:$16 sps:$4 sm:$0xff]   ;;  %v8326_v16 = vld [vmem:[%s11224_s1 + $0x1464] ss:$16 sps:$4 sm:$0xff]  }
 0x254   :  { %5324 = vmatprep.subr.bf16.mxu0 %v8242_v17  ;;  %5857 = vmatprep.subr.bf16.mxu1 %v8245_v18  ;;  %v8329_v17 = vld [vmem:[%s11224_s1 + $0x146c] ss:$16 sps:$4 sm:$0xff]   ;;  %v8324_v18 = vld [vmem:[%s11224_s1 + $0x1460] ss:$16 sps:$4 sm:$0xff]  }
 0x257   :  { %5325 = vmatpush1.bf16.msra.mxu0 %v8240_v19  ;;  %5858 = vmatpush1.bf16.msra.mxu1 %v8243_v20  ;;  %v8327_v19 = vld [vmem:[%s11224_s1 + $0x1468] ss:$16 sps:$4 sm:$0xff]   ;;  %v8332_v20 = vld [vmem:[%s11224_s1 + $0x1484] ss:$16 sps:$4 sm:$0xff]  }
 0x258   :  { %5326 = vmatprep.subr.bf16.mxu0 %v8248_v22  ;;  %5859 = vmatprep.subr.bf16.mxu1 %v8251_v23  ;;  %v8335_v22 = vld [vmem:[%s11224_s1 + $0x148c] ss:$16 sps:$4 sm:$0xff]   ;;  %v8330_v23 = vld [vmem:[%s11224_s1 + $0x1480] ss:$16 sps:$4 sm:$0xff]  }
 0x25b   :  { %5327 = vmatpush1.bf16.msra.mxu0 %v8246_v24  ;;  %5860 = vmatpush1.bf16.msra.mxu1 %v8249_v13  ;;  %v8333_v24 = vld [vmem:[%s11224_s1 + $0x1488] ss:$16 sps:$4 sm:$0xff]   ;;  %v8338_v13 = vld [vmem:[%s11224_s1 + $0x14a4] ss:$16 sps:$4 sm:$0xff]  }
 0x25c   :  { %5328 = vmatprep.subr.bf16.mxu0 %v8254_v27  ;;  %5861 = vmatprep.subr.bf16.mxu1 %v8257_v28  ;;  %v8341_v27 = vld [vmem:[%s11224_s1 + $0x14ac] ss:$16 sps:$4 sm:$0xff]   ;;  %v8336_v28 = vld [vmem:[%s11224_s1 + $0x14a0] ss:$16 sps:$4 sm:$0xff]  }
 0x25f   :  { %5329 = vmatpush1.bf16.msra.mxu0 %v8252_v29  ;;  %5862 = vmatpush1.bf16.msra.mxu1 %v8255_v14  ;;  %v8339_v29 = vld [vmem:[%s11224_s1 + $0x14a8] ss:$16 sps:$4 sm:$0xff]   ;;  %v8344_v14 = vld [vmem:[%s11224_s1 + $0x14c4] ss:$16 sps:$4 sm:$0xff]  }
 0x260   :  { %5330 = vmatprep.subr.bf16.mxu0 %v8260_v30  ;;  %5863 = vmatprep.subr.bf16.mxu1 %v8263_v31  ;;  %v8347_v30 = vld [vmem:[%s11224_s1 + $0x14cc] ss:$16 sps:$4 sm:$0xff]   ;;  %v8342_v31 = vld [vmem:[%s11224_s1 + $0x14c0] ss:$16 sps:$4 sm:$0xff]  }
 0x263   :  { %5331 = vmatpush1.bf16.msra.mxu0 %v8258_v25  ;;  %5864 = vmatpush1.bf16.msra.mxu1 %v8261_v32  ;;  %v8345_v25 = vld [vmem:[%s11224_s1 + $0x14c8] ss:$16 sps:$4 sm:$0xff]   ;;  %v8350_v32 = vld [vmem:[%s11224_s1 + $0x14e4] ss:$16 sps:$4 sm:$0xff]  }
 0x264   :  { %5332 = vmatprep.subr.bf16.mxu0 %v8266_v33  ;;  %5865 = vmatprep.subr.bf16.mxu1 %v8269_v26  ;;  %v8353_v33 = vld [vmem:[%s11224_s1 + $0x14ec] ss:$16 sps:$4 sm:$0xff]   ;;  %v8348_v26 = vld [vmem:[%s11224_s1 + $0x14e0] ss:$16 sps:$4 sm:$0xff]  }
 0x267   :  { %5333 = vmatpush1.bf16.msra.mxu0 %v8264_v36  ;;  %5866 = vmatpush1.bf16.msra.mxu1 %v8267_v37  ;;  %v8351_v36 = vld [vmem:[%s11224_s1 + $0x14e8] ss:$16 sps:$4 sm:$0xff]   ;;  %v8356_v37 = vld [vmem:[%s11224_s1 + $0x1504] ss:$16 sps:$4 sm:$0xff]  }
 0x268   :  { %5334 = vmatprep.subr.bf16.mxu0 %v8272_v21  ;;  %5867 = vmatprep.subr.bf16.mxu1 %v8275_v39  ;;  %v8359_v21 = vld [vmem:[%s11224_s1 + $0x150c] ss:$16 sps:$4 sm:$0xff]   ;;  %v8354_v39 = vld [vmem:[%s11224_s1 + $0x1500] ss:$16 sps:$4 sm:$0xff]  }
 0x26b   :  { %5335 = vmatpush1.bf16.msra.mxu0 %v8270_v40  ;;  %5868 = vmatpush1.bf16.msra.mxu1 %v8273_v41  ;;  %v8357_v40 = vld [vmem:[%s11224_s1 + $0x1508] ss:$16 sps:$4 sm:$0xff]   ;;  %v8362_v41 = vld [vmem:[%s11224_s1 + $0x1524] ss:$16 sps:$4 sm:$0xff]  }
 0x26c   :  { %5336 = vmatprep.subr.bf16.mxu0 %v8278_v34  ;;  %5869 = vmatprep.subr.bf16.mxu1 %v8281_v43  ;;  %v8365_v34 = vld [vmem:[%s11224_s1 + $0x152c] ss:$16 sps:$4 sm:$0xff]   ;;  %v8360_v43 = vld [vmem:[%s11224_s1 + $0x1520] ss:$16 sps:$4 sm:$0xff]  }
 0x26f   :  { %5337 = vmatpush1.bf16.msra.mxu0 %v8276_v45  ;;  %5870 = vmatpush1.bf16.msra.mxu1 %v8279_v46  ;;  %v8363_v45 = vld [vmem:[%s11224_s1 + $0x1528] ss:$16 sps:$4 sm:$0xff]   ;;  %v8368_v46 = vld [vmem:[%s11224_s1 + $0x1544] ss:$16 sps:$4 sm:$0xff]  }
 0x270   :  { %5338 = vmatprep.subr.bf16.mxu0 %v8284_v35  ;;  %5871 = vmatprep.subr.bf16.mxu1 %v8287_v50  ;;  %v8371_v35 = vld [vmem:[%s11224_s1 + $0x154c] ss:$16 sps:$4 sm:$0xff]   ;;  %v8366_v50 = vld [vmem:[%s11224_s1 + $0x1540] ss:$16 sps:$4 sm:$0xff]  }
 0x273   :  { %5339 = vmatpush1.bf16.msra.mxu0 %v8282_v53  ;;  %5872 = vmatpush1.bf16.msra.mxu1 %v8285_v38  ;;  %v8369_v53 = vld [vmem:[%s11224_s1 + $0x1548] ss:$16 sps:$4 sm:$0xff]   ;;  %v8374_v38 = vld [vmem:[%s11224_s1 + $0x1564] ss:$16 sps:$4 sm:$0xff]  }
 0x274   :  { %5340 = vmatprep.subr.bf16.mxu0 %v8290_v54  ;;  %5873 = vmatprep.subr.bf16.mxu1 %v8293_v55  ;;  %v8377_v54 = vld [vmem:[%s11224_s1 + $0x156c] ss:$16 sps:$4 sm:$0xff]   ;;  %v8372_v55 = vld [vmem:[%s11224_s1 + $0x1560] ss:$16 sps:$4 sm:$0xff]  }
 0x277   :  { %5341 = vmatpush1.bf16.msra.mxu0 %v8288_v56  ;;  %5874 = vmatpush1.bf16.msra.mxu1 %v8291_v47  ;;  %v8375_v56 = vld [vmem:[%s11224_s1 + $0x1568] ss:$16 sps:$4 sm:$0xff]   ;;  %v8380_v47 = vld [vmem:[%s11224_s1 + $0x1584] ss:$16 sps:$4 sm:$0xff]  }
 0x278   :  { %5342 = vmatprep.subr.bf16.mxu0 %v8296_v57  ;;  %5875 = vmatprep.subr.bf16.mxu1 %v8299_v58  ;;  %v8383_v57 = vld [vmem:[%s11224_s1 + $0x158c] ss:$16 sps:$4 sm:$0xff]   ;;  %v8378_v58 = vld [vmem:[%s11224_s1 + $0x1580] ss:$16 sps:$4 sm:$0xff]  }
 0x27b   :  { %5343 = vmatpush1.bf16.msra.mxu0 %v8294_v48  ;;  %5876 = vmatpush1.bf16.msra.mxu1 %v8297_v61  ;;  %v8386_v48 = vld [vmem:[%s11224_s1 + $0x15a4] ss:$16 sps:$4 sm:$0xff]   ;;  %v8389_v61 = vld [vmem:[%s11224_s1 + $0x15ac] ss:$16 sps:$4 sm:$0xff]  }
 0x27c   :  { %5344 = vmatprep.subr.bf16.mxu0 %v8302_v63  ;;  %5877 = vmatprep.subr.bf16.mxu1 %v8305_v44  ;;  %v8384_v63 = vld [vmem:[%s11224_s1 + $0x15a0] ss:$16 sps:$4 sm:$0xff]   ;;  %v8387_v44 = vld [vmem:[%s11224_s1 + $0x15a8] ss:$16 sps:$4 sm:$0xff]  }
 0x27f   :  { %5345 = vmatpush1.bf16.msra.mxu0 %v8300_v1  ;;  %5878 = vmatpush1.bf16.msra.mxu1 %v8303_v51  ;;  %v8392_v1 = vld [vmem:[%s11224_s1 + $0x15c4] ss:$16 sps:$4 sm:$0xff]   ;;  %v8395_v51 = vld [vmem:[%s11224_s1 + $0x15cc] ss:$16 sps:$4 sm:$0xff]  }
 0x280   :  { %5355 = vmatprep.subr.bf16.mxu0 %v8308_v2  ;;  %5888 = vmatprep.subr.bf16.mxu1 %v8311_v3  ;;  %v8390_v2 = vld [vmem:[%s11224_s1 + $0x15c0] ss:$16 sps:$4 sm:$0xff]   ;;  %v8393_v3 = vld [vmem:[%s11224_s1 + $0x15c8] ss:$16 sps:$4 sm:$0xff]  }
 0x282   :  { %5347 = vmatmul.mubr.bf16.vlgmr.msra.gmra.mrb[0].mxu0 %v979_v60  ;;  %5880 = vmatmul.mubr.bf16.vlgmr.msra.gmra.mrb[0].mxu1 %v979_v60  ;;  %v8401_v60 = vld [vmem:[%s11224_s1 + $0x15ec] ss:$16 sps:$4 sm:$0xff]  }
 0x283   :  { %5356 = vmatpush1.bf16.msra.mxu0 %v8306_v5  ;;  %5889 = vmatpush1.bf16.msra.mxu1 %v8309_v6  ;;  %v8396_v5 = vld [vmem:[%s11224_s1 + $0x15e0] ss:$16 sps:$4 sm:$0xff]   ;;  %v8399_v6 = vld [vmem:[%s11224_s1 + $0x15e8] ss:$16 sps:$4 sm:$0xff]  }
 0x284   :  { %5357 = vmatprep.subr.bf16.mxu0 %v8314_v7  ;;  %5890 = vmatprep.subr.bf16.mxu1 %v8317_v62  ;;  %v8405_v7 = vld [vmem:[%s11224_s1 + $0x1604] ss:$16 sps:$4 sm:$0xff]   ;;  %v8408_v62 = vld [vmem:[%s11224_s1 + $0x160c] ss:$16 sps:$4 sm:$0xff]  }
 0x285   :  { %5387 = vmatprep.mubr.bf16.mxu0 %v10673_v8  ;;  %5920 = vmatprep.mubr.bf16.mxu1 %v10673_v8 }
 0x287   :  { %5358 = vmatpush1.bf16.msra.mxu0 %v8312_v9  ;;  %5891 = vmatpush1.bf16.msra.mxu1 %v8315_v10  ;;  %v10859_v9 = vrot.slane %v10642_v0, %v8749_v49  ;;  %v8403_v10 = vld [vmem:[%s11224_s1 + $0x1600] ss:$16 sps:$4 sm:$0xff]   ;;  %v8414_v0 = vld [vmem:[%s11224_s1 + $0x162c] ss:$16 sps:$4 sm:$0xff]  }
 0x288   :  { %5359 = vmatprep.subr.bf16.mxu0 %v8320_v11  ;;  %5892 = vmatprep.subr.bf16.mxu1 %v8323_v12  ;;  %v8406_v11 = vld [vmem:[%s11224_s1 + $0x1608] ss:$16 sps:$4 sm:$0xff]   ;;  %v8411_v12 = vld [vmem:[%s11224_s1 + $0x1624] ss:$16 sps:$4 sm:$0xff]  }
 0x28b   :  { %5360 = vmatpush1.bf16.msra.mxu0 %v8318_v52  ;;  %5893 = vmatpush1.bf16.msra.mxu1 %v8321_v15  ;;  %v982_v52 = vcombine.high %v10673_v8, %v10673_v8  ;;  %v8409_v15 = vld [vmem:[%s11224_s1 + $0x1620] ss:$16 sps:$4 sm:$0xff]   ;;  %v8417_v8 = vld [vmem:[%s11224_s1 + $0x1644] ss:$16 sps:$4 sm:$0xff]  }
 0x28c   :  { %5361 = vmatprep.subr.bf16.mxu0 %v8326_v16  ;;  %5894 = vmatprep.subr.bf16.mxu1 %v8329_v17  ;;  %v8412_v16 = vld [vmem:[%s11224_s1 + $0x1628] ss:$16 sps:$4 sm:$0xff]   ;;  %v8420_v17 = vld [vmem:[%s11224_s1 + $0x164c] ss:$16 sps:$4 sm:$0xff]  }
 0x28f   :  { %5362 = vmatpush1.bf16.msra.mxu0 %v8324_v18  ;;  %5895 = vmatpush1.bf16.msra.mxu1 %v8327_v19  ;;  %v8415_v18 = vld [vmem:[%s11224_s1 + $0x1640] ss:$16 sps:$4 sm:$0xff]   ;;  %v8418_v19 = vld [vmem:[%s11224_s1 + $0x1648] ss:$16 sps:$4 sm:$0xff]  }
 0x290   :  { %5363 = vmatprep.subr.bf16.mxu0 %v8332_v20  ;;  %5896 = vmatprep.subr.bf16.mxu1 %v8335_v22  ;;  %v8423_v20 = vld [vmem:[%s11224_s1 + $0x1664] ss:$16 sps:$4 sm:$0xff]   ;;  %v8426_v22 = vld [vmem:[%s11224_s1 + $0x166c] ss:$16 sps:$4 sm:$0xff]  }
 0x293   :  { %5364 = vmatpush1.bf16.msra.mxu0 %v8330_v23  ;;  %5897 = vmatpush1.bf16.msra.mxu1 %v8333_v24  ;;  %v8421_v23 = vld [vmem:[%s11224_s1 + $0x1660] ss:$16 sps:$4 sm:$0xff]   ;;  %v8424_v24 = vld [vmem:[%s11224_s1 + $0x1668] ss:$16 sps:$4 sm:$0xff]  }
 0x294   :  { %5365 = vmatprep.subr.bf16.mxu0 %v8338_v13  ;;  %5898 = vmatprep.subr.bf16.mxu1 %v8341_v27  ;;  %v8429_v13 = vld [vmem:[%s11224_s1 + $0x1684] ss:$16 sps:$4 sm:$0xff]   ;;  %v8432_v27 = vld [vmem:[%s11224_s1 + $0x168c] ss:$16 sps:$4 sm:$0xff]  }
 0x297   :  { %5366 = vmatpush1.bf16.msra.mxu0 %v8336_v28  ;;  %5899 = vmatpush1.bf16.msra.mxu1 %v8339_v29  ;;  %v8427_v28 = vld [vmem:[%s11224_s1 + $0x1680] ss:$16 sps:$4 sm:$0xff]   ;;  %v8430_v29 = vld [vmem:[%s11224_s1 + $0x1688] ss:$16 sps:$4 sm:$0xff]  }
 0x298   :  { %5367 = vmatprep.subr.bf16.mxu0 %v8344_v14  ;;  %5900 = vmatprep.subr.bf16.mxu1 %v8347_v30  ;;  %v8435_v14 = vld [vmem:[%s11224_s1 + $0x16a4] ss:$16 sps:$4 sm:$0xff]   ;;  %v8438_v30 = vld [vmem:[%s11224_s1 + $0x16ac] ss:$16 sps:$4 sm:$0xff]  }
 0x29b   :  { %5368 = vmatpush1.bf16.msra.mxu0 %v8342_v31  ;;  %5901 = vmatpush1.bf16.msra.mxu1 %v8345_v25  ;;  %v8433_v31 = vld [vmem:[%s11224_s1 + $0x16a0] ss:$16 sps:$4 sm:$0xff]   ;;  %v8436_v25 = vld [vmem:[%s11224_s1 + $0x16a8] ss:$16 sps:$4 sm:$0xff]  }
 0x29c   :  { %5369 = vmatprep.subr.bf16.mxu0 %v8350_v32  ;;  %5902 = vmatprep.subr.bf16.mxu1 %v8353_v33  ;;  %v8441_v32 = vld [vmem:[%s11224_s1 + $0x16c4] ss:$16 sps:$4 sm:$0xff]   ;;  %v8444_v33 = vld [vmem:[%s11224_s1 + $0x16cc] ss:$16 sps:$4 sm:$0xff]  }
 0x29f   :  { %5370 = vmatpush1.bf16.msra.mxu0 %v8348_v26  ;;  %5903 = vmatpush1.bf16.msra.mxu1 %v8351_v36  ;;  %v8439_v26 = vld [vmem:[%s11224_s1 + $0x16c0] ss:$16 sps:$4 sm:$0xff]   ;;  %v8442_v36 = vld [vmem:[%s11224_s1 + $0x16c8] ss:$16 sps:$4 sm:$0xff]  }
 0x2a0   :  { %5371 = vmatprep.subr.bf16.mxu0 %v8356_v37  ;;  %5904 = vmatprep.subr.bf16.mxu1 %v8359_v21  ;;  %v8447_v37 = vld [vmem:[%s11224_s1 + $0x16e4] ss:$16 sps:$4 sm:$0xff]   ;;  %v8450_v21 = vld [vmem:[%s11224_s1 + $0x16ec] ss:$16 sps:$4 sm:$0xff]  }
 0x2a3   :  { %5372 = vmatpush1.bf16.msra.mxu0 %v8354_v39  ;;  %5905 = vmatpush1.bf16.msra.mxu1 %v8357_v40  ;;  %v8445_v39 = vld [vmem:[%s11224_s1 + $0x16e0] ss:$16 sps:$4 sm:$0xff]   ;;  %v8448_v40 = vld [vmem:[%s11224_s1 + $0x16e8] ss:$16 sps:$4 sm:$0xff]  }
 0x2a4   :  { %5373 = vmatprep.subr.bf16.mxu0 %v8362_v41  ;;  %5906 = vmatprep.subr.bf16.mxu1 %v8365_v34  ;;  %v8453_v41 = vld [vmem:[%s11224_s1 + $0x1704] ss:$16 sps:$4 sm:$0xff]   ;;  %v8456_v34 = vld [vmem:[%s11224_s1 + $0x170c] ss:$16 sps:$4 sm:$0xff]  }
 0x2a7   :  { %5374 = vmatpush1.bf16.msra.mxu0 %v8360_v43  ;;  %5907 = vmatpush1.bf16.msra.mxu1 %v8363_v45  ;;  %v8451_v43 = vld [vmem:[%s11224_s1 + $0x1700] ss:$16 sps:$4 sm:$0xff]   ;;  %v8454_v45 = vld [vmem:[%s11224_s1 + $0x1708] ss:$16 sps:$4 sm:$0xff]  }
 0x2a8   :  { %5375 = vmatprep.subr.bf16.mxu0 %v8368_v46  ;;  %5908 = vmatprep.subr.bf16.mxu1 %v8371_v35  ;;  %v8459_v46 = vld [vmem:[%s11224_s1 + $0x1724] ss:$16 sps:$4 sm:$0xff]   ;;  %v8462_v35 = vld [vmem:[%s11224_s1 + $0x172c] ss:$16 sps:$4 sm:$0xff]  }
 0x2ab   :  { %5376 = vmatpush1.bf16.msra.mxu0 %v8366_v50  ;;  %5909 = vmatpush1.bf16.msra.mxu1 %v8369_v53  ;;  %v8457_v50 = vld [vmem:[%s11224_s1 + $0x1720] ss:$16 sps:$4 sm:$0xff]   ;;  %v8460_v53 = vld [vmem:[%s11224_s1 + $0x1728] ss:$16 sps:$4 sm:$0xff]  }
 0x2ac   :  { %5377 = vmatprep.subr.bf16.mxu0 %v8374_v38  ;;  %5910 = vmatprep.subr.bf16.mxu1 %v8377_v54  ;;  %v8465_v38 = vld [vmem:[%s11224_s1 + $0x1744] ss:$16 sps:$4 sm:$0xff]   ;;  %v8468_v54 = vld [vmem:[%s11224_s1 + $0x174c] ss:$16 sps:$4 sm:$0xff]  }
 0x2af   :  { %5378 = vmatpush1.bf16.msra.mxu0 %v8372_v55  ;;  %5911 = vmatpush1.bf16.msra.mxu1 %v8375_v56  ;;  %v8463_v55 = vld [vmem:[%s11224_s1 + $0x1740] ss:$16 sps:$4 sm:$0xff]   ;;  %v8466_v56 = vld [vmem:[%s11224_s1 + $0x1748] ss:$16 sps:$4 sm:$0xff]  }
 0x2b0   :  { %5379 = vmatprep.subr.bf16.mxu0 %v8380_v47  ;;  %5912 = vmatprep.subr.bf16.mxu1 %v8383_v57  ;;  %v8471_v47 = vld [vmem:[%s11224_s1 + $0x1764] ss:$16 sps:$4 sm:$0xff]   ;;  %v8474_v57 = vld [vmem:[%s11224_s1 + $0x176c] ss:$16 sps:$4 sm:$0xff]  }
 0x2b3   :  { %5380 = vmatpush1.bf16.msra.mxu0 %v8378_v58  ;;  %5913 = vmatpush1.bf16.msra.mxu1 %v8381_v59  ;;  %v8469_v58 = vld [vmem:[%s11224_s1 + $0x1760] ss:$16 sps:$4 sm:$0xff]   ;;  %v8472_v59 = vld [vmem:[%s11224_s1 + $0x1768] ss:$16 sps:$4 sm:$0xff]  }
 0x2b4   :  { %5381 = vmatprep.subr.bf16.mxu0 %v8386_v48  ;;  %5914 = vmatprep.subr.bf16.mxu1 %v8389_v61  ;;  %v8477_v48 = vld [vmem:[%s11224_s1 + $0x1784] ss:$16 sps:$4 sm:$0xff]   ;;  %v8480_v61 = vld [vmem:[%s11224_s1 + $0x178c] ss:$16 sps:$4 sm:$0xff]  }
 0x2b7   :  { %5382 = vmatpush1.bf16.msra.mxu0 %v8384_v63  ;;  %5915 = vmatpush1.bf16.msra.mxu1 %v8387_v44  ;;  %v8475_v63 = vld [vmem:[%s11224_s1 + $0x1780] ss:$16 sps:$4 sm:$0xff]   ;;  %v8478_v44 = vld [vmem:[%s11224_s1 + $0x1788] ss:$16 sps:$4 sm:$0xff]  }
 0x2b8   :  { %5383 = vmatprep.subr.bf16.mxu0 %v8392_v1  ;;  %5916 = vmatprep.subr.bf16.mxu1 %v8395_v51  ;;  %v8483_v1 = vld [vmem:[%s11224_s1 + $0x17a4] ss:$16 sps:$4 sm:$0xff]   ;;  %v8486_v51 = vld [vmem:[%s11224_s1 + $0x17ac] ss:$16 sps:$4 sm:$0xff]  }
 0x2bb   :  { %5384 = vmatpush1.bf16.msra.mxu0 %v8390_v2  ;;  %5917 = vmatpush1.bf16.msra.mxu1 %v8393_v3  ;;  %v8481_v2 = vld [vmem:[%s11224_s1 + $0x17a0] ss:$16 sps:$4 sm:$0xff]   ;;  %v8484_v3 = vld [vmem:[%s11224_s1 + $0x17a8] ss:$16 sps:$4 sm:$0xff]  }
 0x2bc   :  { %5385 = vmatprep.subr.bf16.mxu0 %v8398_v4  ;;  %5918 = vmatprep.subr.bf16.mxu1 %v8401_v60  ;;  %v8489_v4 = vld [vmem:[%s11224_s1 + $0x17c4] ss:$16 sps:$4 sm:$0xff]   ;;  %v8492_v60 = vld [vmem:[%s11224_s1 + $0x17cc] ss:$16 sps:$4 sm:$0xff]  }
 0x2bf   :  { %5386 = vmatpush1.bf16.msra.mxu0 %v8396_v5  ;;  %5919 = vmatpush1.bf16.msra.mxu1 %v8399_v6  ;;  %v8487_v5 = vld [vmem:[%s11224_s1 + $0x17c0] ss:$16 sps:$4 sm:$0xff]   ;;  %v8490_v6 = vld [vmem:[%s11224_s1 + $0x17c8] ss:$16 sps:$4 sm:$0xff]  }
 0x2c0   :  { %5396 = vmatprep.subr.bf16.mxu0 %v8405_v7  ;;  %5929 = vmatprep.subr.bf16.mxu1 %v8408_v62  ;;  %v8495_v7 = vld [vmem:[%s11224_s1 + $0x17e4] ss:$16 sps:$4 sm:$0xff]   ;;  %v8498_v62 = vld [vmem:[%s11224_s1 + $0x17ec] ss:$16 sps:$4 sm:$0xff]  }
 0x2c2   :  { %5388 = vmatmul.mubr.bf16.vlgmr.msra.gmra.mrb[0].mxu0 %v10859_v9  ;;  %5921 = vmatmul.mubr.bf16.vlgmr.msra.gmra.mrb[0].mxu1 %v10859_v9 }
 0x2c3   :  { %5397 = vmatpush1.bf16.msra.mxu0 %v8403_v10  ;;  %5930 = vmatpush1.bf16.msra.mxu1 %v8406_v11  ;;  %v8493_v10 = vld [vmem:[%s11224_s1 + $0x17e0] ss:$16 sps:$4 sm:$0xff]   ;;  %v8496_v11 = vld [vmem:[%s11224_s1 + $0x17e8] ss:$16 sps:$4 sm:$0xff]  }
 0x2c4   :  { %5398 = vmatprep.subr.bf16.mxu0 %v8411_v12  ;;  %5931 = vmatprep.subr.bf16.mxu1 %v8414_v0  ;;  %v8501_v12 = vld [vmem:[%s11224_s1 + $0x1804] ss:$16 sps:$4 sm:$0xff]   ;;  %v8504_v0 = vld [vmem:[%s11224_s1 + $0x180c] ss:$16 sps:$4 sm:$0xff]  }
 0x2c5   :  { %5428 = vmatprep.mubr.bf16.mxu0 %v982_v52  ;;  %5961 = vmatprep.mubr.bf16.mxu1 %v982_v52  ;;  %v980_v52 = vcombine.high %v10859_v9, %v10859_v9  ;;  %v8510_v9 = vld [vmem:[%s11224_s1 + $0x182c] ss:$16 sps:$4 sm:$0xff]  }
 0x2c7   :  { %5399 = vmatpush1.bf16.msra.mxu0 %v8409_v15  ;;  %5932 = vmatpush1.bf16.msra.mxu1 %v8412_v16  ;;  %v8499_v15 = vld [vmem:[%s11224_s1 + $0x1800] ss:$16 sps:$4 sm:$0xff]   ;;  %v8502_v16 = vld [vmem:[%s11224_s1 + $0x1808] ss:$16 sps:$4 sm:$0xff]  }
 0x2c8   :  { %5400 = vmatprep.subr.bf16.mxu0 %v8417_v8  ;;  %5933 = vmatprep.subr.bf16.mxu1 %v8420_v17  ;;  %v8507_v8 = vld [vmem:[%s11224_s1 + $0x1824] ss:$16 sps:$4 sm:$0xff]   ;;  %v8505_v17 = vld [vmem:[%s11224_s1 + $0x1820] ss:$16 sps:$4 sm:$0xff]  }
 0x2cb   :  { %5401 = vmatpush1.bf16.msra.mxu0 %v8415_v18  ;;  %5934 = vmatpush1.bf16.msra.mxu1 %v8418_v19  ;;  %v8508_v18 = vld [vmem:[%s11224_s1 + $0x1828] ss:$16 sps:$4 sm:$0xff]   ;;  %v8513_v19 = vld [vmem:[%s11224_s1 + $0x1844] ss:$16 sps:$4 sm:$0xff]  }
 0x2cc   :  { %5402 = vmatprep.subr.bf16.mxu0 %v8423_v20  ;;  %5935 = vmatprep.subr.bf16.mxu1 %v8426_v22  ;;  %v8516_v20 = vld [vmem:[%s11224_s1 + $0x184c] ss:$16 sps:$4 sm:$0xff]   ;;  %v8582_v22 = vmov 0  }
 0x2cf   :  { %5403 = vmatpush1.bf16.msra.mxu0 %v8421_v23  ;;  %5936 = vmatpush1.bf16.msra.mxu1 %v8424_v24  ;;  %v8511_v23 = vld [vmem:[%s11224_s1 + $0x1840] ss:$16 sps:$4 sm:$0xff]   ;;  %v8514_v24 = vld [vmem:[%s11224_s1 + $0x1848] ss:$16 sps:$4 sm:$0xff]  }
 0x2d0   :  { %5404 = vmatprep.subr.bf16.mxu0 %v8429_v13  ;;  %5937 = vmatprep.subr.bf16.mxu1 %v8432_v27  ;;  %v8519_v13 = vld [vmem:[%s11224_s1 + $0x1864] ss:$16 sps:$4 sm:$0xff]   ;;  %v8522_v27 = vld [vmem:[%s11224_s1 + $0x186c] ss:$16 sps:$4 sm:$0xff]  }
 0x2d3   :  { %5405 = vmatpush1.bf16.msra.mxu0 %v8427_v28  ;;  %5938 = vmatpush1.bf16.msra.mxu1 %v8430_v29  ;;  %v8517_v28 = vld [vmem:[%s11224_s1 + $0x1860] ss:$16 sps:$4 sm:$0xff]   ;;  %v8520_v29 = vld [vmem:[%s11224_s1 + $0x1868] ss:$16 sps:$4 sm:$0xff]  }
 0x2d4   :  { %5406 = vmatprep.subr.bf16.mxu0 %v8435_v14  ;;  %5939 = vmatprep.subr.bf16.mxu1 %v8438_v30  ;;  %v6377_v14 = vld.sshfl [vmem:[%s11223_s0 + $0x18] sm:$0x1 pattern:$0x75316420]  ;;  %v8523_v30 = vld [vmem:[%s11226_s3 + $0x40] sm:$0xff]  }
 0x2d7   :  { %5407 = vmatpush1.bf16.msra.mxu0 %v8433_v31  ;;  %5940 = vmatpush1.bf16.msra.mxu1 %v8436_v25  ;;  %v8524_v31 = vld [vmem:[%s11226_s3 + $0xc0] sm:$0xff]   ;;  %v996_v25 = vrot.slane %v6377_v14, %v8749_v49  ;;  %v8528_v49 = vld [vmem:[%s11226_s3 + $0xc8] sm:$0xff]  }
 0x2d8   :  { %5408 = vmatprep.subr.bf16.mxu0 %v8441_v32  ;;  %5941 = vmatprep.subr.bf16.mxu1 %v8444_v33  ;;  %v8525_v32 = vld [vmem:[%s11226_s3] sm:$0xff]  }
 0x2d9   :  { %v8526_v33 = vld [vmem:[%s11226_s3 + $0x80] sm:$0xff]  }
 0x2db   :  { %5409 = vmatpush1.bf16.msra.mxu0 %v8439_v26  ;;  %5942 = vmatpush1.bf16.msra.mxu1 %v8442_v36  ;;  %v8527_v26 = vld [vmem:[%s11226_s3 + $0x48] sm:$0xff]  }
 0x2dc   :  { %5410 = vmatprep.subr.bf16.mxu0 %v8447_v37  ;;  %5943 = vmatprep.subr.bf16.mxu1 %v8450_v21  ;;  %v8529_v36 = vld [vmem:[%s11226_s3 + $0x8] sm:$0xff]   ;;  %v8531_v21 = vld [vmem:[%s11226_s3 + $0x50] sm:$0xff]  }
 0x2dd   :  { %v8530_v37 = vld [vmem:[%s11226_s3 + $0x88] sm:$0xff]  }
 0x2df   :  { %5411 = vmatpush1.bf16.msra.mxu0 %v8445_v39  ;;  %5944 = vmatpush1.bf16.msra.mxu1 %v8448_v40  ;;  %v8532_v39 = vld [vmem:[%s11226_s3 + $0xd0] sm:$0xff]  }
 0x2e0   :  { %5412 = vmatprep.subr.bf16.mxu0 %v8453_v41  ;;  %5945 = vmatprep.subr.bf16.mxu1 %v8456_v34  ;;  %v8533_v40 = vld [vmem:[%s11226_s3 + $0x10] sm:$0xff]   ;;  %v8535_v34 = vld [vmem:[%s11226_s3 + $0x58] sm:$0xff]  }
 0x2e1   :  { %v8534_v41 = vld [vmem:[%s11226_s3 + $0x90] sm:$0xff]  }
 0x2e3   :  { %5413 = vmatpush1.bf16.msra.mxu0 %v8451_v43  ;;  %5946 = vmatpush1.bf16.msra.mxu1 %v8454_v45  ;;  %v8536_v43 = vld [vmem:[%s11226_s3 + $0xd8] sm:$0xff]  }
 0x2e4   :  { %5414 = vmatprep.subr.bf16.mxu0 %v8459_v46  ;;  %5947 = vmatprep.subr.bf16.mxu1 %v8462_v35  ;;  %v8537_v45 = vld [vmem:[%s11226_s3 + $0x18] sm:$0xff]   ;;  %v8539_v35 = vld [vmem:[%s11226_s3 + $0x60] sm:$0xff]  }
 0x2e5   :  { %v8538_v46 = vld [vmem:[%s11226_s3 + $0x98] sm:$0xff]  }
 0x2e7   :  { %5415 = vmatpush1.bf16.msra.mxu0 %v8457_v50  ;;  %5948 = vmatpush1.bf16.msra.mxu1 %v8460_v53  ;;  %v8540_v50 = vld [vmem:[%s11226_s3 + $0xe0] sm:$0xff]  }
 0x2e8   :  { %5416 = vmatprep.subr.bf16.mxu0 %v8465_v38  ;;  %5949 = vmatprep.subr.bf16.mxu1 %v8468_v54  ;;  %v8541_v53 = vld [vmem:[%s11226_s3 + $0x20] sm:$0xff]   ;;  %v8543_v54 = vld [vmem:[%s11226_s3 + $0x68] sm:$0xff]  }
 0x2e9   :  { %v8542_v38 = vld [vmem:[%s11226_s3 + $0xa0] sm:$0xff]  }
 0x2eb   :  { %5417 = vmatpush1.bf16.msra.mxu0 %v8463_v55  ;;  %5950 = vmatpush1.bf16.msra.mxu1 %v8466_v56  ;;  %v8544_v55 = vld [vmem:[%s11226_s3 + $0xe8] sm:$0xff]  }
 0x2ec   :  { %5418 = vmatprep.subr.bf16.mxu0 %v8471_v47  ;;  %5951 = vmatprep.subr.bf16.mxu1 %v8474_v57  ;;  %v8545_v56 = vld [vmem:[%s11226_s3 + $0x28] sm:$0xff]   ;;  %v8547_v57 = vld [vmem:[%s11226_s3 + $0x70] sm:$0xff]  }
 0x2ed   :  { %v8546_v47 = vld [vmem:[%s11226_s3 + $0xa8] sm:$0xff]  }
 0x2ef   :  { %5419 = vmatpush1.bf16.msra.mxu0 %v8469_v58  ;;  %5952 = vmatpush1.bf16.msra.mxu1 %v8472_v59  ;;  %v8548_v58 = vld [vmem:[%s11226_s3 + $0xf0] sm:$0xff]  }
 0x2f0   :  { %5420 = vmatprep.subr.bf16.mxu0 %v8477_v48  ;;  %5953 = vmatprep.subr.bf16.mxu1 %v8480_v61  ;;  %v8549_v59 = vld [vmem:[%s11226_s3 + $0x30] sm:$0xff]   ;;  %v8551_v61 = vld [vmem:[%s11226_s3 + $0x78] sm:$0xff]  }
 0x2f1   :  { %v8550_v48 = vld [vmem:[%s11226_s3 + $0xb0] sm:$0xff]  }
 0x2f3   :  { %5421 = vmatpush1.bf16.msra.mxu0 %v8475_v63  ;;  %5954 = vmatpush1.bf16.msra.mxu1 %v8478_v44  ;;  %v8552_v63 = vld [vmem:[%s11226_s3 + $0xf8] sm:$0xff]  }
 0x2f4   :  { %5422 = vmatprep.subr.bf16.mxu0 %v8483_v1  ;;  %5955 = vmatprep.subr.bf16.mxu1 %v8486_v51  ;;  %v8553_v44 = vld [vmem:[%s11226_s3 + $0x38] sm:$0xff]   ;;  %v814_v51 = vsub.s32 0, %v8731_v42 }
 0x2f5   :  { %v8554_v1 = vld [vmem:[%s11226_s3 + $0xb8] sm:$0xff]  }
 0x2f7   :  { %5423 = vmatpush1.bf16.msra.mxu0 %v8481_v2  ;;  %5956 = vmatpush1.bf16.msra.mxu1 %v8484_v3  ;;  %v822_v2 = vsub.s32 2, %v8731_v42  ;;  %v810_v3 = vld [vmem:[%s11225_s2] sm:$0xf] }
 0x2f8   :  { %5424 = vmatprep.subr.bf16.mxu0 %v8489_v4  ;;  %5957 = vmatprep.subr.bf16.mxu1 %v8492_v60  ;;  %v818_v4 = vsub.s32 1, %v8731_v42  ;;  %v826_v60 = vsub.s32 3, %v8731_v42 }
 0x2fb   :  { %5425 = vmatpush1.bf16.msra.mxu0 %v8487_v5  ;;  %5958 = vmatpush1.bf16.msra.mxu1 %v8490_v6  ;;  %v815_v5 = vrot.slane %v810_v3, %v814_v51  ;;  %v823_v6 = vrot.slane %v810_v3, %v822_v2 }
 0x2fc   :  { %5426 = vmatprep.subr.bf16.mxu0 %v8495_v7  ;;  %5959 = vmatprep.subr.bf16.mxu1 %v8498_v62  ;;  %v819_v7 = vrot.slane %v810_v3, %v818_v4  ;;  %v827_v62 = vrot.slane %v810_v3, %v826_v60 }
 0x2ff   :  { %5427 = vmatpush1.bf16.msra.mxu0 %v8493_v10  ;;  %5960 = vmatpush1.bf16.msra.mxu1 %v8496_v11 }
 0x300   :  { %5437 = vmatprep.subr.bf16.mxu0 %v8501_v12  ;;  %5970 = vmatprep.subr.bf16.mxu1 %v8504_v0 }
 0x302   :  { %5429 = vmatmul.mubr.bf16.vlgmr.msra.gmra.mrb[0].mxu0 %v980_v52  ;;  %5962 = vmatmul.mubr.bf16.vlgmr.msra.gmra.mrb[0].mxu1 %v980_v52 }
 0x303   :  { %5438 = vmatpush1.bf16.msra.mxu0 %v8499_v15  ;;  %5971 = vmatpush1.bf16.msra.mxu1 %v8502_v16 }
 0x304   :  { %5439 = vmatprep.subr.bf16.mxu0 %v8507_v8  ;;  %5972 = vmatprep.subr.bf16.mxu1 %v8510_v9 }
 0x305   :  { %5469 = vmatprep.mubr.bf16.mxu0 %v8582_v22  ;;  %6002 = vmatprep.mubr.bf16.mxu1 %v8582_v22 }
 0x307   :  { %5440 = vmatpush1.bf16.msra.mxu0 %v8505_v17  ;;  %5973 = vmatpush1.bf16.msra.mxu1 %v8508_v18 }
 0x308   :  { %5441 = vmatprep.subr.bf16.mxu0 %v8513_v19  ;;  %5974 = vmatprep.subr.bf16.mxu1 %v8516_v20 }
 0x30b   :  { %5442 = vmatpush1.bf16.msra.mxu0 %v8511_v23  ;;  %5975 = vmatpush1.bf16.msra.mxu1 %v8514_v24 }
 0x30c   :  { %5443 = vmatprep.subr.bf16.mxu0 %v8519_v13  ;;  %5976 = vmatprep.subr.bf16.mxu1 %v8522_v27 }
 0x30f   :  { %5444 = vmatpush1.bf16.msra.mxu0 %v8517_v28  ;;  %5977 = vmatpush1.bf16.msra.mxu1 %v8520_v29 }
 0x310   :  { %7197 = vmatprep.subr.bf16.mxu0 %v8523_v30  ;;  %7219 = vmatprep.subr.bf16.mxu1 %v8524_v31  ;;  %v7164_v30 = vld [vmem:[%s11227_s4] ss:$0 sm:$0xff] }
 0x312   :  { %7162 = vmatmul.mubr.msk.bf16.vlgmr.msra.gmra.mrb[0].mxu0 %vm4941_vm0, %v996_v25  ;;  %7163 = vmatmul.mubr.msk.bf16.vlgmr.msra.gmra.mrb[0].mxu1 %vm4941_vm0, %v996_v25 }
 0x313   :  { %7198 = vmatpush3.bf16.msra.mxu0 %v8525_v32  ;;  %7220 = vmatpush3.bf16.msra.mxu1 %v8526_v33 }
 0x314   :  { %7199 = vmatprep.subr.bf16.mxu0 %v8527_v26  ;;  %7221 = vmatprep.subr.bf16.mxu1 %v8528_v49 }
 0x317   :  { %7200 = vmatpush3.bf16.msra.mxu0 %v8529_v36  ;;  %7222 = vmatpush3.bf16.msra.mxu1 %v8530_v37 }
 0x318   :  { %7201 = vmatprep.subr.bf16.mxu0 %v8531_v21  ;;  %7223 = vmatprep.subr.bf16.mxu1 %v8532_v39 }
 0x31b   :  { %7202 = vmatpush3.bf16.msra.mxu0 %v8533_v40  ;;  %7224 = vmatpush3.bf16.msra.mxu1 %v8534_v41 }
 0x31c   :  { %7203 = vmatprep.subr.bf16.mxu0 %v8535_v34  ;;  %7225 = vmatprep.subr.bf16.mxu1 %v8536_v43 }
 0x31f   :  { %7204 = vmatpush3.bf16.msra.mxu0 %v8537_v45  ;;  %7226 = vmatpush3.bf16.msra.mxu1 %v8538_v46 }
 0x320   :  { %7205 = vmatprep.subr.bf16.mxu0 %v8539_v35  ;;  %7227 = vmatprep.subr.bf16.mxu1 %v8540_v50 }
 0x323   :  { %7206 = vmatpush3.bf16.msra.mxu0 %v8541_v53  ;;  %7228 = vmatpush3.bf16.msra.mxu1 %v8542_v38 }
 0x324   :  { %7207 = vmatprep.subr.bf16.mxu0 %v8543_v54  ;;  %7229 = vmatprep.subr.bf16.mxu1 %v8544_v55 }
 0x327   :  { %7208 = vmatpush3.bf16.msra.mxu0 %v8545_v56  ;;  %7230 = vmatpush3.bf16.msra.mxu1 %v8546_v47 }
 0x328   :  { %7209 = vmatprep.subr.bf16.mxu0 %v8547_v57  ;;  %7231 = vmatprep.subr.bf16.mxu1 %v8548_v58 }
 0x32b   :  { %7210 = vmatpush3.bf16.msra.mxu0 %v8549_v59  ;;  %7232 = vmatpush3.bf16.msra.mxu1 %v8550_v48 }
 0x32c   :  { %7211 = vmatprep.subr.bf16.mxu0 %v8551_v61  ;;  %7233 = vmatprep.subr.bf16.mxu1 %v8552_v63 }
 0x32f   :  { %7212 = vmatpush3.bf16.msra.mxu0 %v8553_v44  ;;  %7234 = vmatpush3.bf16.msra.mxu1 %v8554_v1 }
 0x3e5   :  { %v5471_v10 = vpop.f32.mrb[0].mxu0  ;;  %v6004_v11 = vpop.f32.mrb[0].mxu1 }
 0x3e6   :  { %v7241_v12 = vadd.f32 %v5471_v10, %v815_v5  ;;  %v7243_v0 = vadd.f32 %v6004_v11, %v823_v6  ;;  %v5473_v52 = vpop.f32.mrb[1].mxu0  ;;  %v6006_v15 = vpop.f32.mrb[1].mxu1 }
 0x3e7   :  { %v7242_v16 = vadd.f32 %v5473_v52, %v819_v7  ;;  %v7244_v8 = vadd.f32 %v6006_v15, %v827_v62  ;;  %v5475_v9 = vpop.f32.mrb[2].mxu0  ;;  %v6008_v17 = vpop.f32.mrb[2].mxu1 }
 0x3e8   :  { %v6011_v18 = vmax.f32 %v7241_v12, 0.0  ;;  %v6013_v19 = vmax.f32 %v7243_v0, 0.0  ;;  %v5476_v20 = vpop.f32.mrb[3].mxu0  ;;  %v6009_v22 = vpop.f32.mrb[3].mxu1 }
 0x3e9   :  { %v6012_v23 = vmax.f32 %v7242_v16, 0.0  ;;  %v6014_v42 = vmax.f32 %v7244_v8, 0.0 }
 0x3ea   :  { %v6015_v27 = vpack.c.bf16 %v6011_v18, %v6011_v18  ;;  %v6017_v28 = vpack.c.bf16 %v6013_v19, %v6013_v19 }
 0x3eb   :  { %v6016_v24 = vpack.c.bf16 %v6012_v23, %v6012_v23  ;;  %v6018_v13 = vpack.c.bf16 %v6014_v42, %v6014_v42 }
 0x3ed   :  { %6314 = vmatprep.mubr.bf16.mxu0 %v6016_v24  ;;  %6354 = vmatprep.mubr.bf16.mxu1 %v6018_v13 }
 0x3ee   :  { %6315 = vmatmul.mubr.bf16.vlgmr.msra.gmra.mrb[4].mxu0 %v6015_v27  ;;  %6355 = vmatmul.mubr.bf16.vlgmr.msra.gmra.mrb[4].mxu1 %v6017_v28 }
 0x4c1   :  { %v7213_v29 = vpop.f32.mrb[4].mxu0  ;;  %v7235_v14 = vpop.f32.mrb[4].mxu1 }
 0x4c2   :  { %v7214_v31 = vpop.f32.mrb[5].mxu0  ;;  %v7236_v25 = vpop.f32.mrb[5].mxu1 }
 0x4c3   :  { %v7215_v32 = vadd.f32 %v7214_v31, %v7213_v29  ;;  %v7237_v33 = vadd.f32 %v7236_v25, %v7235_v14  ;;  %v7216_v26 = vpop.f32.mrb[6].mxu0  ;;  %v7238_v49 = vpop.f32.mrb[6].mxu1 }
 0x4c4   :  { %v7217_v36 = vpop.f32.mrb[7].mxu0  ;;  %v7239_v37 = vpop.f32.mrb[7].mxu1 }
 0x4c5   :  { %v6317_v21 = vadd.f32 %v7215_v32, %v7164_v30 }
 0x4c7   :  { %v6357_v39 = vadd.f32 %v7237_v33, %v6317_v21 }
 0x4c9   :  { %6362 = vst [vmem:[#allocation2] sm:$0x3] %v6357_v39 }
 0x4ca   :  { %8568 = shalt.err (!%p8565_p4)
}
 0x4cb   :  { %s8569_s10 = scalar_lea.hbm %s11228_s5, 32 }
 0x4cc   :  { %p8570_p5 = scmp.ne.s32.totalorder %s11228_s5, %s8569_s10  ;;  %p8573_p6 = scmp.lt.u32.totalorder %s8569_s10, %s11228_s5 }
 0x4ce   :  { %p8575_p7 = pnand %p8573_p6, %p8570_p5 }
 0x4d0   :  { %8578 = shalt.err (!%p8575_p7)
}
 0x4d1   :  { %6372 = dma.vmem_to_hbm [thread:$0]  %s6370_s7, 32, %s11228_s5, [#allocation3]  }
 0x4d2   :  { %8579 = dma.done.wait [#allocation3], 32  }
 0x4d3   :  { %8580 = vsyncadd [#allocation3], 4294967264 }
 0x4d4   :  { %6376 = vsyncpa [#allocation3], 1 }

</bundles_post_ra>
